<compile_context>
chip_gen: v7x
topology: tpu7x:2x2x1
jax: 0.10.0
libtpu: 0.0.40
codegen_flags: <defaults>
</compile_context>

<pallas_src>
import math

import numpy as np
import jax
import jax.numpy as jnp
from jax.experimental import pallas as pl
from jax.experimental.pallas import tpu as pltpu

# ----------------------------- static config ------------------------------
B, N, T, C = 2, 4, 8, 32          # batch, nodes, time steps, embed_size
HEADS = 4
D = C // HEADS
GAT_LAYERS = 2
ROUTE_LAYERS = GAT_LAYERS + 1     # 3
FE = 2                            # forward_expansion
TIME_NUM = 16
RB = N * T                        # rows per batch sample, (n, t) row order
LN_EPS = 1e-5
BN_EPS = 1e-5
SCALE = 1.0 / math.sqrt(C)
NEG = -1e30


# --------------------------- constant structure ----------------------------

def _np_consts():
    idx = np.arange(RB)
    tvec = idx % T            # time index of each (n, t) row
    nvec = idx // T           # node index of each (n, t) row
    # additive masks: 0 inside the attention group, -1e30 outside
    mask_s = np.where(tvec[:, None] == tvec[None, :], 0.0, NEG).astype(np.float32)
    mask_t = np.where(nvec[:, None] == nvec[None, :], 0.0, NEG).astype(np.float32)
    eh = np.zeros((HEADS, C, D), np.float32)          # per-head column selectors
    for h in range(HEADS):
        eh[h, h * D:(h + 1) * D, :] = np.eye(D, dtype=np.float32)
    return dict(mask_s=mask_s, mask_t=mask_t, eh=eh)


_CONST = _np_consts()


def _mosaic_params(**kw):
    cp = getattr(pltpu, "CompilerParams", None) or getattr(pltpu, "TPUCompilerParams", None)
    return cp(**kw) if cp is not None else None


def _full_spec(x):
    nd = x.ndim
    shape = tuple(int(s) for s in x.shape)
    return pl.BlockSpec(shape, lambda b, _n=nd: (0,) * _n)


# ------------------------------ kernel helpers ------------------------------

def _ln(x, g, b):
    mu = jnp.mean(x, axis=-1, keepdims=True)
    var = jnp.mean((x - mu) ** 2, axis=-1, keepdims=True)
    return (x - mu) * jax.lax.rsqrt(var + LN_EPS) * g + b


def _attn_probs(qh, kh, mask_add):
    # scores[q_row, k_row] with additive group mask; softmax over the *query* axis
    s = jax.lax.dot_general(qh, kh, (((1,), (1,)), ((), ())),
                            preferred_element_type=jnp.float32) * SCALE + mask_add
    s = s - jnp.max(s, axis=0, keepdims=True)
    e = jnp.exp(s)
    return e * pl.reciprocal(jnp.sum(e, axis=0, keepdims=True), approx=True)


# ------------------------------- fused kernel -------------------------------

def _fused_kernel(
    alpha_ref,                                   # (3, ROUTE_LAYERS) in SMEM
    q_ref, k_ref, v_ref,                         # (1, RB, C) batch blocks
    dsr_ref, ter_ref, masks_ref, maskt_ref,      # row embeddings + additive masks
    wq_ref, wk_ref, wvfc_ref, sfcb_ref,          # spatial attention
    sn1g_ref, sn1b_ref, sff1w_ref, sff1b_ref, sff2w_ref, sff2b_ref,
    sn2g_ref, sn2b_ref,
    fsw_ref, fsb_ref, fgw_ref, fgb_ref,
    mix_ref, rmix_ref, wg1_ref, bg1_ref, wg2_ref, bg2_ref,
    kmix_ref, pw2_ref, b2_ref,
    bn1g_ref, bn1b_ref, lfw_ref, lfb_ref,
    wkt_ref, bkt_ref, wkfc_ref, bkfc_ref, tfcb_ref,
    tn1g_ref, tn1b_ref, tff1w_ref, tff1b_ref, tff2w_ref, tff2b_ref,
    tn2g_ref, tn2b_ref,
    bn2g_ref, bn2b_ref, lsw_ref, lsb_ref,
    out_ref,
):
    f32 = jnp.float32
    q = q_ref[0]
    ds = dsr_ref[...]
    mask_s = masks_ref[...]

    # ---- shared spatial-transformer trunk (identical for the 3 branches) ----
    xq = q + ds
    xk = k_ref[0] + ds
    xv = v_ref[0] + ds
    qf = jnp.dot(xq, wq_ref[...], preferred_element_type=f32)
    kf = jnp.dot(xk, wk_ref[...], preferred_element_type=f32)
    attn = jnp.zeros((RB, C), f32) + sfcb_ref[...]
    for h in range(HEADS):
        a = _attn_probs(qf[:, h * D:(h + 1) * D], kf[:, h * D:(h + 1) * D], mask_s)
        vfc = jnp.dot(xv, wvfc_ref[h], preferred_element_type=f32)   # fc folded into V
        attn = attn + jnp.dot(a, vfc, preferred_element_type=f32)
    m_s = _ln(attn + xq, sn1g_ref[...], sn1b_ref[...])
    ff = jnp.maximum(jnp.dot(m_s, sff1w_ref[...], preferred_element_type=f32)
                     + sff1b_ref[...], 0.0)
    ff = jnp.dot(ff, sff2w_ref[...], preferred_element_type=f32) + sff2b_ref[...]
    u_s = _ln(ff + m_s, sn2g_ref[...], sn2b_ref[...])
    fs_u = jnp.dot(u_s, fsw_ref[...], preferred_element_type=f32) + fsb_ref[...]

    # ---- per-adjacency GAT stand-in + fs/fg gating (3 branches unrolled) ----
    gated = []
    for j in range(3):
        mix = mix_ref[j]
        rmix = rmix_ref[j]

        def gat_rev(x):
            # time-reversed GAT stand-in: Rev @ (A @ relu((A @ x) W1 + b1)) W2 + b2
            h1 = jnp.dot(mix, x, preferred_element_type=f32)
            h1 = jnp.maximum(jnp.dot(h1, wg1_ref[...], preferred_element_type=f32)
                             + bg1_ref[...], 0.0)
            h1 = jnp.dot(rmix, h1, preferred_element_type=f32)
            return jnp.dot(h1, wg2_ref[...], preferred_element_type=f32) + bg2_ref[...]

        y1 = gat_rev(q)
        s1 = jax.nn.sigmoid(y1)
        y2 = gat_rev(s1)
        branch = []
        for xg in (s1, y1, jax.nn.sigmoid(y2)):       # only the consumed X_G entries
            fg_x = jnp.dot(xg, fgw_ref[...], preferred_element_type=f32) + fgb_ref[...]
            g = jax.nn.sigmoid(fs_u + fg_x)
            branch.append(g * u_s + (1.0 - g) * xg)
        gated.append(branch)

    # ---- route/fusion loop: gate_conv_beta + weighted softmax fusion ----
    kmix = kmix_ref[...]
    pw2 = pw2_ref[...]
    b2 = b2_ref[...]
    out1 = gated[0][0] + gated[1][0] + gated[2][0]
    for i in range(ROUTE_LAYERS):
        # gate_conv_beta(out1): 1x1 node conv (BN folded) + ReLU + avg-pool + 1x1 conv,
        # expressed with the Kronecker-folded matrices kmix / poolw2; gate_ac = Tanh->ReLU.
        z = jnp.maximum(jnp.dot(kmix, out1, preferred_element_type=f32), 0.0)
        vsum = jnp.dot(pw2, z, preferred_element_type=f32)                       # (3, C)
        ww = jnp.maximum(jnp.tanh(jnp.sum(vsum, axis=1, keepdims=True) + b2), 0.0)  # (3,1)
        acc = out1
        for jbr in range(3):
            xg = gated[jbr][i]
            zf = alpha_ref[jbr, i] * xg
            zf = zf - jnp.max(zf, axis=-1, keepdims=True)
            e = jnp.exp(zf)
            sm = e * pl.reciprocal(jnp.sum(e, axis=-1, keepdims=True), approx=True)
            acc = acc + ww[jbr:jbr + 1, 0:1] * sm + xg
        out1 = acc

    # out1 = liner_first(norm1(dropout(norm1(sigmoid(out1)))) + query)
    t1 = _ln(jax.nn.sigmoid(out1), bn1g_ref[...], bn1b_ref[...])
    t2 = _ln(t1, bn1g_ref[...], bn1b_ref[...])
    out1f = jnp.dot(t2 + q, lfw_ref[...], preferred_element_type=f32) + lfb_ref[...]

    # ---- temporal transformer + liner_second + final sigmoid gate ----
    xt = q + ter_ref[...]
    mask_t = maskt_ref[...]
    kft = jnp.dot(xt, wkt_ref[...], preferred_element_type=f32) + bkt_ref[...]
    attn_t = jnp.zeros((RB, C), f32) + tfcb_ref[...]
    for h in range(HEADS):
        kh = kft[:, h * D:(h + 1) * D]
        a = _attn_probs(kh, kh, mask_t)               # q = k = v = keys(x)
        vfc = jnp.dot(xt, wkfc_ref[h], preferred_element_type=f32) + bkfc_ref[h]
        attn_t = attn_t + jnp.dot(a, vfc, preferred_element_type=f32)
    m_t = _ln(attn_t + xt, tn1g_ref[...], tn1b_ref[...])
    fft = jnp.maximum(jnp.dot(m_t, tff1w_ref[...], preferred_element_type=f32)
                      + tff1b_ref[...], 0.0)
    fft = jnp.dot(fft, tff2w_ref[...], preferred_element_type=f32) + tff2b_ref[...]
    u_t = _ln(m_t + fft, tn2g_ref[...], tn2b_ref[...])
    tt_out = u_t + xt + m_t
    out2 = jnp.dot(_ln(tt_out + q, bn2g_ref[...], bn2b_ref[...]), lsw_ref[...],
                   preferred_element_type=f32) + lsb_ref[...]

    out_ref[0] = jax.nn.sigmoid(out1f) * out1f + jax.nn.sigmoid(out2) * out2


# --------------------------- derived parameters ----------------------------

def _derive(params):
    st, tt, gate = params["st"], params["tt"], params["gate"]
    eh = jnp.asarray(_CONST["eh"])                    # (H, C, D)
    eye_h = jnp.eye(HEADS, dtype=jnp.float32)
    eye_t = jnp.eye(T, dtype=jnp.float32)
    rev_t = eye_t[::-1]

    d = {}
    # spatial attention: block-diagonal full-width Q/K, fc folded into per-head V
    fc_wh = st["attn"]["fc_w"].reshape(HEADS, D, C)
    d["wq_bd"] = jnp.kron(eye_h, st["attn"]["Wq"])
    d["wk_bd"] = jnp.kron(eye_h, st["attn"]["Wk"])
    wv_ph = jnp.einsum("hcd,de->hce", eh, st["attn"]["Wv"])
    d["wvfc"] = jnp.einsum("hcd,hde->hce", wv_ph, fc_wh)              # (H, C, C)

    # temporal attention (q = k = v = keys(x)), fc folded into per-head V
    fc_wh_t = tt["attn"]["fc_w"].reshape(HEADS, D, C)
    d["wk_bd_t"] = jnp.kron(eye_h, tt["attn"]["Wk"])
    d["bk_tile"] = jnp.tile(tt["attn"]["bk"], HEADS).reshape(1, C)
    wk_ph_t = jnp.einsum("hcd,de->hce", eh, tt["attn"]["Wk"])
    d["wkfc_t"] = jnp.einsum("hcd,hde->hce", wk_ph_t, fc_wh_t)        # (H, C, C)
    d["bkfc_t"] = jnp.einsum("d,hdc->hc", tt["attn"]["bk"], fc_wh_t).reshape(HEADS, 1, C)

    # per-row positional embeddings in (n, t) row order (same for every batch)
    d_s = jnp.dot(st["D_S"], st["embed_w"]) + st["embed_b"]           # (N, C)
    d["ds_rows"] = jnp.repeat(d_s, T, axis=0)                         # (RB, C)
    d["temb_rows"] = jnp.tile(tt["temb"][:T], (N, 1))                 # (RB, C)

    # GAT stand-in mixing matrices (per-batch, (n, t) rows): kron(A_norm, I_T) and its
    # time-reversed form kron(A_norm, J_T)
    mixes, rmixes = [], []
    for a in (st["adj"], st["corr"], st["dist"]):
        an = a + jnp.eye(N, dtype=a.dtype)
        an = an / jnp.sum(an, axis=-1, keepdims=True)
        mixes.append(jnp.kron(an, eye_t))
        rmixes.append(jnp.kron(an, rev_t))
    d["mix"] = jnp.stack(mixes)
    d["rmix"] = jnp.stack(rmixes)

    # gate_conv_beta fold: z = kmix @ out1 ; ww_pre = rowsum(poolw2 @ relu(z)) + b2
    bn_scale = np.float32(1.0 / np.sqrt(1.0 + BN_EPS))
    w1f = (gate["conv1_w"] * bn_scale).T                              # (32, N)
    d["kmix"] = jnp.kron(w1f, eye_t)                                  # (32*T, RB)
    d["poolw2"] = jnp.kron(gate["conv2_w"].T,
                           jnp.ones((1, T), jnp.float32) / (T * C))   # (3, 32*T)
    return d


# ----------------------------- block forward ------------------------------

def stgnsnet_block_forward(params, query, key, value):
    st, tt, gate = params["st"], params["tt"], params["gate"]
    der = _derive(params)
    r1 = lambda v: v.reshape(1, -1)
    f32 = jnp.float32

    # single (b, n, t) row ordering throughout: plain reshapes, no transposes
    q = query.reshape(B, RB, C)
    k = key.reshape(B, RB, C)
    v = value.reshape(B, RB, C)

    batch_spec = pl.BlockSpec((1, RB, C), lambda b: (b, 0, 0))
    smem_spec = pl.BlockSpec(memory_space=pltpu.MemorySpace.SMEM)

    operands = [
        (params["if_fusion"], smem_spec),
        (q, batch_spec), (k, batch_spec), (v, batch_spec),
        der["ds_rows"], der["temb_rows"],
        jnp.asarray(_CONST["mask_s"]), jnp.asarray(_CONST["mask_t"]),
        der["wq_bd"], der["wk_bd"], der["wvfc"], r1(st["attn"]["fc_b"]),
        r1(st["n1_g"]), r1(st["n1_b"]),
        st["ff1_w"], r1(st["ff1_b"]), st["ff2_w"], r1(st["ff2_b"]),
        r1(st["n2_g"]), r1(st["n2_b"]),
        st["fs_w"], r1(st["fs_b"]), st["fg_w"], r1(st["fg_b"]),
        der["mix"], der["rmix"],
        st["gat"]["Wg1"], r1(st["gat"]["bg1"]), st["gat"]["Wg2"], r1(st["gat"]["bg2"]),
        der["kmix"], der["poolw2"], gate["conv2_b"].reshape(3, 1),
        r1(params["n1_g"]), r1(params["n1_b"]), params["lf_w"], r1(params["lf_b"]),
        der["wk_bd_t"], der["bk_tile"], der["wkfc_t"], der["bkfc_t"], r1(tt["attn"]["fc_b"]),
        r1(tt["n1_g"]), r1(tt["n1_b"]),
        tt["ff1_w"], r1(tt["ff1_b"]), tt["ff2_w"], r1(tt["ff2_b"]),
        r1(tt["n2_g"]), r1(tt["n2_b"]),
        r1(params["n2_g"]), r1(params["n2_b"]), params["ls_w"], r1(params["ls_b"]),
    ]

    arrays, in_specs = [], []
    for item in operands:
        if isinstance(item, tuple):
            a, s = item
        else:
            a, s = item, None
        a = jnp.asarray(a, f32)
        arrays.append(a)
        in_specs.append(s if s is not None else _full_spec(a))

    out = pl.pallas_call(
        _fused_kernel,
        out_shape=jax.ShapeDtypeStruct((B, RB, C), f32),
        grid=(B,),
        in_specs=in_specs,
        out_specs=pl.BlockSpec((1, RB, C), lambda b: (b, 0, 0)),
        compiler_params=_mosaic_params(dimension_semantics=("parallel",)),
    )(*arrays)
    return out.reshape(B, N, T, C)


# ----------------------------- parameter init -----------------------------

def init_params(key):
    ks = iter(jax.random.split(key, 64))

    def w(shape, scale=0.1):
        return (scale * jax.random.normal(next(ks), shape)).astype(jnp.float32)

    adj = jax.random.bernoulli(next(ks), 0.5, (N, N)).astype(jnp.float32)
    corr = jax.random.bernoulli(next(ks), 0.5, (N, N)).astype(jnp.float32)
    dist = jax.random.bernoulli(next(ks), 0.5, (N, N)).astype(jnp.float32)

    st = dict(
        adj=adj, corr=corr, dist=dist, D_S=adj,
        embed_w=w((N, C)), embed_b=w((C,)),
        attn=dict(Wq=w((D, D)), Wk=w((D, D)), Wv=w((D, D)),
                  fc_w=w((C, C)), fc_b=w((C,))),
        n1_g=jnp.ones((C,), jnp.float32), n1_b=jnp.zeros((C,), jnp.float32),
        n2_g=jnp.ones((C,), jnp.float32), n2_b=jnp.zeros((C,), jnp.float32),
        ff1_w=w((C, FE * C)), ff1_b=w((FE * C,)),
        ff2_w=w((FE * C, C)), ff2_b=w((C,)),
        gat=dict(Wg1=w((C, 2 * C)), bg1=w((2 * C,)),
                 Wg2=w((2 * C, C)), bg2=w((C,))),
        fs_w=w((C, C)), fs_b=w((C,)),
        fg_w=w((C, C)), fg_b=w((C,)),
    )
    tt = dict(
        temb=w((TIME_NUM, C)),
        attn=dict(Wk=w((D, D)), bk=w((D,)), fc_w=w((C, C)), fc_b=w((C,))),
        n1_g=jnp.ones((C,), jnp.float32), n1_b=jnp.zeros((C,), jnp.float32),
        n2_g=jnp.ones((C,), jnp.float32), n2_b=jnp.zeros((C,), jnp.float32),
        ff1_w=w((C, FE * C)), ff1_b=w((FE * C,)),
        ff2_w=w((FE * C, C)), ff2_b=w((C,)),
    )
    params = dict(
        st=st, tt=tt,
        n1_g=jnp.ones((C,), jnp.float32), n1_b=jnp.zeros((C,), jnp.float32),
        n2_g=jnp.ones((C,), jnp.float32), n2_b=jnp.zeros((C,), jnp.float32),
        lf_w=w((C, C)), lf_b=w((C,)),
        ls_w=w((C, C)), ls_b=w((C,)),
        if_fusion=jax.random.bernoulli(next(ks), 0.5,
                                       (3, ROUTE_LAYERS)).astype(jnp.float32),
        gate=dict(conv1_w=w((N, 32)), conv2_w=w((32, 3)), conv2_b=w((3,))),
    )
    return params


# --------------------------------- main ------------------------------------

if __name__ == "__main__":
    root = jax.random.PRNGKey(0)
    kq, kk, kv, kp = jax.random.split(root, 4)
    query = jax.random.normal(kq, (B, N, T, C), jnp.float32)
    key_in = jax.random.normal(kk, (B, N, T, C), jnp.float32)
    value = jax.random.normal(kv, (B, N, T, C), jnp.float32)
    params = init_params(kp)

    fwd = jax.jit(stgnsnet_block_forward)
    out = jax.block_until_ready(fwd(params, query, key_in, value))

    assert out.shape == (B, N, T, C), out.shape
    assert bool(jnp.all(jnp.isfinite(out)))
    print("KERNEL_OK")
</pallas_src>

<mosaic_0001>
module attributes {stable_mosaic.version = 11 : i64} {
  func.func @_fused_kernel(%arg0: i32, %arg1: memref<3x3xf32, #tpu.memory_space<smem>>, %arg2: memref<1x32x32xf32, #tpu.memory_space<vmem>>, %arg3: memref<1x32x32xf32, #tpu.memory_space<vmem>>, %arg4: memref<1x32x32xf32, #tpu.memory_space<vmem>>, %arg5: memref<32x32xf32, #tpu.memory_space<vmem>>, %arg6: memref<32x32xf32, #tpu.memory_space<vmem>>, %arg7: memref<32x32xf32, #tpu.memory_space<vmem>>, %arg8: memref<32x32xf32, #tpu.memory_space<vmem>>, %arg9: memref<32x32xf32, #tpu.memory_space<vmem>>, %arg10: memref<32x32xf32, #tpu.memory_space<vmem>>, %arg11: memref<4x32x32xf32, #tpu.memory_space<vmem>>, %arg12: memref<1x32xf32, #tpu.memory_space<vmem>>, %arg13: memref<1x32xf32, #tpu.memory_space<vmem>>, %arg14: memref<1x32xf32, #tpu.memory_space<vmem>>, %arg15: memref<32x64xf32, #tpu.memory_space<vmem>>, %arg16: memref<1x64xf32, #tpu.memory_space<vmem>>, %arg17: memref<64x32xf32, #tpu.memory_space<vmem>>, %arg18: memref<1x32xf32, #tpu.memory_space<vmem>>, %arg19: memref<1x32xf32, #tpu.memory_space<vmem>>, %arg20: memref<1x32xf32, #tpu.memory_space<vmem>>, %arg21: memref<32x32xf32, #tpu.memory_space<vmem>>, %arg22: memref<1x32xf32, #tpu.memory_space<vmem>>, %arg23: memref<32x32xf32, #tpu.memory_space<vmem>>, %arg24: memref<1x32xf32, #tpu.memory_space<vmem>>, %arg25: memref<3x32x32xf32, #tpu.memory_space<vmem>>, %arg26: memref<3x32x32xf32, #tpu.memory_space<vmem>>, %arg27: memref<32x64xf32, #tpu.memory_space<vmem>>, %arg28: memref<1x64xf32, #tpu.memory_space<vmem>>, %arg29: memref<64x32xf32, #tpu.memory_space<vmem>>, %arg30: memref<1x32xf32, #tpu.memory_space<vmem>>, %arg31: memref<256x32xf32, #tpu.memory_space<vmem>>, %arg32: memref<3x256xf32, #tpu.memory_space<vmem>>, %arg33: memref<3x1xf32, #tpu.memory_space<vmem>>, %arg34: memref<1x32xf32, #tpu.memory_space<vmem>>, %arg35: memref<1x32xf32, #tpu.memory_space<vmem>>, %arg36: memref<32x32xf32, #tpu.memory_space<vmem>>, %arg37: memref<1x32xf32, #tpu.memory_space<vmem>>, %arg38: memref<32x32xf32, #tpu.memory_space<vmem>>, %arg39: memref<1x32xf32, #tpu.memory_space<vmem>>, %arg40: memref<4x32x32xf32, #tpu.memory_space<vmem>>, %arg41: memref<4x1x32xf32, #tpu.memory_space<vmem>>, %arg42: memref<1x32xf32, #tpu.memory_space<vmem>>, %arg43: memref<1x32xf32, #tpu.memory_space<vmem>>, %arg44: memref<1x32xf32, #tpu.memory_space<vmem>>, %arg45: memref<32x64xf32, #tpu.memory_space<vmem>>, %arg46: memref<1x64xf32, #tpu.memory_space<vmem>>, %arg47: memref<64x32xf32, #tpu.memory_space<vmem>>, %arg48: memref<1x32xf32, #tpu.memory_space<vmem>>, %arg49: memref<1x32xf32, #tpu.memory_space<vmem>>, %arg50: memref<1x32xf32, #tpu.memory_space<vmem>>, %arg51: memref<1x32xf32, #tpu.memory_space<vmem>>, %arg52: memref<1x32xf32, #tpu.memory_space<vmem>>, %arg53: memref<32x32xf32, #tpu.memory_space<vmem>>, %arg54: memref<1x32xf32, #tpu.memory_space<vmem>>, %arg55: memref<1x32x32xf32, #tpu.memory_space<vmem>>) attributes {dimension_semantics = [#tpu.dimension_semantics<parallel>], iteration_bounds = array<i64: 2>, scalar_prefetch = 0 : i64, scratch_operands = 0 : i64, tpu.core_type = #tpu.core_type<tc>, window_params = [{transform_indices = @transform_0, window_bounds = array<i64: 3, 3>}, {transform_indices = @transform_1, window_bounds = array<i64: 1, 32, 32>}, {transform_indices = @transform_2, window_bounds = array<i64: 1, 32, 32>}, {transform_indices = @transform_3, window_bounds = array<i64: 1, 32, 32>}, {pipeline_mode = #tpu.pipeline_mode<synchronous>, transform_indices = @transform_4, window_bounds = array<i64: 32, 32>}, {pipeline_mode = #tpu.pipeline_mode<synchronous>, transform_indices = @transform_5, window_bounds = array<i64: 32, 32>}, {pipeline_mode = #tpu.pipeline_mode<synchronous>, transform_indices = @transform_6, window_bounds = array<i64: 32, 32>}, {pipeline_mode = #tpu.pipeline_mode<synchronous>, transform_indices = @transform_7, window_bounds = array<i64: 32, 32>}, {pipeline_mode = #tpu.pipeline_mode<synchronous>, transform_indices = @transform_8, window_bounds = array<i64: 32, 32>}, {pipeline_mode = #tpu.pipeline_mode<synchronous>, transform_indices = @transform_9, window_bounds = array<i64: 32, 32>}, {pipeline_mode = #tpu.pipeline_mode<synchronous>, transform_indices = @transform_10, window_bounds = array<i64: 4, 32, 32>}, {pipeline_mode = #tpu.pipeline_mode<synchronous>, transform_indices = @transform_11, window_bounds = array<i64: 1, 32>}, {pipeline_mode = #tpu.pipeline_mode<synchronous>, transform_indices = @transform_12, window_bounds = array<i64: 1, 32>}, {pipeline_mode = #tpu.pipeline_mode<synchronous>, transform_indices = @transform_13, window_bounds = array<i64: 1, 32>}, {pipeline_mode = #tpu.pipeline_mode<synchronous>, transform_indices = @transform_14, window_bounds = array<i64: 32, 64>}, {pipeline_mode = #tpu.pipeline_mode<synchronous>, transform_indices = @transform_15, window_bounds = array<i64: 1, 64>}, {pipeline_mode = #tpu.pipeline_mode<synchronous>, transform_indices = @transform_16, window_bounds = array<i64: 64, 32>}, {pipeline_mode = #tpu.pipeline_mode<synchronous>, transform_indices = @transform_17, window_bounds = array<i64: 1, 32>}, {pipeline_mode = #tpu.pipeline_mode<synchronous>, transform_indices = @transform_18, window_bounds = array<i64: 1, 32>}, {pipeline_mode = #tpu.pipeline_mode<synchronous>, transform_indices = @transform_19, window_bounds = array<i64: 1, 32>}, {pipeline_mode = #tpu.pipeline_mode<synchronous>, transform_indices = @transform_20, window_bounds = array<i64: 32, 32>}, {pipeline_mode = #tpu.pipeline_mode<synchronous>, transform_indices = @transform_21, window_bounds = array<i64: 1, 32>}, {pipeline_mode = #tpu.pipeline_mode<synchronous>, transform_indices = @transform_22, window_bounds = array<i64: 32, 32>}, {pipeline_mode = #tpu.pipeline_mode<synchronous>, transform_indices = @transform_23, window_bounds = array<i64: 1, 32>}, {pipeline_mode = #tpu.pipeline_mode<synchronous>, transform_indices = @transform_24, window_bounds = array<i64: 3, 32, 32>}, {pipeline_mode = #tpu.pipeline_mode<synchronous>, transform_indices = @transform_25, window_bounds = array<i64: 3, 32, 32>}, {pipeline_mode = #tpu.pipeline_mode<synchronous>, transform_indices = @transform_26, window_bounds = array<i64: 32, 64>}, {pipeline_mode = #tpu.pipeline_mode<synchronous>, transform_indices = @transform_27, window_bounds = array<i64: 1, 64>}, {pipeline_mode = #tpu.pipeline_mode<synchronous>, transform_indices = @transform_28, window_bounds = array<i64: 64, 32>}, {pipeline_mode = #tpu.pipeline_mode<synchronous>, transform_indices = @transform_29, window_bounds = array<i64: 1, 32>}, {pipeline_mode = #tpu.pipeline_mode<synchronous>, transform_indices = @transform_30, window_bounds = array<i64: 256, 32>}, {pipeline_mode = #tpu.pipeline_mode<synchronous>, transform_indices = @transform_31, window_bounds = array<i64: 3, 256>}, {pipeline_mode = #tpu.pipeline_mode<synchronous>, transform_indices = @transform_32, window_bounds = array<i64: 3, 1>}, {pipeline_mode = #tpu.pipeline_mode<synchronous>, transform_indices = @transform_33, window_bounds = array<i64: 1, 32>}, {pipeline_mode = #tpu.pipeline_mode<synchronous>, transform_indices = @transform_34, window_bounds = array<i64: 1, 32>}, {pipeline_mode = #tpu.pipeline_mode<synchronous>, transform_indices = @transform_35, window_bounds = array<i64: 32, 32>}, {pipeline_mode = #tpu.pipeline_mode<synchronous>, transform_indices = @transform_36, window_bounds = array<i64: 1, 32>}, {pipeline_mode = #tpu.pipeline_mode<synchronous>, transform_indices = @transform_37, window_bounds = array<i64: 32, 32>}, {pipeline_mode = #tpu.pipeline_mode<synchronous>, transform_indices = @transform_38, window_bounds = array<i64: 1, 32>}, {pipeline_mode = #tpu.pipeline_mode<synchronous>, transform_indices = @transform_39, window_bounds = array<i64: 4, 32, 32>}, {pipeline_mode = #tpu.pipeline_mode<synchronous>, transform_indices = @transform_40, window_bounds = array<i64: 4, 1, 32>}, {pipeline_mode = #tpu.pipeline_mode<synchronous>, transform_indices = @transform_41, window_bounds = array<i64: 1, 32>}, {pipeline_mode = #tpu.pipeline_mode<synchronous>, transform_indices = @transform_42, window_bounds = array<i64: 1, 32>}, {pipeline_mode = #tpu.pipeline_mode<synchronous>, transform_indices = @transform_43, window_bounds = array<i64: 1, 32>}, {pipeline_mode = #tpu.pipeline_mode<synchronous>, transform_indices = @transform_44, window_bounds = array<i64: 32, 64>}, {pipeline_mode = #tpu.pipeline_mode<synchronous>, transform_indices = @transform_45, window_bounds = array<i64: 1, 64>}, {pipeline_mode = #tpu.pipeline_mode<synchronous>, transform_indices = @transform_46, window_bounds = array<i64: 64, 32>}, {pipeline_mode = #tpu.pipeline_mode<synchronous>, transform_indices = @transform_47, window_bounds = array<i64: 1, 32>}, {pipeline_mode = #tpu.pipeline_mode<synchronous>, transform_indices = @transform_48, window_bounds = array<i64: 1, 32>}, {pipeline_mode = #tpu.pipeline_mode<synchronous>, transform_indices = @transform_49, window_bounds = array<i64: 1, 32>}, {pipeline_mode = #tpu.pipeline_mode<synchronous>, transform_indices = @transform_50, window_bounds = array<i64: 1, 32>}, {pipeline_mode = #tpu.pipeline_mode<synchronous>, transform_indices = @transform_51, window_bounds = array<i64: 1, 32>}, {pipeline_mode = #tpu.pipeline_mode<synchronous>, transform_indices = @transform_52, window_bounds = array<i64: 32, 32>}, {pipeline_mode = #tpu.pipeline_mode<synchronous>, transform_indices = @transform_53, window_bounds = array<i64: 1, 32>}, {transform_indices = @transform_54, window_bounds = array<i64: 1, 32, 32>}]} {
    %c0 = arith.constant 0 : index
    %c0_0 = arith.constant 0 : index
    %c0_1 = arith.constant 0 : index
    %0 = vector.load %arg2[%c0, %c0_0, %c0_1] : memref<1x32x32xf32, #tpu.memory_space<vmem>>, vector<1x32x32xf32>
    %1 = vector.shape_cast %0 : vector<1x32x32xf32> to vector<32x32xf32>
    %c0_2 = arith.constant 0 : index
    %c0_3 = arith.constant 0 : index
    %2 = vector.load %arg5[%c0_2, %c0_3] : memref<32x32xf32, #tpu.memory_space<vmem>>, vector<32x32xf32>
    %c0_4 = arith.constant 0 : index
    %c0_5 = arith.constant 0 : index
    %3 = vector.load %arg7[%c0_4, %c0_5] : memref<32x32xf32, #tpu.memory_space<vmem>>, vector<32x32xf32>
    %4 = arith.addf %1, %2 : vector<32x32xf32>
    %c0_6 = arith.constant 0 : index
    %c0_7 = arith.constant 0 : index
    %c0_8 = arith.constant 0 : index
    %5 = vector.load %arg3[%c0_6, %c0_7, %c0_8] : memref<1x32x32xf32, #tpu.memory_space<vmem>>, vector<1x32x32xf32>
    %6 = vector.shape_cast %5 : vector<1x32x32xf32> to vector<32x32xf32>
    %7 = arith.addf %6, %2 : vector<32x32xf32>
    %c0_9 = arith.constant 0 : index
    %c0_10 = arith.constant 0 : index
    %c0_11 = arith.constant 0 : index
    %8 = vector.load %arg4[%c0_9, %c0_10, %c0_11] : memref<1x32x32xf32, #tpu.memory_space<vmem>>, vector<1x32x32xf32>
    %9 = vector.shape_cast %8 : vector<1x32x32xf32> to vector<32x32xf32>
    %10 = arith.addf %9, %2 : vector<32x32xf32>
    %c0_12 = arith.constant 0 : index
    %c0_13 = arith.constant 0 : index
    %11 = vector.load %arg9[%c0_12, %c0_13] : memref<32x32xf32, #tpu.memory_space<vmem>>, vector<32x32xf32>
    %cst = arith.constant dense<0.000000e+00> : vector<32x32xf32>
    %12 = tpu.matmul %4, %11, %cst {dimension_numbers = #tpu.dot_dimension_numbers<[1], [0], [0], [1], [0, 0, 1, 1], [], []>} : vector<32x32xf32>, vector<32x32xf32>, vector<32x32xf32> -> vector<32x32xf32>
    %c0_14 = arith.constant 0 : index
    %c0_15 = arith.constant 0 : index
    %13 = vector.load %arg10[%c0_14, %c0_15] : memref<32x32xf32, #tpu.memory_space<vmem>>, vector<32x32xf32>
    %cst_16 = arith.constant dense<0.000000e+00> : vector<32x32xf32>
    %14 = tpu.matmul %7, %13, %cst_16 {dimension_numbers = #tpu.dot_dimension_numbers<[1], [0], [0], [1], [0, 0, 1, 1], [], []>} : vector<32x32xf32>, vector<32x32xf32>, vector<32x32xf32> -> vector<32x32xf32>
    %cst_17 = arith.constant 0.000000e+00 : f32
    %15 = vector.broadcast %cst_17 : f32 to vector<32x32xf32>
    %c0_18 = arith.constant 0 : index
    %c0_19 = arith.constant 0 : index
    %16 = vector.load %arg12[%c0_18, %c0_19] : memref<1x32xf32, #tpu.memory_space<vmem>>, vector<1x32xf32>
    %17 = vector.broadcast %16 : vector<1x32xf32> to vector<32x32xf32>
    %18 = arith.addf %15, %17 : vector<32x32xf32>
    %19 = vector.extract_strided_slice %12 {offsets = [0, 0], sizes = [32, 8], strides = [1, 1]} : vector<32x32xf32> to vector<32x8xf32>
    %20 = vector.extract_strided_slice %14 {offsets = [0, 0], sizes = [32, 8], strides = [1, 1]} : vector<32x32xf32> to vector<32x8xf32>
    %cst_20 = arith.constant dense<0.000000e+00> : vector<32x32xf32>
    %21 = tpu.matmul %19, %20, %cst_20 {dimension_numbers = #tpu.dot_dimension_numbers<[1], [1], [0], [0], [0, 0, 1, 0], [], []>} : vector<32x8xf32>, vector<32x8xf32>, vector<32x32xf32> -> vector<32x32xf32>
    %cst_21 = arith.constant 0.176776692 : f32
    %22 = vector.broadcast %cst_21 : f32 to vector<32x32xf32>
    %23 = arith.mulf %21, %22 : vector<32x32xf32>
    %24 = arith.addf %23, %3 : vector<32x32xf32>
    %cst_22 = arith.constant dense<0xFF800000> : vector<32xf32>
    %25 = vector.multi_reduction <maximumf>, %24, %cst_22 [0] : vector<32x32xf32> to vector<32xf32>
    %26 = vector.shape_cast %25 : vector<32xf32> to vector<1x32xf32>
    %27 = vector.broadcast %26 : vector<1x32xf32> to vector<32x32xf32>
    %28 = arith.subf %24, %27 : vector<32x32xf32>
    %29 = math.exp %28 : vector<32x32xf32>
    %cst_23 = arith.constant dense<0.000000e+00> : vector<32xf32>
    %30 = vector.multi_reduction <add>, %29, %cst_23 [0] : vector<32x32xf32> to vector<32xf32>
    %31 = vector.shape_cast %30 : vector<32xf32> to vector<1x32xf32>
    %32 = tpu.reciprocal %31 {approx = true} : vector<1x32xf32> -> vector<1x32xf32>
    %33 = vector.broadcast %32 : vector<1x32xf32> to vector<32x32xf32>
    %34 = arith.mulf %29, %33 : vector<32x32xf32>
    %c0_24 = arith.constant 0 : index
    %c0_25 = arith.constant 0 : index
    %c0_26 = arith.constant 0 : index
    %35 = vector.load %arg11[%c0_24, %c0_25, %c0_26] : memref<4x32x32xf32, #tpu.memory_space<vmem>>, vector<1x32x32xf32>
    %36 = vector.shape_cast %35 : vector<1x32x32xf32> to vector<32x32xf32>
    %cst_27 = arith.constant dense<0.000000e+00> : vector<32x32xf32>
    %37 = tpu.matmul %10, %36, %cst_27 {dimension_numbers = #tpu.dot_dimension_numbers<[1], [0], [0], [1], [0, 0, 1, 1], [], []>} : vector<32x32xf32>, vector<32x32xf32>, vector<32x32xf32> -> vector<32x32xf32>
    %cst_28 = arith.constant dense<0.000000e+00> : vector<32x32xf32>
    %38 = tpu.matmul %34, %37, %cst_28 {dimension_numbers = #tpu.dot_dimension_numbers<[1], [0], [0], [1], [0, 0, 1, 1], [], []>} : vector<32x32xf32>, vector<32x32xf32>, vector<32x32xf32> -> vector<32x32xf32>
    %39 = arith.addf %18, %38 : vector<32x32xf32>
    %40 = vector.extract_strided_slice %12 {offsets = [0, 8], sizes = [32, 8], strides = [1, 1]} : vector<32x32xf32> to vector<32x8xf32>
    %41 = vector.extract_strided_slice %14 {offsets = [0, 8], sizes = [32, 8], strides = [1, 1]} : vector<32x32xf32> to vector<32x8xf32>
    %cst_29 = arith.constant dense<0.000000e+00> : vector<32x32xf32>
    %42 = tpu.matmul %40, %41, %cst_29 {dimension_numbers = #tpu.dot_dimension_numbers<[1], [1], [0], [0], [0, 0, 1, 0], [], []>} : vector<32x8xf32>, vector<32x8xf32>, vector<32x32xf32> -> vector<32x32xf32>
    %cst_30 = arith.constant 0.176776692 : f32
    %43 = vector.broadcast %cst_30 : f32 to vector<32x32xf32>
    %44 = arith.mulf %42, %43 : vector<32x32xf32>
    %45 = arith.addf %44, %3 : vector<32x32xf32>
    %cst_31 = arith.constant dense<0xFF800000> : vector<32xf32>
    %46 = vector.multi_reduction <maximumf>, %45, %cst_31 [0] : vector<32x32xf32> to vector<32xf32>
    %47 = vector.shape_cast %46 : vector<32xf32> to vector<1x32xf32>
    %48 = vector.broadcast %47 : vector<1x32xf32> to vector<32x32xf32>
    %49 = arith.subf %45, %48 : vector<32x32xf32>
    %50 = math.exp %49 : vector<32x32xf32>
    %cst_32 = arith.constant dense<0.000000e+00> : vector<32xf32>
    %51 = vector.multi_reduction <add>, %50, %cst_32 [0] : vector<32x32xf32> to vector<32xf32>
    %52 = vector.shape_cast %51 : vector<32xf32> to vector<1x32xf32>
    %53 = tpu.reciprocal %52 {approx = true} : vector<1x32xf32> -> vector<1x32xf32>
    %54 = vector.broadcast %53 : vector<1x32xf32> to vector<32x32xf32>
    %55 = arith.mulf %50, %54 : vector<32x32xf32>
    %c1 = arith.constant 1 : index
    %c0_33 = arith.constant 0 : index
    %c0_34 = arith.constant 0 : index
    %56 = vector.load %arg11[%c1, %c0_33, %c0_34] : memref<4x32x32xf32, #tpu.memory_space<vmem>>, vector<1x32x32xf32>
    %57 = vector.shape_cast %56 : vector<1x32x32xf32> to vector<32x32xf32>
    %cst_35 = arith.constant dense<0.000000e+00> : vector<32x32xf32>
    %58 = tpu.matmul %10, %57, %cst_35 {dimension_numbers = #tpu.dot_dimension_numbers<[1], [0], [0], [1], [0, 0, 1, 1], [], []>} : vector<32x32xf32>, vector<32x32xf32>, vector<32x32xf32> -> vector<32x32xf32>
    %cst_36 = arith.constant dense<0.000000e+00> : vector<32x32xf32>
    %59 = tpu.matmul %55, %58, %cst_36 {dimension_numbers = #tpu.dot_dimension_numbers<[1], [0], [0], [1], [0, 0, 1, 1], [], []>} : vector<32x32xf32>, vector<32x32xf32>, vector<32x32xf32> -> vector<32x32xf32>
    %60 = arith.addf %39, %59 : vector<32x32xf32>
    %61 = vector.extract_strided_slice %12 {offsets = [0, 16], sizes = [32, 8], strides = [1, 1]} : vector<32x32xf32> to vector<32x8xf32>
    %62 = vector.extract_strided_slice %14 {offsets = [0, 16], sizes = [32, 8], strides = [1, 1]} : vector<32x32xf32> to vector<32x8xf32>
    %cst_37 = arith.constant dense<0.000000e+00> : vector<32x32xf32>
    %63 = tpu.matmul %61, %62, %cst_37 {dimension_numbers = #tpu.dot_dimension_numbers<[1], [1], [0], [0], [0, 0, 1, 0], [], []>} : vector<32x8xf32>, vector<32x8xf32>, vector<32x32xf32> -> vector<32x32xf32>
    %cst_38 = arith.constant 0.176776692 : f32
    %64 = vector.broadcast %cst_38 : f32 to vector<32x32xf32>
    %65 = arith.mulf %63, %64 : vector<32x32xf32>
    %66 = arith.addf %65, %3 : vector<32x32xf32>
    %cst_39 = arith.constant dense<0xFF800000> : vector<32xf32>
    %67 = vector.multi_reduction <maximumf>, %66, %cst_39 [0] : vector<32x32xf32> to vector<32xf32>
    %68 = vector.shape_cast %67 : vector<32xf32> to vector<1x32xf32>
    %69 = vector.broadcast %68 : vector<1x32xf32> to vector<32x32xf32>
    %70 = arith.subf %66, %69 : vector<32x32xf32>
    %71 = math.exp %70 : vector<32x32xf32>
    %cst_40 = arith.constant dense<0.000000e+00> : vector<32xf32>
    %72 = vector.multi_reduction <add>, %71, %cst_40 [0] : vector<32x32xf32> to vector<32xf32>
    %73 = vector.shape_cast %72 : vector<32xf32> to vector<1x32xf32>
    %74 = tpu.reciprocal %73 {approx = true} : vector<1x32xf32> -> vector<1x32xf32>
    %75 = vector.broadcast %74 : vector<1x32xf32> to vector<32x32xf32>
    %76 = arith.mulf %71, %75 : vector<32x32xf32>
    %c2 = arith.constant 2 : index
    %c0_41 = arith.constant 0 : index
    %c0_42 = arith.constant 0 : index
    %77 = vector.load %arg11[%c2, %c0_41, %c0_42] : memref<4x32x32xf32, #tpu.memory_space<vmem>>, vector<1x32x32xf32>
    %78 = vector.shape_cast %77 : vector<1x32x32xf32> to vector<32x32xf32>
    %cst_43 = arith.constant dense<0.000000e+00> : vector<32x32xf32>
    %79 = tpu.matmul %10, %78, %cst_43 {dimension_numbers = #tpu.dot_dimension_numbers<[1], [0], [0], [1], [0, 0, 1, 1], [], []>} : vector<32x32xf32>, vector<32x32xf32>, vector<32x32xf32> -> vector<32x32xf32>
    %cst_44 = arith.constant dense<0.000000e+00> : vector<32x32xf32>
    %80 = tpu.matmul %76, %79, %cst_44 {dimension_numbers = #tpu.dot_dimension_numbers<[1], [0], [0], [1], [0, 0, 1, 1], [], []>} : vector<32x32xf32>, vector<32x32xf32>, vector<32x32xf32> -> vector<32x32xf32>
    %81 = arith.addf %60, %80 : vector<32x32xf32>
    %82 = vector.extract_strided_slice %12 {offsets = [0, 24], sizes = [32, 8], strides = [1, 1]} : vector<32x32xf32> to vector<32x8xf32>
    %83 = vector.extract_strided_slice %14 {offsets = [0, 24], sizes = [32, 8], strides = [1, 1]} : vector<32x32xf32> to vector<32x8xf32>
    %cst_45 = arith.constant dense<0.000000e+00> : vector<32x32xf32>
    %84 = tpu.matmul %82, %83, %cst_45 {dimension_numbers = #tpu.dot_dimension_numbers<[1], [1], [0], [0], [0, 0, 1, 0], [], []>} : vector<32x8xf32>, vector<32x8xf32>, vector<32x32xf32> -> vector<32x32xf32>
    %cst_46 = arith.constant 0.176776692 : f32
    %85 = vector.broadcast %cst_46 : f32 to vector<32x32xf32>
    %86 = arith.mulf %84, %85 : vector<32x32xf32>
    %87 = arith.addf %86, %3 : vector<32x32xf32>
    %cst_47 = arith.constant dense<0xFF800000> : vector<32xf32>
    %88 = vector.multi_reduction <maximumf>, %87, %cst_47 [0] : vector<32x32xf32> to vector<32xf32>
    %89 = vector.shape_cast %88 : vector<32xf32> to vector<1x32xf32>
    %90 = vector.broadcast %89 : vector<1x32xf32> to vector<32x32xf32>
    %91 = arith.subf %87, %90 : vector<32x32xf32>
    %92 = math.exp %91 : vector<32x32xf32>
    %cst_48 = arith.constant dense<0.000000e+00> : vector<32xf32>
    %93 = vector.multi_reduction <add>, %92, %cst_48 [0] : vector<32x32xf32> to vector<32xf32>
    %94 = vector.shape_cast %93 : vector<32xf32> to vector<1x32xf32>
    %95 = tpu.reciprocal %94 {approx = true} : vector<1x32xf32> -> vector<1x32xf32>
    %96 = vector.broadcast %95 : vector<1x32xf32> to vector<32x32xf32>
    %97 = arith.mulf %92, %96 : vector<32x32xf32>
    %c3 = arith.constant 3 : index
    %c0_49 = arith.constant 0 : index
    %c0_50 = arith.constant 0 : index
    %98 = vector.load %arg11[%c3, %c0_49, %c0_50] : memref<4x32x32xf32, #tpu.memory_space<vmem>>, vector<1x32x32xf32>
    %99 = vector.shape_cast %98 : vector<1x32x32xf32> to vector<32x32xf32>
    %cst_51 = arith.constant dense<0.000000e+00> : vector<32x32xf32>
    %100 = tpu.matmul %10, %99, %cst_51 {dimension_numbers = #tpu.dot_dimension_numbers<[1], [0], [0], [1], [0, 0, 1, 1], [], []>} : vector<32x32xf32>, vector<32x32xf32>, vector<32x32xf32> -> vector<32x32xf32>
    %cst_52 = arith.constant dense<0.000000e+00> : vector<32x32xf32>
    %101 = tpu.matmul %97, %100, %cst_52 {dimension_numbers = #tpu.dot_dimension_numbers<[1], [0], [0], [1], [0, 0, 1, 1], [], []>} : vector<32x32xf32>, vector<32x32xf32>, vector<32x32xf32> -> vector<32x32xf32>
    %102 = arith.addf %81, %101 : vector<32x32xf32>
    %103 = arith.addf %102, %4 : vector<32x32xf32>
    %c0_53 = arith.constant 0 : index
    %c0_54 = arith.constant 0 : index
    %104 = vector.load %arg13[%c0_53, %c0_54] : memref<1x32xf32, #tpu.memory_space<vmem>>, vector<1x32xf32>
    %c0_55 = arith.constant 0 : index
    %c0_56 = arith.constant 0 : index
    %105 = vector.load %arg14[%c0_55, %c0_56] : memref<1x32xf32, #tpu.memory_space<vmem>>, vector<1x32xf32>
    %cst_57 = arith.constant dense<0.000000e+00> : vector<32xf32>
    %106 = vector.multi_reduction <add>, %103, %cst_57 [1] : vector<32x32xf32> to vector<32xf32>
    %107 = vector.shape_cast %106 : vector<32xf32> to vector<32x1xf32>
    %cst_58 = arith.constant 3.200000e+01 : f32
    %108 = vector.broadcast %cst_58 : f32 to vector<32x1xf32>
    %109 = arith.divf %107, %108 : vector<32x1xf32>
    %110 = vector.broadcast %109 : vector<32x1xf32> to vector<32x32xf32>
    %111 = arith.subf %103, %110 : vector<32x32xf32>
    %112 = arith.mulf %111, %111 : vector<32x32xf32>
    %cst_59 = arith.constant dense<0.000000e+00> : vector<32xf32>
    %113 = vector.multi_reduction <add>, %112, %cst_59 [1] : vector<32x32xf32> to vector<32xf32>
    %114 = vector.shape_cast %113 : vector<32xf32> to vector<32x1xf32>
    %cst_60 = arith.constant 3.200000e+01 : f32
    %115 = vector.broadcast %cst_60 : f32 to vector<32x1xf32>
    %116 = arith.divf %114, %115 : vector<32x1xf32>
    %117 = vector.broadcast %109 : vector<32x1xf32> to vector<32x32xf32>
    %118 = arith.subf %103, %117 : vector<32x32xf32>
    %cst_61 = arith.constant 9.99999974E-6 : f32
    %119 = vector.broadcast %cst_61 : f32 to vector<32x1xf32>
    %120 = arith.addf %116, %119 : vector<32x1xf32>
    %121 = math.rsqrt %120 : vector<32x1xf32>
    %122 = vector.broadcast %121 : vector<32x1xf32> to vector<32x32xf32>
    %123 = arith.mulf %118, %122 : vector<32x32xf32>
    %124 = vector.broadcast %104 : vector<1x32xf32> to vector<32x32xf32>
    %125 = arith.mulf %123, %124 : vector<32x32xf32>
    %126 = vector.broadcast %105 : vector<1x32xf32> to vector<32x32xf32>
    %127 = arith.addf %125, %126 : vector<32x32xf32>
    %c0_62 = arith.constant 0 : index
    %c0_63 = arith.constant 0 : index
    %128 = vector.load %arg15[%c0_62, %c0_63] : memref<32x64xf32, #tpu.memory_space<vmem>>, vector<32x64xf32>
    %cst_64 = arith.constant dense<0.000000e+00> : vector<32x64xf32>
    %129 = tpu.matmul %127, %128, %cst_64 {dimension_numbers = #tpu.dot_dimension_numbers<[1], [0], [0], [1], [0, 0, 1, 1], [], []>} : vector<32x32xf32>, vector<32x64xf32>, vector<32x64xf32> -> vector<32x64xf32>
    %c0_65 = arith.constant 0 : index
    %c0_66 = arith.constant 0 : index
    %130 = vector.load %arg16[%c0_65, %c0_66] : memref<1x64xf32, #tpu.memory_space<vmem>>, vector<1x64xf32>
    %131 = vector.broadcast %130 : vector<1x64xf32> to vector<32x64xf32>
    %132 = arith.addf %129, %131 : vector<32x64xf32>
    %cst_67 = arith.constant 0.000000e+00 : f32
    %133 = vector.broadcast %cst_67 : f32 to vector<32x64xf32>
    %134 = arith.maximumf %132, %133 : vector<32x64xf32>
    %c0_68 = arith.constant 0 : index
    %c0_69 = arith.constant 0 : index
    %135 = vector.load %arg17[%c0_68, %c0_69] : memref<64x32xf32, #tpu.memory_space<vmem>>, vector<64x32xf32>
    %cst_70 = arith.constant dense<0.000000e+00> : vector<32x32xf32>
    %136 = tpu.matmul %134, %135, %cst_70 {dimension_numbers = #tpu.dot_dimension_numbers<[1], [0], [0], [1], [0, 0, 1, 1], [], []>} : vector<32x64xf32>, vector<64x32xf32>, vector<32x32xf32> -> vector<32x32xf32>
    %c0_71 = arith.constant 0 : index
    %c0_72 = arith.constant 0 : index
    %137 = vector.load %arg18[%c0_71, %c0_72] : memref<1x32xf32, #tpu.memory_space<vmem>>, vector<1x32xf32>
    %138 = vector.broadcast %137 : vector<1x32xf32> to vector<32x32xf32>
    %139 = arith.addf %136, %138 : vector<32x32xf32>
    %140 = arith.addf %139, %127 : vector<32x32xf32>
    %c0_73 = arith.constant 0 : index
    %c0_74 = arith.constant 0 : index
    %141 = vector.load %arg19[%c0_73, %c0_74] : memref<1x32xf32, #tpu.memory_space<vmem>>, vector<1x32xf32>
    %c0_75 = arith.constant 0 : index
    %c0_76 = arith.constant 0 : index
    %142 = vector.load %arg20[%c0_75, %c0_76] : memref<1x32xf32, #tpu.memory_space<vmem>>, vector<1x32xf32>
    %cst_77 = arith.constant dense<0.000000e+00> : vector<32xf32>
    %143 = vector.multi_reduction <add>, %140, %cst_77 [1] : vector<32x32xf32> to vector<32xf32>
    %144 = vector.shape_cast %143 : vector<32xf32> to vector<32x1xf32>
    %cst_78 = arith.constant 3.200000e+01 : f32
    %145 = vector.broadcast %cst_78 : f32 to vector<32x1xf32>
    %146 = arith.divf %144, %145 : vector<32x1xf32>
    %147 = vector.broadcast %146 : vector<32x1xf32> to vector<32x32xf32>
    %148 = arith.subf %140, %147 : vector<32x32xf32>
    %149 = arith.mulf %148, %148 : vector<32x32xf32>
    %cst_79 = arith.constant dense<0.000000e+00> : vector<32xf32>
    %150 = vector.multi_reduction <add>, %149, %cst_79 [1] : vector<32x32xf32> to vector<32xf32>
    %151 = vector.shape_cast %150 : vector<32xf32> to vector<32x1xf32>
    %cst_80 = arith.constant 3.200000e+01 : f32
    %152 = vector.broadcast %cst_80 : f32 to vector<32x1xf32>
    %153 = arith.divf %151, %152 : vector<32x1xf32>
    %154 = vector.broadcast %146 : vector<32x1xf32> to vector<32x32xf32>
    %155 = arith.subf %140, %154 : vector<32x32xf32>
    %cst_81 = arith.constant 9.99999974E-6 : f32
    %156 = vector.broadcast %cst_81 : f32 to vector<32x1xf32>
    %157 = arith.addf %153, %156 : vector<32x1xf32>
    %158 = math.rsqrt %157 : vector<32x1xf32>
    %159 = vector.broadcast %158 : vector<32x1xf32> to vector<32x32xf32>
    %160 = arith.mulf %155, %159 : vector<32x32xf32>
    %161 = vector.broadcast %141 : vector<1x32xf32> to vector<32x32xf32>
    %162 = arith.mulf %160, %161 : vector<32x32xf32>
    %163 = vector.broadcast %142 : vector<1x32xf32> to vector<32x32xf32>
    %164 = arith.addf %162, %163 : vector<32x32xf32>
    %c0_82 = arith.constant 0 : index
    %c0_83 = arith.constant 0 : index
    %165 = vector.load %arg21[%c0_82, %c0_83] : memref<32x32xf32, #tpu.memory_space<vmem>>, vector<32x32xf32>
    %cst_84 = arith.constant dense<0.000000e+00> : vector<32x32xf32>
    %166 = tpu.matmul %164, %165, %cst_84 {dimension_numbers = #tpu.dot_dimension_numbers<[1], [0], [0], [1], [0, 0, 1, 1], [], []>} : vector<32x32xf32>, vector<32x32xf32>, vector<32x32xf32> -> vector<32x32xf32>
    %c0_85 = arith.constant 0 : index
    %c0_86 = arith.constant 0 : index
    %167 = vector.load %arg22[%c0_85, %c0_86] : memref<1x32xf32, #tpu.memory_space<vmem>>, vector<1x32xf32>
    %168 = vector.broadcast %167 : vector<1x32xf32> to vector<32x32xf32>
    %169 = arith.addf %166, %168 : vector<32x32xf32>
    %c0_87 = arith.constant 0 : index
    %c0_88 = arith.constant 0 : index
    %c0_89 = arith.constant 0 : index
    %170 = vector.load %arg25[%c0_87, %c0_88, %c0_89] : memref<3x32x32xf32, #tpu.memory_space<vmem>>, vector<1x32x32xf32>
    %171 = vector.shape_cast %170 : vector<1x32x32xf32> to vector<32x32xf32>
    %c0_90 = arith.constant 0 : index
    %c0_91 = arith.constant 0 : index
    %c0_92 = arith.constant 0 : index
    %172 = vector.load %arg26[%c0_90, %c0_91, %c0_92] : memref<3x32x32xf32, #tpu.memory_space<vmem>>, vector<1x32x32xf32>
    %173 = vector.shape_cast %172 : vector<1x32x32xf32> to vector<32x32xf32>
    %cst_93 = arith.constant dense<0.000000e+00> : vector<32x32xf32>
    %174 = tpu.matmul %171, %1, %cst_93 {dimension_numbers = #tpu.dot_dimension_numbers<[1], [0], [0], [1], [0, 0, 1, 1], [], []>} : vector<32x32xf32>, vector<32x32xf32>, vector<32x32xf32> -> vector<32x32xf32>
    %c0_94 = arith.constant 0 : index
    %c0_95 = arith.constant 0 : index
    %175 = vector.load %arg27[%c0_94, %c0_95] : memref<32x64xf32, #tpu.memory_space<vmem>>, vector<32x64xf32>
    %cst_96 = arith.constant dense<0.000000e+00> : vector<32x64xf32>
    %176 = tpu.matmul %174, %175, %cst_96 {dimension_numbers = #tpu.dot_dimension_numbers<[1], [0], [0], [1], [0, 0, 1, 1], [], []>} : vector<32x32xf32>, vector<32x64xf32>, vector<32x64xf32> -> vector<32x64xf32>
    %c0_97 = arith.constant 0 : index
    %c0_98 = arith.constant 0 : index
    %177 = vector.load %arg28[%c0_97, %c0_98] : memref<1x64xf32, #tpu.memory_space<vmem>>, vector<1x64xf32>
    %178 = vector.broadcast %177 : vector<1x64xf32> to vector<32x64xf32>
    %179 = arith.addf %176, %178 : vector<32x64xf32>
    %cst_99 = arith.constant 0.000000e+00 : f32
    %180 = vector.broadcast %cst_99 : f32 to vector<32x64xf32>
    %181 = arith.maximumf %179, %180 : vector<32x64xf32>
    %cst_100 = arith.constant dense<0.000000e+00> : vector<32x64xf32>
    %182 = tpu.matmul %173, %181, %cst_100 {dimension_numbers = #tpu.dot_dimension_numbers<[1], [0], [0], [1], [0, 0, 1, 1], [], []>} : vector<32x32xf32>, vector<32x64xf32>, vector<32x64xf32> -> vector<32x64xf32>
    %c0_101 = arith.constant 0 : index
    %c0_102 = arith.constant 0 : index
    %183 = vector.load %arg29[%c0_101, %c0_102] : memref<64x32xf32, #tpu.memory_space<vmem>>, vector<64x32xf32>
    %cst_103 = arith.constant dense<0.000000e+00> : vector<32x32xf32>
    %184 = tpu.matmul %182, %183, %cst_103 {dimension_numbers = #tpu.dot_dimension_numbers<[1], [0], [0], [1], [0, 0, 1, 1], [], []>} : vector<32x64xf32>, vector<64x32xf32>, vector<32x32xf32> -> vector<32x32xf32>
    %c0_104 = arith.constant 0 : index
    %c0_105 = arith.constant 0 : index
    %185 = vector.load %arg30[%c0_104, %c0_105] : memref<1x32xf32, #tpu.memory_space<vmem>>, vector<1x32xf32>
    %186 = vector.broadcast %185 : vector<1x32xf32> to vector<32x32xf32>
    %187 = arith.addf %184, %186 : vector<32x32xf32>
    %188 = arith.negf %187 : vector<32x32xf32>
    %189 = math.exp %188 : vector<32x32xf32>
    %cst_106 = arith.constant 1.000000e+00 : f32
    %190 = vector.broadcast %cst_106 : f32 to vector<32x32xf32>
    %191 = arith.addf %190, %189 : vector<32x32xf32>
    %192 = arith.divf %190, %191 : vector<32x32xf32>
    %cst_107 = arith.constant dense<0.000000e+00> : vector<32x32xf32>
    %193 = tpu.matmul %171, %192, %cst_107 {dimension_numbers = #tpu.dot_dimension_numbers<[1], [0], [0], [1], [0, 0, 1, 1], [], []>} : vector<32x32xf32>, vector<32x32xf32>, vector<32x32xf32> -> vector<32x32xf32>
    %c0_108 = arith.constant 0 : index
    %c0_109 = arith.constant 0 : index
    %194 = vector.load %arg27[%c0_108, %c0_109] : memref<32x64xf32, #tpu.memory_space<vmem>>, vector<32x64xf32>
    %cst_110 = arith.constant dense<0.000000e+00> : vector<32x64xf32>
    %195 = tpu.matmul %193, %194, %cst_110 {dimension_numbers = #tpu.dot_dimension_numbers<[1], [0], [0], [1], [0, 0, 1, 1], [], []>} : vector<32x32xf32>, vector<32x64xf32>, vector<32x64xf32> -> vector<32x64xf32>
    %c0_111 = arith.constant 0 : index
    %c0_112 = arith.constant 0 : index
    %196 = vector.load %arg28[%c0_111, %c0_112] : memref<1x64xf32, #tpu.memory_space<vmem>>, vector<1x64xf32>
    %197 = vector.broadcast %196 : vector<1x64xf32> to vector<32x64xf32>
    %198 = arith.addf %195, %197 : vector<32x64xf32>
    %cst_113 = arith.constant 0.000000e+00 : f32
    %199 = vector.broadcast %cst_113 : f32 to vector<32x64xf32>
    %200 = arith.maximumf %198, %199 : vector<32x64xf32>
    %cst_114 = arith.constant dense<0.000000e+00> : vector<32x64xf32>
    %201 = tpu.matmul %173, %200, %cst_114 {dimension_numbers = #tpu.dot_dimension_numbers<[1], [0], [0], [1], [0, 0, 1, 1], [], []>} : vector<32x32xf32>, vector<32x64xf32>, vector<32x64xf32> -> vector<32x64xf32>
    %c0_115 = arith.constant 0 : index
    %c0_116 = arith.constant 0 : index
    %202 = vector.load %arg29[%c0_115, %c0_116] : memref<64x32xf32, #tpu.memory_space<vmem>>, vector<64x32xf32>
    %cst_117 = arith.constant dense<0.000000e+00> : vector<32x32xf32>
    %203 = tpu.matmul %201, %202, %cst_117 {dimension_numbers = #tpu.dot_dimension_numbers<[1], [0], [0], [1], [0, 0, 1, 1], [], []>} : vector<32x64xf32>, vector<64x32xf32>, vector<32x32xf32> -> vector<32x32xf32>
    %c0_118 = arith.constant 0 : index
    %c0_119 = arith.constant 0 : index
    %204 = vector.load %arg30[%c0_118, %c0_119] : memref<1x32xf32, #tpu.memory_space<vmem>>, vector<1x32xf32>
    %205 = vector.broadcast %204 : vector<1x32xf32> to vector<32x32xf32>
    %206 = arith.addf %203, %205 : vector<32x32xf32>
    %207 = arith.negf %206 : vector<32x32xf32>
    %208 = math.exp %207 : vector<32x32xf32>
    %cst_120 = arith.constant 1.000000e+00 : f32
    %209 = vector.broadcast %cst_120 : f32 to vector<32x32xf32>
    %210 = arith.addf %209, %208 : vector<32x32xf32>
    %211 = arith.divf %209, %210 : vector<32x32xf32>
    %c0_121 = arith.constant 0 : index
    %c0_122 = arith.constant 0 : index
    %212 = vector.load %arg23[%c0_121, %c0_122] : memref<32x32xf32, #tpu.memory_space<vmem>>, vector<32x32xf32>
    %cst_123 = arith.constant dense<0.000000e+00> : vector<32x32xf32>
    %213 = tpu.matmul %192, %212, %cst_123 {dimension_numbers = #tpu.dot_dimension_numbers<[1], [0], [0], [1], [0, 0, 1, 1], [], []>} : vector<32x32xf32>, vector<32x32xf32>, vector<32x32xf32> -> vector<32x32xf32>
    %c0_124 = arith.constant 0 : index
    %c0_125 = arith.constant 0 : index
    %214 = vector.load %arg24[%c0_124, %c0_125] : memref<1x32xf32, #tpu.memory_space<vmem>>, vector<1x32xf32>
    %215 = vector.broadcast %214 : vector<1x32xf32> to vector<32x32xf32>
    %216 = arith.addf %213, %215 : vector<32x32xf32>
    %217 = arith.addf %169, %216 : vector<32x32xf32>
    %218 = arith.negf %217 : vector<32x32xf32>
    %219 = math.exp %218 : vector<32x32xf32>
    %cst_126 = arith.constant 1.000000e+00 : f32
    %220 = vector.broadcast %cst_126 : f32 to vector<32x32xf32>
    %221 = arith.addf %220, %219 : vector<32x32xf32>
    %222 = arith.divf %220, %221 : vector<32x32xf32>
    %223 = arith.mulf %222, %164 : vector<32x32xf32>
    %cst_127 = arith.constant 1.000000e+00 : f32
    %224 = vector.broadcast %cst_127 : f32 to vector<32x32xf32>
    %225 = arith.subf %224, %222 : vector<32x32xf32>
    %226 = arith.mulf %225, %192 : vector<32x32xf32>
    %227 = arith.addf %223, %226 : vector<32x32xf32>
    %c0_128 = arith.constant 0 : index
    %c0_129 = arith.constant 0 : index
    %228 = vector.load %arg23[%c0_128, %c0_129] : memref<32x32xf32, #tpu.memory_space<vmem>>, vector<32x32xf32>
    %cst_130 = arith.constant dense<0.000000e+00> : vector<32x32xf32>
    %229 = tpu.matmul %187, %228, %cst_130 {dimension_numbers = #tpu.dot_dimension_numbers<[1], [0], [0], [1], [0, 0, 1, 1], [], []>} : vector<32x32xf32>, vector<32x32xf32>, vector<32x32xf32> -> vector<32x32xf32>
    %c0_131 = arith.constant 0 : index
    %c0_132 = arith.constant 0 : index
    %230 = vector.load %arg24[%c0_131, %c0_132] : memref<1x32xf32, #tpu.memory_space<vmem>>, vector<1x32xf32>
    %231 = vector.broadcast %230 : vector<1x32xf32> to vector<32x32xf32>
    %232 = arith.addf %229, %231 : vector<32x32xf32>
    %233 = arith.addf %169, %232 : vector<32x32xf32>
    %234 = arith.negf %233 : vector<32x32xf32>
    %235 = math.exp %234 : vector<32x32xf32>
    %cst_133 = arith.constant 1.000000e+00 : f32
    %236 = vector.broadcast %cst_133 : f32 to vector<32x32xf32>
    %237 = arith.addf %236, %235 : vector<32x32xf32>
    %238 = arith.divf %236, %237 : vector<32x32xf32>
    %239 = arith.mulf %238, %164 : vector<32x32xf32>
    %cst_134 = arith.constant 1.000000e+00 : f32
    %240 = vector.broadcast %cst_134 : f32 to vector<32x32xf32>
    %241 = arith.subf %240, %238 : vector<32x32xf32>
    %242 = arith.mulf %241, %187 : vector<32x32xf32>
    %243 = arith.addf %239, %242 : vector<32x32xf32>
    %c0_135 = arith.constant 0 : index
    %c0_136 = arith.constant 0 : index
    %244 = vector.load %arg23[%c0_135, %c0_136] : memref<32x32xf32, #tpu.memory_space<vmem>>, vector<32x32xf32>
    %cst_137 = arith.constant dense<0.000000e+00> : vector<32x32xf32>
    %245 = tpu.matmul %211, %244, %cst_137 {dimension_numbers = #tpu.dot_dimension_numbers<[1], [0], [0], [1], [0, 0, 1, 1], [], []>} : vector<32x32xf32>, vector<32x32xf32>, vector<32x32xf32> -> vector<32x32xf32>
    %c0_138 = arith.constant 0 : index
    %c0_139 = arith.constant 0 : index
    %246 = vector.load %arg24[%c0_138, %c0_139] : memref<1x32xf32, #tpu.memory_space<vmem>>, vector<1x32xf32>
    %247 = vector.broadcast %246 : vector<1x32xf32> to vector<32x32xf32>
    %248 = arith.addf %245, %247 : vector<32x32xf32>
    %249 = arith.addf %169, %248 : vector<32x32xf32>
    %250 = arith.negf %249 : vector<32x32xf32>
    %251 = math.exp %250 : vector<32x32xf32>
    %cst_140 = arith.constant 1.000000e+00 : f32
    %252 = vector.broadcast %cst_140 : f32 to vector<32x32xf32>
    %253 = arith.addf %252, %251 : vector<32x32xf32>
    %254 = arith.divf %252, %253 : vector<32x32xf32>
    %255 = arith.mulf %254, %164 : vector<32x32xf32>
    %cst_141 = arith.constant 1.000000e+00 : f32
    %256 = vector.broadcast %cst_141 : f32 to vector<32x32xf32>
    %257 = arith.subf %256, %254 : vector<32x32xf32>
    %258 = arith.mulf %257, %211 : vector<32x32xf32>
    %259 = arith.addf %255, %258 : vector<32x32xf32>
    %c1_142 = arith.constant 1 : index
    %c0_143 = arith.constant 0 : index
    %c0_144 = arith.constant 0 : index
    %260 = vector.load %arg25[%c1_142, %c0_143, %c0_144] : memref<3x32x32xf32, #tpu.memory_space<vmem>>, vector<1x32x32xf32>
    %261 = vector.shape_cast %260 : vector<1x32x32xf32> to vector<32x32xf32>
    %c1_145 = arith.constant 1 : index
    %c0_146 = arith.constant 0 : index
    %c0_147 = arith.constant 0 : index
    %262 = vector.load %arg26[%c1_145, %c0_146, %c0_147] : memref<3x32x32xf32, #tpu.memory_space<vmem>>, vector<1x32x32xf32>
    %263 = vector.shape_cast %262 : vector<1x32x32xf32> to vector<32x32xf32>
    %cst_148 = arith.constant dense<0.000000e+00> : vector<32x32xf32>
    %264 = tpu.matmul %261, %1, %cst_148 {dimension_numbers = #tpu.dot_dimension_numbers<[1], [0], [0], [1], [0, 0, 1, 1], [], []>} : vector<32x32xf32>, vector<32x32xf32>, vector<32x32xf32> -> vector<32x32xf32>
    %c0_149 = arith.constant 0 : index
    %c0_150 = arith.constant 0 : index
    %265 = vector.load %arg27[%c0_149, %c0_150] : memref<32x64xf32, #tpu.memory_space<vmem>>, vector<32x64xf32>
    %cst_151 = arith.constant dense<0.000000e+00> : vector<32x64xf32>
    %266 = tpu.matmul %264, %265, %cst_151 {dimension_numbers = #tpu.dot_dimension_numbers<[1], [0], [0], [1], [0, 0, 1, 1], [], []>} : vector<32x32xf32>, vector<32x64xf32>, vector<32x64xf32> -> vector<32x64xf32>
    %c0_152 = arith.constant 0 : index
    %c0_153 = arith.constant 0 : index
    %267 = vector.load %arg28[%c0_152, %c0_153] : memref<1x64xf32, #tpu.memory_space<vmem>>, vector<1x64xf32>
    %268 = vector.broadcast %267 : vector<1x64xf32> to vector<32x64xf32>
    %269 = arith.addf %266, %268 : vector<32x64xf32>
    %cst_154 = arith.constant 0.000000e+00 : f32
    %270 = vector.broadcast %cst_154 : f32 to vector<32x64xf32>
    %271 = arith.maximumf %269, %270 : vector<32x64xf32>
    %cst_155 = arith.constant dense<0.000000e+00> : vector<32x64xf32>
    %272 = tpu.matmul %263, %271, %cst_155 {dimension_numbers = #tpu.dot_dimension_numbers<[1], [0], [0], [1], [0, 0, 1, 1], [], []>} : vector<32x32xf32>, vector<32x64xf32>, vector<32x64xf32> -> vector<32x64xf32>
    %c0_156 = arith.constant 0 : index
    %c0_157 = arith.constant 0 : index
    %273 = vector.load %arg29[%c0_156, %c0_157] : memref<64x32xf32, #tpu.memory_space<vmem>>, vector<64x32xf32>
    %cst_158 = arith.constant dense<0.000000e+00> : vector<32x32xf32>
    %274 = tpu.matmul %272, %273, %cst_158 {dimension_numbers = #tpu.dot_dimension_numbers<[1], [0], [0], [1], [0, 0, 1, 1], [], []>} : vector<32x64xf32>, vector<64x32xf32>, vector<32x32xf32> -> vector<32x32xf32>
    %c0_159 = arith.constant 0 : index
    %c0_160 = arith.constant 0 : index
    %275 = vector.load %arg30[%c0_159, %c0_160] : memref<1x32xf32, #tpu.memory_space<vmem>>, vector<1x32xf32>
    %276 = vector.broadcast %275 : vector<1x32xf32> to vector<32x32xf32>
    %277 = arith.addf %274, %276 : vector<32x32xf32>
    %278 = arith.negf %277 : vector<32x32xf32>
    %279 = math.exp %278 : vector<32x32xf32>
    %cst_161 = arith.constant 1.000000e+00 : f32
    %280 = vector.broadcast %cst_161 : f32 to vector<32x32xf32>
    %281 = arith.addf %280, %279 : vector<32x32xf32>
    %282 = arith.divf %280, %281 : vector<32x32xf32>
    %cst_162 = arith.constant dense<0.000000e+00> : vector<32x32xf32>
    %283 = tpu.matmul %261, %282, %cst_162 {dimension_numbers = #tpu.dot_dimension_numbers<[1], [0], [0], [1], [0, 0, 1, 1], [], []>} : vector<32x32xf32>, vector<32x32xf32>, vector<32x32xf32> -> vector<32x32xf32>
    %c0_163 = arith.constant 0 : index
    %c0_164 = arith.constant 0 : index
    %284 = vector.load %arg27[%c0_163, %c0_164] : memref<32x64xf32, #tpu.memory_space<vmem>>, vector<32x64xf32>
    %cst_165 = arith.constant dense<0.000000e+00> : vector<32x64xf32>
    %285 = tpu.matmul %283, %284, %cst_165 {dimension_numbers = #tpu.dot_dimension_numbers<[1], [0], [0], [1], [0, 0, 1, 1], [], []>} : vector<32x32xf32>, vector<32x64xf32>, vector<32x64xf32> -> vector<32x64xf32>
    %c0_166 = arith.constant 0 : index
    %c0_167 = arith.constant 0 : index
    %286 = vector.load %arg28[%c0_166, %c0_167] : memref<1x64xf32, #tpu.memory_space<vmem>>, vector<1x64xf32>
    %287 = vector.broadcast %286 : vector<1x64xf32> to vector<32x64xf32>
    %288 = arith.addf %285, %287 : vector<32x64xf32>
    %cst_168 = arith.constant 0.000000e+00 : f32
    %289 = vector.broadcast %cst_168 : f32 to vector<32x64xf32>
    %290 = arith.maximumf %288, %289 : vector<32x64xf32>
    %cst_169 = arith.constant dense<0.000000e+00> : vector<32x64xf32>
    %291 = tpu.matmul %263, %290, %cst_169 {dimension_numbers = #tpu.dot_dimension_numbers<[1], [0], [0], [1], [0, 0, 1, 1], [], []>} : vector<32x32xf32>, vector<32x64xf32>, vector<32x64xf32> -> vector<32x64xf32>
    %c0_170 = arith.constant 0 : index
    %c0_171 = arith.constant 0 : index
    %292 = vector.load %arg29[%c0_170, %c0_171] : memref<64x32xf32, #tpu.memory_space<vmem>>, vector<64x32xf32>
    %cst_172 = arith.constant dense<0.000000e+00> : vector<32x32xf32>
    %293 = tpu.matmul %291, %292, %cst_172 {dimension_numbers = #tpu.dot_dimension_numbers<[1], [0], [0], [1], [0, 0, 1, 1], [], []>} : vector<32x64xf32>, vector<64x32xf32>, vector<32x32xf32> -> vector<32x32xf32>
    %c0_173 = arith.constant 0 : index
    %c0_174 = arith.constant 0 : index
    %294 = vector.load %arg30[%c0_173, %c0_174] : memref<1x32xf32, #tpu.memory_space<vmem>>, vector<1x32xf32>
    %295 = vector.broadcast %294 : vector<1x32xf32> to vector<32x32xf32>
    %296 = arith.addf %293, %295 : vector<32x32xf32>
    %297 = arith.negf %296 : vector<32x32xf32>
    %298 = math.exp %297 : vector<32x32xf32>
    %cst_175 = arith.constant 1.000000e+00 : f32
    %299 = vector.broadcast %cst_175 : f32 to vector<32x32xf32>
    %300 = arith.addf %299, %298 : vector<32x32xf32>
    %301 = arith.divf %299, %300 : vector<32x32xf32>
    %c0_176 = arith.constant 0 : index
    %c0_177 = arith.constant 0 : index
    %302 = vector.load %arg23[%c0_176, %c0_177] : memref<32x32xf32, #tpu.memory_space<vmem>>, vector<32x32xf32>
    %cst_178 = arith.constant dense<0.000000e+00> : vector<32x32xf32>
    %303 = tpu.matmul %282, %302, %cst_178 {dimension_numbers = #tpu.dot_dimension_numbers<[1], [0], [0], [1], [0, 0, 1, 1], [], []>} : vector<32x32xf32>, vector<32x32xf32>, vector<32x32xf32> -> vector<32x32xf32>
    %c0_179 = arith.constant 0 : index
    %c0_180 = arith.constant 0 : index
    %304 = vector.load %arg24[%c0_179, %c0_180] : memref<1x32xf32, #tpu.memory_space<vmem>>, vector<1x32xf32>
    %305 = vector.broadcast %304 : vector<1x32xf32> to vector<32x32xf32>
    %306 = arith.addf %303, %305 : vector<32x32xf32>
    %307 = arith.addf %169, %306 : vector<32x32xf32>
    %308 = arith.negf %307 : vector<32x32xf32>
    %309 = math.exp %308 : vector<32x32xf32>
    %cst_181 = arith.constant 1.000000e+00 : f32
    %310 = vector.broadcast %cst_181 : f32 to vector<32x32xf32>
    %311 = arith.addf %310, %309 : vector<32x32xf32>
    %312 = arith.divf %310, %311 : vector<32x32xf32>
    %313 = arith.mulf %312, %164 : vector<32x32xf32>
    %cst_182 = arith.constant 1.000000e+00 : f32
    %314 = vector.broadcast %cst_182 : f32 to vector<32x32xf32>
    %315 = arith.subf %314, %312 : vector<32x32xf32>
    %316 = arith.mulf %315, %282 : vector<32x32xf32>
    %317 = arith.addf %313, %316 : vector<32x32xf32>
    %c0_183 = arith.constant 0 : index
    %c0_184 = arith.constant 0 : index
    %318 = vector.load %arg23[%c0_183, %c0_184] : memref<32x32xf32, #tpu.memory_space<vmem>>, vector<32x32xf32>
    %cst_185 = arith.constant dense<0.000000e+00> : vector<32x32xf32>
    %319 = tpu.matmul %277, %318, %cst_185 {dimension_numbers = #tpu.dot_dimension_numbers<[1], [0], [0], [1], [0, 0, 1, 1], [], []>} : vector<32x32xf32>, vector<32x32xf32>, vector<32x32xf32> -> vector<32x32xf32>
    %c0_186 = arith.constant 0 : index
    %c0_187 = arith.constant 0 : index
    %320 = vector.load %arg24[%c0_186, %c0_187] : memref<1x32xf32, #tpu.memory_space<vmem>>, vector<1x32xf32>
    %321 = vector.broadcast %320 : vector<1x32xf32> to vector<32x32xf32>
    %322 = arith.addf %319, %321 : vector<32x32xf32>
    %323 = arith.addf %169, %322 : vector<32x32xf32>
    %324 = arith.negf %323 : vector<32x32xf32>
    %325 = math.exp %324 : vector<32x32xf32>
    %cst_188 = arith.constant 1.000000e+00 : f32
    %326 = vector.broadcast %cst_188 : f32 to vector<32x32xf32>
    %327 = arith.addf %326, %325 : vector<32x32xf32>
    %328 = arith.divf %326, %327 : vector<32x32xf32>
    %329 = arith.mulf %328, %164 : vector<32x32xf32>
    %cst_189 = arith.constant 1.000000e+00 : f32
    %330 = vector.broadcast %cst_189 : f32 to vector<32x32xf32>
    %331 = arith.subf %330, %328 : vector<32x32xf32>
    %332 = arith.mulf %331, %277 : vector<32x32xf32>
    %333 = arith.addf %329, %332 : vector<32x32xf32>
    %c0_190 = arith.constant 0 : index
    %c0_191 = arith.constant 0 : index
    %334 = vector.load %arg23[%c0_190, %c0_191] : memref<32x32xf32, #tpu.memory_space<vmem>>, vector<32x32xf32>
    %cst_192 = arith.constant dense<0.000000e+00> : vector<32x32xf32>
    %335 = tpu.matmul %301, %334, %cst_192 {dimension_numbers = #tpu.dot_dimension_numbers<[1], [0], [0], [1], [0, 0, 1, 1], [], []>} : vector<32x32xf32>, vector<32x32xf32>, vector<32x32xf32> -> vector<32x32xf32>
    %c0_193 = arith.constant 0 : index
    %c0_194 = arith.constant 0 : index
    %336 = vector.load %arg24[%c0_193, %c0_194] : memref<1x32xf32, #tpu.memory_space<vmem>>, vector<1x32xf32>
    %337 = vector.broadcast %336 : vector<1x32xf32> to vector<32x32xf32>
    %338 = arith.addf %335, %337 : vector<32x32xf32>
    %339 = arith.addf %169, %338 : vector<32x32xf32>
    %340 = arith.negf %339 : vector<32x32xf32>
    %341 = math.exp %340 : vector<32x32xf32>
    %cst_195 = arith.constant 1.000000e+00 : f32
    %342 = vector.broadcast %cst_195 : f32 to vector<32x32xf32>
    %343 = arith.addf %342, %341 : vector<32x32xf32>
    %344 = arith.divf %342, %343 : vector<32x32xf32>
    %345 = arith.mulf %344, %164 : vector<32x32xf32>
    %cst_196 = arith.constant 1.000000e+00 : f32
    %346 = vector.broadcast %cst_196 : f32 to vector<32x32xf32>
    %347 = arith.subf %346, %344 : vector<32x32xf32>
    %348 = arith.mulf %347, %301 : vector<32x32xf32>
    %349 = arith.addf %345, %348 : vector<32x32xf32>
    %c2_197 = arith.constant 2 : index
    %c0_198 = arith.constant 0 : index
    %c0_199 = arith.constant 0 : index
    %350 = vector.load %arg25[%c2_197, %c0_198, %c0_199] : memref<3x32x32xf32, #tpu.memory_space<vmem>>, vector<1x32x32xf32>
    %351 = vector.shape_cast %350 : vector<1x32x32xf32> to vector<32x32xf32>
    %c2_200 = arith.constant 2 : index
    %c0_201 = arith.constant 0 : index
    %c0_202 = arith.constant 0 : index
    %352 = vector.load %arg26[%c2_200, %c0_201, %c0_202] : memref<3x32x32xf32, #tpu.memory_space<vmem>>, vector<1x32x32xf32>
    %353 = vector.shape_cast %352 : vector<1x32x32xf32> to vector<32x32xf32>
    %cst_203 = arith.constant dense<0.000000e+00> : vector<32x32xf32>
    %354 = tpu.matmul %351, %1, %cst_203 {dimension_numbers = #tpu.dot_dimension_numbers<[1], [0], [0], [1], [0, 0, 1, 1], [], []>} : vector<32x32xf32>, vector<32x32xf32>, vector<32x32xf32> -> vector<32x32xf32>
    %c0_204 = arith.constant 0 : index
    %c0_205 = arith.constant 0 : index
    %355 = vector.load %arg27[%c0_204, %c0_205] : memref<32x64xf32, #tpu.memory_space<vmem>>, vector<32x64xf32>
    %cst_206 = arith.constant dense<0.000000e+00> : vector<32x64xf32>
    %356 = tpu.matmul %354, %355, %cst_206 {dimension_numbers = #tpu.dot_dimension_numbers<[1], [0], [0], [1], [0, 0, 1, 1], [], []>} : vector<32x32xf32>, vector<32x64xf32>, vector<32x64xf32> -> vector<32x64xf32>
    %c0_207 = arith.constant 0 : index
    %c0_208 = arith.constant 0 : index
    %357 = vector.load %arg28[%c0_207, %c0_208] : memref<1x64xf32, #tpu.memory_space<vmem>>, vector<1x64xf32>
    %358 = vector.broadcast %357 : vector<1x64xf32> to vector<32x64xf32>
    %359 = arith.addf %356, %358 : vector<32x64xf32>
    %cst_209 = arith.constant 0.000000e+00 : f32
    %360 = vector.broadcast %cst_209 : f32 to vector<32x64xf32>
    %361 = arith.maximumf %359, %360 : vector<32x64xf32>
    %cst_210 = arith.constant dense<0.000000e+00> : vector<32x64xf32>
    %362 = tpu.matmul %353, %361, %cst_210 {dimension_numbers = #tpu.dot_dimension_numbers<[1], [0], [0], [1], [0, 0, 1, 1], [], []>} : vector<32x32xf32>, vector<32x64xf32>, vector<32x64xf32> -> vector<32x64xf32>
    %c0_211 = arith.constant 0 : index
    %c0_212 = arith.constant 0 : index
    %363 = vector.load %arg29[%c0_211, %c0_212] : memref<64x32xf32, #tpu.memory_space<vmem>>, vector<64x32xf32>
    %cst_213 = arith.constant dense<0.000000e+00> : vector<32x32xf32>
    %364 = tpu.matmul %362, %363, %cst_213 {dimension_numbers = #tpu.dot_dimension_numbers<[1], [0], [0], [1], [0, 0, 1, 1], [], []>} : vector<32x64xf32>, vector<64x32xf32>, vector<32x32xf32> -> vector<32x32xf32>
    %c0_214 = arith.constant 0 : index
    %c0_215 = arith.constant 0 : index
    %365 = vector.load %arg30[%c0_214, %c0_215] : memref<1x32xf32, #tpu.memory_space<vmem>>, vector<1x32xf32>
    %366 = vector.broadcast %365 : vector<1x32xf32> to vector<32x32xf32>
    %367 = arith.addf %364, %366 : vector<32x32xf32>
    %368 = arith.negf %367 : vector<32x32xf32>
    %369 = math.exp %368 : vector<32x32xf32>
    %cst_216 = arith.constant 1.000000e+00 : f32
    %370 = vector.broadcast %cst_216 : f32 to vector<32x32xf32>
    %371 = arith.addf %370, %369 : vector<32x32xf32>
    %372 = arith.divf %370, %371 : vector<32x32xf32>
    %cst_217 = arith.constant dense<0.000000e+00> : vector<32x32xf32>
    %373 = tpu.matmul %351, %372, %cst_217 {dimension_numbers = #tpu.dot_dimension_numbers<[1], [0], [0], [1], [0, 0, 1, 1], [], []>} : vector<32x32xf32>, vector<32x32xf32>, vector<32x32xf32> -> vector<32x32xf32>
    %c0_218 = arith.constant 0 : index
    %c0_219 = arith.constant 0 : index
    %374 = vector.load %arg27[%c0_218, %c0_219] : memref<32x64xf32, #tpu.memory_space<vmem>>, vector<32x64xf32>
    %cst_220 = arith.constant dense<0.000000e+00> : vector<32x64xf32>
    %375 = tpu.matmul %373, %374, %cst_220 {dimension_numbers = #tpu.dot_dimension_numbers<[1], [0], [0], [1], [0, 0, 1, 1], [], []>} : vector<32x32xf32>, vector<32x64xf32>, vector<32x64xf32> -> vector<32x64xf32>
    %c0_221 = arith.constant 0 : index
    %c0_222 = arith.constant 0 : index
    %376 = vector.load %arg28[%c0_221, %c0_222] : memref<1x64xf32, #tpu.memory_space<vmem>>, vector<1x64xf32>
    %377 = vector.broadcast %376 : vector<1x64xf32> to vector<32x64xf32>
    %378 = arith.addf %375, %377 : vector<32x64xf32>
    %cst_223 = arith.constant 0.000000e+00 : f32
    %379 = vector.broadcast %cst_223 : f32 to vector<32x64xf32>
    %380 = arith.maximumf %378, %379 : vector<32x64xf32>
    %cst_224 = arith.constant dense<0.000000e+00> : vector<32x64xf32>
    %381 = tpu.matmul %353, %380, %cst_224 {dimension_numbers = #tpu.dot_dimension_numbers<[1], [0], [0], [1], [0, 0, 1, 1], [], []>} : vector<32x32xf32>, vector<32x64xf32>, vector<32x64xf32> -> vector<32x64xf32>
    %c0_225 = arith.constant 0 : index
    %c0_226 = arith.constant 0 : index
    %382 = vector.load %arg29[%c0_225, %c0_226] : memref<64x32xf32, #tpu.memory_space<vmem>>, vector<64x32xf32>
    %cst_227 = arith.constant dense<0.000000e+00> : vector<32x32xf32>
    %383 = tpu.matmul %381, %382, %cst_227 {dimension_numbers = #tpu.dot_dimension_numbers<[1], [0], [0], [1], [0, 0, 1, 1], [], []>} : vector<32x64xf32>, vector<64x32xf32>, vector<32x32xf32> -> vector<32x32xf32>
    %c0_228 = arith.constant 0 : index
    %c0_229 = arith.constant 0 : index
    %384 = vector.load %arg30[%c0_228, %c0_229] : memref<1x32xf32, #tpu.memory_space<vmem>>, vector<1x32xf32>
    %385 = vector.broadcast %384 : vector<1x32xf32> to vector<32x32xf32>
    %386 = arith.addf %383, %385 : vector<32x32xf32>
    %387 = arith.negf %386 : vector<32x32xf32>
    %388 = math.exp %387 : vector<32x32xf32>
    %cst_230 = arith.constant 1.000000e+00 : f32
    %389 = vector.broadcast %cst_230 : f32 to vector<32x32xf32>
    %390 = arith.addf %389, %388 : vector<32x32xf32>
    %391 = arith.divf %389, %390 : vector<32x32xf32>
    %c0_231 = arith.constant 0 : index
    %c0_232 = arith.constant 0 : index
    %392 = vector.load %arg23[%c0_231, %c0_232] : memref<32x32xf32, #tpu.memory_space<vmem>>, vector<32x32xf32>
    %cst_233 = arith.constant dense<0.000000e+00> : vector<32x32xf32>
    %393 = tpu.matmul %372, %392, %cst_233 {dimension_numbers = #tpu.dot_dimension_numbers<[1], [0], [0], [1], [0, 0, 1, 1], [], []>} : vector<32x32xf32>, vector<32x32xf32>, vector<32x32xf32> -> vector<32x32xf32>
    %c0_234 = arith.constant 0 : index
    %c0_235 = arith.constant 0 : index
    %394 = vector.load %arg24[%c0_234, %c0_235] : memref<1x32xf32, #tpu.memory_space<vmem>>, vector<1x32xf32>
    %395 = vector.broadcast %394 : vector<1x32xf32> to vector<32x32xf32>
    %396 = arith.addf %393, %395 : vector<32x32xf32>
    %397 = arith.addf %169, %396 : vector<32x32xf32>
    %398 = arith.negf %397 : vector<32x32xf32>
    %399 = math.exp %398 : vector<32x32xf32>
    %cst_236 = arith.constant 1.000000e+00 : f32
    %400 = vector.broadcast %cst_236 : f32 to vector<32x32xf32>
    %401 = arith.addf %400, %399 : vector<32x32xf32>
    %402 = arith.divf %400, %401 : vector<32x32xf32>
    %403 = arith.mulf %402, %164 : vector<32x32xf32>
    %cst_237 = arith.constant 1.000000e+00 : f32
    %404 = vector.broadcast %cst_237 : f32 to vector<32x32xf32>
    %405 = arith.subf %404, %402 : vector<32x32xf32>
    %406 = arith.mulf %405, %372 : vector<32x32xf32>
    %407 = arith.addf %403, %406 : vector<32x32xf32>
    %c0_238 = arith.constant 0 : index
    %c0_239 = arith.constant 0 : index
    %408 = vector.load %arg23[%c0_238, %c0_239] : memref<32x32xf32, #tpu.memory_space<vmem>>, vector<32x32xf32>
    %cst_240 = arith.constant dense<0.000000e+00> : vector<32x32xf32>
    %409 = tpu.matmul %367, %408, %cst_240 {dimension_numbers = #tpu.dot_dimension_numbers<[1], [0], [0], [1], [0, 0, 1, 1], [], []>} : vector<32x32xf32>, vector<32x32xf32>, vector<32x32xf32> -> vector<32x32xf32>
    %c0_241 = arith.constant 0 : index
    %c0_242 = arith.constant 0 : index
    %410 = vector.load %arg24[%c0_241, %c0_242] : memref<1x32xf32, #tpu.memory_space<vmem>>, vector<1x32xf32>
    %411 = vector.broadcast %410 : vector<1x32xf32> to vector<32x32xf32>
    %412 = arith.addf %409, %411 : vector<32x32xf32>
    %413 = arith.addf %169, %412 : vector<32x32xf32>
    %414 = arith.negf %413 : vector<32x32xf32>
    %415 = math.exp %414 : vector<32x32xf32>
    %cst_243 = arith.constant 1.000000e+00 : f32
    %416 = vector.broadcast %cst_243 : f32 to vector<32x32xf32>
    %417 = arith.addf %416, %415 : vector<32x32xf32>
    %418 = arith.divf %416, %417 : vector<32x32xf32>
    %419 = arith.mulf %418, %164 : vector<32x32xf32>
    %cst_244 = arith.constant 1.000000e+00 : f32
    %420 = vector.broadcast %cst_244 : f32 to vector<32x32xf32>
    %421 = arith.subf %420, %418 : vector<32x32xf32>
    %422 = arith.mulf %421, %367 : vector<32x32xf32>
    %423 = arith.addf %419, %422 : vector<32x32xf32>
    %c0_245 = arith.constant 0 : index
    %c0_246 = arith.constant 0 : index
    %424 = vector.load %arg23[%c0_245, %c0_246] : memref<32x32xf32, #tpu.memory_space<vmem>>, vector<32x32xf32>
    %cst_247 = arith.constant dense<0.000000e+00> : vector<32x32xf32>
    %425 = tpu.matmul %391, %424, %cst_247 {dimension_numbers = #tpu.dot_dimension_numbers<[1], [0], [0], [1], [0, 0, 1, 1], [], []>} : vector<32x32xf32>, vector<32x32xf32>, vector<32x32xf32> -> vector<32x32xf32>
    %c0_248 = arith.constant 0 : index
    %c0_249 = arith.constant 0 : index
    %426 = vector.load %arg24[%c0_248, %c0_249] : memref<1x32xf32, #tpu.memory_space<vmem>>, vector<1x32xf32>
    %427 = vector.broadcast %426 : vector<1x32xf32> to vector<32x32xf32>
    %428 = arith.addf %425, %427 : vector<32x32xf32>
    %429 = arith.addf %169, %428 : vector<32x32xf32>
    %430 = arith.negf %429 : vector<32x32xf32>
    %431 = math.exp %430 : vector<32x32xf32>
    %cst_250 = arith.constant 1.000000e+00 : f32
    %432 = vector.broadcast %cst_250 : f32 to vector<32x32xf32>
    %433 = arith.addf %432, %431 : vector<32x32xf32>
    %434 = arith.divf %432, %433 : vector<32x32xf32>
    %435 = arith.mulf %434, %164 : vector<32x32xf32>
    %cst_251 = arith.constant 1.000000e+00 : f32
    %436 = vector.broadcast %cst_251 : f32 to vector<32x32xf32>
    %437 = arith.subf %436, %434 : vector<32x32xf32>
    %438 = arith.mulf %437, %391 : vector<32x32xf32>
    %439 = arith.addf %435, %438 : vector<32x32xf32>
    %c0_252 = arith.constant 0 : index
    %c0_253 = arith.constant 0 : index
    %440 = vector.load %arg31[%c0_252, %c0_253] : memref<256x32xf32, #tpu.memory_space<vmem>>, vector<256x32xf32>
    %c0_254 = arith.constant 0 : index
    %c0_255 = arith.constant 0 : index
    %441 = vector.load %arg32[%c0_254, %c0_255] : memref<3x256xf32, #tpu.memory_space<vmem>>, vector<3x256xf32>
    %c0_256 = arith.constant 0 : index
    %c0_257 = arith.constant 0 : index
    %442 = vector.load %arg33[%c0_256, %c0_257] : memref<3x1xf32, #tpu.memory_space<vmem>>, vector<3x1xf32>
    %443 = arith.addf %227, %317 : vector<32x32xf32>
    %444 = arith.addf %443, %407 : vector<32x32xf32>
    %cst_258 = arith.constant dense<0.000000e+00> : vector<256x32xf32>
    %445 = tpu.matmul %440, %444, %cst_258 {dimension_numbers = #tpu.dot_dimension_numbers<[1], [0], [0], [1], [0, 0, 1, 1], [], []>} : vector<256x32xf32>, vector<32x32xf32>, vector<256x32xf32> -> vector<256x32xf32>
    %cst_259 = arith.constant 0.000000e+00 : f32
    %446 = vector.broadcast %cst_259 : f32 to vector<256x32xf32>
    %447 = arith.maximumf %445, %446 : vector<256x32xf32>
    %cst_260 = arith.constant dense<0.000000e+00> : vector<3x32xf32>
    %448 = tpu.matmul %441, %447, %cst_260 {dimension_numbers = #tpu.dot_dimension_numbers<[1], [0], [0], [1], [0, 0, 1, 1], [], []>} : vector<3x256xf32>, vector<256x32xf32>, vector<3x32xf32> -> vector<3x32xf32>
    %cst_261 = arith.constant dense<0.000000e+00> : vector<3xf32>
    %449 = vector.multi_reduction <add>, %448, %cst_261 [1] : vector<3x32xf32> to vector<3xf32>
    %450 = vector.shape_cast %449 : vector<3xf32> to vector<3x1xf32>
    %451 = arith.addf %450, %442 : vector<3x1xf32>
    %452 = math.tanh %451 : vector<3x1xf32>
    %cst_262 = arith.constant 0.000000e+00 : f32
    %453 = vector.broadcast %cst_262 : f32 to vector<3x1xf32>
    %454 = arith.maximumf %452, %453 : vector<3x1xf32>
    %c0_263 = arith.constant 0 : index
    %c0_264 = arith.constant 0 : index
    %455 = memref.load %arg1[%c0_263, %c0_264] : memref<3x3xf32, #tpu.memory_space<smem>>
    %456 = vector.broadcast %455 : f32 to vector<32x32xf32>
    %457 = arith.mulf %456, %227 : vector<32x32xf32>
    %cst_265 = arith.constant dense<0xFF800000> : vector<32xf32>
    %458 = vector.multi_reduction <maximumf>, %457, %cst_265 [1] : vector<32x32xf32> to vector<32xf32>
    %459 = vector.shape_cast %458 : vector<32xf32> to vector<32x1xf32>
    %460 = vector.broadcast %459 : vector<32x1xf32> to vector<32x32xf32>
    %461 = arith.subf %457, %460 : vector<32x32xf32>
    %462 = math.exp %461 : vector<32x32xf32>
    %cst_266 = arith.constant dense<0.000000e+00> : vector<32xf32>
    %463 = vector.multi_reduction <add>, %462, %cst_266 [1] : vector<32x32xf32> to vector<32xf32>
    %464 = vector.shape_cast %463 : vector<32xf32> to vector<32x1xf32>
    %465 = tpu.reciprocal %464 {approx = true} : vector<32x1xf32> -> vector<32x1xf32>
    %466 = vector.broadcast %465 : vector<32x1xf32> to vector<32x32xf32>
    %467 = arith.mulf %462, %466 : vector<32x32xf32>
    %468 = vector.extract_strided_slice %454 {offsets = [0, 0], sizes = [1, 1], strides = [1, 1]} : vector<3x1xf32> to vector<1x1xf32>
    %469 = vector.broadcast %468 : vector<1x1xf32> to vector<32x32xf32>
    %470 = arith.mulf %469, %467 : vector<32x32xf32>
    %471 = arith.addf %444, %470 : vector<32x32xf32>
    %472 = arith.addf %471, %227 : vector<32x32xf32>
    %c1_267 = arith.constant 1 : index
    %c0_268 = arith.constant 0 : index
    %473 = memref.load %arg1[%c1_267, %c0_268] : memref<3x3xf32, #tpu.memory_space<smem>>
    %474 = vector.broadcast %473 : f32 to vector<32x32xf32>
    %475 = arith.mulf %474, %317 : vector<32x32xf32>
    %cst_269 = arith.constant dense<0xFF800000> : vector<32xf32>
    %476 = vector.multi_reduction <maximumf>, %475, %cst_269 [1] : vector<32x32xf32> to vector<32xf32>
    %477 = vector.shape_cast %476 : vector<32xf32> to vector<32x1xf32>
    %478 = vector.broadcast %477 : vector<32x1xf32> to vector<32x32xf32>
    %479 = arith.subf %475, %478 : vector<32x32xf32>
    %480 = math.exp %479 : vector<32x32xf32>
    %cst_270 = arith.constant dense<0.000000e+00> : vector<32xf32>
    %481 = vector.multi_reduction <add>, %480, %cst_270 [1] : vector<32x32xf32> to vector<32xf32>
    %482 = vector.shape_cast %481 : vector<32xf32> to vector<32x1xf32>
    %483 = tpu.reciprocal %482 {approx = true} : vector<32x1xf32> -> vector<32x1xf32>
    %484 = vector.broadcast %483 : vector<32x1xf32> to vector<32x32xf32>
    %485 = arith.mulf %480, %484 : vector<32x32xf32>
    %486 = vector.extract_strided_slice %454 {offsets = [1, 0], sizes = [1, 1], strides = [1, 1]} : vector<3x1xf32> to vector<1x1xf32>
    %487 = vector.broadcast %486 : vector<1x1xf32> to vector<32x32xf32>
    %488 = arith.mulf %487, %485 : vector<32x32xf32>
    %489 = arith.addf %472, %488 : vector<32x32xf32>
    %490 = arith.addf %489, %317 : vector<32x32xf32>
    %c2_271 = arith.constant 2 : index
    %c0_272 = arith.constant 0 : index
    %491 = memref.load %arg1[%c2_271, %c0_272] : memref<3x3xf32, #tpu.memory_space<smem>>
    %492 = vector.broadcast %491 : f32 to vector<32x32xf32>
    %493 = arith.mulf %492, %407 : vector<32x32xf32>
    %cst_273 = arith.constant dense<0xFF800000> : vector<32xf32>
    %494 = vector.multi_reduction <maximumf>, %493, %cst_273 [1] : vector<32x32xf32> to vector<32xf32>
    %495 = vector.shape_cast %494 : vector<32xf32> to vector<32x1xf32>
    %496 = vector.broadcast %495 : vector<32x1xf32> to vector<32x32xf32>
    %497 = arith.subf %493, %496 : vector<32x32xf32>
    %498 = math.exp %497 : vector<32x32xf32>
    %cst_274 = arith.constant dense<0.000000e+00> : vector<32xf32>
    %499 = vector.multi_reduction <add>, %498, %cst_274 [1] : vector<32x32xf32> to vector<32xf32>
    %500 = vector.shape_cast %499 : vector<32xf32> to vector<32x1xf32>
    %501 = tpu.reciprocal %500 {approx = true} : vector<32x1xf32> -> vector<32x1xf32>
    %502 = vector.broadcast %501 : vector<32x1xf32> to vector<32x32xf32>
    %503 = arith.mulf %498, %502 : vector<32x32xf32>
    %504 = vector.extract_strided_slice %454 {offsets = [2, 0], sizes = [1, 1], strides = [1, 1]} : vector<3x1xf32> to vector<1x1xf32>
    %505 = vector.broadcast %504 : vector<1x1xf32> to vector<32x32xf32>
    %506 = arith.mulf %505, %503 : vector<32x32xf32>
    %507 = arith.addf %490, %506 : vector<32x32xf32>
    %508 = arith.addf %507, %407 : vector<32x32xf32>
    %cst_275 = arith.constant dense<0.000000e+00> : vector<256x32xf32>
    %509 = tpu.matmul %440, %508, %cst_275 {dimension_numbers = #tpu.dot_dimension_numbers<[1], [0], [0], [1], [0, 0, 1, 1], [], []>} : vector<256x32xf32>, vector<32x32xf32>, vector<256x32xf32> -> vector<256x32xf32>
    %cst_276 = arith.constant 0.000000e+00 : f32
    %510 = vector.broadcast %cst_276 : f32 to vector<256x32xf32>
    %511 = arith.maximumf %509, %510 : vector<256x32xf32>
    %cst_277 = arith.constant dense<0.000000e+00> : vector<3x32xf32>
    %512 = tpu.matmul %441, %511, %cst_277 {dimension_numbers = #tpu.dot_dimension_numbers<[1], [0], [0], [1], [0, 0, 1, 1], [], []>} : vector<3x256xf32>, vector<256x32xf32>, vector<3x32xf32> -> vector<3x32xf32>
    %cst_278 = arith.constant dense<0.000000e+00> : vector<3xf32>
    %513 = vector.multi_reduction <add>, %512, %cst_278 [1] : vector<3x32xf32> to vector<3xf32>
    %514 = vector.shape_cast %513 : vector<3xf32> to vector<3x1xf32>
    %515 = arith.addf %514, %442 : vector<3x1xf32>
    %516 = math.tanh %515 : vector<3x1xf32>
    %cst_279 = arith.constant 0.000000e+00 : f32
    %517 = vector.broadcast %cst_279 : f32 to vector<3x1xf32>
    %518 = arith.maximumf %516, %517 : vector<3x1xf32>
    %c0_280 = arith.constant 0 : index
    %c1_281 = arith.constant 1 : index
    %519 = memref.load %arg1[%c0_280, %c1_281] : memref<3x3xf32, #tpu.memory_space<smem>>
    %520 = vector.broadcast %519 : f32 to vector<32x32xf32>
    %521 = arith.mulf %520, %243 : vector<32x32xf32>
    %cst_282 = arith.constant dense<0xFF800000> : vector<32xf32>
    %522 = vector.multi_reduction <maximumf>, %521, %cst_282 [1] : vector<32x32xf32> to vector<32xf32>
    %523 = vector.shape_cast %522 : vector<32xf32> to vector<32x1xf32>
    %524 = vector.broadcast %523 : vector<32x1xf32> to vector<32x32xf32>
    %525 = arith.subf %521, %524 : vector<32x32xf32>
    %526 = math.exp %525 : vector<32x32xf32>
    %cst_283 = arith.constant dense<0.000000e+00> : vector<32xf32>
    %527 = vector.multi_reduction <add>, %526, %cst_283 [1] : vector<32x32xf32> to vector<32xf32>
    %528 = vector.shape_cast %527 : vector<32xf32> to vector<32x1xf32>
    %529 = tpu.reciprocal %528 {approx = true} : vector<32x1xf32> -> vector<32x1xf32>
    %530 = vector.broadcast %529 : vector<32x1xf32> to vector<32x32xf32>
    %531 = arith.mulf %526, %530 : vector<32x32xf32>
    %532 = vector.extract_strided_slice %518 {offsets = [0, 0], sizes = [1, 1], strides = [1, 1]} : vector<3x1xf32> to vector<1x1xf32>
    %533 = vector.broadcast %532 : vector<1x1xf32> to vector<32x32xf32>
    %534 = arith.mulf %533, %531 : vector<32x32xf32>
    %535 = arith.addf %508, %534 : vector<32x32xf32>
    %536 = arith.addf %535, %243 : vector<32x32xf32>
    %c1_284 = arith.constant 1 : index
    %c1_285 = arith.constant 1 : index
    %537 = memref.load %arg1[%c1_284, %c1_285] : memref<3x3xf32, #tpu.memory_space<smem>>
    %538 = vector.broadcast %537 : f32 to vector<32x32xf32>
    %539 = arith.mulf %538, %333 : vector<32x32xf32>
    %cst_286 = arith.constant dense<0xFF800000> : vector<32xf32>
    %540 = vector.multi_reduction <maximumf>, %539, %cst_286 [1] : vector<32x32xf32> to vector<32xf32>
    %541 = vector.shape_cast %540 : vector<32xf32> to vector<32x1xf32>
    %542 = vector.broadcast %541 : vector<32x1xf32> to vector<32x32xf32>
    %543 = arith.subf %539, %542 : vector<32x32xf32>
    %544 = math.exp %543 : vector<32x32xf32>
    %cst_287 = arith.constant dense<0.000000e+00> : vector<32xf32>
    %545 = vector.multi_reduction <add>, %544, %cst_287 [1] : vector<32x32xf32> to vector<32xf32>
    %546 = vector.shape_cast %545 : vector<32xf32> to vector<32x1xf32>
    %547 = tpu.reciprocal %546 {approx = true} : vector<32x1xf32> -> vector<32x1xf32>
    %548 = vector.broadcast %547 : vector<32x1xf32> to vector<32x32xf32>
    %549 = arith.mulf %544, %548 : vector<32x32xf32>
    %550 = vector.extract_strided_slice %518 {offsets = [1, 0], sizes = [1, 1], strides = [1, 1]} : vector<3x1xf32> to vector<1x1xf32>
    %551 = vector.broadcast %550 : vector<1x1xf32> to vector<32x32xf32>
    %552 = arith.mulf %551, %549 : vector<32x32xf32>
    %553 = arith.addf %536, %552 : vector<32x32xf32>
    %554 = arith.addf %553, %333 : vector<32x32xf32>
    %c2_288 = arith.constant 2 : index
    %c1_289 = arith.constant 1 : index
    %555 = memref.load %arg1[%c2_288, %c1_289] : memref<3x3xf32, #tpu.memory_space<smem>>
    %556 = vector.broadcast %555 : f32 to vector<32x32xf32>
    %557 = arith.mulf %556, %423 : vector<32x32xf32>
    %cst_290 = arith.constant dense<0xFF800000> : vector<32xf32>
    %558 = vector.multi_reduction <maximumf>, %557, %cst_290 [1] : vector<32x32xf32> to vector<32xf32>
    %559 = vector.shape_cast %558 : vector<32xf32> to vector<32x1xf32>
    %560 = vector.broadcast %559 : vector<32x1xf32> to vector<32x32xf32>
    %561 = arith.subf %557, %560 : vector<32x32xf32>
    %562 = math.exp %561 : vector<32x32xf32>
    %cst_291 = arith.constant dense<0.000000e+00> : vector<32xf32>
    %563 = vector.multi_reduction <add>, %562, %cst_291 [1] : vector<32x32xf32> to vector<32xf32>
    %564 = vector.shape_cast %563 : vector<32xf32> to vector<32x1xf32>
    %565 = tpu.reciprocal %564 {approx = true} : vector<32x1xf32> -> vector<32x1xf32>
    %566 = vector.broadcast %565 : vector<32x1xf32> to vector<32x32xf32>
    %567 = arith.mulf %562, %566 : vector<32x32xf32>
    %568 = vector.extract_strided_slice %518 {offsets = [2, 0], sizes = [1, 1], strides = [1, 1]} : vector<3x1xf32> to vector<1x1xf32>
    %569 = vector.broadcast %568 : vector<1x1xf32> to vector<32x32xf32>
    %570 = arith.mulf %569, %567 : vector<32x32xf32>
    %571 = arith.addf %554, %570 : vector<32x32xf32>
    %572 = arith.addf %571, %423 : vector<32x32xf32>
    %cst_292 = arith.constant dense<0.000000e+00> : vector<256x32xf32>
    %573 = tpu.matmul %440, %572, %cst_292 {dimension_numbers = #tpu.dot_dimension_numbers<[1], [0], [0], [1], [0, 0, 1, 1], [], []>} : vector<256x32xf32>, vector<32x32xf32>, vector<256x32xf32> -> vector<256x32xf32>
    %cst_293 = arith.constant 0.000000e+00 : f32
    %574 = vector.broadcast %cst_293 : f32 to vector<256x32xf32>
    %575 = arith.maximumf %573, %574 : vector<256x32xf32>
    %cst_294 = arith.constant dense<0.000000e+00> : vector<3x32xf32>
    %576 = tpu.matmul %441, %575, %cst_294 {dimension_numbers = #tpu.dot_dimension_numbers<[1], [0], [0], [1], [0, 0, 1, 1], [], []>} : vector<3x256xf32>, vector<256x32xf32>, vector<3x32xf32> -> vector<3x32xf32>
    %cst_295 = arith.constant dense<0.000000e+00> : vector<3xf32>
    %577 = vector.multi_reduction <add>, %576, %cst_295 [1] : vector<3x32xf32> to vector<3xf32>
    %578 = vector.shape_cast %577 : vector<3xf32> to vector<3x1xf32>
    %579 = arith.addf %578, %442 : vector<3x1xf32>
    %580 = math.tanh %579 : vector<3x1xf32>
    %cst_296 = arith.constant 0.000000e+00 : f32
    %581 = vector.broadcast %cst_296 : f32 to vector<3x1xf32>
    %582 = arith.maximumf %580, %581 : vector<3x1xf32>
    %c0_297 = arith.constant 0 : index
    %c2_298 = arith.constant 2 : index
    %583 = memref.load %arg1[%c0_297, %c2_298] : memref<3x3xf32, #tpu.memory_space<smem>>
    %584 = vector.broadcast %583 : f32 to vector<32x32xf32>
    %585 = arith.mulf %584, %259 : vector<32x32xf32>
    %cst_299 = arith.constant dense<0xFF800000> : vector<32xf32>
    %586 = vector.multi_reduction <maximumf>, %585, %cst_299 [1] : vector<32x32xf32> to vector<32xf32>
    %587 = vector.shape_cast %586 : vector<32xf32> to vector<32x1xf32>
    %588 = vector.broadcast %587 : vector<32x1xf32> to vector<32x32xf32>
    %589 = arith.subf %585, %588 : vector<32x32xf32>
    %590 = math.exp %589 : vector<32x32xf32>
    %cst_300 = arith.constant dense<0.000000e+00> : vector<32xf32>
    %591 = vector.multi_reduction <add>, %590, %cst_300 [1] : vector<32x32xf32> to vector<32xf32>
    %592 = vector.shape_cast %591 : vector<32xf32> to vector<32x1xf32>
    %593 = tpu.reciprocal %592 {approx = true} : vector<32x1xf32> -> vector<32x1xf32>
    %594 = vector.broadcast %593 : vector<32x1xf32> to vector<32x32xf32>
    %595 = arith.mulf %590, %594 : vector<32x32xf32>
    %596 = vector.extract_strided_slice %582 {offsets = [0, 0], sizes = [1, 1], strides = [1, 1]} : vector<3x1xf32> to vector<1x1xf32>
    %597 = vector.broadcast %596 : vector<1x1xf32> to vector<32x32xf32>
    %598 = arith.mulf %597, %595 : vector<32x32xf32>
    %599 = arith.addf %572, %598 : vector<32x32xf32>
    %600 = arith.addf %599, %259 : vector<32x32xf32>
    %c1_301 = arith.constant 1 : index
    %c2_302 = arith.constant 2 : index
    %601 = memref.load %arg1[%c1_301, %c2_302] : memref<3x3xf32, #tpu.memory_space<smem>>
    %602 = vector.broadcast %601 : f32 to vector<32x32xf32>
    %603 = arith.mulf %602, %349 : vector<32x32xf32>
    %cst_303 = arith.constant dense<0xFF800000> : vector<32xf32>
    %604 = vector.multi_reduction <maximumf>, %603, %cst_303 [1] : vector<32x32xf32> to vector<32xf32>
    %605 = vector.shape_cast %604 : vector<32xf32> to vector<32x1xf32>
    %606 = vector.broadcast %605 : vector<32x1xf32> to vector<32x32xf32>
    %607 = arith.subf %603, %606 : vector<32x32xf32>
    %608 = math.exp %607 : vector<32x32xf32>
    %cst_304 = arith.constant dense<0.000000e+00> : vector<32xf32>
    %609 = vector.multi_reduction <add>, %608, %cst_304 [1] : vector<32x32xf32> to vector<32xf32>
    %610 = vector.shape_cast %609 : vector<32xf32> to vector<32x1xf32>
    %611 = tpu.reciprocal %610 {approx = true} : vector<32x1xf32> -> vector<32x1xf32>
    %612 = vector.broadcast %611 : vector<32x1xf32> to vector<32x32xf32>
    %613 = arith.mulf %608, %612 : vector<32x32xf32>
    %614 = vector.extract_strided_slice %582 {offsets = [1, 0], sizes = [1, 1], strides = [1, 1]} : vector<3x1xf32> to vector<1x1xf32>
    %615 = vector.broadcast %614 : vector<1x1xf32> to vector<32x32xf32>
    %616 = arith.mulf %615, %613 : vector<32x32xf32>
    %617 = arith.addf %600, %616 : vector<32x32xf32>
    %618 = arith.addf %617, %349 : vector<32x32xf32>
    %c2_305 = arith.constant 2 : index
    %c2_306 = arith.constant 2 : index
    %619 = memref.load %arg1[%c2_305, %c2_306] : memref<3x3xf32, #tpu.memory_space<smem>>
    %620 = vector.broadcast %619 : f32 to vector<32x32xf32>
    %621 = arith.mulf %620, %439 : vector<32x32xf32>
    %cst_307 = arith.constant dense<0xFF800000> : vector<32xf32>
    %622 = vector.multi_reduction <maximumf>, %621, %cst_307 [1] : vector<32x32xf32> to vector<32xf32>
    %623 = vector.shape_cast %622 : vector<32xf32> to vector<32x1xf32>
    %624 = vector.broadcast %623 : vector<32x1xf32> to vector<32x32xf32>
    %625 = arith.subf %621, %624 : vector<32x32xf32>
    %626 = math.exp %625 : vector<32x32xf32>
    %cst_308 = arith.constant dense<0.000000e+00> : vector<32xf32>
    %627 = vector.multi_reduction <add>, %626, %cst_308 [1] : vector<32x32xf32> to vector<32xf32>
    %628 = vector.shape_cast %627 : vector<32xf32> to vector<32x1xf32>
    %629 = tpu.reciprocal %628 {approx = true} : vector<32x1xf32> -> vector<32x1xf32>
    %630 = vector.broadcast %629 : vector<32x1xf32> to vector<32x32xf32>
    %631 = arith.mulf %626, %630 : vector<32x32xf32>
    %632 = vector.extract_strided_slice %582 {offsets = [2, 0], sizes = [1, 1], strides = [1, 1]} : vector<3x1xf32> to vector<1x1xf32>
    %633 = vector.broadcast %632 : vector<1x1xf32> to vector<32x32xf32>
    %634 = arith.mulf %633, %631 : vector<32x32xf32>
    %635 = arith.addf %618, %634 : vector<32x32xf32>
    %636 = arith.addf %635, %439 : vector<32x32xf32>
    %637 = arith.negf %636 : vector<32x32xf32>
    %638 = math.exp %637 : vector<32x32xf32>
    %cst_309 = arith.constant 1.000000e+00 : f32
    %639 = vector.broadcast %cst_309 : f32 to vector<32x32xf32>
    %640 = arith.addf %639, %638 : vector<32x32xf32>
    %641 = arith.divf %639, %640 : vector<32x32xf32>
    %c0_310 = arith.constant 0 : index
    %c0_311 = arith.constant 0 : index
    %642 = vector.load %arg34[%c0_310, %c0_311] : memref<1x32xf32, #tpu.memory_space<vmem>>, vector<1x32xf32>
    %c0_312 = arith.constant 0 : index
    %c0_313 = arith.constant 0 : index
    %643 = vector.load %arg35[%c0_312, %c0_313] : memref<1x32xf32, #tpu.memory_space<vmem>>, vector<1x32xf32>
    %cst_314 = arith.constant dense<0.000000e+00> : vector<32xf32>
    %644 = vector.multi_reduction <add>, %641, %cst_314 [1] : vector<32x32xf32> to vector<32xf32>
    %645 = vector.shape_cast %644 : vector<32xf32> to vector<32x1xf32>
    %cst_315 = arith.constant 3.200000e+01 : f32
    %646 = vector.broadcast %cst_315 : f32 to vector<32x1xf32>
    %647 = arith.divf %645, %646 : vector<32x1xf32>
    %648 = vector.broadcast %647 : vector<32x1xf32> to vector<32x32xf32>
    %649 = arith.subf %641, %648 : vector<32x32xf32>
    %650 = arith.mulf %649, %649 : vector<32x32xf32>
    %cst_316 = arith.constant dense<0.000000e+00> : vector<32xf32>
    %651 = vector.multi_reduction <add>, %650, %cst_316 [1] : vector<32x32xf32> to vector<32xf32>
    %652 = vector.shape_cast %651 : vector<32xf32> to vector<32x1xf32>
    %cst_317 = arith.constant 3.200000e+01 : f32
    %653 = vector.broadcast %cst_317 : f32 to vector<32x1xf32>
    %654 = arith.divf %652, %653 : vector<32x1xf32>
    %655 = vector.broadcast %647 : vector<32x1xf32> to vector<32x32xf32>
    %656 = arith.subf %641, %655 : vector<32x32xf32>
    %cst_318 = arith.constant 9.99999974E-6 : f32
    %657 = vector.broadcast %cst_318 : f32 to vector<32x1xf32>
    %658 = arith.addf %654, %657 : vector<32x1xf32>
    %659 = math.rsqrt %658 : vector<32x1xf32>
    %660 = vector.broadcast %659 : vector<32x1xf32> to vector<32x32xf32>
    %661 = arith.mulf %656, %660 : vector<32x32xf32>
    %662 = vector.broadcast %642 : vector<1x32xf32> to vector<32x32xf32>
    %663 = arith.mulf %661, %662 : vector<32x32xf32>
    %664 = vector.broadcast %643 : vector<1x32xf32> to vector<32x32xf32>
    %665 = arith.addf %663, %664 : vector<32x32xf32>
    %c0_319 = arith.constant 0 : index
    %c0_320 = arith.constant 0 : index
    %666 = vector.load %arg34[%c0_319, %c0_320] : memref<1x32xf32, #tpu.memory_space<vmem>>, vector<1x32xf32>
    %c0_321 = arith.constant 0 : index
    %c0_322 = arith.constant 0 : index
    %667 = vector.load %arg35[%c0_321, %c0_322] : memref<1x32xf32, #tpu.memory_space<vmem>>, vector<1x32xf32>
    %cst_323 = arith.constant dense<0.000000e+00> : vector<32xf32>
    %668 = vector.multi_reduction <add>, %665, %cst_323 [1] : vector<32x32xf32> to vector<32xf32>
    %669 = vector.shape_cast %668 : vector<32xf32> to vector<32x1xf32>
    %cst_324 = arith.constant 3.200000e+01 : f32
    %670 = vector.broadcast %cst_324 : f32 to vector<32x1xf32>
    %671 = arith.divf %669, %670 : vector<32x1xf32>
    %672 = vector.broadcast %671 : vector<32x1xf32> to vector<32x32xf32>
    %673 = arith.subf %665, %672 : vector<32x32xf32>
    %674 = arith.mulf %673, %673 : vector<32x32xf32>
    %cst_325 = arith.constant dense<0.000000e+00> : vector<32xf32>
    %675 = vector.multi_reduction <add>, %674, %cst_325 [1] : vector<32x32xf32> to vector<32xf32>
    %676 = vector.shape_cast %675 : vector<32xf32> to vector<32x1xf32>
    %cst_326 = arith.constant 3.200000e+01 : f32
    %677 = vector.broadcast %cst_326 : f32 to vector<32x1xf32>
    %678 = arith.divf %676, %677 : vector<32x1xf32>
    %679 = vector.broadcast %671 : vector<32x1xf32> to vector<32x32xf32>
    %680 = arith.subf %665, %679 : vector<32x32xf32>
    %cst_327 = arith.constant 9.99999974E-6 : f32
    %681 = vector.broadcast %cst_327 : f32 to vector<32x1xf32>
    %682 = arith.addf %678, %681 : vector<32x1xf32>
    %683 = math.rsqrt %682 : vector<32x1xf32>
    %684 = vector.broadcast %683 : vector<32x1xf32> to vector<32x32xf32>
    %685 = arith.mulf %680, %684 : vector<32x32xf32>
    %686 = vector.broadcast %666 : vector<1x32xf32> to vector<32x32xf32>
    %687 = arith.mulf %685, %686 : vector<32x32xf32>
    %688 = vector.broadcast %667 : vector<1x32xf32> to vector<32x32xf32>
    %689 = arith.addf %687, %688 : vector<32x32xf32>
    %690 = arith.addf %689, %1 : vector<32x32xf32>
    %c0_328 = arith.constant 0 : index
    %c0_329 = arith.constant 0 : index
    %691 = vector.load %arg36[%c0_328, %c0_329] : memref<32x32xf32, #tpu.memory_space<vmem>>, vector<32x32xf32>
    %cst_330 = arith.constant dense<0.000000e+00> : vector<32x32xf32>
    %692 = tpu.matmul %690, %691, %cst_330 {dimension_numbers = #tpu.dot_dimension_numbers<[1], [0], [0], [1], [0, 0, 1, 1], [], []>} : vector<32x32xf32>, vector<32x32xf32>, vector<32x32xf32> -> vector<32x32xf32>
    %c0_331 = arith.constant 0 : index
    %c0_332 = arith.constant 0 : index
    %693 = vector.load %arg37[%c0_331, %c0_332] : memref<1x32xf32, #tpu.memory_space<vmem>>, vector<1x32xf32>
    %694 = vector.broadcast %693 : vector<1x32xf32> to vector<32x32xf32>
    %695 = arith.addf %692, %694 : vector<32x32xf32>
    %c0_333 = arith.constant 0 : index
    %c0_334 = arith.constant 0 : index
    %696 = vector.load %arg6[%c0_333, %c0_334] : memref<32x32xf32, #tpu.memory_space<vmem>>, vector<32x32xf32>
    %697 = arith.addf %1, %696 : vector<32x32xf32>
    %c0_335 = arith.constant 0 : index
    %c0_336 = arith.constant 0 : index
    %698 = vector.load %arg8[%c0_335, %c0_336] : memref<32x32xf32, #tpu.memory_space<vmem>>, vector<32x32xf32>
    %c0_337 = arith.constant 0 : index
    %c0_338 = arith.constant 0 : index
    %699 = vector.load %arg38[%c0_337, %c0_338] : memref<32x32xf32, #tpu.memory_space<vmem>>, vector<32x32xf32>
    %cst_339 = arith.constant dense<0.000000e+00> : vector<32x32xf32>
    %700 = tpu.matmul %697, %699, %cst_339 {dimension_numbers = #tpu.dot_dimension_numbers<[1], [0], [0], [1], [0, 0, 1, 1], [], []>} : vector<32x32xf32>, vector<32x32xf32>, vector<32x32xf32> -> vector<32x32xf32>
    %c0_340 = arith.constant 0 : index
    %c0_341 = arith.constant 0 : index
    %701 = vector.load %arg39[%c0_340, %c0_341] : memref<1x32xf32, #tpu.memory_space<vmem>>, vector<1x32xf32>
    %702 = vector.broadcast %701 : vector<1x32xf32> to vector<32x32xf32>
    %703 = arith.addf %700, %702 : vector<32x32xf32>
    %cst_342 = arith.constant 0.000000e+00 : f32
    %704 = vector.broadcast %cst_342 : f32 to vector<32x32xf32>
    %c0_343 = arith.constant 0 : index
    %c0_344 = arith.constant 0 : index
    %705 = vector.load %arg42[%c0_343, %c0_344] : memref<1x32xf32, #tpu.memory_space<vmem>>, vector<1x32xf32>
    %706 = vector.broadcast %705 : vector<1x32xf32> to vector<32x32xf32>
    %707 = arith.addf %704, %706 : vector<32x32xf32>
    %708 = vector.extract_strided_slice %703 {offsets = [0, 0], sizes = [32, 8], strides = [1, 1]} : vector<32x32xf32> to vector<32x8xf32>
    %cst_345 = arith.constant dense<0.000000e+00> : vector<32x32xf32>
    %709 = tpu.matmul %708, %708, %cst_345 {dimension_numbers = #tpu.dot_dimension_numbers<[1], [1], [0], [0], [0, 0, 1, 0], [], []>} : vector<32x8xf32>, vector<32x8xf32>, vector<32x32xf32> -> vector<32x32xf32>
    %cst_346 = arith.constant 0.176776692 : f32
    %710 = vector.broadcast %cst_346 : f32 to vector<32x32xf32>
    %711 = arith.mulf %709, %710 : vector<32x32xf32>
    %712 = arith.addf %711, %698 : vector<32x32xf32>
    %cst_347 = arith.constant dense<0xFF800000> : vector<32xf32>
    %713 = vector.multi_reduction <maximumf>, %712, %cst_347 [0] : vector<32x32xf32> to vector<32xf32>
    %714 = vector.shape_cast %713 : vector<32xf32> to vector<1x32xf32>
    %715 = vector.broadcast %714 : vector<1x32xf32> to vector<32x32xf32>
    %716 = arith.subf %712, %715 : vector<32x32xf32>
    %717 = math.exp %716 : vector<32x32xf32>
    %cst_348 = arith.constant dense<0.000000e+00> : vector<32xf32>
    %718 = vector.multi_reduction <add>, %717, %cst_348 [0] : vector<32x32xf32> to vector<32xf32>
    %719 = vector.shape_cast %718 : vector<32xf32> to vector<1x32xf32>
    %720 = tpu.reciprocal %719 {approx = true} : vector<1x32xf32> -> vector<1x32xf32>
    %721 = vector.broadcast %720 : vector<1x32xf32> to vector<32x32xf32>
    %722 = arith.mulf %717, %721 : vector<32x32xf32>
    %c0_349 = arith.constant 0 : index
    %c0_350 = arith.constant 0 : index
    %c0_351 = arith.constant 0 : index
    %723 = vector.load %arg40[%c0_349, %c0_350, %c0_351] : memref<4x32x32xf32, #tpu.memory_space<vmem>>, vector<1x32x32xf32>
    %724 = vector.shape_cast %723 : vector<1x32x32xf32> to vector<32x32xf32>
    %cst_352 = arith.constant dense<0.000000e+00> : vector<32x32xf32>
    %725 = tpu.matmul %697, %724, %cst_352 {dimension_numbers = #tpu.dot_dimension_numbers<[1], [0], [0], [1], [0, 0, 1, 1], [], []>} : vector<32x32xf32>, vector<32x32xf32>, vector<32x32xf32> -> vector<32x32xf32>
    %c0_353 = arith.constant 0 : index
    %c0_354 = arith.constant 0 : index
    %c0_355 = arith.constant 0 : index
    %726 = vector.load %arg41[%c0_353, %c0_354, %c0_355] : memref<4x1x32xf32, #tpu.memory_space<vmem>>, vector<1x1x32xf32>
    %727 = vector.shape_cast %726 : vector<1x1x32xf32> to vector<1x32xf32>
    %728 = vector.broadcast %727 : vector<1x32xf32> to vector<32x32xf32>
    %729 = arith.addf %725, %728 : vector<32x32xf32>
    %cst_356 = arith.constant dense<0.000000e+00> : vector<32x32xf32>
    %730 = tpu.matmul %722, %729, %cst_356 {dimension_numbers = #tpu.dot_dimension_numbers<[1], [0], [0], [1], [0, 0, 1, 1], [], []>} : vector<32x32xf32>, vector<32x32xf32>, vector<32x32xf32> -> vector<32x32xf32>
    %731 = arith.addf %707, %730 : vector<32x32xf32>
    %732 = vector.extract_strided_slice %703 {offsets = [0, 8], sizes = [32, 8], strides = [1, 1]} : vector<32x32xf32> to vector<32x8xf32>
    %cst_357 = arith.constant dense<0.000000e+00> : vector<32x32xf32>
    %733 = tpu.matmul %732, %732, %cst_357 {dimension_numbers = #tpu.dot_dimension_numbers<[1], [1], [0], [0], [0, 0, 1, 0], [], []>} : vector<32x8xf32>, vector<32x8xf32>, vector<32x32xf32> -> vector<32x32xf32>
    %cst_358 = arith.constant 0.176776692 : f32
    %734 = vector.broadcast %cst_358 : f32 to vector<32x32xf32>
    %735 = arith.mulf %733, %734 : vector<32x32xf32>
    %736 = arith.addf %735, %698 : vector<32x32xf32>
    %cst_359 = arith.constant dense<0xFF800000> : vector<32xf32>
    %737 = vector.multi_reduction <maximumf>, %736, %cst_359 [0] : vector<32x32xf32> to vector<32xf32>
    %738 = vector.shape_cast %737 : vector<32xf32> to vector<1x32xf32>
    %739 = vector.broadcast %738 : vector<1x32xf32> to vector<32x32xf32>
    %740 = arith.subf %736, %739 : vector<32x32xf32>
    %741 = math.exp %740 : vector<32x32xf32>
    %cst_360 = arith.constant dense<0.000000e+00> : vector<32xf32>
    %742 = vector.multi_reduction <add>, %741, %cst_360 [0] : vector<32x32xf32> to vector<32xf32>
    %743 = vector.shape_cast %742 : vector<32xf32> to vector<1x32xf32>
    %744 = tpu.reciprocal %743 {approx = true} : vector<1x32xf32> -> vector<1x32xf32>
    %745 = vector.broadcast %744 : vector<1x32xf32> to vector<32x32xf32>
    %746 = arith.mulf %741, %745 : vector<32x32xf32>
    %c1_361 = arith.constant 1 : index
    %c0_362 = arith.constant 0 : index
    %c0_363 = arith.constant 0 : index
    %747 = vector.load %arg40[%c1_361, %c0_362, %c0_363] : memref<4x32x32xf32, #tpu.memory_space<vmem>>, vector<1x32x32xf32>
    %748 = vector.shape_cast %747 : vector<1x32x32xf32> to vector<32x32xf32>
    %cst_364 = arith.constant dense<0.000000e+00> : vector<32x32xf32>
    %749 = tpu.matmul %697, %748, %cst_364 {dimension_numbers = #tpu.dot_dimension_numbers<[1], [0], [0], [1], [0, 0, 1, 1], [], []>} : vector<32x32xf32>, vector<32x32xf32>, vector<32x32xf32> -> vector<32x32xf32>
    %c1_365 = arith.constant 1 : index
    %c0_366 = arith.constant 0 : index
    %c0_367 = arith.constant 0 : index
    %750 = vector.load %arg41[%c1_365, %c0_366, %c0_367] : memref<4x1x32xf32, #tpu.memory_space<vmem>>, vector<1x1x32xf32>
    %751 = vector.shape_cast %750 : vector<1x1x32xf32> to vector<1x32xf32>
    %752 = vector.broadcast %751 : vector<1x32xf32> to vector<32x32xf32>
    %753 = arith.addf %749, %752 : vector<32x32xf32>
    %cst_368 = arith.constant dense<0.000000e+00> : vector<32x32xf32>
    %754 = tpu.matmul %746, %753, %cst_368 {dimension_numbers = #tpu.dot_dimension_numbers<[1], [0], [0], [1], [0, 0, 1, 1], [], []>} : vector<32x32xf32>, vector<32x32xf32>, vector<32x32xf32> -> vector<32x32xf32>
    %755 = arith.addf %731, %754 : vector<32x32xf32>
    %756 = vector.extract_strided_slice %703 {offsets = [0, 16], sizes = [32, 8], strides = [1, 1]} : vector<32x32xf32> to vector<32x8xf32>
    %cst_369 = arith.constant dense<0.000000e+00> : vector<32x32xf32>
    %757 = tpu.matmul %756, %756, %cst_369 {dimension_numbers = #tpu.dot_dimension_numbers<[1], [1], [0], [0], [0, 0, 1, 0], [], []>} : vector<32x8xf32>, vector<32x8xf32>, vector<32x32xf32> -> vector<32x32xf32>
    %cst_370 = arith.constant 0.176776692 : f32
    %758 = vector.broadcast %cst_370 : f32 to vector<32x32xf32>
    %759 = arith.mulf %757, %758 : vector<32x32xf32>
    %760 = arith.addf %759, %698 : vector<32x32xf32>
    %cst_371 = arith.constant dense<0xFF800000> : vector<32xf32>
    %761 = vector.multi_reduction <maximumf>, %760, %cst_371 [0] : vector<32x32xf32> to vector<32xf32>
    %762 = vector.shape_cast %761 : vector<32xf32> to vector<1x32xf32>
    %763 = vector.broadcast %762 : vector<1x32xf32> to vector<32x32xf32>
    %764 = arith.subf %760, %763 : vector<32x32xf32>
    %765 = math.exp %764 : vector<32x32xf32>
    %cst_372 = arith.constant dense<0.000000e+00> : vector<32xf32>
    %766 = vector.multi_reduction <add>, %765, %cst_372 [0] : vector<32x32xf32> to vector<32xf32>
    %767 = vector.shape_cast %766 : vector<32xf32> to vector<1x32xf32>
    %768 = tpu.reciprocal %767 {approx = true} : vector<1x32xf32> -> vector<1x32xf32>
    %769 = vector.broadcast %768 : vector<1x32xf32> to vector<32x32xf32>
    %770 = arith.mulf %765, %769 : vector<32x32xf32>
    %c2_373 = arith.constant 2 : index
    %c0_374 = arith.constant 0 : index
    %c0_375 = arith.constant 0 : index
    %771 = vector.load %arg40[%c2_373, %c0_374, %c0_375] : memref<4x32x32xf32, #tpu.memory_space<vmem>>, vector<1x32x32xf32>
    %772 = vector.shape_cast %771 : vector<1x32x32xf32> to vector<32x32xf32>
    %cst_376 = arith.constant dense<0.000000e+00> : vector<32x32xf32>
    %773 = tpu.matmul %697, %772, %cst_376 {dimension_numbers = #tpu.dot_dimension_numbers<[1], [0], [0], [1], [0, 0, 1, 1], [], []>} : vector<32x32xf32>, vector<32x32xf32>, vector<32x32xf32> -> vector<32x32xf32>
    %c2_377 = arith.constant 2 : index
    %c0_378 = arith.constant 0 : index
    %c0_379 = arith.constant 0 : index
    %774 = vector.load %arg41[%c2_377, %c0_378, %c0_379] : memref<4x1x32xf32, #tpu.memory_space<vmem>>, vector<1x1x32xf32>
    %775 = vector.shape_cast %774 : vector<1x1x32xf32> to vector<1x32xf32>
    %776 = vector.broadcast %775 : vector<1x32xf32> to vector<32x32xf32>
    %777 = arith.addf %773, %776 : vector<32x32xf32>
    %cst_380 = arith.constant dense<0.000000e+00> : vector<32x32xf32>
    %778 = tpu.matmul %770, %777, %cst_380 {dimension_numbers = #tpu.dot_dimension_numbers<[1], [0], [0], [1], [0, 0, 1, 1], [], []>} : vector<32x32xf32>, vector<32x32xf32>, vector<32x32xf32> -> vector<32x32xf32>
    %779 = arith.addf %755, %778 : vector<32x32xf32>
    %780 = vector.extract_strided_slice %703 {offsets = [0, 24], sizes = [32, 8], strides = [1, 1]} : vector<32x32xf32> to vector<32x8xf32>
    %cst_381 = arith.constant dense<0.000000e+00> : vector<32x32xf32>
    %781 = tpu.matmul %780, %780, %cst_381 {dimension_numbers = #tpu.dot_dimension_numbers<[1], [1], [0], [0], [0, 0, 1, 0], [], []>} : vector<32x8xf32>, vector<32x8xf32>, vector<32x32xf32> -> vector<32x32xf32>
    %cst_382 = arith.constant 0.176776692 : f32
    %782 = vector.broadcast %cst_382 : f32 to vector<32x32xf32>
    %783 = arith.mulf %781, %782 : vector<32x32xf32>
    %784 = arith.addf %783, %698 : vector<32x32xf32>
    %cst_383 = arith.constant dense<0xFF800000> : vector<32xf32>
    %785 = vector.multi_reduction <maximumf>, %784, %cst_383 [0] : vector<32x32xf32> to vector<32xf32>
    %786 = vector.shape_cast %785 : vector<32xf32> to vector<1x32xf32>
    %787 = vector.broadcast %786 : vector<1x32xf32> to vector<32x32xf32>
    %788 = arith.subf %784, %787 : vector<32x32xf32>
    %789 = math.exp %788 : vector<32x32xf32>
    %cst_384 = arith.constant dense<0.000000e+00> : vector<32xf32>
    %790 = vector.multi_reduction <add>, %789, %cst_384 [0] : vector<32x32xf32> to vector<32xf32>
    %791 = vector.shape_cast %790 : vector<32xf32> to vector<1x32xf32>
    %792 = tpu.reciprocal %791 {approx = true} : vector<1x32xf32> -> vector<1x32xf32>
    %793 = vector.broadcast %792 : vector<1x32xf32> to vector<32x32xf32>
    %794 = arith.mulf %789, %793 : vector<32x32xf32>
    %c3_385 = arith.constant 3 : index
    %c0_386 = arith.constant 0 : index
    %c0_387 = arith.constant 0 : index
    %795 = vector.load %arg40[%c3_385, %c0_386, %c0_387] : memref<4x32x32xf32, #tpu.memory_space<vmem>>, vector<1x32x32xf32>
    %796 = vector.shape_cast %795 : vector<1x32x32xf32> to vector<32x32xf32>
    %cst_388 = arith.constant dense<0.000000e+00> : vector<32x32xf32>
    %797 = tpu.matmul %697, %796, %cst_388 {dimension_numbers = #tpu.dot_dimension_numbers<[1], [0], [0], [1], [0, 0, 1, 1], [], []>} : vector<32x32xf32>, vector<32x32xf32>, vector<32x32xf32> -> vector<32x32xf32>
    %c3_389 = arith.constant 3 : index
    %c0_390 = arith.constant 0 : index
    %c0_391 = arith.constant 0 : index
    %798 = vector.load %arg41[%c3_389, %c0_390, %c0_391] : memref<4x1x32xf32, #tpu.memory_space<vmem>>, vector<1x1x32xf32>
    %799 = vector.shape_cast %798 : vector<1x1x32xf32> to vector<1x32xf32>
    %800 = vector.broadcast %799 : vector<1x32xf32> to vector<32x32xf32>
    %801 = arith.addf %797, %800 : vector<32x32xf32>
    %cst_392 = arith.constant dense<0.000000e+00> : vector<32x32xf32>
    %802 = tpu.matmul %794, %801, %cst_392 {dimension_numbers = #tpu.dot_dimension_numbers<[1], [0], [0], [1], [0, 0, 1, 1], [], []>} : vector<32x32xf32>, vector<32x32xf32>, vector<32x32xf32> -> vector<32x32xf32>
    %803 = arith.addf %779, %802 : vector<32x32xf32>
    %804 = arith.addf %803, %697 : vector<32x32xf32>
    %c0_393 = arith.constant 0 : index
    %c0_394 = arith.constant 0 : index
    %805 = vector.load %arg43[%c0_393, %c0_394] : memref<1x32xf32, #tpu.memory_space<vmem>>, vector<1x32xf32>
    %c0_395 = arith.constant 0 : index
    %c0_396 = arith.constant 0 : index
    %806 = vector.load %arg44[%c0_395, %c0_396] : memref<1x32xf32, #tpu.memory_space<vmem>>, vector<1x32xf32>
    %cst_397 = arith.constant dense<0.000000e+00> : vector<32xf32>
    %807 = vector.multi_reduction <add>, %804, %cst_397 [1] : vector<32x32xf32> to vector<32xf32>
    %808 = vector.shape_cast %807 : vector<32xf32> to vector<32x1xf32>
    %cst_398 = arith.constant 3.200000e+01 : f32
    %809 = vector.broadcast %cst_398 : f32 to vector<32x1xf32>
    %810 = arith.divf %808, %809 : vector<32x1xf32>
    %811 = vector.broadcast %810 : vector<32x1xf32> to vector<32x32xf32>
    %812 = arith.subf %804, %811 : vector<32x32xf32>
    %813 = arith.mulf %812, %812 : vector<32x32xf32>
    %cst_399 = arith.constant dense<0.000000e+00> : vector<32xf32>
    %814 = vector.multi_reduction <add>, %813, %cst_399 [1] : vector<32x32xf32> to vector<32xf32>
    %815 = vector.shape_cast %814 : vector<32xf32> to vector<32x1xf32>
    %cst_400 = arith.constant 3.200000e+01 : f32
    %816 = vector.broadcast %cst_400 : f32 to vector<32x1xf32>
    %817 = arith.divf %815, %816 : vector<32x1xf32>
    %818 = vector.broadcast %810 : vector<32x1xf32> to vector<32x32xf32>
    %819 = arith.subf %804, %818 : vector<32x32xf32>
    %cst_401 = arith.constant 9.99999974E-6 : f32
    %820 = vector.broadcast %cst_401 : f32 to vector<32x1xf32>
    %821 = arith.addf %817, %820 : vector<32x1xf32>
    %822 = math.rsqrt %821 : vector<32x1xf32>
    %823 = vector.broadcast %822 : vector<32x1xf32> to vector<32x32xf32>
    %824 = arith.mulf %819, %823 : vector<32x32xf32>
    %825 = vector.broadcast %805 : vector<1x32xf32> to vector<32x32xf32>
    %826 = arith.mulf %824, %825 : vector<32x32xf32>
    %827 = vector.broadcast %806 : vector<1x32xf32> to vector<32x32xf32>
    %828 = arith.addf %826, %827 : vector<32x32xf32>
    %c0_402 = arith.constant 0 : index
    %c0_403 = arith.constant 0 : index
    %829 = vector.load %arg45[%c0_402, %c0_403] : memref<32x64xf32, #tpu.memory_space<vmem>>, vector<32x64xf32>
    %cst_404 = arith.constant dense<0.000000e+00> : vector<32x64xf32>
    %830 = tpu.matmul %828, %829, %cst_404 {dimension_numbers = #tpu.dot_dimension_numbers<[1], [0], [0], [1], [0, 0, 1, 1], [], []>} : vector<32x32xf32>, vector<32x64xf32>, vector<32x64xf32> -> vector<32x64xf32>
    %c0_405 = arith.constant 0 : index
    %c0_406 = arith.constant 0 : index
    %831 = vector.load %arg46[%c0_405, %c0_406] : memref<1x64xf32, #tpu.memory_space<vmem>>, vector<1x64xf32>
    %832 = vector.broadcast %831 : vector<1x64xf32> to vector<32x64xf32>
    %833 = arith.addf %830, %832 : vector<32x64xf32>
    %cst_407 = arith.constant 0.000000e+00 : f32
    %834 = vector.broadcast %cst_407 : f32 to vector<32x64xf32>
    %835 = arith.maximumf %833, %834 : vector<32x64xf32>
    %c0_408 = arith.constant 0 : index
    %c0_409 = arith.constant 0 : index
    %836 = vector.load %arg47[%c0_408, %c0_409] : memref<64x32xf32, #tpu.memory_space<vmem>>, vector<64x32xf32>
    %cst_410 = arith.constant dense<0.000000e+00> : vector<32x32xf32>
    %837 = tpu.matmul %835, %836, %cst_410 {dimension_numbers = #tpu.dot_dimension_numbers<[1], [0], [0], [1], [0, 0, 1, 1], [], []>} : vector<32x64xf32>, vector<64x32xf32>, vector<32x32xf32> -> vector<32x32xf32>
    %c0_411 = arith.constant 0 : index
    %c0_412 = arith.constant 0 : index
    %838 = vector.load %arg48[%c0_411, %c0_412] : memref<1x32xf32, #tpu.memory_space<vmem>>, vector<1x32xf32>
    %839 = vector.broadcast %838 : vector<1x32xf32> to vector<32x32xf32>
    %840 = arith.addf %837, %839 : vector<32x32xf32>
    %841 = arith.addf %828, %840 : vector<32x32xf32>
    %c0_413 = arith.constant 0 : index
    %c0_414 = arith.constant 0 : index
    %842 = vector.load %arg49[%c0_413, %c0_414] : memref<1x32xf32, #tpu.memory_space<vmem>>, vector<1x32xf32>
    %c0_415 = arith.constant 0 : index
    %c0_416 = arith.constant 0 : index
    %843 = vector.load %arg50[%c0_415, %c0_416] : memref<1x32xf32, #tpu.memory_space<vmem>>, vector<1x32xf32>
    %cst_417 = arith.constant dense<0.000000e+00> : vector<32xf32>
    %844 = vector.multi_reduction <add>, %841, %cst_417 [1] : vector<32x32xf32> to vector<32xf32>
    %845 = vector.shape_cast %844 : vector<32xf32> to vector<32x1xf32>
    %cst_418 = arith.constant 3.200000e+01 : f32
    %846 = vector.broadcast %cst_418 : f32 to vector<32x1xf32>
    %847 = arith.divf %845, %846 : vector<32x1xf32>
    %848 = vector.broadcast %847 : vector<32x1xf32> to vector<32x32xf32>
    %849 = arith.subf %841, %848 : vector<32x32xf32>
    %850 = arith.mulf %849, %849 : vector<32x32xf32>
    %cst_419 = arith.constant dense<0.000000e+00> : vector<32xf32>
    %851 = vector.multi_reduction <add>, %850, %cst_419 [1] : vector<32x32xf32> to vector<32xf32>
    %852 = vector.shape_cast %851 : vector<32xf32> to vector<32x1xf32>
    %cst_420 = arith.constant 3.200000e+01 : f32
    %853 = vector.broadcast %cst_420 : f32 to vector<32x1xf32>
    %854 = arith.divf %852, %853 : vector<32x1xf32>
    %855 = vector.broadcast %847 : vector<32x1xf32> to vector<32x32xf32>
    %856 = arith.subf %841, %855 : vector<32x32xf32>
    %cst_421 = arith.constant 9.99999974E-6 : f32
    %857 = vector.broadcast %cst_421 : f32 to vector<32x1xf32>
    %858 = arith.addf %854, %857 : vector<32x1xf32>
    %859 = math.rsqrt %858 : vector<32x1xf32>
    %860 = vector.broadcast %859 : vector<32x1xf32> to vector<32x32xf32>
    %861 = arith.mulf %856, %860 : vector<32x32xf32>
    %862 = vector.broadcast %842 : vector<1x32xf32> to vector<32x32xf32>
    %863 = arith.mulf %861, %862 : vector<32x32xf32>
    %864 = vector.broadcast %843 : vector<1x32xf32> to vector<32x32xf32>
    %865 = arith.addf %863, %864 : vector<32x32xf32>
    %866 = arith.addf %865, %697 : vector<32x32xf32>
    %867 = arith.addf %866, %828 : vector<32x32xf32>
    %868 = arith.addf %867, %1 : vector<32x32xf32>
    %c0_422 = arith.constant 0 : index
    %c0_423 = arith.constant 0 : index
    %869 = vector.load %arg51[%c0_422, %c0_423] : memref<1x32xf32, #tpu.memory_space<vmem>>, vector<1x32xf32>
    %c0_424 = arith.constant 0 : index
    %c0_425 = arith.constant 0 : index
    %870 = vector.load %arg52[%c0_424, %c0_425] : memref<1x32xf32, #tpu.memory_space<vmem>>, vector<1x32xf32>
    %cst_426 = arith.constant dense<0.000000e+00> : vector<32xf32>
    %871 = vector.multi_reduction <add>, %868, %cst_426 [1] : vector<32x32xf32> to vector<32xf32>
    %872 = vector.shape_cast %871 : vector<32xf32> to vector<32x1xf32>
    %cst_427 = arith.constant 3.200000e+01 : f32
    %873 = vector.broadcast %cst_427 : f32 to vector<32x1xf32>
    %874 = arith.divf %872, %873 : vector<32x1xf32>
    %875 = vector.broadcast %874 : vector<32x1xf32> to vector<32x32xf32>
    %876 = arith.subf %868, %875 : vector<32x32xf32>
    %877 = arith.mulf %876, %876 : vector<32x32xf32>
    %cst_428 = arith.constant dense<0.000000e+00> : vector<32xf32>
    %878 = vector.multi_reduction <add>, %877, %cst_428 [1] : vector<32x32xf32> to vector<32xf32>
    %879 = vector.shape_cast %878 : vector<32xf32> to vector<32x1xf32>
    %cst_429 = arith.constant 3.200000e+01 : f32
    %880 = vector.broadcast %cst_429 : f32 to vector<32x1xf32>
    %881 = arith.divf %879, %880 : vector<32x1xf32>
    %882 = vector.broadcast %874 : vector<32x1xf32> to vector<32x32xf32>
    %883 = arith.subf %868, %882 : vector<32x32xf32>
    %cst_430 = arith.constant 9.99999974E-6 : f32
    %884 = vector.broadcast %cst_430 : f32 to vector<32x1xf32>
    %885 = arith.addf %881, %884 : vector<32x1xf32>
    %886 = math.rsqrt %885 : vector<32x1xf32>
    %887 = vector.broadcast %886 : vector<32x1xf32> to vector<32x32xf32>
    %888 = arith.mulf %883, %887 : vector<32x32xf32>
    %889 = vector.broadcast %869 : vector<1x32xf32> to vector<32x32xf32>
    %890 = arith.mulf %888, %889 : vector<32x32xf32>
    %891 = vector.broadcast %870 : vector<1x32xf32> to vector<32x32xf32>
    %892 = arith.addf %890, %891 : vector<32x32xf32>
    %c0_431 = arith.constant 0 : index
    %c0_432 = arith.constant 0 : index
    %893 = vector.load %arg53[%c0_431, %c0_432] : memref<32x32xf32, #tpu.memory_space<vmem>>, vector<32x32xf32>
    %cst_433 = arith.constant dense<0.000000e+00> : vector<32x32xf32>
    %894 = tpu.matmul %892, %893, %cst_433 {dimension_numbers = #tpu.dot_dimension_numbers<[1], [0], [0], [1], [0, 0, 1, 1], [], []>} : vector<32x32xf32>, vector<32x32xf32>, vector<32x32xf32> -> vector<32x32xf32>
    %c0_434 = arith.constant 0 : index
    %c0_435 = arith.constant 0 : index
    %895 = vector.load %arg54[%c0_434, %c0_435] : memref<1x32xf32, #tpu.memory_space<vmem>>, vector<1x32xf32>
    %896 = vector.broadcast %895 : vector<1x32xf32> to vector<32x32xf32>
    %897 = arith.addf %894, %896 : vector<32x32xf32>
    %898 = arith.negf %695 : vector<32x32xf32>
    %899 = math.exp %898 : vector<32x32xf32>
    %cst_436 = arith.constant 1.000000e+00 : f32
    %900 = vector.broadcast %cst_436 : f32 to vector<32x32xf32>
    %901 = arith.addf %900, %899 : vector<32x32xf32>
    %902 = arith.divf %900, %901 : vector<32x32xf32>
    %903 = arith.mulf %902, %695 : vector<32x32xf32>
    %904 = arith.negf %897 : vector<32x32xf32>
    %905 = math.exp %904 : vector<32x32xf32>
    %cst_437 = arith.constant 1.000000e+00 : f32
    %906 = vector.broadcast %cst_437 : f32 to vector<32x32xf32>
    %907 = arith.addf %906, %905 : vector<32x32xf32>
    %908 = arith.divf %906, %907 : vector<32x32xf32>
    %909 = arith.mulf %908, %897 : vector<32x32xf32>
    %910 = arith.addf %903, %909 : vector<32x32xf32>
    %c0_438 = arith.constant 0 : index
    %c0_439 = arith.constant 0 : index
    %c0_440 = arith.constant 0 : index
    %911 = vector.load %arg55[%c0_438, %c0_439, %c0_440] : memref<1x32x32xf32, #tpu.memory_space<vmem>>, vector<1x32x32xf32>
    %912 = vector.shape_cast %911 : vector<1x32x32xf32> to vector<32x32xf32>
    %913 = vector.shape_cast %910 : vector<32x32xf32> to vector<1x32x32xf32>
    tpu.vector_store %arg55[%c0_438, %c0_439, %c0_440], %913 {strides = array<i32>} : memref<1x32x32xf32, #tpu.memory_space<vmem>>, vector<1x32x32xf32>,
    return
  }
  func.func @transform_0(%arg0: i32) -> (i32, i32) {
    %c0_i32 = arith.constant 0 : i32
    %c0_i32_0 = arith.constant 0 : i32
    %c0_i32_1 = arith.constant 0 : i32
    return %c0_i32, %c0_i32_0 : i32, i32
  }
  func.func @transform_1(%arg0: i32) -> (i32, i32, i32) {
    %c0_i32 = arith.constant 0 : i32
    %c0_i32_0 = arith.constant 0 : i32
    %c0_i32_1 = arith.constant 0 : i32
    return %arg0, %c0_i32, %c0_i32_0 : i32, i32, i32
  }
  func.func @transform_2(%arg0: i32) -> (i32, i32, i32) {
    %c0_i32 = arith.constant 0 : i32
    %c0_i32_0 = arith.constant 0 : i32
    %c0_i32_1 = arith.constant 0 : i32
    return %arg0, %c0_i32, %c0_i32_0 : i32, i32, i32
  }
  func.func @transform_3(%arg0: i32) -> (i32, i32, i32) {
    %c0_i32 = arith.constant 0 : i32
    %c0_i32_0 = arith.constant 0 : i32
    %c0_i32_1 = arith.constant 0 : i32
    return %arg0, %c0_i32, %c0_i32_0 : i32, i32, i32
  }
  func.func @transform_4(%arg0: i32) -> (i32, i32) {
    %c0_i32 = arith.constant 0 : i32
    %c0_i32_0 = arith.constant 0 : i32
    %c0_i32_1 = arith.constant 0 : i32
    return %c0_i32, %c0_i32_0 : i32, i32
  }
  func.func @transform_5(%arg0: i32) -> (i32, i32) {
    %c0_i32 = arith.constant 0 : i32
    %c0_i32_0 = arith.constant 0 : i32
    %c0_i32_1 = arith.constant 0 : i32
    return %c0_i32, %c0_i32_0 : i32, i32
  }
  func.func @transform_6(%arg0: i32) -> (i32, i32) {
    %c0_i32 = arith.constant 0 : i32
    %c0_i32_0 = arith.constant 0 : i32
    %c0_i32_1 = arith.constant 0 : i32
    return %c0_i32, %c0_i32_0 : i32, i32
  }
  func.func @transform_7(%arg0: i32) -> (i32, i32) {
    %c0_i32 = arith.constant 0 : i32
    %c0_i32_0 = arith.constant 0 : i32
    %c0_i32_1 = arith.constant 0 : i32
    return %c0_i32, %c0_i32_0 : i32, i32
  }
  func.func @transform_8(%arg0: i32) -> (i32, i32) {
    %c0_i32 = arith.constant 0 : i32
    %c0_i32_0 = arith.constant 0 : i32
    %c0_i32_1 = arith.constant 0 : i32
    return %c0_i32, %c0_i32_0 : i32, i32
  }
  func.func @transform_9(%arg0: i32) -> (i32, i32) {
    %c0_i32 = arith.constant 0 : i32
    %c0_i32_0 = arith.constant 0 : i32
    %c0_i32_1 = arith.constant 0 : i32
    return %c0_i32, %c0_i32_0 : i32, i32
  }
  func.func @transform_10(%arg0: i32) -> (i32, i32, i32) {
    %c0_i32 = arith.constant 0 : i32
    %c0_i32_0 = arith.constant 0 : i32
    %c0_i32_1 = arith.constant 0 : i32
    %c0_i32_2 = arith.constant 0 : i32
    return %c0_i32, %c0_i32_0, %c0_i32_1 : i32, i32, i32
  }
  func.func @transform_11(%arg0: i32) -> (i32, i32) {
    %c0_i32 = arith.constant 0 : i32
    %c0_i32_0 = arith.constant 0 : i32
    %c0_i32_1 = arith.constant 0 : i32
    return %c0_i32, %c0_i32_0 : i32, i32
  }
  func.func @transform_12(%arg0: i32) -> (i32, i32) {
    %c0_i32 = arith.constant 0 : i32
    %c0_i32_0 = arith.constant 0 : i32
    %c0_i32_1 = arith.constant 0 : i32
    return %c0_i32, %c0_i32_0 : i32, i32
  }
  func.func @transform_13(%arg0: i32) -> (i32, i32) {
    %c0_i32 = arith.constant 0 : i32
    %c0_i32_0 = arith.constant 0 : i32
    %c0_i32_1 = arith.constant 0 : i32
    return %c0_i32, %c0_i32_0 : i32, i32
  }
  func.func @transform_14(%arg0: i32) -> (i32, i32) {
    %c0_i32 = arith.constant 0 : i32
    %c0_i32_0 = arith.constant 0 : i32
    %c0_i32_1 = arith.constant 0 : i32
    return %c0_i32, %c0_i32_0 : i32, i32
  }
  func.func @transform_15(%arg0: i32) -> (i32, i32) {
    %c0_i32 = arith.constant 0 : i32
    %c0_i32_0 = arith.constant 0 : i32
    %c0_i32_1 = arith.constant 0 : i32
    return %c0_i32, %c0_i32_0 : i32, i32
  }
  func.func @transform_16(%arg0: i32) -> (i32, i32) {
    %c0_i32 = arith.constant 0 : i32
    %c0_i32_0 = arith.constant 0 : i32
    %c0_i32_1 = arith.constant 0 : i32
    return %c0_i32, %c0_i32_0 : i32, i32
  }
  func.func @transform_17(%arg0: i32) -> (i32, i32) {
    %c0_i32 = arith.constant 0 : i32
    %c0_i32_0 = arith.constant 0 : i32
    %c0_i32_1 = arith.constant 0 : i32
    return %c0_i32, %c0_i32_0 : i32, i32
  }
  func.func @transform_18(%arg0: i32) -> (i32, i32) {
    %c0_i32 = arith.constant 0 : i32
    %c0_i32_0 = arith.constant 0 : i32
    %c0_i32_1 = arith.constant 0 : i32
    return %c0_i32, %c0_i32_0 : i32, i32
  }
  func.func @transform_19(%arg0: i32) -> (i32, i32) {
    %c0_i32 = arith.constant 0 : i32
    %c0_i32_0 = arith.constant 0 : i32
    %c0_i32_1 = arith.constant 0 : i32
    return %c0_i32, %c0_i32_0 : i32, i32
  }
  func.func @transform_20(%arg0: i32) -> (i32, i32) {
    %c0_i32 = arith.constant 0 : i32
    %c0_i32_0 = arith.constant 0 : i32
    %c0_i32_1 = arith.constant 0 : i32
    return %c0_i32, %c0_i32_0 : i32, i32
  }
  func.func @transform_21(%arg0: i32) -> (i32, i32) {
    %c0_i32 = arith.constant 0 : i32
    %c0_i32_0 = arith.constant 0 : i32
    %c0_i32_1 = arith.constant 0 : i32
    return %c0_i32, %c0_i32_0 : i32, i32
  }
  func.func @transform_22(%arg0: i32) -> (i32, i32) {
    %c0_i32 = arith.constant 0 : i32
    %c0_i32_0 = arith.constant 0 : i32
    %c0_i32_1 = arith.constant 0 : i32
    return %c0_i32, %c0_i32_0 : i32, i32
  }
  func.func @transform_23(%arg0: i32) -> (i32, i32) {
    %c0_i32 = arith.constant 0 : i32
    %c0_i32_0 = arith.constant 0 : i32
    %c0_i32_1 = arith.constant 0 : i32
    return %c0_i32, %c0_i32_0 : i32, i32
  }
  func.func @transform_24(%arg0: i32) -> (i32, i32, i32) {
    %c0_i32 = arith.constant 0 : i32
    %c0_i32_0 = arith.constant 0 : i32
    %c0_i32_1 = arith.constant 0 : i32
    %c0_i32_2 = arith.constant 0 : i32
    return %c0_i32, %c0_i32_0, %c0_i32_1 : i32, i32, i32
  }
  func.func @transform_25(%arg0: i32) -> (i32, i32, i32) {
    %c0_i32 = arith.constant 0 : i32
    %c0_i32_0 = arith.constant 0 : i32
    %c0_i32_1 = arith.constant 0 : i32
    %c0_i32_2 = arith.constant 0 : i32
    return %c0_i32, %c0_i32_0, %c0_i32_1 : i32, i32, i32
  }
  func.func @transform_26(%arg0: i32) -> (i32, i32) {
    %c0_i32 = arith.constant 0 : i32
    %c0_i32_0 = arith.constant 0 : i32
    %c0_i32_1 = arith.constant 0 : i32
    return %c0_i32, %c0_i32_0 : i32, i32
  }
  func.func @transform_27(%arg0: i32) -> (i32, i32) {
    %c0_i32 = arith.constant 0 : i32
    %c0_i32_0 = arith.constant 0 : i32
    %c0_i32_1 = arith.constant 0 : i32
    return %c0_i32, %c0_i32_0 : i32, i32
  }
  func.func @transform_28(%arg0: i32) -> (i32, i32) {
    %c0_i32 = arith.constant 0 : i32
    %c0_i32_0 = arith.constant 0 : i32
    %c0_i32_1 = arith.constant 0 : i32
    return %c0_i32, %c0_i32_0 : i32, i32
  }
  func.func @transform_29(%arg0: i32) -> (i32, i32) {
    %c0_i32 = arith.constant 0 : i32
    %c0_i32_0 = arith.constant 0 : i32
    %c0_i32_1 = arith.constant 0 : i32
    return %c0_i32, %c0_i32_0 : i32, i32
  }
  func.func @transform_30(%arg0: i32) -> (i32, i32) {
    %c0_i32 = arith.constant 0 : i32
    %c0_i32_0 = arith.constant 0 : i32
    %c0_i32_1 = arith.constant 0 : i32
    return %c0_i32, %c0_i32_0 : i32, i32
  }
  func.func @transform_31(%arg0: i32) -> (i32, i32) {
    %c0_i32 = arith.constant 0 : i32
    %c0_i32_0 = arith.constant 0 : i32
    %c0_i32_1 = arith.constant 0 : i32
    return %c0_i32, %c0_i32_0 : i32, i32
  }
  func.func @transform_32(%arg0: i32) -> (i32, i32) {
    %c0_i32 = arith.constant 0 : i32
    %c0_i32_0 = arith.constant 0 : i32
    %c0_i32_1 = arith.constant 0 : i32
    return %c0_i32, %c0_i32_0 : i32, i32
  }
  func.func @transform_33(%arg0: i32) -> (i32, i32) {
    %c0_i32 = arith.constant 0 : i32
    %c0_i32_0 = arith.constant 0 : i32
    %c0_i32_1 = arith.constant 0 : i32
    return %c0_i32, %c0_i32_0 : i32, i32
  }
  func.func @transform_34(%arg0: i32) -> (i32, i32) {
    %c0_i32 = arith.constant 0 : i32
    %c0_i32_0 = arith.constant 0 : i32
    %c0_i32_1 = arith.constant 0 : i32
    return %c0_i32, %c0_i32_0 : i32, i32
  }
  func.func @transform_35(%arg0: i32) -> (i32, i32) {
    %c0_i32 = arith.constant 0 : i32
    %c0_i32_0 = arith.constant 0 : i32
    %c0_i32_1 = arith.constant 0 : i32
    return %c0_i32, %c0_i32_0 : i32, i32
  }
  func.func @transform_36(%arg0: i32) -> (i32, i32) {
    %c0_i32 = arith.constant 0 : i32
    %c0_i32_0 = arith.constant 0 : i32
    %c0_i32_1 = arith.constant 0 : i32
    return %c0_i32, %c0_i32_0 : i32, i32
  }
  func.func @transform_37(%arg0: i32) -> (i32, i32) {
    %c0_i32 = arith.constant 0 : i32
    %c0_i32_0 = arith.constant 0 : i32
    %c0_i32_1 = arith.constant 0 : i32
    return %c0_i32, %c0_i32_0 : i32, i32
  }
  func.func @transform_38(%arg0: i32) -> (i32, i32) {
    %c0_i32 = arith.constant 0 : i32
    %c0_i32_0 = arith.constant 0 : i32
    %c0_i32_1 = arith.constant 0 : i32
    return %c0_i32, %c0_i32_0 : i32, i32
  }
  func.func @transform_39(%arg0: i32) -> (i32, i32, i32) {
    %c0_i32 = arith.constant 0 : i32
    %c0_i32_0 = arith.constant 0 : i32
    %c0_i32_1 = arith.constant 0 : i32
    %c0_i32_2 = arith.constant 0 : i32
    return %c0_i32, %c0_i32_0, %c0_i32_1 : i32, i32, i32
  }
  func.func @transform_40(%arg0: i32) -> (i32, i32, i32) {
    %c0_i32 = arith.constant 0 : i32
    %c0_i32_0 = arith.constant 0 : i32
    %c0_i32_1 = arith.constant 0 : i32
    %c0_i32_2 = arith.constant 0 : i32
    return %c0_i32, %c0_i32_0, %c0_i32_1 : i32, i32, i32
  }
  func.func @transform_41(%arg0: i32) -> (i32, i32) {
    %c0_i32 = arith.constant 0 : i32
    %c0_i32_0 = arith.constant 0 : i32
    %c0_i32_1 = arith.constant 0 : i32
    return %c0_i32, %c0_i32_0 : i32, i32
  }
  func.func @transform_42(%arg0: i32) -> (i32, i32) {
    %c0_i32 = arith.constant 0 : i32
    %c0_i32_0 = arith.constant 0 : i32
    %c0_i32_1 = arith.constant 0 : i32
    return %c0_i32, %c0_i32_0 : i32, i32
  }
  func.func @transform_43(%arg0: i32) -> (i32, i32) {
    %c0_i32 = arith.constant 0 : i32
    %c0_i32_0 = arith.constant 0 : i32
    %c0_i32_1 = arith.constant 0 : i32
    return %c0_i32, %c0_i32_0 : i32, i32
  }
  func.func @transform_44(%arg0: i32) -> (i32, i32) {
    %c0_i32 = arith.constant 0 : i32
    %c0_i32_0 = arith.constant 0 : i32
    %c0_i32_1 = arith.constant 0 : i32
    return %c0_i32, %c0_i32_0 : i32, i32
  }
  func.func @transform_45(%arg0: i32) -> (i32, i32) {
    %c0_i32 = arith.constant 0 : i32
    %c0_i32_0 = arith.constant 0 : i32
    %c0_i32_1 = arith.constant 0 : i32
    return %c0_i32, %c0_i32_0 : i32, i32
  }
  func.func @transform_46(%arg0: i32) -> (i32, i32) {
    %c0_i32 = arith.constant 0 : i32
    %c0_i32_0 = arith.constant 0 : i32
    %c0_i32_1 = arith.constant 0 : i32
    return %c0_i32, %c0_i32_0 : i32, i32
  }
  func.func @transform_47(%arg0: i32) -> (i32, i32) {
    %c0_i32 = arith.constant 0 : i32
    %c0_i32_0 = arith.constant 0 : i32
    %c0_i32_1 = arith.constant 0 : i32
    return %c0_i32, %c0_i32_0 : i32, i32
  }
  func.func @transform_48(%arg0: i32) -> (i32, i32) {
    %c0_i32 = arith.constant 0 : i32
    %c0_i32_0 = arith.constant 0 : i32
    %c0_i32_1 = arith.constant 0 : i32
    return %c0_i32, %c0_i32_0 : i32, i32
  }
  func.func @transform_49(%arg0: i32) -> (i32, i32) {
    %c0_i32 = arith.constant 0 : i32
    %c0_i32_0 = arith.constant 0 : i32
    %c0_i32_1 = arith.constant 0 : i32
    return %c0_i32, %c0_i32_0 : i32, i32
  }
  func.func @transform_50(%arg0: i32) -> (i32, i32) {
    %c0_i32 = arith.constant 0 : i32
    %c0_i32_0 = arith.constant 0 : i32
    %c0_i32_1 = arith.constant 0 : i32
    return %c0_i32, %c0_i32_0 : i32, i32
  }
  func.func @transform_51(%arg0: i32) -> (i32, i32) {
    %c0_i32 = arith.constant 0 : i32
    %c0_i32_0 = arith.constant 0 : i32
    %c0_i32_1 = arith.constant 0 : i32
    return %c0_i32, %c0_i32_0 : i32, i32
  }
  func.func @transform_52(%arg0: i32) -> (i32, i32) {
    %c0_i32 = arith.constant 0 : i32
    %c0_i32_0 = arith.constant 0 : i32
    %c0_i32_1 = arith.constant 0 : i32
    return %c0_i32, %c0_i32_0 : i32, i32
  }
  func.func @transform_53(%arg0: i32) -> (i32, i32) {
    %c0_i32 = arith.constant 0 : i32
    %c0_i32_0 = arith.constant 0 : i32
    %c0_i32_1 = arith.constant 0 : i32
    return %c0_i32, %c0_i32_0 : i32, i32
  }
  func.func @transform_54(%arg0: i32) -> (i32, i32, i32) {
    %c0_i32 = arith.constant 0 : i32
    %c0_i32_0 = arith.constant 0 : i32
    %c0_i32_1 = arith.constant 0 : i32
    return %arg0, %c0_i32, %c0_i32_0 : i32, i32, i32
  }
}

</mosaic_0001>

<bundles_post_ra>
// kernel: tile.13
= control target key start
LH: loop header
LB: loop body
LE: loop exit
PB: predicated region body
PF: predicated region fallthrough
CT: control target
= control target key end

     0   :  { %s22_s0 = inlined_call_operand.vmem [shape: f32[8], index: 0, kind: input, shape index: {}]   ;;  %s23_s1 = inlined_call_operand.vmem [shape: f32[4,8], index: 1, kind: output, shape index: {}]  }
   0x1   :  { %v4_v0 = vld [vmem:[%s22_s0] ss:$0 sm:$0xff] }
   0x2   :  { %5 = vst [vmem:[%s23_s1] sm:$0xf] %v4_v0 }

// kernel: tile.14
= control target key start
LH: loop header
LB: loop body
LE: loop exit
PB: predicated region body
PF: predicated region fallthrough
CT: control target
= control target key end

     0   :  { %vm7_vm0 = vcmask 64512   ;;  %s37_s8 = smov 8   ;;  %s38_s9 = smov 16   ;;  %vm13_vm1 = vcmask 261312   ;;  %vm19_vm2 = vcmask 195712   ;;  %vm25_vm3 = vcmask 130112   ;;  %s55_s0 = inlined_call_operand.vmem [shape: f32[4,8], index: 0, kind: input, shape index: {}]   ;;  %s56_s1 = inlined_call_operand.vmem [shape: f32[1,32], index: 1, kind: output, shape index: {}]  }
   0x1   :  { %v4_v0 = vld [vmem:[%s55_s0] sm:$0xf]  ;;  %s36_s0 = smov 24  }
   0x2   :  { %5 = vst [vmem:[#allocation1] sm:$0xf] %v4_v0 }
   0x9   :  { %v10_v1 = vld [vmem:[#allocation1 + $0x3] sm:$0x1]   ;;  %v22_v2 = vld [vmem:[#allocation1 + $0x1] sm:$0x1]   ;;  %v6_v3 = vld [vmem:[#allocation1] sm:$0x1]  }
   0xa   :  { %11 = vrot.lane.b32.xlu0 %v10_v1, %s36_s0  ;;  %23 = vrot.lane.b32.xlu1 %v22_v2, %s37_s8  ;;  %v16_v4 = vld [vmem:[#allocation1 + $0x2] sm:$0x1]   ;;  %8 = vst.msk [vmem:[#allocation0] sm:$0x1] %vm7_vm0, %v6_v3  }
   0xe   :  { %17 = vrot.lane.b32.xlu0 %v16_v4, %s38_s9 }
  0x7c   :  { %v12_v5 = vpop.permute.xlu0 %11   ;;  %v24_v6 = vpop.permute.xlu1 %23  }
  0x7d   :  { %14 = vst.msk [vmem:[#allocation0] sm:$0x1] %vm13_vm1, %v12_v5  }
  0x80   :  { %v18_v7 = vpop.permute.xlu0 %17  }
  0x81   :  { %20 = vst.msk [vmem:[#allocation0] sm:$0x1] %vm19_vm2, %v18_v7  }
  0x82   :  { %26 = vst.msk [vmem:[#allocation0] sm:$0x1] %vm25_vm3, %v24_v6  }
  0x89   :  { %v30_v8 = vld [vmem:[#allocation0] sm:$0x1] }
  0x8a   :  { %32 = vst [vmem:[%s56_s1] sm:$0x1] %v30_v8 }

// kernel: stgnsnet_block_forward.1
= control target key start
LH: loop header
LB: loop body
LE: loop exit
PB: predicated region body
PF: predicated region fallthrough
CT: control target
= control target key end

     0   :  { %s16288_s6 = smov 1   ;;  %s16289_s10 = smov 2   ;;  %s19443_s0 = inlined_call_operand.smem [shape: u32[55], index: -1, kind: input, shape index: {}] }
   0x1   :  { %s16360_s5 = sld [smem:[%s19443_s0]]   ;;  %s16290_s14 = smov 3  }
   0x2   :  { %s16365_s9 = sld [smem:[%s19443_s0 + %s16288_s6]]   ;;  %s16291_s18 = smov 4  }
   0x3   :  { %s16370_s13 = sld [smem:[%s19443_s0 + %s16289_s10]]   ;;  %s16292_s22 = smov 5  }
   0x4   :  { %s16375_s17 = sld [smem:[%s19443_s0 + %s16290_s14]]   ;;  %s16293_s26 = smov 6  }
   0x5   :  { %s16380_s21 = sld [smem:[%s19443_s0 + %s16291_s18]]   ;;  %s16294_s30 = smov 7  }
   0x6   :  { %s16385_s25 = sld [smem:[%s19443_s0 + %s16292_s22]]   ;;  %s16295_s4 = smov 8  }
   0x7   :  { %19580 = sst [smem:[#allocation15_spill]] %s16360_s5  ;;  %s16296_s10 = smov 9  }
   0x8   :  { %s16390_s29 = sld [smem:[%s19443_s0 + %s16293_s26]]   ;;  %s16297_s15 = smov 10  }
   0x9   :  { %s16395_s3 = sld [smem:[%s19443_s0 + %s16294_s30]]   ;;  %s16298_s20 = smov 11  }
   0xa   :  { %s16400_s8 = sld [smem:[%s19443_s0 + %s16295_s4]]   ;;  %s16299_s26 = smov 12  }
   0xb   :  { %s16405_s14 = sld [smem:[%s19443_s0 + %s16296_s10]]   ;;  %s16300_s1 = smov 13  }
   0xc   :  { %19581 = sst [smem:[#allocation16_spill]] %s16385_s25  ;;  %s16301_s7 = smov 14  }
   0xd   :  { %s16410_s19 = sld [smem:[%s19443_s0 + %s16297_s15]]   ;;  %s16302_s15 = smov 15  }
   0xe   :  { %s16415_s24 = sld [smem:[%s19443_s0 + %s16298_s20]]   ;;  %s16303_s22 = smov 16  }
   0xf   :  { %19582 = sst [smem:[#allocation17_spill]] %s16395_s3  ;;  %s16304_s28 = smov 17  }
  0x10   :  { %19583 = sst [smem:[#allocation18_spill]] %s16400_s8 }
  0x11   :  { %s16420_s30 = sld [smem:[%s19443_s0 + %s16299_s26]]  }
  0x12   :  { %s16425_s6 = sld [smem:[%s19443_s0 + %s16300_s1]]  }
  0x13   :  { %s16430_s12 = sld [smem:[%s19443_s0 + %s16301_s7]]   ;;  %s16305_s7 = smov 18  }
  0x14   :  { %s16435_s20 = sld [smem:[%s19443_s0 + %s16302_s15]]   ;;  %s16306_s15 = smov 19  }
  0x15   :  { %s16440_s27 = sld [smem:[%s19443_s0 + %s16303_s22]]   ;;  %s16307_s22 = smov 20  }
  0x16   :  { %s16445_s4 = sld [smem:[%s19443_s0 + %s16304_s28]]   ;;  %s16308_s28 = smov 21  }
  0x17   :  { %s16450_s3 = sld [smem:[%s19443_s0 + %s16305_s7]]   ;;  %s16309_s7 = smov 22  }
  0x18   :  { %19584 = sst [smem:[#allocation19_spill]] %s16425_s6 }
  0x19   :  { %s16455_s25 = sld [smem:[%s19443_s0 + %s16306_s15]]   ;;  %s16310_s15 = smov 23  }
  0x1a   :  { %19585 = sst [smem:[#allocation20_spill]] %s16435_s20 }
  0x1b   :  { %s16460_s20 = sld [smem:[%s19443_s0 + %s16307_s22]]   ;;  %s16311_s22 = smov 24  }
  0x1c   :  { %19586 = sst [smem:[#allocation21_spill]] %s16445_s4 }
  0x1d   :  { %19587 = sst [smem:[#allocation22_spill]] %s16450_s3 }
  0x1e   :  { %s16465_s4 = sld [smem:[%s19443_s0 + %s16308_s28]]   ;;  %s16312_s28 = smov 25  }
  0x1f   :  { %19588 = sst [smem:[#allocation23_spill]] %s16455_s25 }
  0x20   :  { %s16470_s3 = sld [smem:[%s19443_s0 + %s16309_s7]]   ;;  %s16313_s7 = smov 26  }
  0x21   :  { %19589 = sst [smem:[#allocation24_spill]] %s16460_s20 }
  0x22   :  { %s16475_s25 = sld [smem:[%s19443_s0 + %s16310_s15]]   ;;  %s16314_s15 = smov 27  }
  0x23   :  { %s16480_s20 = sld [smem:[%s19443_s0 + %s16311_s22]]   ;;  %s16315_s22 = smov 28  }
  0x24   :  { %19590 = sst [smem:[#allocation25_spill]] %s16465_s4 }
  0x25   :  { %s16485_s4 = sld [smem:[%s19443_s0 + %s16312_s28]]   ;;  %s16316_s28 = smov 29  }
  0x26   :  { %19591 = sst [smem:[#allocation26_spill]] %s16470_s3 }
  0x27   :  { %s16490_s3 = sld [smem:[%s19443_s0 + %s16313_s7]]   ;;  %s16317_s7 = smov 30  }
  0x28   :  { %19592 = sst [smem:[#allocation27_spill]] %s16475_s25 }
  0x29   :  { %19593 = sst [smem:[#allocation28_spill]] %s16480_s20 }
  0x2a   :  { %s16495_s25 = sld [smem:[%s19443_s0 + %s16314_s15]]   ;;  %s16318_s15 = smov 31  }
  0x2b   :  { %19594 = sst [smem:[#allocation29_spill]] %s16485_s4 }
  0x2c   :  { %s16500_s20 = sld [smem:[%s19443_s0 + %s16315_s22]]   ;;  %s16319_s22 = smov 32  }
  0x2d   :  { %19595 = sst [smem:[#allocation30_spill]] %s16490_s3 }
  0x2e   :  { %s16505_s4 = sld [smem:[%s19443_s0 + %s16316_s28]]   ;;  %s16320_s28 = smov 33  }
  0x2f   :  { %s16510_s3 = sld [smem:[%s19443_s0 + %s16317_s7]]   ;;  %s16321_s7 = smov 34  }
  0x30   :  { %19596 = sst [smem:[#allocation31_spill]] %s16495_s25 }
  0x31   :  { %s16515_s25 = sld [smem:[%s19443_s0 + %s16318_s15]]   ;;  %s16322_s15 = smov 35  }
  0x32   :  { %19597 = sst [smem:[#allocation32_spill]] %s16500_s20 }
  0x33   :  { %s16520_s20 = sld [smem:[%s19443_s0 + %s16319_s22]]   ;;  %s16323_s22 = smov 36  }
  0x34   :  { %19598 = sst [smem:[#allocation33_spill]] %s16505_s4 }
  0x35   :  { %19599 = sst [smem:[#allocation34_spill]] %s16510_s3 }
  0x36   :  { %s16525_s4 = sld [smem:[%s19443_s0 + %s16320_s28]]   ;;  %s16324_s28 = smov 37  }
  0x37   :  { %19600 = sst [smem:[#allocation35_spill]] %s16515_s25 }
  0x38   :  { %s16530_s3 = sld [smem:[%s19443_s0 + %s16321_s7]]   ;;  %s16325_s7 = smov 38  }
  0x39   :  { %19601 = sst [smem:[#allocation36_spill]] %s16520_s20 }
  0x3a   :  { %s16535_s25 = sld [smem:[%s19443_s0 + %s16322_s15]]   ;;  %s16326_s15 = smov 39  }
  0x3b   :  { %s16540_s20 = sld [smem:[%s19443_s0 + %s16323_s22]]   ;;  %s16327_s22 = smov 40  }
  0x3c   :  { %19602 = sst [smem:[#allocation37_spill]] %s16525_s4 }
  0x3d   :  { %s16545_s4 = sld [smem:[%s19443_s0 + %s16324_s28]]   ;;  %s16328_s28 = smov 41  }
  0x3e   :  { %19603 = sst [smem:[#allocation38_spill]] %s16530_s3 }
  0x3f   :  { %s16550_s3 = sld [smem:[%s19443_s0 + %s16325_s7]]   ;;  %s16329_s7 = smov 42  }
  0x40   :  { %19604 = sst [smem:[#allocation39_spill]] %s16535_s25 }
  0x41   :  { %19605 = sst [smem:[#allocation40_spill]] %s16540_s20 }
  0x42   :  { %s16555_s25 = sld [smem:[%s19443_s0 + %s16326_s15]]   ;;  %s16330_s15 = smov 43  }
  0x43   :  { %19606 = sst [smem:[#allocation41_spill]] %s16545_s4 }
  0x44   :  { %s16560_s20 = sld [smem:[%s19443_s0 + %s16327_s22]]   ;;  %s16331_s22 = smov 44  }
  0x45   :  { %19607 = sst [smem:[#allocation42_spill]] %s16550_s3 }
  0x46   :  { %s16565_s4 = sld [smem:[%s19443_s0 + %s16328_s28]]   ;;  %s16332_s28 = smov 45  }
  0x47   :  { %s16570_s3 = sld [smem:[%s19443_s0 + %s16329_s7]]   ;;  %s16333_s7 = smov 46  }
  0x48   :  { %19608 = sst [smem:[#allocation43_spill]] %s16555_s25 }
  0x49   :  { %s16575_s25 = sld [smem:[%s19443_s0 + %s16330_s15]]   ;;  %s16334_s15 = smov 47  }
  0x4a   :  { %19609 = sst [smem:[#allocation44_spill]] %s16560_s20 }
  0x4b   :  { %s16580_s20 = sld [smem:[%s19443_s0 + %s16331_s22]]   ;;  %s16335_s22 = smov 48  }
  0x4c   :  { %19610 = sst [smem:[#allocation45_spill]] %s16565_s4 }
  0x4d   :  { %19611 = sst [smem:[#allocation46_spill]] %s16570_s3 }
  0x4e   :  { %s16585_s4 = sld [smem:[%s19443_s0 + %s16332_s28]]   ;;  %s16336_s28 = smov 49  }
  0x4f   :  { %19612 = sst [smem:[#allocation47_spill]] %s16575_s25 }
  0x50   :  { %s16590_s3 = sld [smem:[%s19443_s0 + %s16333_s7]]   ;;  %s16337_s7 = smov 50  }
  0x51   :  { %19613 = sst [smem:[#allocation48_spill]] %s16580_s20 }
  0x52   :  { %s16595_s25 = sld [smem:[%s19443_s0 + %s16334_s15]]   ;;  %s16338_s15 = smov 51  }
  0x53   :  { %s16600_s20 = sld [smem:[%s19443_s0 + %s16335_s22]]   ;;  %s16339_s22 = smov 52  }
  0x54   :  { %19614 = sst [smem:[#allocation49_spill]] %s16585_s4 }
  0x55   :  { %s16605_s4 = sld [smem:[%s19443_s0 + %s16336_s28]]   ;;  %s16340_s28 = smov 53  }
  0x56   :  { %19615 = sst [smem:[#allocation50_spill]] %s16590_s3 }
  0x57   :  { %s16610_s3 = sld [smem:[%s19443_s0 + %s16337_s7]]   ;;  %s16341_s7 = smov 54  }
  0x58   :  { %19616 = sst [smem:[#allocation51_spill]] %s16595_s25 }
  0x59   :  { %19617 = sst [smem:[#allocation52_spill]] %s16600_s20 }
  0x5a   :  { %s16615_s25 = sld [smem:[%s19443_s0 + %s16338_s15]]  }
  0x5b   :  { %19618 = sst [smem:[#allocation53_spill]] %s16605_s4 }
  0x5c   :  { %s16620_s20 = sld [smem:[%s19443_s0 + %s16339_s22]]  }
  0x5d   :  { %19619 = sst [smem:[#allocation54_spill]] %s16610_s3 }
  0x5e   :  { %s16625_s4 = sld [smem:[%s19443_s0 + %s16340_s28]]  }
  0x5f   :  { %s16630_s6 = sld [smem:[%s19443_s0 + %s16341_s7]]  }
  0x64   :  { %19620 = sst [smem:[#allocation55_spill]] %s16625_s4 }
  0x65   :  { %114 = vsyncpa [#allocation5], 0 }
  0x66   :  { %115 = vsyncpa [#allocation3], 0 }
  0x67   :  { %116 = vsyncpa [#allocation8], 0 }
  0x68   :  { %117 = vsyncpa [#allocation4], 0 }
  0x69   :  { %119 = vsyncpa [#allocation4 + $0x1], 0  ;;  %s16632_s15 = smov 0   ;;  %s16634_s16 = smov 0  }
  0x6a   :  { %s16636_s18 = smov 0   ;;  %s16638_s22 = smov 0  }
  0x6b LB: > { %s19621_s8 = sld [smem:[#allocation18_spill]]  ;;  %s19622_s4 = sld [smem:[#allocation55_spill]]  ;;  %s16282_s18 = sphi %s16636_s18, %s19884_s18   ;;  %s16278_s16 = sphi %s16634_s16, %s19886_s16   ;;  %s16274_s15 = sphi %s16632_s15, %s19885_s15   ;;  %s16286_s22 = sphi %s16638_s22, %s19882_s22  }
  0x6c   : > { %s19623_s3 = sld [smem:[#allocation54_spill]]  ;;  %19624 = sst [smem:[#allocation56_spill]] %s16282_s18 }
  0x6d   : > { %s16653_s0 = sadd.s32 4294967295, %s16286_s22   ;;  %s11990_s23 = sadd.s32 4294967294, %s16286_s22  }
  0x6e   : > { %s16657_s26 = sadd.s32 1, %s16286_s22   ;;  %s1281_s28 = sadd.s32 1, %s16282_s18 }
  0x6f   : > { %19625 = sst [smem:[#allocation57_spill]] %s16657_s26  ;;  %s19626_s5 = sld [smem:[#allocation15_spill]] }
  0x70   : > { %s1278_s1 = ssub.s32 %s16286_s22, %s16657_s26  ;;  %p1291_p0 = scmp.ne.s32.totalorder %s16282_s18, %s16278_s16 }
  0x71   : > { %p1279_p1 = scmp.eq.s32.totalorder %s1278_s1, 0  ;;  %p1292_p2 = scmp.eq.s32.totalorder %s16653_s0, 1 }
  0x72   : > { %p1297_p3 = scmp.ne.s32.totalorder %s16278_s16, %s16274_s15  ;;  %p1298_p4 = scmp.eq.s32.totalorder %s11990_s23, 1 }
  0x73   : > { %s16668_s2 = scalar_select %p1279_p1, %s16282_s18, %s1281_s28  }
  0x74   : > { %p16670_p5 = por %p1292_p2, %p1291_p0  ;;  %p16674_p6 = por %p1298_p4, %p1297_p3 }
  0x75   : > { %19627 = sst [smem:[#allocation58_spill]] %s16668_s2  ;;  %p11991_p7 = scmp.ge.s32.totalorder %s16286_s22, 1 }
  0x76   : > { %s19628_s7 = scalar_select %p16670_p5, 1, 0 }
  0x77   : > { %s19629_s10 = scalar_select %p16674_p6, 1, 0 }
  0x78   : > { %p1305_p8 = scmp.lt.s32.totalorder %s16286_s22, 3  ;;  %p19468_p9 = scmp.eq.s32.totalorder %s16653_s0, 0 }
  0x79   : > { %19630 = sst [smem:[#allocation59_spill]] %s19629_s10  ;;  %s16342_s23 = smov [#allocation7]  }
  0x7a   : > { %p16681_p10 = pnand %p11991_p7, %p1305_p8  ;;  %s1478_s28 = sshll.u32 %s16342_s23, 4  ;;  %s1479_s28 = int_to_ptr.vmem [resolvable:$true] %s1478_s28 }
  0x7b   : > { %s1318_s1 = sshll.u32 %s19626_s5, 4  ;;  %s16343_s18 = smov [#allocation6]   ;;  %s16688_s1 = int_to_ptr.vmem [resolvable:$true] %s1318_s1 }
  0x7c   : > { %s19631_s11 = scalar_select %p16681_p10, 1, 0 }
  0x7d   : > { %p15337_p11 = pneg %p16681_p10  ;;  %s1467_s26 = sshll.u32 %s16343_s18, 4  ;;  %s16696_s26 = int_to_ptr.vmem [resolvable:$true] %s1467_s26 }
  0x7e   : > { %s16113_s10 = scalar_lea.hbm %s16615_s25, 16 }
  0x7f   : > { %p16692_p12 = pnand %p19468_p9, %p15337_p11  ;;  %p16114_p13 = scmp.ne.s32.totalorder %s16615_s25, %s16113_s10 }
  0x80   : > { %p16120_p3 = scmp.lt.u32.totalorder %s16113_s10, %s16615_s25 }
  0x81   : > { %p16702_p0 = pneg %p16692_p12 }
  0x83   : > { %p16116_p1 = pnand %p16702_p0, %p16114_p13 }
  0x85   : > { %p16117_p2 = pneg %p16116_p1 }
  0x87   : > { %p16122_p4 = pnand %p16120_p3, %p16117_p2 }
  0x89   : > { %16125 = shalt.err (!%p16122_p4)
}
  0x8a   : > { %s16126_s5 = scalar_lea.vmem %s1479_s28, 16  ;;  %s16133_s18 = scalar_lea.vmem %s1479_s28, 32 }
  0x8b   : > { %p16127_p7 = scmp.ne.s32.totalorder %s1479_s28, %s16126_s5  ;;  %p16134_p9 = scmp.lt.s32.totalorder %s1479_s28, %s1479_s28 }
  0x8c   : > { %p16135_p6 = scmp.lt.s32.totalorder %s16133_s18, %s16126_s5 }
  0x8d   : > { %p16129_p8 = pnand %p16127_p7, %p16702_p0 }
  0x8e   : > { %p16136_p5 = por %p16135_p6, %p16134_p9 }
  0x8f   : > { %p16130_p11 = pneg %p16129_p8 }
  0x91   : > { %p16137_p10 = pnand %p16136_p5, %p16130_p11 }
  0x93   : > { %16140 = shalt.err (!%p16137_p10)
}
  0x94   : > { %15346 = dma.hbm_to_vmem [thread:$0]  (!%p16692_p12), %s16615_s25, 16, %s1479_s28, [#allocation8]  }
  0x95   : > { %s16141_s10 = scalar_lea.vmem %s16688_s1, 64  ;;  %p16149_p3 = scmp.lt.s32.totalorder %s16688_s1, %s16688_s1 }
  0x96   : > { %p16142_p13 = scmp.ne.s32.totalorder %s16688_s1, %s16141_s10  ;;  %p16150_p4 = scmp.lt.s32.totalorder %s16141_s10, %s16141_s10 }
  0x98   : > { %p16144_p1 = pnand %p16142_p13, %p16702_p0  ;;  %p16151_p7 = por %p16150_p4, %p16149_p3 }
  0x9a   : > { %p16145_p2 = pneg %p16144_p1 }
  0x9c   : > { %p16152_p6 = pnand %p16151_p7, %p16145_p2 }
  0x9e   : > { %16155 = shalt.err (!%p16152_p6)
}
  0x9f   : > { %s16344_s5 = smov [#allocation2]   ;;  %s16156_s28 = scalar_lea.hbm %s19623_s3, 16 }
  0xa0   : > { %15340 = dma.vmem_to_smem (!%p16692_p12), %s16688_s1, 64, %s16344_s5, [#allocation5]  }
  0xa1   : > { %p16157_p5 = scmp.ne.s32.totalorder %s19623_s3, %s16156_s28  ;;  %p16163_p8 = scmp.lt.u32.totalorder %s16156_s28, %s19623_s3 }
  0xa3   : > { %p16159_p9 = pnand %p16157_p5, %p16702_p0 }
  0xa5   : > { %p16160_p10 = pneg %p16159_p9 }
  0xa7   : > { %p16165_p11 = pnand %p16163_p8, %p16160_p10 }
  0xa9   : > { %16168 = shalt.err (!%p16165_p11)
}
  0xaa   : > { %s16169_s18 = scalar_lea.vmem %s16696_s26, 16  ;;  %s16176_s10 = scalar_lea.vmem %s16696_s26, 32 }
  0xab   : > { %p16170_p13 = scmp.ne.s32.totalorder %s16696_s26, %s16169_s18  ;;  %p16177_p3 = scmp.lt.s32.totalorder %s16696_s26, %s16696_s26 }
  0xac   : > { %p16178_p4 = scmp.lt.s32.totalorder %s16176_s10, %s16169_s18 }
  0xad   : > { %p16172_p1 = pnand %p16170_p13, %p16702_p0 }
  0xae   : > { %p16179_p7 = por %p16178_p4, %p16177_p3 }
  0xaf   : > { %p16173_p2 = pneg %p16172_p1 }
  0xb1   : > { %p16180_p6 = pnand %p16179_p7, %p16173_p2 }
  0xb3   : > { %16183 = shalt.err (!%p16180_p6)
}
  0xb4   : > { %15343 = dma.hbm_to_vmem [thread:$0]  (!%p16692_p12), %s19623_s3, 16, %s16696_s26, [#allocation3]  }
  0xb5   : > { %s16345_s1 = smov [#allocation9]   ;;  %s16184_s28 = scalar_lea.hbm %s19622_s4, 16 }
  0xb6   : > { %s1492_s5 = sshll.u32 %s16345_s1, 4  ;;  %p16185_p5 = scmp.ne.s32.totalorder %s19622_s4, %s16184_s28  ;;  %s1493_s5 = int_to_ptr.vmem [resolvable:$true] %s1492_s5 }
  0xb7   : > { %p16191_p8 = scmp.lt.u32.totalorder %s16184_s28, %s19622_s4 }
  0xb8   : > { %p16187_p9 = pnand %p16185_p5, %p16702_p0 }
  0xba   : > { %p16188_p10 = pneg %p16187_p9 }
  0xbc   : > { %p16193_p11 = pnand %p16191_p8, %p16188_p10 }
  0xbe   : > { %16196 = shalt.err (!%p16193_p11)
}
  0xbf   : > { %s16197_s18 = scalar_lea.vmem %s1493_s5, 16  ;;  %s16204_s10 = scalar_lea.vmem %s1493_s5, 32 }
  0xc0   : > { %p16198_p13 = scmp.ne.s32.totalorder %s1493_s5, %s16197_s18  ;;  %p16205_p3 = scmp.lt.s32.totalorder %s1493_s5, %s1493_s5 }
  0xc1   : > { %p16206_p4 = scmp.lt.s32.totalorder %s16204_s10, %s16197_s18 }
  0xc2   : > { %p16200_p1 = pnand %p16198_p13, %p16702_p0 }
  0xc3   : > { %p16207_p7 = por %p16206_p4, %p16205_p3 }
  0xc4   : > { %p16201_p2 = pneg %p16200_p1 }
  0xc6   : > { %p16208_p6 = pnand %p16207_p7, %p16201_p2 }
  0xc8   : > { %16211 = shalt.err (!%p16208_p6)
}
  0xc9   : > { %15349 = dma.hbm_to_vmem [thread:$0]  (!%p16692_p12), %s19622_s4, 16, %s1493_s5, [#allocation8]  }
  0xca   : > { %p19634_p5 = scmp.ne.s32.totalorder %s19631_s11, 0 }
  0xcc   : > { %1529 = sbr.rel (%p19634_p5) target bundleno = 13470 (0x349e), region = 236 }
  0xd3   : > { %p19635_p9 = scmp.eq.s32.totalorder %s16653_s0, 0 }
  0xd5   : > { %16257 = dma.done.wait (%p19635_p9), [#allocation5], 64   ;;  %p19636_p10 = pmov %p19635_p9 }
  0xd6   : > { %p19637_p0 = pmov %p19635_p9 }
  0xd7   : > { %16259 = vsyncadd (%p19636_p10), [#allocation5], 4294967232 }
  0xd8   : > { %16261 = dma.done.wait (%p19637_p0), [#allocation3], 16   ;;  %p19638_p8 = pmov %p19637_p0 }
  0xd9   : > { %p19639_p11 = pmov %p19637_p0 }
  0xda   : > { %16263 = vsyncadd (%p19638_p8), [#allocation3], 4294967280 }
  0xdb   : > { %16265 = dma.done.wait (%p19639_p11), [#allocation8], 32   ;;  %p19640_p12 = pmov %p19637_p0 }
  0xdd   : > { %16267 = vsyncadd (%p19640_p12), [#allocation8], 4294967264 }
  0xde   : > { %1547 = sfence }
  0xdf   : > { %v1725_v0 = vld [vmem:[%s19621_s8] sm:$0xff]  ;;  %v1726_v1 = vld [vmem:[%s19621_s8 + $0x8] sm:$0xff]  ;;  %p1678_p13 = scmp.lt.s32.totalorder %s16653_s0, 1  ;;  %v1727_v5 = vld [vmem:[%s19621_s8 + $0x10] sm:$0xff]  ;;  %vm1729_vm0 = vcmask 261120   ;;  %vm1936_vm1 = vcmask 64512  }
  0xe0   : > { %v1827_v2 = vld [vmem:[%s16405_s14] sm:$0xff]  ;;  %v14517_v3 = vpack.c.bf16 %v1726_v1, %v1725_v0  ;;  %v1828_v4 = vld [vmem:[%s16405_s14 + $0x8] sm:$0xff]  ;;  %v1728_v6 = vld [vmem:[%s19621_s8 + $0x18] sm:$0xff]  ;;  %s19475_s5 = smov 120   ;;  %v19641_v50 = vmov 0  ;;  %s19473_s28 = smov 112  }
  0xe1   : > { %v14525_v7 = vpack.c.bf16 %v1828_v4, %v1827_v2  ;;  %v14521_v8 = vpack.c.bf16 %v1728_v6, %v1727_v5  ;;  %v1829_v9 = vld [vmem:[%s16405_s14 + $0x10] sm:$0xff]  ;;  %v1830_v10 = vld [vmem:[%s16405_s14 + $0x18] sm:$0xff]  ;;  %s1679_s26 = scalar_select %p1678_p13, %s16653_s0, 1  ;;  %v1697_v12 = vld [vmem:[%s16380_s21] sm:$0xff]  ;;  %vm3582_vm3 = vcmask 523264   ;;  %vm8092_vm4 = vcmask 256000  }
  0xe2   : > { %14518 = vmatprep.subr.bf16.mxu0 %v14517_v3  ;;  %v14529_v11 = vpack.c.bf16 %v1830_v10, %v1829_v9  ;;  %v1698_v13 = vld [vmem:[%s16380_s21 + $0x8] sm:$0xff]  ;;  %v1699_v16 = vld [vmem:[%s16380_s21 + $0x10] sm:$0xff]  ;;  %v1700_v26 = vld [vmem:[%s16380_s21 + $0x18] sm:$0xff]  ;;  %s19471_s18 = smov 104   ;;  %s19644_s10 = sld [smem:[#allocation19_spill]] }
  0xe3   : > { %14526 = vmatprep.subr.bf16.mxu1 %v14525_v7  ;;  %14520 = vmatpush3.bf16.msra.mxu0 %v14517_v3  ;;  %s12562_s2 = sshll.u32 %s1679_s26, 5  ;;  %v2097_v34 = vld [vmem:[%s16410_s19] sm:$0xff]  ;;  %v2098_v35 = vld [vmem:[%s16410_s19 + $0x8] sm:$0xff]  ;;  %v2099_v36 = vld [vmem:[%s16410_s19 + $0x10] sm:$0xff]  ;;  %s19645_s26 = sld [smem:[#allocation20_spill]] }
  0xe4   : > { %14528 = vmatpush3.bf16.msra.mxu1 %v14525_v7  ;;  %14522 = vmatprep.subr.bf16.mxu0 %v14521_v8  ;;  %s16776_s11 = scalar_lea.vmem %s16365_s9, %s12562_s2  ;;  %s1687_s23 = scalar_lea.vmem %s16370_s13, %s12562_s2  ;;  %v14545_v37 = vpack.c.bf16 %v2098_v35, %v2097_v34  ;;  %v2100_v38 = vld [vmem:[%s16410_s19 + $0x18] sm:$0xff]  ;;  %vm16835_vm2 = vmpackc.low %vm1936_vm1, %vm1936_vm1 }
  0xe5   : > { %14530 = vmatprep.subr.bf16.mxu1 %v14529_v11  ;;  %v1693_v14 = vld [vmem:[%s16776_s11] sm:$0xff]  ;;  %v1694_v15 = vld [vmem:[%s16776_s11 + $0x8] sm:$0xff]  ;;  %s16783_s1 = scalar_lea.vmem %s16375_s17, %s12562_s2  ;;  %v1711_v23 = vld [vmem:[%s1687_s23 + $0x10] sm:$0xff]  ;;  %v14549_v39 = vpack.c.bf16 %v2100_v38, %v2099_v36  ;;  %v19642_v50 = vsel %vm16835_vm2, 4294967295, %v19641_v50  ;;  %s19646_s2 = sld [smem:[#allocation21_spill]] }
  0xe6   : > { %v16785_v17 = vadd.f32 %v1697_v12, %v1693_v14  ;;  %v1709_v18 = vld [vmem:[%s1687_s23] sm:$0xff]  ;;  %v16787_v19 = vadd.f32 %v1698_v13, %v1694_v15  ;;  %v1710_v20 = vld [vmem:[%s1687_s23 + $0x8] sm:$0xff]  ;;  %v1695_v24 = vld [vmem:[%s16776_s11 + $0x10] sm:$0xff]  ;;  %v1715_v25 = vadd.f32 %v1711_v23, %v1699_v16  ;;  %19643 = vst [vmem:[#allocation60_spill] sm:$0xff] %v19642_v50  ;;  %s19703_s3 = sld [smem:[#allocation35_spill]]  ;;  %s12391_s4 = sld [smem:[#allocation2 + $0x81]] }
  0xe7   : > { %14524 = vmatpush3.bf16.msra.mxu0 %v14521_v8  ;;  %v1713_v21 = vadd.f32 %v1709_v18, %v1697_v12  ;;  %v1714_v22 = vadd.f32 %v1710_v20, %v1698_v13  ;;  %v1712_v27 = vld [vmem:[%s1687_s23 + $0x18] sm:$0xff]  ;;  %v16793_v28 = vadd.f32 %v1699_v16, %v1695_v24  ;;  %v1717_v30 = vld [vmem:[%s16783_s1] sm:$0xff]  ;;  %v1718_v40 = vld [vmem:[%s16783_s1 + $0x8] sm:$0xff]  ;;  %s19647_s23 = sld [smem:[#allocation24_spill]]  ;;  %p19879_p2 = scmp.ne.s32.totalorder %s19628_s7, 0 }
  0xe8   : > { %14532 = vmatpush3.bf16.msra.mxu1 %v14529_v11  ;;  %13355 = vmatprep.mubr.msk.f32.mxu0 %vm1729_vm0, %v16785_v17  ;;  %v1696_v29 = vld [vmem:[%s16776_s11 + $0x18] sm:$0xff]  ;;  %v1716_v32 = vadd.f32 %v1712_v27, %v1700_v26  ;;  %v16805_v33 = vadd.f32 %v1717_v30, %v1697_v12  ;;  %v1719_v41 = vld [vmem:[%s16783_s1 + $0x10] sm:$0xff]  ;;  %v16819_v42 = vadd.f32 %v1718_v40, %v1698_v13 }
  0xe9   : > { %13369 = vmatprep.mubr.msk.f32.mxu1 %vm1729_vm0, %v1713_v21  ;;  %v16800_v31 = vadd.f32 %v1700_v26, %v1696_v29  ;;  %14546 = vmatprep.subr.bf16.mxu1 %v14545_v37  ;;  %v16821_v43 = vadd.f32 %v1719_v41, %v1699_v16  ;;  %v1720_v44 = vld [vmem:[%s16783_s1 + $0x18] sm:$0xff]  ;;  %s19648_s1 = sld [smem:[#allocation22_spill]] }
  0xea   : > { %13356 = vmatmul.mubr.msk.f32.vlgmr.msra.gmra.mrb[0].mxu0 %vm1729_vm0, %v16787_v19  ;;  %v16826_v45 = vadd.f32 %v1720_v44, %v1700_v26  ;;  %v12042_v44 = vld [vmem:[%s16410_s19 + $0x20] sm:$0xff] }
  0xeb   : > { %13370 = vmatmul.mubr.msk.f32.vlgmr.msra.gmra.mrb[0].mxu1 %vm1729_vm0, %v1714_v22  ;;  %13358 = vmatprep.mubr.msk.f32.mxu0 %vm1729_vm0, %v16793_v28 }
  0xec   : > { %13372 = vmatprep.mubr.msk.f32.mxu1 %vm1729_vm0, %v1715_v25  ;;  %14548 = vmatpush3.bf16.msra.mxu1 %v14545_v37 }
  0xed   : > { %14550 = vmatprep.subr.bf16.mxu1 %v14549_v39 }
  0xee   : > { %13359 = vmatmul.mubr.msk.f32.gmra.mrb[2].mxu0 %vm1729_vm0, %v16800_v31 }
  0xef   : > { %13373 = vmatmul.mubr.msk.f32.gmra.mrb[2].mxu1 %vm1729_vm0, %v1716_v32 }
  0xf0   : > { %13397 = vmatprep.mubr.msk.f32.mxu1 %vm1729_vm0, %v16805_v33  ;;  %14552 = vmatpush3.bf16.msra.mxu1 %v14549_v39 }
  0xf3   : > { %13398 = vmatmul.mubr.msk.f32.vlgmr.msra.gmra.mrb[4].mxu1 %vm1729_vm0, %v16819_v42 }
  0xf4   : > { %13400 = vmatprep.mubr.msk.f32.mxu1 %vm1729_vm0, %v16821_v43 }
  0xf7   : > { %13401 = vmatmul.mubr.msk.f32.gmra.mrb[6].mxu1 %vm1729_vm0, %v16826_v45 }
 0x1bd   : > { %v13357_v46 = vpop.f32.mrb[0].mxu0 }
 0x1be   : > { %v13371_v47 = vpop.f32.mrb[0].mxu1  ;;  %v1808_v48 = vpop.f32.mrb[1].mxu0 }
 0x1bf   : > { %v1909_v49 = vpop.f32.mrb[1].mxu1  ;;  %2299 = vrot.lane.b32.xlu1 %v1808_v48, %s19475_s5  ;;  %13383 = vmatprep.mubr.msk.f32.mxu0 %vm1936_vm1, %v1808_v48 }
 0x1c0   : > { %v14533_v51 = vpack.c.bf16 %v13371_v47, %v1909_v49  ;;  %v15458_v52 = vpack.i.bf16 %v13371_v47, %v1909_v49 }
 0x1c1   : > { %v13360_v53 = vpop.f32.mrb[2].mxu0 }
 0x1c2   : > { %15459 = vrot.lane.b32.xlu0 %v15458_v52, %s19475_s5  ;;  %v13374_v54 = vpop.f32.mrb[2].mxu1  ;;  %14535 = vmatprep.subr.msk.bf16.mxu0 %vm16835_vm2, %v14533_v51  ;;  %v1818_v55 = vpop.f32.mrb[3].mxu0 }
 0x1c3   : > { %v1919_v56 = vpop.f32.mrb[3].mxu1  ;;  %14538 = vmatpush3.bf16.xpose.msk.msra.mxu0 %vm16835_vm2, %v14533_v51  ;;  %2301 = vrot.lane.b32.xlu1 %v13357_v46, %s19475_s5 }
 0x1c4   : > { %v14539_v57 = vpack.c.bf16 %v13374_v54, %v1919_v56  ;;  %v15463_v58 = vpack.i.bf16 %v13374_v54, %v1919_v56 }
 0x1c6   : > { %15464 = vrot.lane.b32.xlu0 %v15463_v58, %s19475_s5  ;;  %14541 = vmatprep.subr.msk.bf16.mxu0 %vm16835_vm2, %v14539_v57  ;;  %v13399_v32 = vpop.f32.mrb[4].mxu1 }
 0x1c7   : > { %2305 = vrot.lane.b32.xlu1 %v13360_v53, %s19475_s5  ;;  %v2179_v34 = vpop.f32.mrb[5].mxu1 }
 0x1c8   : > { %v14553_v35 = vpack.c.bf16 %v13399_v32, %v2179_v34 }
 0x1ca   : > { %2303 = vrot.lane.b32.xlu0 %v1818_v55, %s19475_s5  ;;  %v13402_v36 = vpop.f32.mrb[6].mxu1  ;;  %14554 = vmatprep.subr.bf16.mxu1 %v14553_v35 }
 0x1cb   : > { %14544 = vmatpush3.bf16.xpose.msk.msra.mxu0 %vm16835_vm2, %v14539_v57  ;;  %15474 = vrot.lane.b32.xlu1 %v15463_v58, %s19473_s28  ;;  %v2189_v38 = vpop.f32.mrb[7].mxu1  ;;  %v16918_v57 = vld [vmem:[%s16390_s29 + $0x18] sm:$0xff] }
 0x1cc   : > { %v14557_v39 = vpack.c.bf16 %v13402_v36, %v2189_v38  ;;  %14556 = vmatpush3.bf16.msra.mxu1 %v14553_v35 }
 0x1ce   : > { %15469 = vrot.lane.b32.xlu0 %v15458_v52, %s19473_s28  ;;  %14558 = vmatprep.subr.bf16.mxu1 %v14557_v39 }
 0x1cf   : > { %2660 = vrot.lane.b32.xlu1 %v13357_v46, %s19473_s28 }
 0x1d0   : > { %14560 = vmatpush3.bf16.msra.mxu1 %v14557_v39 }
 0x1d2   : > { %13384 = vmatmul.mubr.msk.f32.vlgmr.msra.gmra.mrb[4].mxu0 %vm1936_vm1, %v13357_v46  ;;  %2658 = vrot.lane.b32.xlu0 %v1808_v48, %s19473_s28 }
 0x1d3   : > { %2664 = vrot.lane.b32.xlu1 %v13360_v53, %s19473_s28  ;;  %13386 = vmatprep.mubr.msk.f32.mxu0 %vm1936_vm1, %v1818_v55 }
 0x1d6   : > { %2662 = vrot.lane.b32.xlu0 %v1818_v55, %s19473_s28  ;;  %13387 = vmatmul.mubr.msk.f32.gmra.mrb[6].mxu0 %vm1936_vm1, %v13360_v53 }
 0x1d7   : > { %15484 = vrot.lane.b32.xlu1 %v15463_v58, %s19471_s18 }
 0x1da   : > { %15479 = vrot.lane.b32.xlu0 %v15458_v52, %s19471_s18  ;;  %v16913_v52 = vld [vmem:[%s16390_s29] sm:$0xff] }
 0x1db   : > { %3019 = vrot.lane.b32.xlu1 %v13357_v46, %s19471_s18  ;;  %v12043_v46 = vld [vmem:[%s16410_s19 + $0x28] sm:$0xff] }
 0x1dc   : > { %v16906_v47 = vpack.c.bf16 %v12043_v46, %v12042_v44 }
 0x1de   : > { %3017 = vrot.lane.b32.xlu0 %v1808_v48, %s19471_s18  ;;  %14574 = vmatprep.subr.bf16.mxu1 %v16906_v47  ;;  %v16910_v48 = vld [vmem:[%s16390_s29 + $0x8] sm:$0xff] }
 0x1df   : > { %3023 = vrot.lane.b32.xlu1 %v13360_v53, %s19471_s18 }
 0x1e2   : > { %3021 = vrot.lane.b32.xlu0 %v1818_v55, %s19471_s18  ;;  %s19654_s18 = sld [smem:[#allocation31_spill]] }
 0x1e8   : > { %s19655_s28 = smov %s19654_s18 }
 0x231   : > { %v2300_v59 = vpop.permute.xlu1 %2299 }
 0x232   : > { %13425 = vmatprep.mubr.msk.f32.mxu0 %vm1936_vm1, %v2300_v59 }
 0x234   : > { %v15460_v60 = vpop.permute.xlu0 %15459 }
 0x235   : > { %v15462_v61 = vunpack.i.h.bf16 %v15460_v60  ;;  %v15461_v62 = vunpack.i.l.bf16 %v15460_v60  ;;  %v2302_v63 = vpop.permute.xlu1 %2301 }
 0x237   : > { %v14561_v0 = vpack.c.bf16 %v15462_v61, %v15461_v62  ;;  %v16922_v61 = vld [vmem:[%s16390_s29 + $0x10] sm:$0xff] }
 0x238   : > { %v15465_v1 = vpop.permute.xlu0 %15464 }
 0x239   : > { %v15467_v2 = vunpack.i.h.bf16 %v15465_v1  ;;  %v15466_v3 = vunpack.i.l.bf16 %v15465_v1  ;;  %14563 = vmatprep.subr.msk.bf16.mxu0 %vm16835_vm2, %v14561_v0  ;;  %v2306_v4 = vpop.permute.xlu1 %2305 }
 0x23a   : > { %14566 = vmatpush3.bf16.xpose.msk.msra.mxu0 %vm16835_vm2, %v14561_v0 }
 0x23b   : > { %v14567_v5 = vpack.c.bf16 %v15467_v2, %v15466_v3 }
 0x23c   : > { %v2304_v6 = vpop.permute.xlu0 %2303 }
 0x23d   : > { %14569 = vmatprep.subr.msk.bf16.mxu0 %vm16835_vm2, %v14567_v5  ;;  %v15475_v7 = vpop.permute.xlu1 %15474 }
 0x23e   : > { %v15477_v13 = vunpack.i.h.bf16 %v15475_v7  ;;  %v15476_v14 = vunpack.i.l.bf16 %v15475_v7 }
 0x240   : > { %v15470_v8 = vpop.permute.xlu0 %15469  ;;  %v14595_v18 = vpack.c.bf16 %v15477_v13, %v15476_v14 }
 0x241   : > { %v15472_v9 = vunpack.i.h.bf16 %v15470_v8  ;;  %v15471_v10 = vunpack.i.l.bf16 %v15470_v8  ;;  %v2661_v15 = vpop.permute.xlu1 %2660 }
 0x242   : > { %14572 = vmatpush3.bf16.xpose.msk.msra.mxu0 %vm16835_vm2, %v14567_v5 }
 0x243   : > { %v14589_v11 = vpack.c.bf16 %v15472_v9, %v15471_v10 }
 0x244   : > { %v2659_v12 = vpop.permute.xlu0 %2658 }
 0x245   : > { %14591 = vmatprep.subr.msk.bf16.mxu0 %vm16835_vm2, %v14589_v11  ;;  %v2665_v20 = vpop.permute.xlu1 %2664 }
 0x248   : > { %v2663_v16 = vpop.permute.xlu0 %2662 }
 0x249   : > { %13426 = vmatmul.mubr.msk.f32.vlgmr.msra.gmra.mrb[8].mxu0 %vm1936_vm1, %v2302_v63  ;;  %v15485_v25 = vpop.permute.xlu1 %15484 }
 0x24a   : > { %13428 = vmatprep.mubr.msk.f32.mxu0 %vm1936_vm1, %v2304_v6  ;;  %14594 = vmatpush3.bf16.xpose.msk.msra.mxu0 %vm16835_vm2, %v14589_v11  ;;  %v15487_v26 = vunpack.i.h.bf16 %v15485_v25  ;;  %v15486_v27 = vunpack.i.l.bf16 %v15485_v25 }
 0x24b   : > { %14597 = vmatprep.subr.msk.bf16.mxu0 %vm16835_vm2, %v14595_v18 }
 0x24c   : > { %v15480_v21 = vpop.permute.xlu0 %15479  ;;  %v14623_v29 = vpack.c.bf16 %v15487_v26, %v15486_v27 }
 0x24d   : > { %v15482_v22 = vunpack.i.h.bf16 %v15480_v21  ;;  %v15481_v23 = vunpack.i.l.bf16 %v15480_v21  ;;  %13429 = vmatmul.mubr.msk.f32.gmra.mrb[10].mxu0 %vm1936_vm1, %v2306_v4  ;;  %v3020_v37 = vpop.permute.xlu1 %3019 }
 0x24e   : > { %13467 = vmatprep.mubr.msk.f32.mxu0 %vm1936_vm1, %v2659_v12 }
 0x24f   : > { %v14617_v24 = vpack.c.bf16 %v15482_v22, %v15481_v23 }
 0x250   : > { %v3018_v30 = vpop.permute.xlu0 %3017 }
 0x251   : > { %v3024_v41 = vpop.permute.xlu1 %3023 }
 0x252   : > { %14600 = vmatpush3.bf16.xpose.msk.msra.mxu0 %vm16835_vm2, %v14595_v18 }
 0x253   : > { %14619 = vmatprep.subr.msk.bf16.mxu0 %vm16835_vm2, %v14617_v24 }
 0x254   : > { %v3022_v40 = vpop.permute.xlu0 %3021 }
 0x259   : > { %13468 = vmatmul.mubr.msk.f32.vlgmr.msra.gmra.mrb[12].mxu0 %vm1936_vm1, %v2661_v15 }
 0x25a   : > { %13470 = vmatprep.mubr.msk.f32.mxu0 %vm1936_vm1, %v2663_v16  ;;  %14622 = vmatpush3.bf16.xpose.msk.msra.mxu0 %vm16835_vm2, %v14617_v24 }
 0x25b   : > { %14625 = vmatprep.subr.msk.bf16.mxu0 %vm16835_vm2, %v14623_v29 }
 0x25d   : > { %13471 = vmatmul.mubr.msk.f32.gmra.mrb[14].mxu0 %vm1936_vm1, %v2665_v20 }
 0x25e   : > { %13509 = vmatprep.mubr.msk.f32.mxu0 %vm1936_vm1, %v3018_v30 }
 0x262   : > { %14628 = vmatpush3.bf16.xpose.msk.msra.mxu0 %vm16835_vm2, %v14623_v29 }
 0x269   : > { %13510 = vmatmul.mubr.msk.f32.vlgmr.msra.gmra.mrb[16].mxu0 %vm1936_vm1, %v3020_v37 }
 0x26a   : > { %13512 = vmatprep.mubr.msk.f32.mxu0 %vm1936_vm1, %v3022_v40 }
 0x26d   : > { %13513 = vmatmul.mubr.msk.f32.gmra.mrb[18].mxu0 %vm1936_vm1, %v3024_v41 }
 0x2a5   : > { %v13385_v49 = vpop.f32.mrb[4].mxu0 }
 0x2a6   : > { %v2047_v51 = vmul.f32 0.17677669, %v13385_v49  ;;  %v2027_v53 = vpop.f32.mrb[5].mxu0  ;;  %v12044_v49 = vld [vmem:[%s16410_s19 + $0x30] sm:$0xff] }
 0x2a7   : > { %v2046_v54 = vmul.f32 0.17677669, %v2027_v53 }
 0x2a8   : > { %v2051_v55 = vadd.f32 %v2047_v51, %v16910_v48  ;;  %v12045_v51 = vld [vmem:[%s16410_s19 + $0x38] sm:$0xff] }
 0x2a9   : > { %v2050_v56 = vadd.f32 %v2046_v54, %v16913_v52  ;;  %v13388_v58 = vpop.f32.mrb[6].mxu0 }
 0x2aa   : > { %v2055_v59 = vsel %vm1729_vm0, %v2051_v55, -inf  ;;  %v2049_v60 = vmul.f32 0.17677669, %v13388_v58  ;;  %v2037_v62 = vpop.f32.mrb[7].mxu0 }
 0x2ab   : > { %v2054_v63 = vsel %vm1729_vm0, %v2050_v56, -inf  ;;  %v2048_v0 = vmul.f32 0.17677669, %v2037_v62 }
 0x2ac   : > { %v2058_v1 = vmax.f32 %v2054_v63, %v2055_v59  ;;  %v2053_v2 = vadd.f32 %v2049_v60, %v16918_v57  ;;  %v14577_v59 = vpack.c.bf16 %v12045_v51, %v12044_v49 }
 0x2ad   : > { %v2052_v3 = vadd.f32 %v2048_v0, %v16922_v61 }
 0x2ae   : > { %v2057_v4 = vsel %vm1729_vm0, %v2053_v2, -inf }
 0x2af   : > { %v2056_v5 = vsel %vm1729_vm0, %v2052_v3, -inf }
 0x2b0   : > { %v2059_v6 = vmax.f32 %v2056_v5, %v2057_v4 }
 0x2b2   : > { %v2060_v7 = vmax.f32 %v2058_v1, %v2059_v6 }
 0x2b4   : > { %v2061_v8 = vrot.slane %v2060_v7, 4 }
 0x2b6   : > { %v2062_v9 = vmax.f32 %v2060_v7, %v2061_v8 }
 0x2b8   : > { %v2063_v10 = vrot.slane %v2062_v9, 2 }
 0x2ba   : > { %v2064_v11 = vmax.f32 %v2062_v9, %v2063_v10 }
 0x2bc   : > { %v2065_v12 = vrot.slane %v2064_v11, 1 }
 0x2be   : > { %v2066_v13 = vmax.f32 %v2064_v11, %v2065_v12 }
 0x2c0   : > { %v2067_v14 = vsub.f32 %v2050_v56, %v2066_v13  ;;  %v2068_v15 = vsub.f32 %v2051_v55, %v2066_v13  ;;  %v2069_v16 = vsub.f32 %v2052_v3, %v2066_v13  ;;  %v2070_v18 = vsub.f32 %v2053_v2, %v2066_v13 }
 0x2c2   : > { %v2071_v20 = vmul.f32 1.442695, %v2067_v14  ;;  %v2073_v21 = vmul.f32 1.442695, %v2068_v15  ;;  %v2075_v22 = vmul.f32 1.442695, %v2069_v16 }
 0x2c3   : > { %v2077_v23 = vmul.f32 1.442695, %v2070_v18 }
 0x2c4   : > { %15489 = vpow2.f32 %v2071_v20 }
 0x2c5   : > { %15491 = vpow2.f32 %v2073_v21 }
 0x2c6   : > { %15493 = vpow2.f32 %v2075_v22 }
 0x2c7   : > { %15495 = vpow2.f32 %v2077_v23 }
 0x2ce   : > { %v15490_v24 = vpop.eup %15489 }
 0x2cf   : > { %v15492_v25 = vpop.eup %15491  ;;  %v2079_v26 = vsel %vm1729_vm0, %v15490_v24, 0.0 }
 0x2d0   : > { %v15494_v27 = vpop.eup %15493  ;;  %v2080_v29 = vsel %vm1729_vm0, %v15492_v25, 0.0 }
 0x2d1   : > { %v15496_v30 = vpop.eup %15495  ;;  %v2081_v32 = vadd.f32 %v2080_v29, %v2079_v26  ;;  %v2082_v34 = vsel %vm1729_vm0, %v15494_v27, 0.0 }
 0x2d2   : > { %v2084_v36 = vsel %vm1729_vm0, %v15496_v30, 0.0 }
 0x2d3   : > { %v2083_v35 = vadd.f32 %v2082_v34, %v2081_v32 }
 0x2d5   : > { %v2085_v37 = vadd.f32 %v2084_v36, %v2083_v35 }
 0x2d7   : > { %v2086_v38 = vrot.slane %v2085_v37, 4 }
 0x2d9   : > { %v2087_v39 = vadd.f32 %v2086_v38, %v2085_v37 }
 0x2db   : > { %v2088_v40 = vrot.slane %v2087_v39, 2 }
 0x2dd   : > { %v2089_v41 = vadd.f32 %v2088_v40, %v2087_v39 }
 0x2df   : > { %v2090_v44 = vrot.slane %v2089_v41, 1 }
 0x2e1   : > { %v2091_v46 = vadd.f32 %v2090_v44, %v2089_v41 }
 0x2e3   : > { %15497 = vrcp.f32 %v2091_v46 }
 0x2ed   : > { %v15498_v53 = vpop.eup %15497 }
 0x2ee   : > { %v2093_v54 = vmul.f32 %v15498_v53, %v15490_v24  ;;  %v2094_v55 = vmul.f32 %v15498_v53, %v15492_v25  ;;  %v2095_v56 = vmul.f32 %v15498_v53, %v15494_v27  ;;  %v2096_v58 = vmul.f32 %v15498_v53, %v15496_v30 }
 0x2f0   : > { %13411 = vmatprep.mubr.msk.f32.mxu1 %vm1729_vm0, %v2093_v54 }
 0x2f1   : > { %13412 = vmatmul.mubr.msk.f32.vlgmr.msra.gmra.mrb[8].mxu1 %vm1729_vm0, %v2094_v55 }
 0x2f2   : > { %13414 = vmatprep.mubr.msk.f32.mxu1 %vm1729_vm0, %v2095_v56  ;;  %14576 = vmatpush3.bf16.msra.mxu1 %v16906_v47 }
 0x2f3   : > { %14578 = vmatprep.subr.bf16.mxu1 %v14577_v59 }
 0x2f5   : > { %13415 = vmatmul.mubr.msk.f32.gmra.mrb[10].mxu1 %vm1729_vm0, %v2096_v58 }
 0x2f6   : > { %14580 = vmatpush3.bf16.msra.mxu1 %v14577_v59  ;;  %13439 = vmatprep.mubr.msk.f32.mxu1 %vm1729_vm0, %v16805_v33 }
 0x2f9   : > { %13440 = vmatmul.mubr.msk.f32.vlgmr.msra.gmra.mrb[12].mxu1 %vm1729_vm0, %v16819_v42 }
 0x2fa   : > { %13442 = vmatprep.mubr.msk.f32.mxu1 %vm1729_vm0, %v16821_v43 }
 0x2fd   : > { %13443 = vmatmul.mubr.msk.f32.gmra.mrb[14].mxu1 %vm1729_vm0, %v16826_v45 }
 0x31c   : > { %v13427_v60 = vpop.f32.mrb[8].mxu0 }
 0x31d   : > { %v2417_v62 = vmul.f32 0.17677669, %v13427_v60  ;;  %v2397_v63 = vpop.f32.mrb[9].mxu0 }
 0x31e   : > { %v2416_v47 = vmul.f32 0.17677669, %v2397_v63 }
 0x31f   : > { %v2421_v0 = vadd.f32 %v2417_v62, %v16910_v48 }
 0x320   : > { %v2420_v1 = vadd.f32 %v2416_v47, %v16913_v52  ;;  %v13430_v2 = vpop.f32.mrb[10].mxu0 }
 0x321   : > { %v2425_v3 = vsel %vm1729_vm0, %v2421_v0, -inf  ;;  %v2419_v4 = vmul.f32 0.17677669, %v13430_v2  ;;  %v2407_v5 = vpop.f32.mrb[11].mxu0 }
 0x322   : > { %v2424_v6 = vsel %vm1729_vm0, %v2420_v1, -inf  ;;  %v2418_v7 = vmul.f32 0.17677669, %v2407_v5 }
 0x323   : > { %v2428_v8 = vmax.f32 %v2424_v6, %v2425_v3  ;;  %v2423_v9 = vadd.f32 %v2419_v4, %v16918_v57 }
 0x324   : > { %v2422_v10 = vadd.f32 %v2418_v7, %v16922_v61 }
 0x325   : > { %v2427_v11 = vsel %vm1729_vm0, %v2423_v9, -inf }
 0x326   : > { %v2426_v12 = vsel %vm1729_vm0, %v2422_v10, -inf }
 0x327   : > { %v2429_v13 = vmax.f32 %v2426_v12, %v2427_v11 }
 0x329   : > { %v2430_v14 = vmax.f32 %v2428_v8, %v2429_v13 }
 0x32b   : > { %v2431_v15 = vrot.slane %v2430_v14, 4 }
 0x32c   : > { %v13469_v16 = vpop.f32.mrb[12].mxu0 }
 0x32d   : > { %v2432_v18 = vmax.f32 %v2430_v14, %v2431_v15  ;;  %v2776_v20 = vmul.f32 0.17677669, %v13469_v16  ;;  %v2756_v21 = vpop.f32.mrb[13].mxu0 }
 0x32e   : > { %v2775_v22 = vmul.f32 0.17677669, %v2756_v21 }
 0x32f   : > { %v2433_v23 = vrot.slane %v2432_v18, 2  ;;  %v16957_v24 = vadd.f32 %v2776_v20, %v16910_v48 }
 0x330   : > { %v16960_v25 = vadd.f32 %v2775_v22, %v16913_v52  ;;  %v13472_v26 = vpop.f32.mrb[14].mxu0 }
 0x331   : > { %v2434_v27 = vmax.f32 %v2432_v18, %v2433_v23  ;;  %v2784_v29 = vsel %vm1729_vm0, %v16957_v24, -inf  ;;  %v2778_v30 = vmul.f32 0.17677669, %v13472_v26  ;;  %v2766_v32 = vpop.f32.mrb[15].mxu0 }
 0x332   : > { %v2783_v34 = vsel %vm1729_vm0, %v16960_v25, -inf  ;;  %v2777_v35 = vmul.f32 0.17677669, %v2766_v32 }
 0x333   : > { %v2435_v36 = vrot.slane %v2434_v27, 1  ;;  %v2787_v37 = vmax.f32 %v2783_v34, %v2784_v29  ;;  %v2782_v38 = vadd.f32 %v2778_v30, %v16918_v57 }
 0x334   : > { %v2781_v39 = vadd.f32 %v2777_v35, %v16922_v61 }
 0x335   : > { %v2436_v40 = vmax.f32 %v2434_v27, %v2435_v36  ;;  %v2786_v41 = vsel %vm1729_vm0, %v2782_v38, -inf }
 0x336   : > { %v2785_v44 = vsel %vm1729_vm0, %v2781_v39, -inf }
 0x337   : > { %v2437_v46 = vsub.f32 %v2420_v1, %v2436_v40  ;;  %v2438_v49 = vsub.f32 %v2421_v0, %v2436_v40  ;;  %v2439_v51 = vsub.f32 %v2422_v10, %v2436_v40  ;;  %v2440_v53 = vsub.f32 %v2423_v9, %v2436_v40 }
 0x338   : > { %v2788_v54 = vmax.f32 %v2785_v44, %v2786_v41 }
 0x339   : > { %v2441_v55 = vmul.f32 1.442695, %v2437_v46  ;;  %v2443_v56 = vmul.f32 1.442695, %v2438_v49  ;;  %v2445_v58 = vmul.f32 1.442695, %v2439_v51 }
 0x33a   : > { %v2447_v59 = vmul.f32 1.442695, %v2440_v53  ;;  %v2789_v60 = vmax.f32 %v2787_v37, %v2788_v54 }
 0x33b   : > { %15499 = vpow2.f32 %v2441_v55 }
 0x33c   : > { %15501 = vpow2.f32 %v2443_v56  ;;  %v2790_v62 = vrot.slane %v2789_v60, 4  ;;  %v13511_v63 = vpop.f32.mrb[16].mxu0 }
 0x33d   : > { %15503 = vpow2.f32 %v2445_v58  ;;  %v3135_v47 = vmul.f32 0.17677669, %v13511_v63  ;;  %v3115_v2 = vpop.f32.mrb[17].mxu0 }
 0x33e   : > { %15505 = vpow2.f32 %v2447_v59  ;;  %v2791_v3 = vmax.f32 %v2789_v60, %v2790_v62  ;;  %v3134_v4 = vmul.f32 0.17677669, %v3115_v2 }
 0x33f   : > { %v16971_v0 = vadd.f32 %v3135_v47, %v16910_v48 }
 0x340   : > { %v2792_v1 = vrot.slane %v2791_v3, 2  ;;  %v16974_v5 = vadd.f32 %v3134_v4, %v16913_v52  ;;  %v13514_v6 = vpop.f32.mrb[18].mxu0 }
 0x341   : > { %v3143_v7 = vsel %vm1729_vm0, %v16971_v0, -inf  ;;  %v3137_v8 = vmul.f32 0.17677669, %v13514_v6  ;;  %v3125_v9 = vpop.f32.mrb[19].mxu0 }
 0x342   : > { %v2793_v10 = vmax.f32 %v2791_v3, %v2792_v1  ;;  %v3142_v11 = vsel %vm1729_vm0, %v16974_v5, -inf  ;;  %v3136_v12 = vmul.f32 0.17677669, %v3125_v9 }
 0x343   : > { %v3146_v13 = vmax.f32 %v3142_v11, %v3143_v7  ;;  %v3141_v14 = vadd.f32 %v3137_v8, %v16918_v57 }
 0x344   : > { %v2794_v48 = vrot.slane %v2793_v10, 1  ;;  %v3140_v15 = vadd.f32 %v3136_v12, %v16922_v61 }
 0x345   : > { %v16982_v16 = vpop.eup %15499  ;;  %v3145_v52 = vsel %vm1729_vm0, %v3141_v14, -inf }
 0x346   : > { %v16985_v18 = vpop.eup %15501  ;;  %v2449_v20 = vsel %vm1729_vm0, %v16982_v16, 0.0  ;;  %v2795_v21 = vmax.f32 %v2793_v10, %v2794_v48  ;;  %v3144_v22 = vsel %vm1729_vm0, %v3140_v15, -inf }
 0x347   : > { %v16990_v23 = vpop.eup %15503  ;;  %v2450_v57 = vsel %vm1729_vm0, %v16985_v18, 0.0  ;;  %v3147_v26 = vmax.f32 %v3144_v22, %v3145_v52 }
 0x348   : > { %v16994_v27 = vpop.eup %15505  ;;  %v2451_v61 = vadd.f32 %v2450_v57, %v2449_v20  ;;  %v2796_v29 = vsub.f32 %v16960_v25, %v2795_v21  ;;  %v2797_v30 = vsub.f32 %v16957_v24, %v2795_v21  ;;  %v2452_v32 = vsel %vm1729_vm0, %v16990_v23, 0.0 }
 0x349   : > { %v2798_v34 = vsub.f32 %v2781_v39, %v2795_v21  ;;  %v2799_v35 = vsub.f32 %v2782_v38, %v2795_v21  ;;  %v3148_v36 = vmax.f32 %v3146_v13, %v3147_v26  ;;  %v2454_v44 = vsel %vm1729_vm0, %v16994_v27, 0.0 }
 0x34a   : > { %v2453_v37 = vadd.f32 %v2452_v32, %v2451_v61  ;;  %v2800_v40 = vmul.f32 1.442695, %v2796_v29  ;;  %v2802_v41 = vmul.f32 1.442695, %v2797_v30 }
 0x34b   : > { %v2804_v46 = vmul.f32 1.442695, %v2798_v34  ;;  %v2806_v49 = vmul.f32 1.442695, %v2799_v35  ;;  %v3149_v51 = vrot.slane %v3148_v36, 4 }
 0x34c   : > { %v2455_v53 = vadd.f32 %v2454_v44, %v2453_v37  ;;  %15507 = vpow2.f32 %v2800_v40 }
 0x34d   : > { %15509 = vpow2.f32 %v2802_v41  ;;  %v3150_v25 = vmax.f32 %v3148_v36, %v3149_v51 }
 0x34e   : > { %v2456_v24 = vrot.slane %v2455_v53, 4  ;;  %15511 = vpow2.f32 %v2804_v46 }
 0x34f   : > { %15513 = vpow2.f32 %v2806_v49  ;;  %v3151_v54 = vrot.slane %v3150_v25, 2 }
 0x350   : > { %v2457_v39 = vadd.f32 %v2456_v24, %v2455_v53 }
 0x351   : > { %v3152_v38 = vmax.f32 %v3150_v25, %v3151_v54 }
 0x352   : > { %v2458_v55 = vrot.slane %v2457_v39, 2 }
 0x353   : > { %v3153_v56 = vrot.slane %v3152_v38, 1 }
 0x354   : > { %v2459_v58 = vadd.f32 %v2458_v55, %v2457_v39 }
 0x355   : > { %v3154_v59 = vmax.f32 %v3152_v38, %v3153_v56 }
 0x356   : > { %v15508_v60 = vpop.eup %15507  ;;  %v2460_v62 = vrot.slane %v2459_v58, 1 }
 0x357   : > { %v15510_v63 = vpop.eup %15509  ;;  %v2808_v47 = vsel %vm1729_vm0, %v15508_v60, 0.0  ;;  %v3155_v2 = vsub.f32 %v16974_v5, %v3154_v59  ;;  %v3156_v3 = vsub.f32 %v16971_v0, %v3154_v59  ;;  %v3157_v4 = vsub.f32 %v3140_v15, %v3154_v59 }
 0x358   : > { %v15512_v1 = vpop.eup %15511  ;;  %v2461_v6 = vadd.f32 %v2460_v62, %v2459_v58  ;;  %v2809_v7 = vsel %vm1729_vm0, %v15510_v63, 0.0  ;;  %v3158_v8 = vsub.f32 %v3141_v14, %v3154_v59 }
 0x359   : > { %v15514_v9 = vpop.eup %15513  ;;  %v2810_v10 = vadd.f32 %v2809_v7, %v2808_v47  ;;  %v3159_v11 = vmul.f32 1.442695, %v3155_v2  ;;  %v3161_v12 = vmul.f32 1.442695, %v3156_v3  ;;  %v2811_v13 = vsel %vm1729_vm0, %v15512_v1, 0.0 }
 0x35a   : > { %15515 = vrcp.f32 %v2461_v6  ;;  %v3163_v48 = vmul.f32 1.442695, %v3157_v4  ;;  %v3165_v52 = vmul.f32 1.442695, %v3158_v8  ;;  %v2813_v5 = vsel %vm1729_vm0, %v15514_v9, 0.0  ;;  %v12062_v8 = vld [vmem:[%s16410_s19 + $0x40] sm:$0xff] }
 0x35b   : > { %v2812_v20 = vadd.f32 %v2811_v13, %v2810_v10  ;;  %15517 = vpow2.f32 %v3159_v11  ;;  %v12064_v11 = vld [vmem:[%s16410_s19 + $0x50] sm:$0xff] }
 0x35c   : > { %15519 = vpow2.f32 %v3161_v12  ;;  %v12065_v12 = vld [vmem:[%s16410_s19 + $0x58] sm:$0xff] }
 0x35d   : > { %v2814_v0 = vadd.f32 %v2813_v5, %v2812_v20  ;;  %15521 = vpow2.f32 %v3163_v48  ;;  %v14605_v13 = vpack.c.bf16 %v12065_v12, %v12064_v11  ;;  %v12082_v5 = vld [vmem:[%s16410_s19 + $0x60] sm:$0xff] }
 0x35e   : > { %15523 = vpow2.f32 %v3165_v52  ;;  %v3567_v12 = vld [vmem:[%s16440_s27] sm:$0xff] }
 0x35f   : > { %v2815_v15 = vrot.slane %v2814_v0, 4 }
 0x361   : > { %v2816_v21 = vadd.f32 %v2815_v15, %v2814_v0  ;;  %v12083_v0 = vld [vmem:[%s16410_s19 + $0x68] sm:$0xff] }
 0x363   : > { %v2817_v14 = vrot.slane %v2816_v21, 2 }
 0x364   : > { %v15516_v22 = vpop.eup %15515 }
 0x365   : > { %v15518_v57 = vpop.eup %15517  ;;  %v2818_v26 = vadd.f32 %v2817_v14, %v2816_v21  ;;  %v2463_v61 = vmul.f32 %v15516_v22, %v16982_v16  ;;  %v2464_v29 = vmul.f32 %v15516_v22, %v16985_v18  ;;  %v2465_v30 = vmul.f32 %v15516_v22, %v16990_v23 }
 0x366   : > { %v15520_v32 = vpop.eup %15519  ;;  %v3167_v34 = vsel %vm1729_vm0, %v15518_v57, 0.0  ;;  %v2466_v35 = vmul.f32 %v15516_v22, %v16994_v27  ;;  %v14629_v22 = vpack.c.bf16 %v12083_v0, %v12082_v5  ;;  %v3571_v0 = vld [vmem:[%s16440_s27 + $0x20] sm:$0xff] }
 0x367   : > { %v15522_v36 = vpop.eup %15521  ;;  %v2819_v37 = vrot.slane %v2818_v26, 1  ;;  %v3168_v40 = vsel %vm1729_vm0, %v15520_v32, 0.0  ;;  %13453 = vmatprep.mubr.msk.f32.mxu1 %vm1729_vm0, %v2463_v61 }
 0x368   : > { %v15524_v41 = vpop.eup %15523  ;;  %v3169_v44 = vadd.f32 %v3168_v40, %v3167_v34  ;;  %v3170_v16 = vsel %vm1729_vm0, %v15522_v36, 0.0 }
 0x369   : > { %v2820_v46 = vadd.f32 %v2819_v37, %v2818_v26  ;;  %v3172_v18 = vsel %vm1729_vm0, %v15524_v41, 0.0  ;;  %v12085_v26 = vld [vmem:[%s16410_s19 + $0x78] sm:$0xff] }
 0x36a   : > { %v3171_v49 = vadd.f32 %v3170_v16, %v3169_v44 }
 0x36b   : > { %15525 = vrcp.f32 %v2820_v46 }
 0x36c   : > { %v3173_v23 = vadd.f32 %v3172_v18, %v3171_v49 }
 0x36e   : > { %v3174_v51 = vrot.slane %v3173_v23, 4 }
 0x370   : > { %v3175_v53 = vadd.f32 %v3174_v51, %v3173_v23 }
 0x372   : > { %v3176_v25 = vrot.slane %v3175_v53, 2 }
 0x374   : > { %v3177_v27 = vadd.f32 %v3176_v25, %v3175_v53 }
 0x375   : > { %v15526_v24 = vpop.eup %15525 }
 0x376   : > { %v3178_v54 = vrot.slane %v3177_v27, 1  ;;  %v2822_v39 = vmul.f32 %v15526_v24, %v15508_v60  ;;  %v2823_v38 = vmul.f32 %v15526_v24, %v15510_v63  ;;  %v2824_v55 = vmul.f32 %v15526_v24, %v15512_v1  ;;  %v12063_v60 = vld [vmem:[%s16410_s19 + $0x48] sm:$0xff] }
 0x377   : > { %v2825_v56 = vmul.f32 %v15526_v24, %v15514_v9  ;;  %v14601_v10 = vpack.c.bf16 %v12063_v60, %v12062_v8  ;;  %v3455_v60 = vld [vmem:[%s16430_s12] sm:$0xff] }
 0x378   : > { %v3179_v58 = vadd.f32 %v3178_v54, %v3177_v27 }
 0x37a   : > { %15527 = vrcp.f32 %v3179_v58 }
 0x384   : > { %v15528_v59 = vpop.eup %15527 }
 0x385   : > { %v3181_v62 = vmul.f32 %v15528_v59, %v15518_v57  ;;  %v17017_v47 = vmul.f32 %v15528_v59, %v15520_v32  ;;  %v17019_v2 = vmul.f32 %v15528_v59, %v15522_v36  ;;  %v17021_v3 = vmul.f32 %v15528_v59, %v15524_v41  ;;  %v12084_v57 = vld [vmem:[%s16410_s19 + $0x70] sm:$0xff] }
 0x386   : > { %v14633_v61 = vpack.c.bf16 %v12085_v26, %v12084_v57 }
 0x3cc   : > { %v13441_v4 = vpop.f32.mrb[12].mxu1 }
 0x3cd   : > { %v2538_v6 = vpop.f32.mrb[13].mxu1 }
 0x3ce   : > { %v14581_v7 = vpack.c.bf16 %v13441_v4, %v2538_v6 }
 0x3d0   : > { %v13444_v63 = vpop.f32.mrb[14].mxu1  ;;  %14582 = vmatprep.subr.bf16.mxu1 %v14581_v7 }
 0x3d1   : > { %v2548_v1 = vpop.f32.mrb[15].mxu1  ;;  %14584 = vmatpush3.bf16.msra.mxu1 %v14581_v7 }
 0x3d2   : > { %v14585_v9 = vpack.c.bf16 %v13444_v63, %v2548_v1  ;;  %v3456_v63 = vld [vmem:[%s16430_s12 + $0x8] sm:$0xff]  ;;  %v3457_v1 = vld [vmem:[%s16430_s12 + $0x10] sm:$0xff] }
 0x3d4   : > { %14586 = vmatprep.subr.bf16.mxu1 %v14585_v9 }
 0x3d5   : > { %14588 = vmatpush3.bf16.msra.mxu1 %v14585_v9  ;;  %v14645_v9 = vpack.c.bf16 %v3456_v63, %v3455_v60 }
 0x3d6   : > { %14602 = vmatprep.subr.bf16.mxu1 %v14601_v10 }
 0x3d7   : > { %14646 = vmatprep.subr.bf16.mxu0 %v14645_v9 }
 0x3d8   : > { %13454 = vmatmul.mubr.msk.f32.vlgmr.msra.gmra.mrb[8].mxu1 %vm1729_vm0, %v2464_v29  ;;  %14648 = vmatpush3.bf16.msra.mxu0 %v14645_v9 }
 0x3d9   : > { %13456 = vmatprep.mubr.msk.f32.mxu1 %vm1729_vm0, %v2465_v30  ;;  %14604 = vmatpush3.bf16.msra.mxu1 %v14601_v10  ;;  %v3458_v10 = vld [vmem:[%s16430_s12 + $0x18] sm:$0xff] }
 0x3da   : > { %14606 = vmatprep.subr.bf16.mxu1 %v14605_v13  ;;  %v14649_v11 = vpack.c.bf16 %v3458_v10, %v3457_v1 }
 0x3dc   : > { %13457 = vmatmul.mubr.msk.f32.gmra.mrb[10].mxu1 %vm1729_vm0, %v2466_v35  ;;  %14650 = vmatprep.subr.bf16.mxu0 %v14649_v11 }
 0x3dd   : > { %14608 = vmatpush3.bf16.msra.mxu1 %v14605_v13  ;;  %13481 = vmatprep.mubr.msk.f32.mxu1 %vm1729_vm0, %v16805_v33  ;;  %v3568_v13 = vld [vmem:[%s16440_s27 + $0x8] sm:$0xff] }
 0x3de   : > { %14652 = vmatpush3.bf16.msra.mxu0 %v14649_v11 }
 0x3e0   : > { %13482 = vmatmul.mubr.msk.f32.vlgmr.msra.gmra.mrb[16].mxu1 %vm1729_vm0, %v16819_v42 }
 0x3e1   : > { %13484 = vmatprep.mubr.msk.f32.mxu1 %vm1729_vm0, %v16821_v43 }
 0x3e4   : > { %13485 = vmatmul.mubr.msk.f32.gmra.mrb[18].mxu1 %vm1729_vm0, %v16826_v45 }
 0x3e5   : > { %13495 = vmatprep.mubr.msk.f32.mxu1 %vm1729_vm0, %v2822_v39 }
 0x4b3   : > { %v13483_v48 = vpop.f32.mrb[16].mxu1 }
 0x4b4   : > { %v2897_v52 = vpop.f32.mrb[17].mxu1 }
 0x4b5   : > { %v14609_v20 = vpack.c.bf16 %v13483_v48, %v2897_v52  ;;  %v3569_v48 = vld [vmem:[%s16440_s27 + $0x10] sm:$0xff]  ;;  %v14653_v52 = vpack.c.bf16 %v3568_v13, %v3567_v12 }
 0x4b7   : > { %v13486_v15 = vpop.f32.mrb[18].mxu1  ;;  %14610 = vmatprep.subr.bf16.mxu1 %v14609_v20 }
 0x4b8   : > { %v2907_v21 = vpop.f32.mrb[19].mxu1  ;;  %14612 = vmatpush3.bf16.msra.mxu1 %v14609_v20  ;;  %v3570_v20 = vld [vmem:[%s16440_s27 + $0x18] sm:$0xff] }
 0x4b9   : > { %v14613_v14 = vpack.c.bf16 %v13486_v15, %v2907_v21  ;;  %v14657_v5 = vpack.c.bf16 %v3570_v20, %v3569_v48  ;;  %v3572_v15 = vld [vmem:[%s16440_s27 + $0x28] sm:$0xff] }
 0x4ba   : > { %v14661_v21 = vpack.c.bf16 %v3572_v15, %v3571_v0 }
 0x4bb   : > { %14614 = vmatprep.subr.bf16.mxu1 %v14613_v14 }
 0x4bc   : > { %14616 = vmatpush3.bf16.msra.mxu1 %v14613_v14 }
 0x4bd   : > { %14630 = vmatprep.subr.bf16.mxu1 %v14629_v22 }
 0x4bf   : > { %13496 = vmatmul.mubr.msk.f32.vlgmr.msra.gmra.mrb[8].mxu1 %vm1729_vm0, %v2823_v38 }
 0x4c0   : > { %13498 = vmatprep.mubr.msk.f32.mxu1 %vm1729_vm0, %v2824_v55  ;;  %14632 = vmatpush3.bf16.msra.mxu1 %v14629_v22 }
 0x4c1   : > { %14634 = vmatprep.subr.bf16.mxu1 %v14633_v61 }
 0x4c3   : > { %13499 = vmatmul.mubr.msk.f32.gmra.mrb[10].mxu1 %vm1729_vm0, %v2825_v56 }
 0x4c4   : > { %14636 = vmatpush3.bf16.msra.mxu1 %v14633_v61  ;;  %13523 = vmatprep.mubr.msk.f32.mxu1 %vm1729_vm0, %v16805_v33 }
 0x4c7   : > { %13524 = vmatmul.mubr.msk.f32.vlgmr.msra.gmra.mrb[20].mxu1 %vm1729_vm0, %v16819_v42  ;;  %v12017_v42 = vld [vmem:[%s16415_s24] ss:$0 sm:$0xff] }
 0x4c8   : > { %13526 = vmatprep.mubr.msk.f32.mxu1 %vm1729_vm0, %v16821_v43 }
 0x4cb   : > { %13527 = vmatmul.mubr.msk.f32.gmra.mrb[22].mxu1 %vm1729_vm0, %v16826_v45 }
 0x4cc   : > { %13537 = vmatprep.mubr.msk.f32.mxu1 %vm1729_vm0, %v3181_v62 }
 0x59a   : > { %v13525_v29 = vpop.f32.mrb[20].mxu1 }
 0x59b   : > { %v3256_v30 = vpop.f32.mrb[21].mxu1 }
 0x59c   : > { %v14637_v32 = vpack.c.bf16 %v13525_v29, %v3256_v30 }
 0x59e   : > { %v13528_v34 = vpop.f32.mrb[22].mxu1  ;;  %14638 = vmatprep.subr.bf16.mxu1 %v14637_v32 }
 0x59f   : > { %v3266_v35 = vpop.f32.mrb[23].mxu1  ;;  %14640 = vmatpush3.bf16.msra.mxu1 %v14637_v32 }
 0x5a0   : > { %v14641_v33 = vpack.c.bf16 %v13528_v34, %v3266_v35 }
 0x5a2   : > { %14642 = vmatprep.subr.bf16.mxu1 %v14641_v33 }
 0x5a3   : > { %14644 = vmatpush3.bf16.msra.mxu1 %v14641_v33 }
 0x5a4   : > { %14654 = vmatprep.subr.bf16.mxu1 %v14653_v52 }
 0x5a6   : > { %13538 = vmatmul.mubr.msk.f32.vlgmr.msra.gmra.mrb[8].mxu1 %vm1729_vm0, %v17017_v47 }
 0x5a7   : > { %13540 = vmatprep.mubr.msk.f32.mxu1 %vm1729_vm0, %v17019_v2  ;;  %14656 = vmatpush3.bf16.msra.mxu1 %v14653_v52 }
 0x5a8   : > { %14658 = vmatprep.subr.bf16.mxu1 %v14657_v5 }
 0x5aa   : > { %13541 = vmatmul.mubr.msk.f32.gmra.mrb[10].mxu1 %vm1729_vm0, %v17021_v3 }
 0x5ab   : > { %14660 = vmatpush3.bf16.msra.mxu1 %v14657_v5 }
 0x5ac   : > { %14662 = vmatprep.subr.bf16.mxu1 %v14661_v21 }
 0x5af   : > { %14664 = vmatpush3.bf16.msra.mxu1 %v14661_v21 }
 0x679   : > { %v13539_v43 = vpop.f32.mrb[8].mxu1 }
 0x67a   : > { %v15269_v45 = vadd.f32 %v13539_v43, %v12017_v42  ;;  %v3353_v36 = vpop.f32.mrb[9].mxu1 }
 0x67b   : > { %v15270_v37 = vadd.f32 %v12017_v42, %v3353_v36 }
 0x67c   : > { %v3377_v40 = vadd.f32 %v15269_v45, %v16787_v19  ;;  %v12094_v45 = vld [vmem:[%s16420_s30] ss:$0 sm:$0xff] }
 0x67d   : > { %v13542_v41 = vpop.f32.mrb[10].mxu1  ;;  %v3376_v44 = vadd.f32 %v15270_v37, %v16785_v17 }
 0x67e   : > { %v3363_v46 = vpop.f32.mrb[11].mxu1  ;;  %v3385_v16 = vsel %vm1729_vm0, %v3377_v40, 0.0  ;;  %v15271_v49 = vadd.f32 %v13542_v41, %v12017_v42  ;;  %v12095_v41 = vld [vmem:[%s19644_s10] ss:$0 sm:$0xff]  ;;  %s19649_s10 = sld [smem:[#allocation23_spill]] }
 0x67f   : > { %v15272_v18 = vadd.f32 %v12017_v42, %v3363_v46  ;;  %3386 = vadd.xlane.f32.xlu1 %v3385_v16  ;;  %v3382_v23 = vsel %vm1729_vm0, %v3376_v44, 0.0 }
 0x680   : > { %3383 = vadd.xlane.f32.xlu0 %v3382_v23  ;;  %v3379_v25 = vadd.f32 %v15271_v49, %v16800_v31 }
 0x681   : > { %v3378_v51 = vadd.f32 %v15272_v18, %v16793_v28 }
 0x682   : > { %v3391_v19 = vsel %vm1729_vm0, %v3379_v25, 0.0 }
 0x683   : > { %v3388_v53 = vsel %vm1729_vm0, %v3378_v51, 0.0 }
 0x684   : > { %3389 = vadd.xlane.f32.xlu0 %v3388_v53 }
 0x688   : > { %3392 = vadd.xlane.f32.xlu0 %v3391_v19 }
 0x70c   : > { %v3387_v17 = vpop.xlane.xlu1 %3386 }
 0x70d   : > { %v3396_v27 = vmul.f32 0.03125, %v3387_v17  ;;  %v3384_v24 = vpop.xlane.xlu0 %3383 }
 0x70e   : > { %v3395_v54 = vmul.f32 0.03125, %v3384_v24  ;;  %v3573_v24 = vld [vmem:[%s16440_s27 + $0x30] sm:$0xff] }
 0x70f   : > { %v17070_v39 = vsub.f32 %v3377_v40, %v3396_v27 }
 0x710   : > { %v17072_v38 = vsub.f32 %v3376_v44, %v3395_v54  ;;  %v3574_v54 = vld [vmem:[%s16440_s27 + $0x38] sm:$0xff] }
 0x711   : > { %v3390_v55 = vpop.xlane.xlu0 %3389  ;;  %v3404_v28 = vmul.f32 %v17070_v39, %v17070_v39 }
 0x712   : > { %v3397_v56 = vmul.f32 0.03125, %v3390_v55  ;;  %v3403_v31 = vmul.f32 %v17072_v38, %v17072_v38 }
 0x713   : > { %v3410_v58 = vsel %vm1729_vm0, %v3404_v28, 0.0 }
 0x714   : > { %v17079_v59 = vsub.f32 %v3378_v51, %v3397_v56  ;;  %3411 = vadd.xlane.f32.xlu0 %v3410_v58  ;;  %v3407_v62 = vsel %vm1729_vm0, %v3403_v31, 0.0 }
 0x715   : > { %3408 = vadd.xlane.f32.xlu1 %v3407_v62  ;;  %v3393_v47 = vpop.xlane.xlu0 %3392 }
 0x716   : > { %v3398_v2 = vmul.f32 0.03125, %v3393_v47  ;;  %v3405_v3 = vmul.f32 %v17079_v59, %v17079_v59 }
 0x718   : > { %v17084_v4 = vsub.f32 %v3379_v25, %v3398_v2  ;;  %v3413_v6 = vsel %vm1729_vm0, %v3405_v3, 0.0 }
 0x719   : > { %3414 = vadd.xlane.f32.xlu1 %v3413_v6 }
 0x71a   : > { %v3406_v7 = vmul.f32 %v17084_v4, %v17084_v4 }
 0x71c   : > { %v3416_v8 = vsel %vm1729_vm0, %v3406_v7, 0.0  ;;  %v12101_v7 = vld [vmem:[%s19646_s2] ss:$0 sm:$0xff]  ;;  %s19651_s2 = sld [smem:[#allocation30_spill]] }
 0x71d   : > { %3417 = vadd.xlane.f32.xlu0 %v3416_v8 }
 0x7a1   : > { %v3412_v14 = vpop.xlane.xlu0 %3411 }
 0x7a2   : > { %v3420_v22 = vmul.f32 0.03125, %v3412_v14  ;;  %v3409_v57 = vpop.xlane.xlu1 %3408 }
 0x7a3   : > { %v3419_v26 = vmul.f32 0.03125, %v3409_v57 }
 0x7a4   : > { %v3424_v61 = vadd.f32 1e-05, %v3420_v22 }
 0x7a5   : > { %v3423_v29 = vadd.f32 1e-05, %v3419_v26 }
 0x7a6   : > { %15529 = vrsqrt.f32 %v3424_v61  ;;  %v3415_v30 = vpop.xlane.xlu1 %3414 }
 0x7a7   : > { %15531 = vrsqrt.f32 %v3423_v29  ;;  %v3421_v32 = vmul.f32 0.03125, %v3415_v30 }
 0x7a9   : > { %v3425_v34 = vadd.f32 1e-05, %v3421_v32 }
 0x7aa   : > { %v3418_v35 = vpop.xlane.xlu0 %3417 }
 0x7ab   : > { %15533 = vrsqrt.f32 %v3425_v34  ;;  %v3422_v33 = vmul.f32 0.03125, %v3418_v35 }
 0x7ad   : > { %v3426_v42 = vadd.f32 1e-05, %v3422_v33 }
 0x7af   : > { %15535 = vrsqrt.f32 %v3426_v42 }
 0x7b0   : > { %v15530_v43 = vpop.eup %15529 }
 0x7b1   : > { %v15532_v36 = vpop.eup %15531  ;;  %v3432_v37 = vmul.f32 %v15530_v43, %v17070_v39  ;;  %v14665_v39 = vpack.c.bf16 %v3574_v54, %v3573_v24 }
 0x7b2   : > { %v3431_v40 = vmul.f32 %v15532_v36, %v17072_v38  ;;  %v12096_v38 = vld [vmem:[%s19645_s26] ss:$0 sm:$0xff]  ;;  %s19650_s26 = sld [smem:[#allocation28_spill]] }
 0x7b3   : > { %v3442_v44 = vmul.f32 %v12094_v45, %v3432_v37  ;;  %14666 = vmatprep.subr.bf16.mxu1 %v14665_v39 }
 0x7b4   : > { %v3441_v46 = vmul.f32 %v12094_v45, %v3431_v40  ;;  %14668 = vmatpush3.bf16.msra.mxu1 %v14665_v39 }
 0x7b5   : > { %v15534_v16 = vpop.eup %15533  ;;  %v3452_v23 = vadd.f32 %v12095_v41, %v3442_v44 }
 0x7b6   : > { %v3451_v49 = vadd.f32 %v12095_v41, %v3441_v46  ;;  %v3433_v18 = vmul.f32 %v15534_v16, %v17079_v59  ;;  %v3758_v16 = vld [vmem:[%s19647_s23] sm:$0xff] }
 0x7b8   : > { %13551 = vmatprep.mubr.msk.f32.mxu0 %vm1729_vm0, %v3451_v49  ;;  %v3443_v51 = vmul.f32 %v12094_v45, %v3433_v18 }
 0x7b9   : > { %v15536_v53 = vpop.eup %15535  ;;  %13552 = vmatmul.mubr.msk.f32.vlgmr.msra.gmra.mrb[20].mxu0 %vm1729_vm0, %v3452_v23 }
 0x7ba   : > { %v3453_v25 = vadd.f32 %v12095_v41, %v3443_v51  ;;  %v3434_v19 = vmul.f32 %v15536_v53, %v17084_v4  ;;  %v3761_v51 = vld [vmem:[%s19647_s23 + $0x18] sm:$0xff] }
 0x7bc   : > { %13554 = vmatprep.mubr.msk.f32.mxu0 %vm1729_vm0, %v3453_v25  ;;  %v3444_v17 = vmul.f32 %v12094_v45, %v3434_v19  ;;  %v16064_v19 = vld [vmem:[%s16776_s11 + $0x8] sm:$0xff] }
 0x7be   : > { %v3454_v27 = vadd.f32 %v12095_v41, %v3444_v17 }
 0x7c0   : > { %13555 = vmatmul.mubr.msk.f32.gmra.mrb[22].mxu0 %vm1729_vm0, %v3454_v27 }
 0x88c   : > { %v13553_v55 = vpop.f32.mrb[20].mxu0 }
 0x88d   : > { %v3550_v28 = vadd.f32 %v13553_v55, %v12096_v38  ;;  %v3544_v56 = vpop.f32.mrb[21].mxu0 }
 0x88e   : > { %v3545_v31 = vadd.f32 %v12096_v38, %v3544_v56 }
 0x88f   : > { %v3564_v59 = vmax.f32 %v3550_v28, 0.0 }
 0x890   : > { %v3563_v58 = vmax.f32 %v3545_v31, 0.0 }
 0x892   : > { %13573 = vmatprep.mubr.msk.f32.mxu1 %vm3582_vm3, %v3563_v58 }
 0x893   : > { %v13556_v62 = vpop.f32.mrb[22].mxu0  ;;  %13574 = vmatmul.mubr.msk.f32.vlgmr.msra.gmra.mrb[24].mxu1 %vm3582_vm3, %v3564_v59 }
 0x894   : > { %v3560_v47 = vadd.f32 %v13556_v62, %v12096_v38  ;;  %v3554_v2 = vpop.f32.mrb[23].mxu0 }
 0x895   : > { %v3555_v3 = vadd.f32 %v12096_v38, %v3554_v2  ;;  %v12106_v2 = vld [vmem:[%s19648_s1] ss:$0 sm:$0xff]  ;;  %s19652_s1 = sld [smem:[#allocation29_spill]] }
 0x896   : > { %v3566_v6 = vmax.f32 %v3560_v47, 0.0 }
 0x897   : > { %v3565_v4 = vmax.f32 %v3555_v3, 0.0 }
 0x899   : > { %13576 = vmatprep.mubr.msk.f32.mxu1 %vm3582_vm3, %v3565_v4 }
 0x89a   : > { %13577 = vmatmul.mubr.msk.f32.gmra.mrb[26].mxu1 %vm3582_vm3, %v3566_v6 }
 0x89b   : > { %v17505_v50 = vld [vmem:[%s19652_s1 + $0x28] sm:$0xff] }
 0x966   : > { %v13575_v8 = vpop.f32.mrb[24].mxu1 }
 0x967   : > { %v3667_v60 = vadd.f32 %v13575_v8, %v12101_v7  ;;  %v3661_v63 = vpop.f32.mrb[25].mxu1 }
 0x968   : > { %v3662_v1 = vadd.f32 %v12101_v7, %v3661_v63 }
 0x969   : > { %v3681_v9 = vadd.f32 %v3667_v60, %v3452_v23  ;;  %v3760_v23 = vld [vmem:[%s19647_s23 + $0x10] sm:$0xff] }
 0x96a   : > { %v3680_v10 = vadd.f32 %v3662_v1, %v3451_v49  ;;  %v3759_v49 = vld [vmem:[%s19647_s23 + $0x8] sm:$0xff]  ;;  %v14673_v53 = vpack.c.bf16 %v3761_v51, %v3760_v23 }
 0x96b   : > { %v3689_v11 = vsel %vm1729_vm0, %v3681_v9, 0.0  ;;  %v14669_v18 = vpack.c.bf16 %v3759_v49, %v3758_v16 }
 0x96c   : > { %3690 = vadd.xlane.f32.xlu0 %v3689_v11  ;;  %v3686_v12 = vsel %vm1729_vm0, %v3680_v10, 0.0  ;;  %v16066_v11 = vld [vmem:[%s16776_s11 + $0x18] sm:$0xff] }
 0x96d   : > { %3687 = vadd.xlane.f32.xlu1 %v3686_v12  ;;  %v13578_v13 = vpop.f32.mrb[26].mxu1  ;;  %14670 = vmatprep.subr.bf16.mxu0 %v14669_v18 }
 0x96e   : > { %v3677_v48 = vadd.f32 %v13578_v13, %v12101_v7  ;;  %v3671_v52 = vpop.f32.mrb[27].mxu1  ;;  %14672 = vmatpush3.bf16.msra.mxu0 %v14669_v18 }
 0x96f   : > { %v3672_v20 = vadd.f32 %v12101_v7, %v3671_v52  ;;  %14674 = vmatprep.subr.bf16.mxu0 %v14673_v53  ;;  %v12107_v7 = vld [vmem:[%s19649_s10] ss:$0 sm:$0xff]  ;;  %s19653_s10 = sld [smem:[#allocation32_spill]] }
 0x970   : > { %v3683_v5 = vadd.f32 %v3677_v48, %v3454_v27 }
 0x971   : > { %v3682_v0 = vadd.f32 %v3672_v20, %v3453_v25  ;;  %v16063_v25 = vld [vmem:[%s16776_s11] sm:$0xff] }
 0x972   : > { %v3695_v15 = vsel %vm1729_vm0, %v3683_v5, 0.0  ;;  %14676 = vmatpush3.bf16.msra.mxu0 %v14673_v53  ;;  %v17132_v17 = vpack.c.bf16 %v16064_v19, %v16063_v25 }
 0x973   : > { %3696 = vadd.xlane.f32.xlu0 %v3695_v15  ;;  %v3692_v21 = vsel %vm1729_vm0, %v3682_v0, 0.0 }
 0x974   : > { %3693 = vadd.xlane.f32.xlu1 %v3692_v21  ;;  %14678 = vmatprep.subr.bf16.mxu0 %v17132_v17  ;;  %v17157_v21 = vld [vmem:[%s19650_s26] sm:$0xff] }
 0x975   : > { %v4182_v16 = vld [vmem:[%s19653_s10 + $0x10] sm:$0xff]  ;;  %v4183_v18 = vld [vmem:[%s19653_s10 + $0x18] sm:$0xff]  ;;  %v4184_v51 = vld [vmem:[%s19653_s10 + $0x20] sm:$0xff] }
 0x976   : > { %v17212_v23 = vpack.c.bf16 %v4183_v18, %v4182_v16  ;;  %v4185_v53 = vld [vmem:[%s19653_s10 + $0x28] sm:$0xff]  ;;  %v4186_v19 = vld [vmem:[%s19653_s10 + $0x30] sm:$0xff] }
 0x977   : > { %v17219_v25 = vpack.c.bf16 %v4185_v53, %v4184_v51 }
 0x9f9   : > { %v3691_v14 = vpop.xlane.xlu0 %3690 }
 0x9fa   : > { %v3699_v22 = vmul.f32 0.03125, %v3691_v14  ;;  %v3688_v57 = vpop.xlane.xlu1 %3687  ;;  %v17166_v14 = vld [vmem:[%s19650_s26 + $0x8] sm:$0xff] }
 0x9fb   : > { %v3698_v26 = vmul.f32 0.03125, %v3688_v57  ;;  %v17176_v57 = vld [vmem:[%s19650_s26 + $0x18] sm:$0xff] }
 0x9fc   : > { %v3703_v61 = vsub.f32 %v3681_v9, %v3699_v22  ;;  %v17169_v22 = vld [vmem:[%s19650_s26 + $0x10] sm:$0xff] }
 0x9fd   : > { %v3702_v29 = vsub.f32 %v3680_v10, %v3698_v26  ;;  %v16065_v10 = vld [vmem:[%s16776_s11 + $0x10] sm:$0xff]  ;;  %v3971_v26 = vld [vmem:[%s19651_s2] sm:$0xff] }
 0x9fe   : > { %v3707_v30 = vmul.f32 %v3703_v61, %v3703_v61  ;;  %v17143_v12 = vpack.c.bf16 %v16066_v11, %v16065_v10 }
 0x9ff   : > { %v3706_v32 = vmul.f32 %v3702_v29, %v3702_v29 }
 0xa00   : > { %v3697_v34 = vpop.xlane.xlu0 %3696  ;;  %v3713_v35 = vsel %vm1729_vm0, %v3707_v30, 0.0  ;;  %v3973_v30 = vld [vmem:[%s19651_s2 + $0x10] sm:$0xff] }
 0xa01   : > { %v3701_v33 = vmul.f32 0.03125, %v3697_v34  ;;  %v3694_v42 = vpop.xlane.xlu1 %3693  ;;  %3714 = vadd.xlane.f32.xlu0 %v3713_v35  ;;  %v3710_v43 = vsel %vm1729_vm0, %v3706_v32, 0.0  ;;  %v3974_v32 = vld [vmem:[%s19651_s2 + $0x18] sm:$0xff] }
 0xa02   : > { %v3700_v45 = vmul.f32 0.03125, %v3694_v42  ;;  %3711 = vadd.xlane.f32.xlu1 %v3710_v43  ;;  %v17188_v34 = vpack.c.bf16 %v3974_v32, %v3973_v30 }
 0xa03   : > { %v3705_v36 = vsub.f32 %v3683_v5, %v3701_v33 }
 0xa04   : > { %v3704_v37 = vsub.f32 %v3682_v0, %v3700_v45 }
 0xa05   : > { %v3709_v40 = vmul.f32 %v3705_v36, %v3705_v36 }
 0xa06   : > { %v3708_v41 = vmul.f32 %v3704_v37, %v3704_v37 }
 0xa07   : > { %v3719_v44 = vsel %vm1729_vm0, %v3709_v40, 0.0 }
 0xa08   : > { %3720 = vadd.xlane.f32.xlu0 %v3719_v44  ;;  %v3716_v46 = vsel %vm1729_vm0, %v3708_v41, 0.0  ;;  %v3870_v41 = vld [vmem:[%s19652_s1] sm:$0xff] }
 0xa09   : > { %3717 = vadd.xlane.f32.xlu1 %v3716_v46  ;;  %v4180_v44 = vld [vmem:[%s19653_s10] sm:$0xff]  ;;  %v4181_v46 = vld [vmem:[%s19653_s10 + $0x8] sm:$0xff] }
 0xa0a   : > { %v17209_v49 = vpack.c.bf16 %v4181_v46, %v4180_v44 }
 0xa8e   : > { %v3715_v27 = vpop.xlane.xlu0 %3714 }
 0xa8f   : > { %v3723_v24 = vmul.f32 0.03125, %v3715_v27  ;;  %v3712_v54 = vpop.xlane.xlu1 %3711  ;;  %v4187_v27 = vld [vmem:[%s19653_s10 + $0x38] sm:$0xff] }
 0xa90   : > { %v3722_v39 = vmul.f32 0.03125, %v3712_v54  ;;  %v17231_v54 = vld [vmem:[%s19654_s18] ss:$0 sm:$0xff]  ;;  %s19656_s18 = sld [smem:[#allocation33_spill]] }
 0xa91   : > { %v3727_v38 = vadd.f32 1e-05, %v3723_v24  ;;  %v17225_v24 = vpack.c.bf16 %v4187_v27, %v4186_v19 }
 0xa92   : > { %v3726_v55 = vadd.f32 1e-05, %v3722_v39 }
 0xa93   : > { %15537 = vrsqrt.f32 %v3727_v38 }
 0xa94   : > { %15539 = vrsqrt.f32 %v3726_v55 }
 0xa95   : > { %v3721_v28 = vpop.xlane.xlu0 %3720 }
 0xa96   : > { %v3725_v56 = vmul.f32 0.03125, %v3721_v28  ;;  %v3718_v31 = vpop.xlane.xlu1 %3717  ;;  %s19657_s5 = smov %s19656_s18 }
 0xa97   : > { %v3724_v58 = vmul.f32 0.03125, %v3718_v31 }
 0xa98   : > { %v3729_v59 = vadd.f32 1e-05, %v3725_v56 }
 0xa99   : > { %v3728_v62 = vadd.f32 1e-05, %v3724_v58 }
 0xa9a   : > { %15541 = vrsqrt.f32 %v3729_v59 }
 0xa9b   : > { %15543 = vrsqrt.f32 %v3728_v62 }
 0xa9d   : > { %v15538_v47 = vpop.eup %15537 }
 0xa9e   : > { %v15540_v3 = vpop.eup %15539  ;;  %v3735_v4 = vmul.f32 %v15538_v47, %v3703_v61  ;;  %v3972_v61 = vld [vmem:[%s19651_s2 + $0x8] sm:$0xff] }
 0xa9f   : > { %v3734_v6 = vmul.f32 %v15540_v3, %v3702_v29  ;;  %v17182_v29 = vpack.c.bf16 %v3972_v61, %v3971_v26 }
 0xaa0   : > { %v3745_v8 = vmul.f32 %v12106_v2, %v3735_v4 }
 0xaa1   : > { %v3744_v60 = vmul.f32 %v12106_v2, %v3734_v6  ;;  %14686 = vmatprep.subr.bf16.mxu1 %v17182_v29 }
 0xaa2   : > { %v17139_v9 = vadd.f32 %v12107_v7, %v3745_v8  ;;  %14688 = vmatpush3.bf16.msra.mxu1 %v17182_v29  ;;  %v17241_v8 = vld [vmem:[%s19652_s1 + $0x10] sm:$0xff] }
 0xaa3   : > { %v17137_v63 = vadd.f32 %v12107_v7, %v3744_v60  ;;  %14690 = vmatprep.subr.bf16.mxu1 %v17188_v34  ;;  %v17248_v60 = vld [vmem:[%s19652_s1 + $0x18] sm:$0xff] }
 0xaa4   : > { %v15542_v1 = vpop.eup %15541 }
 0xaa5   : > { %v15544_v13 = vpop.eup %15543  ;;  %v3737_v48 = vmul.f32 %v15542_v1, %v3705_v36  ;;  %13587 = vmatprep.mubr.msk.f32.mxu0 %vm1729_vm0, %v17137_v63 }
 0xaa6   : > { %v3736_v52 = vmul.f32 %v15544_v13, %v3704_v37  ;;  %13588 = vmatmul.mubr.msk.f32.vlgmr.msra.gmra.mrb[24].mxu0 %vm1729_vm0, %v17139_v9  ;;  %14692 = vmatpush3.bf16.msra.mxu1 %v17188_v34 }
 0xaa7   : > { %v3747_v20 = vmul.f32 %v12106_v2, %v3737_v48  ;;  %14680 = vmatpush3.bf16.msra.mxu0 %v17132_v17  ;;  %14702 = vmatprep.subr.bf16.mxu1 %v17209_v49  ;;  %v17260_v48 = vld [vmem:[%s19656_s18] ss:$0 sm:$0xff]  ;;  %s19660_s18 = sld [smem:[#allocation26_spill]] }
 0xaa8   : > { %v3746_v5 = vmul.f32 %v12106_v2, %v3736_v52  ;;  %14682 = vmatprep.subr.bf16.mxu0 %v17143_v12 }
 0xaa9   : > { %v17153_v15 = vadd.f32 %v12107_v7, %v3747_v20 }
 0xaaa   : > { %v17151_v0 = vadd.f32 %v12107_v7, %v3746_v5  ;;  %v17238_v7 = vld [vmem:[%s19652_s1 + $0x8] sm:$0xff] }
 0xaab   : > { %14684 = vmatpush3.bf16.msra.mxu0 %v17143_v12 }
 0xaac   : > { %13590 = vmatprep.mubr.msk.f32.mxu0 %vm1729_vm0, %v17151_v0 }
 0xaad   : > { %13591 = vmatmul.mubr.msk.f32.gmra.mrb[26].mxu0 %vm1729_vm0, %v17153_v15  ;;  %s19661_s2 = smov %s19660_s18 }
 0xaae   : > { %13601 = vmatprep.mubr.msk.f32.mxu0 %vm1729_vm0, %v17157_v21 }
 0xab1   : > { %13602 = vmatmul.mubr.msk.f32.vlgmr.msra.gmra.mrb[28].mxu0 %vm1729_vm0, %v17166_v14 }
 0xab2   : > { %13604 = vmatprep.mubr.msk.f32.mxu0 %vm1729_vm0, %v17169_v22 }
 0xab5   : > { %13605 = vmatmul.mubr.msk.f32.gmra.mrb[30].mxu0 %vm1729_vm0, %v17176_v57 }
 0xab6   : > { %13629 = vmatprep.mubr.msk.f32.mxu0 %vm1729_vm0, %v3870_v41 }
 0xb79   : > { %v17192_v35 = vpop.f32.mrb[24].mxu0 }
 0xb7a   : > { %v17194_v33 = vpop.f32.mrb[25].mxu0 }
 0xb80   : > { %v17196_v42 = vpop.f32.mrb[26].mxu0 }
 0xb81   : > { %v17198_v43 = vpop.f32.mrb[27].mxu0 }
 0xb84   : > { %v13603_v45 = vpop.f32.mrb[28].mxu0 }
 0xb85   : > { %v3952_v36 = vpop.f32.mrb[29].mxu0 }
 0xb86   : > { %13615 = vmatprep.mubr.msk.f32.mxu1 %vm1729_vm0, %v3952_v36 }
 0xb87   : > { %13616 = vmatmul.mubr.msk.f32.vlgmr.msra.gmra.mrb[28].mxu1 %vm1729_vm0, %v13603_v45 }
 0xb88   : > { %v13606_v37 = vpop.f32.mrb[30].mxu0  ;;  %14704 = vmatpush3.bf16.msra.mxu1 %v17209_v49 }
 0xb89   : > { %v3962_v40 = vpop.f32.mrb[31].mxu0  ;;  %14706 = vmatprep.subr.bf16.mxu1 %v17212_v23 }
 0xb8a   : > { %13618 = vmatprep.mubr.msk.f32.mxu1 %vm1729_vm0, %v3962_v40 }
 0xb8b   : > { %13619 = vmatmul.mubr.msk.f32.gmra.mrb[30].mxu1 %vm1729_vm0, %v13606_v37 }
 0xb8c   : > { %14708 = vmatpush3.bf16.msra.mxu1 %v17212_v23 }
 0xb8d   : > { %14710 = vmatprep.subr.bf16.mxu1 %v17219_v25 }
 0xb90   : > { %14712 = vmatpush3.bf16.msra.mxu1 %v17219_v25 }
 0xb91   : > { %14714 = vmatprep.subr.bf16.mxu1 %v17225_v24 }
 0xb94   : > { %14716 = vmatpush3.bf16.msra.mxu1 %v17225_v24 }
 0xc5a   : > { %v13617_v39 = vpop.f32.mrb[28].mxu1 }
 0xc5b   : > { %v4066_v38 = vadd.f32 %v13617_v39, %v17231_v54  ;;  %v4060_v55 = vpop.f32.mrb[29].mxu1 }
 0xc5c   : > { %v4061_v28 = vadd.f32 %v17231_v54, %v4060_v55 }
 0xc5d   : > { %v4080_v56 = vmax.f32 %v4066_v38, 0.0 }
 0xc5e   : > { %v4079_v31 = vmax.f32 %v4061_v28, 0.0  ;;  %v13620_v58 = vpop.f32.mrb[30].mxu1 }
 0xc5f   : > { %v4076_v59 = vadd.f32 %v13620_v58, %v17231_v54  ;;  %v4070_v62 = vpop.f32.mrb[31].mxu1 }
 0xc60   : > { %v14693_v47 = vpack.c.bf16 %v4080_v56, %v4079_v31  ;;  %v4071_v2 = vadd.f32 %v17231_v54, %v4070_v62 }
 0xc61   : > { %v4082_v3 = vmax.f32 %v4076_v59, 0.0  ;;  %v4709_v59 = vld [vmem:[%s19661_s2 + $0x8] sm:$0xff] }
 0xc62   : > { %v4081_v4 = vmax.f32 %v4071_v2, 0.0  ;;  %14694 = vmatprep.subr.bf16.mxu0 %v14693_v47 }
 0xc63   : > { %14696 = vmatpush3.bf16.msra.mxu0 %v14693_v47 }
 0xc64   : > { %v14697_v6 = vpack.c.bf16 %v4082_v3, %v4081_v4 }
 0xc66   : > { %14698 = vmatprep.subr.bf16.mxu0 %v14697_v6 }
 0xc67   : > { %14700 = vmatpush3.bf16.msra.mxu0 %v14697_v6 }
 0xc6a   : > { %13630 = vmatmul.mubr.msk.f32.vlgmr.msra.gmra.mrb[32].mxu0 %vm1729_vm0, %v17238_v7 }
 0xc6b   : > { %13632 = vmatprep.mubr.msk.f32.mxu0 %vm1729_vm0, %v17241_v8 }
 0xc6e   : > { %13633 = vmatmul.mubr.msk.f32.gmra.mrb[34].mxu0 %vm1729_vm0, %v17248_v60 }
 0xc6f   : > { %13665 = vmatprep.mubr.msk.f32.mxu0 %vm1729_vm0, %v17157_v21 }
 0xd3d   : > { %v13631_v1 = vpop.f32.mrb[32].mxu0 }
 0xd3e   : > { %v4161_v10 = vpop.f32.mrb[33].mxu0 }
 0xd3f   : > { %13651 = vmatprep.mubr.msk.f32.mxu1 %vm3582_vm3, %v4161_v10 }
 0xd40   : > { %13652 = vmatmul.mubr.msk.f32.vlgmr.msra.gmra.mrb[32].mxu1 %vm3582_vm3, %v13631_v1 }
 0xd41   : > { %v13634_v11 = vpop.f32.mrb[34].mxu0 }
 0xd42   : > { %v4171_v13 = vpop.f32.mrb[35].mxu0 }
 0xd43   : > { %13654 = vmatprep.mubr.msk.f32.mxu1 %vm3582_vm3, %v4171_v13 }
 0xd44   : > { %13655 = vmatmul.mubr.msk.f32.gmra.mrb[34].mxu1 %vm3582_vm3, %v13634_v11 }
 0xd45   : > { %13693 = vmatprep.mubr.msk.f32.mxu1 %vm1729_vm0, %v3870_v41 }
 0xe13   : > { %v13653_v52 = vpop.f32.mrb[32].mxu1 }
 0xe14   : > { %v17263_v20 = vadd.f32 %v13653_v52, %v17260_v48  ;;  %v4273_v5 = vpop.f32.mrb[33].mxu1 }
 0xe15   : > { %v17266_v21 = vadd.f32 %v17260_v48, %v4273_v5 }
 0xe16   : > { %19658 = vst [vmem:[#allocation61_spill] sm:$0xff] %v17263_v20  ;;  %v12132_v26 = vmul.f32 -1.442695, %v17263_v20 }
 0xe17   : > { %v12131_v61 = vmul.f32 -1.442695, %v17266_v21  ;;  %v13656_v30 = vpop.f32.mrb[34].mxu1 }
 0xe18   : > { %15545 = vpow2.f32 %v12132_v26  ;;  %v17271_v32 = vadd.f32 %v13656_v30, %v17260_v48  ;;  %v4283_v45 = vpop.f32.mrb[35].mxu1 }
 0xe19   : > { %15547 = vpow2.f32 %v12131_v61  ;;  %v17274_v36 = vadd.f32 %v17260_v48, %v4283_v45  ;;  %v4710_v45 = vld [vmem:[%s19661_s2 + $0x10] sm:$0xff] }
 0xe1a   : > { %19659 = vst [vmem:[#allocation62_spill] sm:$0xff] %v17271_v32  ;;  %v12134_v37 = vmul.f32 -1.442695, %v17271_v32 }
 0xe1b   : > { %v12133_v40 = vmul.f32 -1.442695, %v17274_v36 }
 0xe1c   : > { %15549 = vpow2.f32 %v12134_v37  ;;  %v4711_v37 = vld [vmem:[%s19661_s2 + $0x18] sm:$0xff]  ;;  %s19663_s2 = sld [smem:[#allocation27_spill]] }
 0xe1d   : > { %15551 = vpow2.f32 %v12133_v40  ;;  %v17324_v40 = vpack.c.bf16 %v4711_v37, %v4710_v45 }
 0xe22   : > { %v15546_v41 = vpop.eup %15545 }
 0xe23   : > { %v15548_v44 = vpop.eup %15547  ;;  %v4305_v46 = vadd.f32 1.0, %v15546_v41  ;;  %v17373_v41 = vld [vmem:[%s19650_s26 + $0x38] sm:$0xff] }
 0xe24   : > { %v4304_v16 = vadd.f32 1.0, %v15548_v44 }
 0xe25   : > { %15553 = vrcp.f32 %v4305_v46 }
 0xe26   : > { %v15550_v18 = vpop.eup %15549  ;;  %15555 = vrcp.f32 %v4304_v16 }
 0xe27   : > { %v15552_v51 = vpop.eup %15551  ;;  %v4307_v53 = vadd.f32 1.0, %v15550_v18 }
 0xe28   : > { %v4306_v19 = vadd.f32 1.0, %v15552_v51 }
 0xe29   : > { %15557 = vrcp.f32 %v4307_v53  ;;  %v17386_v53 = vld [vmem:[%s19663_s2] ss:$0 sm:$0xff] }
 0xe2a   : > { %15559 = vrcp.f32 %v4306_v19 }
 0xe2f   : > { %v17278_v27 = vpop.eup %15553 }
 0xe30   : > { %v17280_v39 = vpop.eup %15555 }
 0xe31   : > { %v14717_v38 = vpack.c.bf16 %v17278_v27, %v17280_v39 }
 0xe33   : > { %v17284_v55 = vpop.eup %15557  ;;  %14718 = vmatprep.subr.bf16.mxu0 %v14717_v38 }
 0xe34   : > { %v17286_v28 = vpop.eup %15559  ;;  %14720 = vmatpush3.bf16.msra.mxu0 %v14717_v38 }
 0xe35   : > { %v14721_v56 = vpack.c.bf16 %v17284_v55, %v17286_v28 }
 0xe37   : > { %14722 = vmatprep.subr.bf16.mxu0 %v14721_v56 }
 0xe38   : > { %14724 = vmatpush3.bf16.msra.mxu0 %v14721_v56 }
 0xe39   : > { %14726 = vmatprep.subr.bf16.mxu0 %v17182_v29 }
 0xe3b   : > { %13666 = vmatmul.mubr.msk.f32.vlgmr.msra.gmra.mrb[36].mxu0 %vm1729_vm0, %v17166_v14 }
 0xe3c   : > { %13668 = vmatprep.mubr.msk.f32.mxu0 %vm1729_vm0, %v17169_v22  ;;  %14728 = vmatpush3.bf16.msra.mxu0 %v17182_v29 }
 0xe3d   : > { %14730 = vmatprep.subr.bf16.mxu0 %v17188_v34 }
 0xe3f   : > { %13669 = vmatmul.mubr.msk.f32.gmra.mrb[38].mxu0 %vm1729_vm0, %v17176_v57  ;;  %v4708_v57 = vld [vmem:[%s19660_s18] sm:$0xff]  ;;  %s19662_s18 = sld [smem:[#allocation25_spill]] }
 0xe40   : > { %14732 = vmatpush3.bf16.msra.mxu0 %v17188_v34  ;;  %v17314_v62 = vpack.c.bf16 %v4709_v59, %v4708_v57 }
 0xe41   : > { %14742 = vmatprep.subr.bf16.mxu0 %v17209_v49 }
 0xe45   : > { %v12108_v51 = vld [vmem:[%s19662_s18] ss:$0 sm:$0xff]  ;;  %s8099_s18 = sld [smem:[#allocation2]] }
 0xe46   : > { %v17391_v38 = vadd.f32 %v17192_v35, %v12108_v51 }
 0xf0e   : > { %v13667_v31 = vpop.f32.mrb[36].mxu0 }
 0xf0f   : > { %v4382_v58 = vpop.f32.mrb[37].mxu0 }
 0xf10   : > { %13679 = vmatprep.mubr.msk.f32.mxu0 %vm1729_vm0, %v4382_v58  ;;  %v17396_v58 = vadd.f32 %v12108_v51, %v17194_v33 }
 0xf11   : > { %13680 = vmatmul.mubr.msk.f32.vlgmr.msra.gmra.mrb[40].mxu0 %vm1729_vm0, %v13667_v31 }
 0xf12   : > { %v13670_v14 = vpop.f32.mrb[38].mxu0  ;;  %14744 = vmatpush3.bf16.msra.mxu0 %v17209_v49 }
 0xf13   : > { %v4392_v22 = vpop.f32.mrb[39].mxu0  ;;  %14746 = vmatprep.subr.bf16.mxu0 %v17212_v23 }
 0xf14   : > { %13682 = vmatprep.mubr.msk.f32.mxu0 %vm1729_vm0, %v4392_v22 }
 0xf15   : > { %13683 = vmatmul.mubr.msk.f32.gmra.mrb[42].mxu0 %vm1729_vm0, %v13670_v14 }
 0xf16   : > { %14748 = vmatpush3.bf16.msra.mxu0 %v17212_v23 }
 0xf17   : > { %14750 = vmatprep.subr.bf16.mxu0 %v17219_v25 }
 0xf1a   : > { %14752 = vmatpush3.bf16.msra.mxu0 %v17219_v25 }
 0xf1b   : > { %14754 = vmatprep.subr.bf16.mxu0 %v17225_v24 }
 0xf1e   : > { %14756 = vmatpush3.bf16.msra.mxu0 %v17225_v24 }
 0xf1f   : > { %14774 = vmatprep.subr.bf16.mxu0 %v17314_v62 }
 0xfe4   : > { %v13681_v47 = vpop.f32.mrb[40].mxu0 }
 0xfe5   : > { %v4485_v2 = vadd.f32 %v13681_v47, %v17231_v54  ;;  %v4479_v3 = vpop.f32.mrb[41].mxu0  ;;  %v17402_v47 = vadd.f32 %v17196_v42, %v12108_v51 }
 0xfe6   : > { %v4480_v4 = vadd.f32 %v17231_v54, %v4479_v3 }
 0xfe7   : > { %v4499_v6 = vmax.f32 %v4485_v2, 0.0 }
 0xfe8   : > { %v4498_v1 = vmax.f32 %v4480_v4, 0.0  ;;  %v13684_v10 = vpop.f32.mrb[42].mxu0  ;;  %v17406_v4 = vadd.f32 %v12108_v51, %v17198_v43 }
 0xfe9   : > { %v4495_v11 = vadd.f32 %v13684_v10, %v17231_v54  ;;  %v4489_v13 = vpop.f32.mrb[43].mxu0 }
 0xfea   : > { %v14733_v52 = vpack.c.bf16 %v4499_v6, %v4498_v1  ;;  %v4490_v5 = vadd.f32 %v17231_v54, %v4489_v13 }
 0xfeb   : > { %v4501_v26 = vmax.f32 %v4495_v11, 0.0 }
 0xfec   : > { %v4500_v61 = vmax.f32 %v4490_v5, 0.0  ;;  %14734 = vmatprep.subr.bf16.mxu1 %v14733_v52 }
 0xfed   : > { %14736 = vmatpush3.bf16.msra.mxu1 %v14733_v52 }
 0xfee   : > { %v14737_v30 = vpack.c.bf16 %v4501_v26, %v4500_v61 }
 0xff0   : > { %14738 = vmatprep.subr.bf16.mxu1 %v14737_v30 }
 0xff1   : > { %14740 = vmatpush3.bf16.msra.mxu1 %v14737_v30 }
 0xff2   : > { %14758 = vmatprep.subr.bf16.mxu1 %v17314_v62 }
 0xff4   : > { %13694 = vmatmul.mubr.msk.f32.vlgmr.msra.gmra.mrb[36].mxu1 %vm1729_vm0, %v17238_v7  ;;  %v17360_v7 = vld [vmem:[%s19650_s26 + $0x20] sm:$0xff] }
 0xff5   : > { %14760 = vmatpush3.bf16.msra.mxu1 %v17314_v62  ;;  %13696 = vmatprep.mubr.msk.f32.mxu1 %vm1729_vm0, %v17241_v8  ;;  %v17365_v8 = vld [vmem:[%s19650_s26 + $0x28] sm:$0xff] }
 0xff6   : > { %14762 = vmatprep.subr.bf16.mxu1 %v17324_v40 }
 0xff8   : > { %13697 = vmatmul.mubr.msk.f32.gmra.mrb[38].mxu1 %vm1729_vm0, %v17248_v60  ;;  %v17370_v60 = vld [vmem:[%s19650_s26 + $0x30] sm:$0xff] }
 0xff9   : > { %14764 = vmatpush3.bf16.msra.mxu1 %v17324_v40  ;;  %13729 = vmatprep.mubr.msk.f32.mxu1 %vm1729_vm0, %v17280_v39 }
 0xffa   : > { %14766 = vmatprep.subr.bf16.mxu1 %v17314_v62 }
 0xffc   : > { %13730 = vmatmul.mubr.msk.f32.vlgmr.msra.gmra.mrb[40].mxu1 %vm1729_vm0, %v17278_v27 }
 0xffd   : > { %13732 = vmatprep.mubr.msk.f32.mxu1 %vm1729_vm0, %v17286_v28  ;;  %14768 = vmatpush3.bf16.msra.mxu1 %v17314_v62 }
 0xffe   : > { %14770 = vmatprep.subr.bf16.mxu1 %v17324_v40 }
0x1000   : > { %13733 = vmatmul.mubr.msk.f32.gmra.mrb[42].mxu1 %vm1729_vm0, %v17284_v55 }
0x1001   : > { %14772 = vmatpush3.bf16.msra.mxu1 %v17324_v40  ;;  %13743 = vmatprep.mubr.msk.f32.mxu1 %vm1729_vm0, %v17266_v21 }
0x1002   : > { %14782 = vmatprep.subr.bf16.mxu1 %v17132_v17 }
0x1004   : > { %13744 = vmatmul.mubr.msk.f32.vlgmr.msra.gmra.mrb[44].mxu1 %vm1729_vm0, %v17263_v20 }
0x1005   : > { %13746 = vmatprep.mubr.msk.f32.mxu1 %vm1729_vm0, %v17274_v36  ;;  %14784 = vmatpush3.bf16.msra.mxu1 %v17132_v17 }
0x1006   : > { %14786 = vmatprep.subr.bf16.mxu1 %v17143_v12 }
0x1008   : > { %13747 = vmatmul.mubr.msk.f32.gmra.mrb[46].mxu1 %vm1729_vm0, %v17271_v32 }
0x1009   : > { %14788 = vmatpush3.bf16.msra.mxu1 %v17143_v12  ;;  %13771 = vmatprep.mubr.msk.f32.mxu1 %vm1729_vm0, %v17360_v7 }
0x100c   : > { %13772 = vmatmul.mubr.msk.f32.vlgmr.msra.gmra.mrb[48].mxu1 %vm1729_vm0, %v17365_v8 }
0x100d   : > { %13774 = vmatprep.mubr.msk.f32.mxu1 %vm1729_vm0, %v17370_v60 }
0x1010   : > { %13775 = vmatmul.mubr.msk.f32.gmra.mrb[50].mxu1 %vm1729_vm0, %v17373_v41 }
0x10c7   : > { %v13695_v44 = vpop.f32.mrb[36].mxu1 }
0x10c8   : > { %v4568_v46 = vpop.f32.mrb[37].mxu1 }
0x10c9   : > { %13715 = vmatprep.mubr.msk.f32.mxu0 %vm3582_vm3, %v4568_v46 }
0x10ca   : > { %13716 = vmatmul.mubr.msk.f32.vlgmr.msra.gmra.mrb[44].mxu0 %vm3582_vm3, %v13695_v44 }
0x10cb   : > { %v13698_v16 = vpop.f32.mrb[38].mxu1  ;;  %14776 = vmatpush3.bf16.msra.mxu0 %v17314_v62 }
0x10cc   : > { %v4578_v18 = vpop.f32.mrb[39].mxu1  ;;  %14778 = vmatprep.subr.bf16.mxu0 %v17324_v40 }
0x10cd   : > { %13718 = vmatprep.mubr.msk.f32.mxu0 %vm3582_vm3, %v4578_v18 }
0x10ce   : > { %13719 = vmatmul.mubr.msk.f32.gmra.mrb[46].mxu0 %vm3582_vm3, %v13698_v16 }
0x10cf   : > { %v13731_v19 = vpop.f32.mrb[40].mxu1  ;;  %14780 = vmatpush3.bf16.msra.mxu0 %v17324_v40 }
0x10d0   : > { %v4803_v56 = vadd.f32 %v13731_v19, %v17386_v53  ;;  %v4797_v31 = vpop.f32.mrb[41].mxu1  ;;  %14790 = vmatprep.subr.bf16.mxu0 %v17182_v29 }
0x10d1   : > { %v4798_v14 = vadd.f32 %v17386_v53, %v4797_v31 }
0x10d2   : > { %v4817_v22 = vadd.f32 %v4803_v56, %v17391_v38 }
0x10d3   : > { %v4816_v57 = vadd.f32 %v4798_v14, %v17396_v58  ;;  %v13734_v59 = vpop.f32.mrb[42].mxu1 }
0x10d4   : > { %v12161_v35 = vmul.f32 -1.442695, %v4817_v22  ;;  %v4813_v2 = vadd.f32 %v13734_v59, %v17386_v53  ;;  %v4807_v3 = vpop.f32.mrb[43].mxu1 }
0x10d5   : > { %v12160_v6 = vmul.f32 -1.442695, %v4816_v57  ;;  %v4808_v33 = vadd.f32 %v17386_v53, %v4807_v3  ;;  %v8100_v57 = vstv %s8099_s18  ;;  %s12356_s18 = sld [smem:[#allocation2 + $0x80]] }
0x10d6   : > { %15561 = vpow2.f32 %v12161_v35  ;;  %v4819_v1 = vadd.f32 %v4813_v2, %v17402_v47 }
0x10d7   : > { %15563 = vpow2.f32 %v12160_v6  ;;  %v4818_v10 = vadd.f32 %v4808_v33, %v17406_v4  ;;  %v17411_v11 = vpop.f32.mrb[44].mxu1 }
0x10d8   : > { %v12163_v42 = vmul.f32 -1.442695, %v4819_v1  ;;  %v17413_v13 = vpop.f32.mrb[45].mxu1 }
0x10d9   : > { %v12162_v52 = vmul.f32 -1.442695, %v4818_v10 }
0x10da   : > { %15565 = vpow2.f32 %v12163_v42 }
0x10db   : > { %15567 = vpow2.f32 %v12162_v52  ;;  %v17415_v5 = vpop.f32.mrb[46].mxu1 }
0x10dc   : > { %v17417_v43 = vpop.f32.mrb[47].mxu1 }
0x10e0   : > { %v15562_v26 = vpop.eup %15561 }
0x10e1   : > { %v15564_v61 = vpop.eup %15563  ;;  %v4833_v30 = vadd.f32 1.0, %v15562_v26 }
0x10e2   : > { %v4832_v45 = vadd.f32 1.0, %v15564_v61 }
0x10e3   : > { %15569 = vrcp.f32 %v4833_v30 }
0x10e4   : > { %v15566_v37 = vpop.eup %15565  ;;  %15571 = vrcp.f32 %v4832_v45 }
0x10e5   : > { %v15568_v44 = vpop.eup %15567  ;;  %v4835_v46 = vadd.f32 1.0, %v15566_v37 }
0x10e6   : > { %v4834_v16 = vadd.f32 1.0, %v15568_v44 }
0x10e7   : > { %15573 = vrcp.f32 %v4835_v46 }
0x10e8   : > { %15575 = vrcp.f32 %v4834_v16  ;;  %v13773_v16 = vpop.f32.mrb[48].mxu1 }
0x10ed   : > { %v15570_v18 = vpop.eup %15569 }
0x10ee   : > { %v15572_v51 = vpop.eup %15571  ;;  %v4849_v19 = vsub.f32 1.0, %v15570_v18  ;;  %v4845_v31 = vmul.f32 %v15570_v18, %v17139_v9  ;;  %v5230_v18 = vpop.f32.mrb[49].mxu1 }
0x10ef   : > { %v4848_v56 = vsub.f32 1.0, %v15572_v51  ;;  %v4844_v59 = vmul.f32 %v15572_v51, %v17137_v63  ;;  %v13776_v51 = vpop.f32.mrb[50].mxu1 }
0x10f0   : > { %v4853_v14 = vmul.f32 %v17278_v27, %v4849_v19  ;;  %v5240_v19 = vpop.f32.mrb[51].mxu1 }
0x10f1   : > { %v15574_v22 = vpop.eup %15573  ;;  %v4852_v35 = vmul.f32 %v17280_v39, %v4848_v56 }
0x10f2   : > { %v15576_v2 = vpop.eup %15575  ;;  %v17423_v3 = vadd.f32 %v4853_v14, %v4845_v31  ;;  %v4851_v6 = vsub.f32 1.0, %v15574_v22  ;;  %v4847_v42 = vmul.f32 %v15574_v22, %v17153_v15 }
0x10f3   : > { %v17425_v33 = vadd.f32 %v4852_v35, %v4844_v59  ;;  %v4850_v1 = vsub.f32 1.0, %v15576_v2  ;;  %v4846_v26 = vmul.f32 %v15576_v2, %v17151_v0 }
0x10f4   : > { %19664 = vst [vmem:[#allocation63_spill] sm:$0xff] %v17423_v3  ;;  %v17428_v10 = vmul.f32 %v8100_v57, %v17423_v3  ;;  %v4855_v27 = vmul.f32 %v17284_v55, %v4851_v6 }
0x10f5   : > { %19665 = vst [vmem:[#allocation64_spill] sm:$0xff] %v17425_v33  ;;  %v17433_v52 = vmul.f32 %v8100_v57, %v17425_v33  ;;  %v4854_v39 = vmul.f32 %v17286_v28, %v4850_v1 }
0x10f6   : > { %19666 = vst [vmem:[#allocation65_spill] sm:$0xff] %v17428_v10  ;;  %v8108_v61 = vsel %vm1729_vm0, %v17428_v10, -inf  ;;  %v17439_v30 = vadd.f32 %v4855_v27, %v4847_v42 }
0x10f7   : > { %8109 = vmax.xlane.f32.xlu0 %v8108_v61  ;;  %v8105_v45 = vsel %vm1729_vm0, %v17433_v52, -inf  ;;  %v17443_v37 = vadd.f32 %v4854_v39, %v4846_v26 }
0x10f8   : > { %19667 = vst [vmem:[#allocation66_spill] sm:$0xff] %v17439_v30  ;;  %8106 = vmax.xlane.f32.xlu1 %v8105_v45  ;;  %v17446_v55 = vmul.f32 %v8100_v57, %v17439_v30 }
0x10f9   : > { %19668 = vst [vmem:[#allocation67_spill] sm:$0xff] %v17443_v37  ;;  %v17449_v44 = vmul.f32 %v8100_v57, %v17443_v37 }
0x10fa   : > { %19669 = vst [vmem:[#allocation68_spill] sm:$0xff] %v17446_v55  ;;  %v8114_v28 = vsel %vm1729_vm0, %v17446_v55, -inf }
0x10fb   : > { %8115 = vmax.xlane.f32.xlu0 %v8114_v28  ;;  %v8111_v46 = vsel %vm1729_vm0, %v17449_v44, -inf }
0x10fc   : > { %8112 = vmax.xlane.f32.xlu1 %v8111_v46 }
0x119d   : > { %v13717_v56 = vpop.f32.mrb[44].mxu0 }
0x119e   : > { %v4671_v31 = vadd.f32 %v13717_v56, %v17260_v48  ;;  %v4665_v14 = vpop.f32.mrb[45].mxu0 }
0x119f   : > { %v4666_v22 = vadd.f32 %v17260_v48, %v4665_v14 }
0x11a0   : > { %v12152_v57 = vmul.f32 -1.442695, %v4671_v31 }
0x11a1   : > { %v12151_v59 = vmul.f32 -1.442695, %v4666_v22  ;;  %v13720_v35 = vpop.f32.mrb[46].mxu0 }
0x11a2   : > { %15577 = vpow2.f32 %v12152_v57  ;;  %v4681_v2 = vadd.f32 %v13720_v35, %v17260_v48  ;;  %v4675_v6 = vpop.f32.mrb[47].mxu0 }
0x11a3   : > { %15579 = vpow2.f32 %v12151_v59  ;;  %v4676_v1 = vadd.f32 %v17260_v48, %v4675_v6 }
0x11a4   : > { %v12154_v42 = vmul.f32 -1.442695, %v4681_v2 }
0x11a5   : > { %v12153_v27 = vmul.f32 -1.442695, %v4676_v1 }
0x11a6   : > { %15581 = vpow2.f32 %v12154_v42 }
0x11a7   : > { %15583 = vpow2.f32 %v12153_v27 }
0x11ac   : > { %v15578_v26 = vpop.eup %15577 }
0x11ad   : > { %v15580_v39 = vpop.eup %15579  ;;  %v4697_v61 = vadd.f32 1.0, %v15578_v26 }
0x11ae   : > { %v4696_v45 = vadd.f32 1.0, %v15580_v39 }
0x11b0   : > { %v15582_v28 = vpop.eup %15581  ;;  %15585 = vrcp.f32 %v4696_v45 }
0x11b1   : > { %v15584_v46 = vpop.eup %15583  ;;  %15587 = vrcp.f32 %v4697_v61  ;;  %v4699_v56 = vadd.f32 1.0, %v15582_v28 }
0x11b2   : > { %v4698_v31 = vadd.f32 1.0, %v15584_v46 }
0x11b4   : > { %15589 = vrcp.f32 %v4698_v31 }
0x11b5   : > { %15591 = vrcp.f32 %v4699_v56 }
0x11ba   : > { %v17459_v14 = vpop.eup %15585 }
0x11bb   : > { %19670 = vst [vmem:[#allocation69_spill] sm:$0xff] %v17459_v14  ;;  %v17461_v22 = vpop.eup %15587  ;;  %13757 = vmatprep.mubr.msk.f32.mxu0 %vm1729_vm0, %v17459_v14 }
0x11bc   : > { %19671 = vst [vmem:[#allocation70_spill] sm:$0xff] %v17461_v22  ;;  %13758 = vmatmul.mubr.msk.f32.vlgmr.msra.gmra.mrb[48].mxu0 %vm1729_vm0, %v17461_v22 }
0x11bd   : > { %14792 = vmatpush3.bf16.msra.mxu0 %v17182_v29 }
0x11be   : > { %v17468_v57 = vpop.eup %15589  ;;  %14794 = vmatprep.subr.bf16.mxu0 %v17188_v34 }
0x11bf   : > { %19672 = vst [vmem:[#allocation71_spill] sm:$0xff] %v17468_v57  ;;  %v17471_v59 = vpop.eup %15591  ;;  %13760 = vmatprep.mubr.msk.f32.mxu0 %vm1729_vm0, %v17468_v57 }
0x11c0   : > { %19673 = vst [vmem:[#allocation72_spill] sm:$0xff] %v17471_v59  ;;  %13761 = vmatmul.mubr.msk.f32.gmra.mrb[50].mxu0 %vm1729_vm0, %v17471_v59 }
0x11c1   : > { %14796 = vmatpush3.bf16.msra.mxu0 %v17188_v34  ;;  %13785 = vmatprep.mubr.msk.f32.mxu0 %vm1729_vm0, %v5230_v18  ;;  %v12184_v18 = vld [vmem:[%s19652_s1 + $0x20] sm:$0xff] }
0x11c2   : > { %14806 = vmatprep.subr.bf16.mxu0 %v17209_v49  ;;  %13799 = vmatprep.mubr.msk.f32.mxu1 %vm1729_vm0, %v12184_v18 }
0x11c4   : > { %13786 = vmatmul.mubr.msk.f32.vlgmr.msra.gmra.mrb[52].mxu0 %vm1729_vm0, %v13773_v16 }
0x11c5   : > { %13788 = vmatprep.mubr.msk.f32.mxu0 %vm1729_vm0, %v5240_v19  ;;  %14808 = vmatpush3.bf16.msra.mxu0 %v17209_v49 }
0x11c6   : > { %14810 = vmatprep.subr.bf16.mxu0 %v17212_v23 }
0x11c8   : > { %13789 = vmatmul.mubr.msk.f32.gmra.mrb[54].mxu0 %vm1729_vm0, %v13776_v51 }
0x11c9   : > { %14812 = vmatpush3.bf16.msra.mxu0 %v17212_v23 }
0x11ca   : > { %14814 = vmatprep.subr.bf16.mxu0 %v17219_v25 }
0x11cd   : > { %14816 = vmatpush3.bf16.msra.mxu0 %v17219_v25 }
0x11ce   : > { %14818 = vmatprep.subr.bf16.mxu0 %v17225_v24 }
0x11d1   : > { %14820 = vmatpush3.bf16.msra.mxu0 %v17225_v24 }
0x128f   : > { %v17492_v16 = vpop.f32.mrb[48].mxu0 }
0x1290   : > { %19674 = vst [vmem:[#allocation73_spill] sm:$0xff] %v17492_v16  ;;  %v17494_v19 = vpop.f32.mrb[49].mxu0 }
0x1291   : > { %19675 = vst [vmem:[#allocation74_spill] sm:$0xff] %v17494_v19 }
0x1293   : > { %v17496_v35 = vpop.f32.mrb[50].mxu0 }
0x1294   : > { %19676 = vst [vmem:[#allocation75_spill] sm:$0xff] %v17496_v35  ;;  %v17498_v51 = vpop.f32.mrb[51].mxu0 }
0x1295   : > { %19677 = vst [vmem:[#allocation76_spill] sm:$0xff] %v17498_v51 }
0x1297   : > { %v13787_v2 = vpop.f32.mrb[52].mxu0 }
0x1298   : > { %v5333_v6 = vadd.f32 %v13787_v2, %v17231_v54  ;;  %v5327_v1 = vpop.f32.mrb[53].mxu0 }
0x1299   : > { %v5328_v42 = vadd.f32 %v17231_v54, %v5327_v1  ;;  %v17508_v1 = vld [vmem:[%s19652_s1 + $0x30] sm:$0xff] }
0x129a   : > { %v5347_v27 = vmax.f32 %v5333_v6, 0.0  ;;  %v17515_v6 = vld [vmem:[%s19652_s1 + $0x38] sm:$0xff] }
0x129b   : > { %v5346_v26 = vmax.f32 %v5328_v42, 0.0  ;;  %v13790_v39 = vpop.f32.mrb[54].mxu0 }
0x129c   : > { %v5343_v61 = vadd.f32 %v13790_v39, %v17231_v54  ;;  %v5337_v45 = vpop.f32.mrb[55].mxu0 }
0x129d   : > { %v14797_v28 = vpack.c.bf16 %v5347_v27, %v5346_v26  ;;  %v5338_v46 = vadd.f32 %v17231_v54, %v5337_v45 }
0x129e   : > { %v5349_v56 = vmax.f32 %v5343_v61, 0.0 }
0x129f   : > { %v5348_v31 = vmax.f32 %v5338_v46, 0.0  ;;  %14798 = vmatprep.subr.bf16.mxu1 %v14797_v28 }
0x12a0   : > { %14800 = vmatpush3.bf16.msra.mxu1 %v14797_v28 }
0x12a1   : > { %v14801_v2 = vpack.c.bf16 %v5349_v56, %v5348_v31 }
0x12a3   : > { %14802 = vmatprep.subr.bf16.mxu1 %v14801_v2 }
0x12a4   : > { %14804 = vmatpush3.bf16.msra.mxu1 %v14801_v2 }
0x12a7   : > { %13800 = vmatmul.mubr.msk.f32.vlgmr.msra.gmra.mrb[52].mxu1 %vm1729_vm0, %v17505_v50 }
0x12a8   : > { %13802 = vmatprep.mubr.msk.f32.mxu1 %vm1729_vm0, %v17508_v1 }
0x12ab   : > { %13803 = vmatmul.mubr.msk.f32.gmra.mrb[54].mxu1 %vm1729_vm0, %v17515_v6 }
0x12ac   : > { %13835 = vmatprep.mubr.msk.f32.mxu1 %vm1729_vm0, %v17360_v7 }
0x137a   : > { %v13801_v42 = vpop.f32.mrb[52].mxu1 }
0x137b   : > { %v5428_v27 = vpop.f32.mrb[53].mxu1 }
0x137c   : > { %13821 = vmatprep.mubr.msk.f32.mxu0 %vm3582_vm3, %v5428_v27 }
0x137d   : > { %13822 = vmatmul.mubr.msk.f32.vlgmr.msra.gmra.mrb[56].mxu0 %vm3582_vm3, %v13801_v42 }
0x137e   : > { %v13804_v26 = vpop.f32.mrb[54].mxu1 }
0x137f   : > { %v5438_v39 = vpop.f32.mrb[55].mxu1 }
0x1380   : > { %13824 = vmatprep.mubr.msk.f32.mxu0 %vm3582_vm3, %v5438_v39 }
0x1381   : > { %13825 = vmatmul.mubr.msk.f32.gmra.mrb[58].mxu0 %vm3582_vm3, %v13804_v26 }
0x1382   : > { %13863 = vmatprep.mubr.msk.f32.mxu0 %vm1729_vm0, %v12184_v18 }
0x1450   : > { %v13823_v61 = vpop.f32.mrb[56].mxu0 }
0x1451   : > { %v17527_v45 = vadd.f32 %v13823_v61, %v17260_v48  ;;  %v5525_v28 = vpop.f32.mrb[57].mxu0 }
0x1452   : > { %v17530_v7 = vadd.f32 %v17260_v48, %v5525_v28 }
0x1453   : > { %19678 = vst [vmem:[#allocation77_spill] sm:$0xff] %v17527_v45  ;;  %v12205_v46 = vmul.f32 -1.442695, %v17527_v45 }
0x1454   : > { %v12204_v56 = vmul.f32 -1.442695, %v17530_v7  ;;  %v13826_v31 = vpop.f32.mrb[58].mxu0 }
0x1455   : > { %15593 = vpow2.f32 %v12205_v46  ;;  %v17535_v2 = vadd.f32 %v13826_v31, %v17260_v48  ;;  %v5535_v42 = vpop.f32.mrb[59].mxu0 }
0x1456   : > { %15595 = vpow2.f32 %v12204_v56  ;;  %v17538_v18 = vadd.f32 %v17260_v48, %v5535_v42 }
0x1457   : > { %19679 = vst [vmem:[#allocation78_spill] sm:$0xff] %v17535_v2  ;;  %v12207_v27 = vmul.f32 -1.442695, %v17535_v2 }
0x1458   : > { %v12206_v26 = vmul.f32 -1.442695, %v17538_v18 }
0x1459   : > { %15597 = vpow2.f32 %v12207_v27 }
0x145a   : > { %15599 = vpow2.f32 %v12206_v26 }
0x145f   : > { %v15594_v39 = vpop.eup %15593 }
0x1460   : > { %v15596_v61 = vpop.eup %15595  ;;  %v5557_v28 = vadd.f32 1.0, %v15594_v39 }
0x1461   : > { %v5556_v22 = vadd.f32 1.0, %v15596_v61 }
0x1462   : > { %15601 = vrcp.f32 %v5557_v28 }
0x1463   : > { %v15598_v46 = vpop.eup %15597  ;;  %15603 = vrcp.f32 %v5556_v22 }
0x1464   : > { %v15600_v31 = vpop.eup %15599  ;;  %v5559_v16 = vadd.f32 1.0, %v15598_v46 }
0x1465   : > { %v5558_v59 = vadd.f32 1.0, %v15600_v31 }
0x1466   : > { %15605 = vrcp.f32 %v5559_v16 }
0x1467   : > { %15607 = vrcp.f32 %v5558_v59 }
0x146c   : > { %v17542_v56 = vpop.eup %15601 }
0x146d   : > { %v17544_v42 = vpop.eup %15603 }
0x146e   : > { %v14821_v27 = vpack.c.bf16 %v17542_v56, %v17544_v42 }
0x1470   : > { %v17548_v26 = vpop.eup %15605  ;;  %14822 = vmatprep.subr.bf16.mxu1 %v14821_v27 }
0x1471   : > { %v17550_v39 = vpop.eup %15607  ;;  %14824 = vmatpush3.bf16.msra.mxu1 %v14821_v27 }
0x1472   : > { %v14825_v22 = vpack.c.bf16 %v17548_v26, %v17550_v39 }
0x1474   : > { %14826 = vmatprep.subr.bf16.mxu1 %v14825_v22 }
0x1475   : > { %14828 = vmatpush3.bf16.msra.mxu1 %v14825_v22 }
0x1476   : > { %14830 = vmatprep.subr.bf16.mxu1 %v17182_v29 }
0x1478   : > { %13836 = vmatmul.mubr.msk.f32.vlgmr.msra.gmra.mrb[56].mxu1 %vm1729_vm0, %v17365_v8 }
0x1479   : > { %13838 = vmatprep.mubr.msk.f32.mxu1 %vm1729_vm0, %v17370_v60  ;;  %14832 = vmatpush3.bf16.msra.mxu1 %v17182_v29 }
0x147a   : > { %14834 = vmatprep.subr.bf16.mxu1 %v17188_v34 }
0x147c   : > { %13839 = vmatmul.mubr.msk.f32.gmra.mrb[58].mxu1 %vm1729_vm0, %v17373_v41 }
0x147d   : > { %14836 = vmatpush3.bf16.msra.mxu1 %v17188_v34 }
0x147e   : > { %14846 = vmatprep.subr.bf16.mxu1 %v17209_v49 }
0x154b   : > { %v13837_v59 = vpop.f32.mrb[56].mxu1 }
0x154c   : > { %v5634_v16 = vpop.f32.mrb[57].mxu1 }
0x154d   : > { %13849 = vmatprep.mubr.msk.f32.mxu1 %vm1729_vm0, %v5634_v16 }
0x154e   : > { %13850 = vmatmul.mubr.msk.f32.vlgmr.msra.gmra.mrb[60].mxu1 %vm1729_vm0, %v13837_v59 }
0x154f   : > { %v13840_v8 = vpop.f32.mrb[58].mxu1  ;;  %14848 = vmatpush3.bf16.msra.mxu1 %v17209_v49 }
0x1550   : > { %v5644_v60 = vpop.f32.mrb[59].mxu1  ;;  %14850 = vmatprep.subr.bf16.mxu1 %v17212_v23 }
0x1551   : > { %13852 = vmatprep.mubr.msk.f32.mxu1 %vm1729_vm0, %v5644_v60 }
0x1552   : > { %13853 = vmatmul.mubr.msk.f32.gmra.mrb[62].mxu1 %vm1729_vm0, %v13840_v8 }
0x1553   : > { %14852 = vmatpush3.bf16.msra.mxu1 %v17212_v23 }
0x1554   : > { %14854 = vmatprep.subr.bf16.mxu1 %v17219_v25 }
0x1557   : > { %14856 = vmatpush3.bf16.msra.mxu1 %v17219_v25 }
0x1558   : > { %14858 = vmatprep.subr.bf16.mxu1 %v17225_v24 }
0x155b   : > { %14860 = vmatpush3.bf16.msra.mxu1 %v17225_v24 }
0x155c   : > { %14878 = vmatprep.subr.bf16.mxu1 %v17314_v62 }
0x1621   : > { %v13851_v41 = vpop.f32.mrb[60].mxu1 }
0x1622   : > { %v5737_v61 = vadd.f32 %v13851_v41, %v17231_v54  ;;  %v5731_v28 = vpop.f32.mrb[61].mxu1 }
0x1623   : > { %v5732_v46 = vadd.f32 %v17231_v54, %v5731_v28 }
0x1624   : > { %v5751_v31 = vmax.f32 %v5737_v61, 0.0 }
0x1625   : > { %v5750_v27 = vmax.f32 %v5732_v46, 0.0  ;;  %v13854_v22 = vpop.f32.mrb[62].mxu1 }
0x1626   : > { %v5747_v59 = vadd.f32 %v13854_v22, %v17231_v54  ;;  %v5741_v16 = vpop.f32.mrb[63].mxu1 }
0x1627   : > { %v14837_v8 = vpack.c.bf16 %v5751_v31, %v5750_v27  ;;  %v5742_v60 = vadd.f32 %v17231_v54, %v5741_v16  ;;  %v17621_v54 = vld [vmem:[%s19650_s26 + $0x48] sm:$0xff] }
0x1628   : > { %v5753_v57 = vmax.f32 %v5747_v59, 0.0 }
0x1629   : > { %v5752_v14 = vmax.f32 %v5742_v60, 0.0  ;;  %14838 = vmatprep.subr.bf16.mxu0 %v14837_v8 }
0x162a   : > { %14840 = vmatpush3.bf16.msra.mxu0 %v14837_v8 }
0x162b   : > { %v14841_v35 = vpack.c.bf16 %v5753_v57, %v5752_v14  ;;  %v17626_v14 = vld [vmem:[%s19650_s26 + $0x50] sm:$0xff] }
0x162d   : > { %14842 = vmatprep.subr.bf16.mxu0 %v14841_v35 }
0x162e   : > { %14844 = vmatpush3.bf16.msra.mxu0 %v14841_v35 }
0x162f   : > { %14862 = vmatprep.subr.bf16.mxu0 %v17314_v62 }
0x1631   : > { %13864 = vmatmul.mubr.msk.f32.vlgmr.msra.gmra.mrb[60].mxu0 %vm1729_vm0, %v17505_v50  ;;  %v17616_v50 = vld [vmem:[%s19650_s26 + $0x40] sm:$0xff] }
0x1632   : > { %14864 = vmatpush3.bf16.msra.mxu0 %v17314_v62  ;;  %13866 = vmatprep.mubr.msk.f32.mxu0 %vm1729_vm0, %v17508_v1 }
0x1633   : > { %14866 = vmatprep.subr.bf16.mxu0 %v17324_v40 }
0x1635   : > { %13867 = vmatmul.mubr.msk.f32.gmra.mrb[62].mxu0 %vm1729_vm0, %v17515_v6 }
0x1636   : > { %14868 = vmatpush3.bf16.msra.mxu0 %v17324_v40  ;;  %13899 = vmatprep.mubr.msk.f32.mxu0 %vm1729_vm0, %v17544_v42 }
0x1637   : > { %14870 = vmatprep.subr.bf16.mxu0 %v17314_v62 }
0x1639   : > { %13900 = vmatmul.mubr.msk.f32.vlgmr.msra.gmra.mrb[64].mxu0 %vm1729_vm0, %v17542_v56 }
0x163a   : > { %13902 = vmatprep.mubr.msk.f32.mxu0 %vm1729_vm0, %v17550_v39  ;;  %14872 = vmatpush3.bf16.msra.mxu0 %v17314_v62 }
0x163b   : > { %14874 = vmatprep.subr.bf16.mxu0 %v17324_v40 }
0x163d   : > { %13903 = vmatmul.mubr.msk.f32.gmra.mrb[66].mxu0 %vm1729_vm0, %v17548_v26 }
0x163e   : > { %14876 = vmatpush3.bf16.msra.mxu0 %v17324_v40  ;;  %13913 = vmatprep.mubr.msk.f32.mxu0 %vm1729_vm0, %v17530_v7 }
0x163f   : > { %14886 = vmatprep.subr.bf16.mxu0 %v17132_v17 }
0x1641   : > { %13914 = vmatmul.mubr.msk.f32.vlgmr.msra.gmra.mrb[68].mxu0 %vm1729_vm0, %v17527_v45 }
0x1642   : > { %13916 = vmatprep.mubr.msk.f32.mxu0 %vm1729_vm0, %v17538_v18  ;;  %14888 = vmatpush3.bf16.msra.mxu0 %v17132_v17  ;;  %v17629_v17 = vld [vmem:[%s19650_s26 + $0x58] sm:$0xff] }
0x1643   : > { %14890 = vmatprep.subr.bf16.mxu0 %v17143_v12 }
0x1645   : > { %13917 = vmatmul.mubr.msk.f32.gmra.mrb[70].mxu0 %vm1729_vm0, %v17535_v2 }
0x1646   : > { %14892 = vmatpush3.bf16.msra.mxu0 %v17143_v12  ;;  %13941 = vmatprep.mubr.msk.f32.mxu0 %vm1729_vm0, %v17616_v50 }
0x1649   : > { %13942 = vmatmul.mubr.msk.f32.vlgmr.msra.gmra.mrb[72].mxu0 %vm1729_vm0, %v17621_v54 }
0x164a   : > { %13944 = vmatprep.mubr.msk.f32.mxu0 %vm1729_vm0, %v17626_v14 }
0x164d   : > { %13945 = vmatmul.mubr.msk.f32.gmra.mrb[74].mxu0 %vm1729_vm0, %v17629_v17 }
0x1704   : > { %v13865_v12 = vpop.f32.mrb[60].mxu0 }
0x1705   : > { %v5820_v57 = vpop.f32.mrb[61].mxu0 }
0x1706   : > { %13885 = vmatprep.mubr.msk.f32.mxu1 %vm3582_vm3, %v5820_v57 }
0x1707   : > { %13886 = vmatmul.mubr.msk.f32.vlgmr.msra.gmra.mrb[64].mxu1 %vm3582_vm3, %v13865_v12 }
0x1708   : > { %v13868_v35 = vpop.f32.mrb[62].mxu0  ;;  %14880 = vmatpush3.bf16.msra.mxu1 %v17314_v62 }
0x1709   : > { %v5830_v1 = vpop.f32.mrb[63].mxu0  ;;  %14882 = vmatprep.subr.bf16.mxu1 %v17324_v40 }
0x170a   : > { %13888 = vmatprep.mubr.msk.f32.mxu1 %vm3582_vm3, %v5830_v1 }
0x170b   : > { %13889 = vmatmul.mubr.msk.f32.gmra.mrb[66].mxu1 %vm3582_vm3, %v13868_v35 }
0x170c   : > { %v13901_v6 = vpop.f32.mrb[64].mxu0  ;;  %14884 = vmatpush3.bf16.msra.mxu1 %v17324_v40 }
0x170d   : > { %v6044_v41 = vadd.f32 %v13901_v6, %v17386_v53  ;;  %v6038_v61 = vpop.f32.mrb[65].mxu0  ;;  %14894 = vmatprep.subr.bf16.mxu1 %v17182_v29 }
0x170e   : > { %v6039_v28 = vadd.f32 %v17386_v53, %v6038_v61 }
0x170f   : > { %v6058_v46 = vadd.f32 %v6044_v41, %v17391_v38 }
0x1710   : > { %v6057_v31 = vadd.f32 %v6039_v28, %v17396_v58  ;;  %v13904_v27 = vpop.f32.mrb[66].mxu0 }
0x1711   : > { %v12233_v22 = vmul.f32 -1.442695, %v6058_v46  ;;  %v6054_v59 = vadd.f32 %v13904_v27, %v17386_v53  ;;  %v6048_v16 = vpop.f32.mrb[67].mxu0 }
0x1712   : > { %v12232_v8 = vmul.f32 -1.442695, %v6057_v31  ;;  %v6049_v60 = vadd.f32 %v17386_v53, %v6048_v16 }
0x1713   : > { %15609 = vpow2.f32 %v12233_v22  ;;  %v6060_v12 = vadd.f32 %v6054_v59, %v17402_v47 }
0x1714   : > { %15611 = vpow2.f32 %v12232_v8  ;;  %v6059_v57 = vadd.f32 %v6049_v60, %v17406_v4  ;;  %v17651_v35 = vpop.f32.mrb[68].mxu0 }
0x1715   : > { %v12235_v1 = vmul.f32 -1.442695, %v6060_v12  ;;  %v17653_v6 = vpop.f32.mrb[69].mxu0 }
0x1716   : > { %v12234_v41 = vmul.f32 -1.442695, %v6059_v57 }
0x1717   : > { %15613 = vpow2.f32 %v12235_v1 }
0x1718   : > { %15615 = vpow2.f32 %v12234_v41  ;;  %v17655_v61 = vpop.f32.mrb[70].mxu0 }
0x1719   : > { %19680 = vst [vmem:[#allocation79_spill] sm:$0xff] %v17655_v61  ;;  %v17657_v28 = vpop.f32.mrb[71].mxu0 }
0x171d   : > { %v15610_v46 = vpop.eup %15609 }
0x171e   : > { %v15612_v53 = vpop.eup %15611  ;;  %v6074_v31 = vadd.f32 1.0, %v15610_v46  ;;  %v8166_v46 = vstv %s12356_s18  ;;  %s19694_s18 = sld [smem:[#allocation34_spill]] }
0x171f   : > { %v6073_v27 = vadd.f32 1.0, %v15612_v53 }
0x1720   : > { %15617 = vrcp.f32 %v6074_v31 }
0x1721   : > { %v15614_v22 = vpop.eup %15613  ;;  %15619 = vrcp.f32 %v6073_v27 }
0x1722   : > { %v15616_v59 = vpop.eup %15615  ;;  %v6076_v16 = vadd.f32 1.0, %v15614_v22 }
0x1723   : > { %v6075_v8 = vadd.f32 1.0, %v15616_v59 }
0x1724   : > { %15621 = vrcp.f32 %v6076_v16 }
0x1725   : > { %15623 = vrcp.f32 %v6075_v8 }
0x172a   : > { %v15618_v60 = vpop.eup %15617 }
0x172b   : > { %v15620_v12 = vpop.eup %15619  ;;  %v6090_v57 = vsub.f32 1.0, %v15618_v60  ;;  %v6086_v41 = vmul.f32 %v15618_v60, %v17139_v9 }
0x172c   : > { %v6089_v1 = vsub.f32 1.0, %v15620_v12  ;;  %v6085_v53 = vmul.f32 %v15620_v12, %v17137_v63 }
0x172d   : > { %v6094_v2 = vmul.f32 %v17542_v56, %v6090_v57 }
0x172e   : > { %v15622_v45 = vpop.eup %15621  ;;  %v6093_v31 = vmul.f32 %v17544_v42, %v6089_v1 }
0x172f   : > { %v15624_v27 = vpop.eup %15623  ;;  %v17663_v22 = vadd.f32 %v6094_v2, %v6086_v41  ;;  %v6092_v59 = vsub.f32 1.0, %v15622_v45  ;;  %v6088_v60 = vmul.f32 %v15622_v45, %v17153_v15 }
0x1730   : > { %v17665_v16 = vadd.f32 %v6093_v31, %v6085_v53  ;;  %v6091_v8 = vsub.f32 1.0, %v15624_v27  ;;  %v6087_v12 = vmul.f32 %v15624_v27, %v17151_v0  ;;  %v13943_v27 = vpop.f32.mrb[72].mxu0 }
0x1731   : > { %19681 = vst [vmem:[#allocation80_spill] sm:$0xff] %v17663_v22  ;;  %v17668_v32 = vmul.f32 %v8166_v46, %v17663_v22  ;;  %v6096_v56 = vmul.f32 %v17548_v26, %v6092_v59  ;;  %v6471_v59 = vpop.f32.mrb[73].mxu0 }
0x1732   : > { %19682 = vst [vmem:[#allocation81_spill] sm:$0xff] %v17665_v16  ;;  %v17673_v57 = vmul.f32 %v8166_v46, %v17665_v16  ;;  %v6095_v42 = vmul.f32 %v17550_v39, %v6091_v8  ;;  %v13946_v8 = vpop.f32.mrb[74].mxu0 }
0x1733   : > { %19683 = vst [vmem:[#allocation82_spill] sm:$0xff] %v17668_v32  ;;  %v8174_v2 = vsel %vm1729_vm0, %v17668_v32, -inf  ;;  %v17679_v1 = vadd.f32 %v6096_v56, %v6088_v60  ;;  %v6481_v60 = vpop.f32.mrb[75].mxu0 }
0x1734   : > { %8175 = vmax.xlane.f32.xlu0 %v8174_v2  ;;  %v8171_v41 = vsel %vm1729_vm0, %v17673_v57, -inf  ;;  %v17683_v53 = vadd.f32 %v6095_v42, %v6087_v12 }
0x1735   : > { %19684 = vst [vmem:[#allocation83_spill] sm:$0xff] %v17679_v1  ;;  %8172 = vmax.xlane.f32.xlu1 %v8171_v41  ;;  %v17686_v45 = vmul.f32 %v8166_v46, %v17679_v1 }
0x1736   : > { %19685 = vst [vmem:[#allocation84_spill] sm:$0xff] %v17683_v53  ;;  %v17689_v26 = vmul.f32 %v8166_v46, %v17683_v53 }
0x1737   : > { %19686 = vst [vmem:[#allocation85_spill] sm:$0xff] %v17686_v45  ;;  %v8180_v39 = vsel %vm1729_vm0, %v17686_v45, -inf }
0x1738   : > { %8181 = vmax.xlane.f32.xlu0 %v8180_v39  ;;  %v8177_v31 = vsel %vm1729_vm0, %v17689_v26, -inf }
0x1739   : > { %8178 = vmax.xlane.f32.xlu1 %v8177_v31 }
0x17da   : > { %v13887_v56 = vpop.f32.mrb[64].mxu1 }
0x17db   : > { %v5923_v12 = vadd.f32 %v13887_v56, %v17260_v48  ;;  %v5917_v42 = vpop.f32.mrb[65].mxu1 }
0x17dc   : > { %v5918_v2 = vadd.f32 %v17260_v48, %v5917_v42 }
0x17dd   : > { %v12225_v46 = vmul.f32 -1.442695, %v5923_v12 }
0x17de   : > { %v12224_v41 = vmul.f32 -1.442695, %v5918_v2  ;;  %v13890_v51 = vpop.f32.mrb[66].mxu1 }
0x17df   : > { %15625 = vpow2.f32 %v12225_v46  ;;  %v5933_v39 = vadd.f32 %v13890_v51, %v17260_v48  ;;  %v5927_v19 = vpop.f32.mrb[67].mxu1 }
0x17e0   : > { %15627 = vpow2.f32 %v12224_v41  ;;  %v5928_v31 = vadd.f32 %v17260_v48, %v5927_v19 }
0x17e1   : > { %v12227_v20 = vmul.f32 -1.442695, %v5933_v39 }
0x17e2   : > { %v12226_v45 = vmul.f32 -1.442695, %v5928_v31 }
0x17e3   : > { %15629 = vpow2.f32 %v12227_v20 }
0x17e4   : > { %15631 = vpow2.f32 %v12226_v45 }
0x17e9   : > { %v15626_v32 = vpop.eup %15625 }
0x17ea   : > { %v15628_v55 = vpop.eup %15627  ;;  %v5949_v56 = vadd.f32 1.0, %v15626_v32  ;;  %v12256_v32 = vld [vmem:[%s19652_s1 + $0x40] sm:$0xff] }
0x17eb   : > { %v5948_v10 = vadd.f32 1.0, %v15628_v55  ;;  %13969 = vmatprep.mubr.msk.f32.mxu0 %vm1729_vm0, %v12256_v32 }
0x17ed   : > { %v15630_v61 = vpop.eup %15629  ;;  %15633 = vrcp.f32 %v5948_v10 }
0x17ee   : > { %v15632_v12 = vpop.eup %15631  ;;  %15635 = vrcp.f32 %v5949_v56  ;;  %v5951_v42 = vadd.f32 1.0, %v15630_v61 }
0x17ef   : > { %v5950_v2 = vadd.f32 1.0, %v15632_v12 }
0x17f1   : > { %15637 = vrcp.f32 %v5950_v2 }
0x17f2   : > { %15639 = vrcp.f32 %v5951_v42 }
0x17f7   : > { %v17699_v51 = vpop.eup %15633 }
0x17f8   : > { %19687 = vst [vmem:[#allocation86_spill] sm:$0xff] %v17699_v51  ;;  %v17701_v46 = vpop.eup %15635  ;;  %13927 = vmatprep.mubr.msk.f32.mxu1 %vm1729_vm0, %v17699_v51 }
0x17f9   : > { %19688 = vst [vmem:[#allocation87_spill] sm:$0xff] %v17701_v46  ;;  %13928 = vmatmul.mubr.msk.f32.vlgmr.msra.gmra.mrb[68].mxu1 %vm1729_vm0, %v17701_v46 }
0x17fa   : > { %14896 = vmatpush3.bf16.msra.mxu1 %v17182_v29 }
0x17fb   : > { %v17708_v48 = vpop.eup %15637  ;;  %14898 = vmatprep.subr.bf16.mxu1 %v17188_v34 }
0x17fc   : > { %19689 = vst [vmem:[#allocation88_spill] sm:$0xff] %v17708_v48  ;;  %v17711_v20 = vpop.eup %15639  ;;  %13930 = vmatprep.mubr.msk.f32.mxu1 %vm1729_vm0, %v17708_v48 }
0x17fd   : > { %19690 = vst [vmem:[#allocation89_spill] sm:$0xff] %v17711_v20  ;;  %13931 = vmatmul.mubr.msk.f32.gmra.mrb[70].mxu1 %vm1729_vm0, %v17711_v20 }
0x17fe   : > { %14900 = vmatpush3.bf16.msra.mxu1 %v17188_v34  ;;  %13955 = vmatprep.mubr.msk.f32.mxu1 %vm1729_vm0, %v6471_v59 }
0x17ff   : > { %14910 = vmatprep.subr.bf16.mxu1 %v17209_v49 }
0x1801   : > { %13956 = vmatmul.mubr.msk.f32.vlgmr.msra.gmra.mrb[72].mxu1 %vm1729_vm0, %v13943_v27  ;;  %v17741_v27 = vld [vmem:[%s19655_s28] ss:$0 sm:$0xff] }
0x1802   : > { %13958 = vmatprep.mubr.msk.f32.mxu1 %vm1729_vm0, %v6481_v60  ;;  %14912 = vmatpush3.bf16.msra.mxu1 %v17209_v49 }
0x1803   : > { %14914 = vmatprep.subr.bf16.mxu1 %v17212_v23 }
0x1805   : > { %13959 = vmatmul.mubr.msk.f32.gmra.mrb[74].mxu1 %vm1729_vm0, %v13946_v8 }
0x1806   : > { %14916 = vmatpush3.bf16.msra.mxu1 %v17212_v23 }
0x1807   : > { %14918 = vmatprep.subr.bf16.mxu1 %v17219_v25 }
0x180a   : > { %14920 = vmatpush3.bf16.msra.mxu1 %v17219_v25 }
0x180b   : > { %14922 = vmatprep.subr.bf16.mxu1 %v17225_v24 }
0x180e   : > { %14924 = vmatpush3.bf16.msra.mxu1 %v17225_v24 }
0x18cc   : > { %v17732_v10 = vpop.f32.mrb[68].mxu1 }
0x18cd   : > { %19691 = vst [vmem:[#allocation90_spill] sm:$0xff] %v17732_v10  ;;  %v17734_v55 = vpop.f32.mrb[69].mxu1  ;;  %v17748_v10 = vld [vmem:[%s19652_s1 + $0x48] sm:$0xff] }
0x18ce   : > { %19692 = vst [vmem:[#allocation91_spill] sm:$0xff] %v17734_v55 }
0x18d0   : > { %v17736_v19 = vpop.f32.mrb[70].mxu1 }
0x18d1   : > { %19693 = vst [vmem:[#allocation92_spill] sm:$0xff] %v17736_v19  ;;  %v17738_v61 = vpop.f32.mrb[71].mxu1 }
0x18d4   : > { %v13957_v45 = vpop.f32.mrb[72].mxu1 }
0x18d5   : > { %v6574_v59 = vadd.f32 %v17741_v27, %v13957_v45  ;;  %v6568_v8 = vpop.f32.mrb[73].mxu1 }
0x18d6   : > { %v6569_v60 = vadd.f32 %v17741_v27, %v6568_v8  ;;  %v17751_v8 = vld [vmem:[%s19652_s1 + $0x50] sm:$0xff] }
0x18d7   : > { %v6588_v41 = vmax.f32 %v6574_v59, 0.0  ;;  %v17758_v59 = vld [vmem:[%s19652_s1 + $0x58] sm:$0xff]  ;;  %s19695_s1 = smov %s19694_s18 }
0x18d8   : > { %v6587_v39 = vmax.f32 %v6569_v60, 0.0  ;;  %v13960_v31 = vpop.f32.mrb[74].mxu1 }
0x18d9   : > { %v6584_v56 = vadd.f32 %v17741_v27, %v13960_v31  ;;  %v6578_v12 = vpop.f32.mrb[75].mxu1  ;;  %v17770_v31 = vld [vmem:[%s19657_s5] ss:$0 sm:$0xff] }
0x18da   : > { %v14901_v42 = vpack.c.bf16 %v6588_v41, %v6587_v39  ;;  %v6579_v2 = vadd.f32 %v17741_v27, %v6578_v12 }
0x18db   : > { %v6590_v46 = vmax.f32 %v6584_v56, 0.0 }
0x18dc   : > { %v6589_v51 = vmax.f32 %v6579_v2, 0.0  ;;  %14902 = vmatprep.subr.bf16.mxu0 %v14901_v42 }
0x18dd   : > { %14904 = vmatpush3.bf16.msra.mxu0 %v14901_v42 }
0x18de   : > { %v14905_v45 = vpack.c.bf16 %v6590_v46, %v6589_v51 }
0x18e0   : > { %14906 = vmatprep.subr.bf16.mxu0 %v14905_v45 }
0x18e1   : > { %14908 = vmatpush3.bf16.msra.mxu0 %v14905_v45 }
0x18e4   : > { %13970 = vmatmul.mubr.msk.f32.vlgmr.msra.gmra.mrb[76].mxu0 %vm1729_vm0, %v17748_v10 }
0x18e5   : > { %13972 = vmatprep.mubr.msk.f32.mxu0 %vm1729_vm0, %v17751_v8 }
0x18e8   : > { %13973 = vmatmul.mubr.msk.f32.gmra.mrb[78].mxu0 %vm1729_vm0, %v17758_v59 }
0x18e9   : > { %14005 = vmatprep.mubr.msk.f32.mxu0 %vm1729_vm0, %v17616_v50 }
0x19b7   : > { %v13971_v51 = vpop.f32.mrb[76].mxu0 }
0x19b8   : > { %v6669_v46 = vpop.f32.mrb[77].mxu0 }
0x19b9   : > { %13991 = vmatprep.mubr.msk.f32.mxu1 %vm3582_vm3, %v6669_v46 }
0x19ba   : > { %13992 = vmatmul.mubr.msk.f32.vlgmr.msra.gmra.mrb[76].mxu1 %vm3582_vm3, %v13971_v51 }
0x19bb   : > { %v13974_v60 = vpop.f32.mrb[78].mxu0 }
0x19bc   : > { %v6679_v41 = vpop.f32.mrb[79].mxu0 }
0x19bd   : > { %13994 = vmatprep.mubr.msk.f32.mxu1 %vm3582_vm3, %v6679_v41 }
0x19be   : > { %13995 = vmatmul.mubr.msk.f32.gmra.mrb[78].mxu1 %vm3582_vm3, %v13974_v60 }
0x19bf   : > { %14033 = vmatprep.mubr.msk.f32.mxu1 %vm1729_vm0, %v12256_v32 }
0x1a8d   : > { %v13993_v39 = vpop.f32.mrb[76].mxu1 }
0x1a8e   : > { %v17773_v56 = vadd.f32 %v17770_v31, %v13993_v39  ;;  %v6766_v50 = vpop.f32.mrb[77].mxu1 }
0x1a8f   : > { %v17776_v12 = vadd.f32 %v17770_v31, %v6766_v50 }
0x1a90   : > { %v12277_v42 = vmul.f32 -1.442695, %v17773_v56 }
0x1a91   : > { %v12276_v2 = vmul.f32 -1.442695, %v17776_v12  ;;  %v13996_v45 = vpop.f32.mrb[78].mxu1 }
0x1a92   : > { %15641 = vpow2.f32 %v12277_v42  ;;  %v17781_v51 = vadd.f32 %v17770_v31, %v13996_v45  ;;  %v6776_v32 = vpop.f32.mrb[79].mxu1 }
0x1a93   : > { %15643 = vpow2.f32 %v12276_v2  ;;  %v17784_v46 = vadd.f32 %v17770_v31, %v6776_v32 }
0x1a94   : > { %v12279_v60 = vmul.f32 -1.442695, %v17781_v51 }
0x1a95   : > { %v12278_v41 = vmul.f32 -1.442695, %v17784_v46 }
0x1a96   : > { %15645 = vpow2.f32 %v12279_v60 }
0x1a97   : > { %15647 = vpow2.f32 %v12278_v41 }
0x1a9c   : > { %v15642_v39 = vpop.eup %15641 }
0x1a9d   : > { %v15644_v50 = vpop.eup %15643  ;;  %v6798_v55 = vadd.f32 1.0, %v15642_v39 }
0x1a9e   : > { %v6797_v20 = vadd.f32 1.0, %v15644_v50 }
0x1a9f   : > { %15649 = vrcp.f32 %v6798_v55 }
0x1aa0   : > { %v15646_v42 = vpop.eup %15645  ;;  %15651 = vrcp.f32 %v6797_v20 }
0x1aa1   : > { %v15648_v45 = vpop.eup %15647  ;;  %v6800_v48 = vadd.f32 1.0, %v15646_v42 }
0x1aa2   : > { %v6799_v19 = vadd.f32 1.0, %v15648_v45 }
0x1aa3   : > { %15653 = vrcp.f32 %v6800_v48 }
0x1aa4   : > { %15655 = vrcp.f32 %v6799_v19 }
0x1aa9   : > { %v17788_v2 = vpop.eup %15649 }
0x1aaa   : > { %v17790_v32 = vpop.eup %15651 }
0x1aab   : > { %v14925_v60 = vpack.c.bf16 %v17788_v2, %v17790_v32 }
0x1aad   : > { %v17794_v41 = vpop.eup %15653  ;;  %14926 = vmatprep.subr.bf16.mxu0 %v14925_v60 }
0x1aae   : > { %v17796_v39 = vpop.eup %15655  ;;  %14928 = vmatpush3.bf16.msra.mxu0 %v14925_v60 }
0x1aaf   : > { %v14929_v20 = vpack.c.bf16 %v17794_v41, %v17796_v39 }
0x1ab1   : > { %14930 = vmatprep.subr.bf16.mxu0 %v14929_v20 }
0x1ab2   : > { %14932 = vmatpush3.bf16.msra.mxu0 %v14929_v20 }
0x1ab3   : > { %14934 = vmatprep.subr.bf16.mxu0 %v17182_v29 }
0x1ab5   : > { %14006 = vmatmul.mubr.msk.f32.vlgmr.msra.gmra.mrb[80].mxu0 %vm1729_vm0, %v17621_v54 }
0x1ab6   : > { %14008 = vmatprep.mubr.msk.f32.mxu0 %vm1729_vm0, %v17626_v14  ;;  %14936 = vmatpush3.bf16.msra.mxu0 %v17182_v29 }
0x1ab7   : > { %14938 = vmatprep.subr.bf16.mxu0 %v17188_v34 }
0x1ab9   : > { %14009 = vmatmul.mubr.msk.f32.gmra.mrb[82].mxu0 %vm1729_vm0, %v17629_v17 }
0x1aba   : > { %14940 = vmatpush3.bf16.msra.mxu0 %v17188_v34 }
0x1abb   : > { %14950 = vmatprep.subr.bf16.mxu0 %v17209_v49 }
0x1b88   : > { %v14007_v48 = vpop.f32.mrb[80].mxu0 }
0x1b89   : > { %v6875_v55 = vpop.f32.mrb[81].mxu0 }
0x1b8a   : > { %14019 = vmatprep.mubr.msk.f32.mxu0 %vm1729_vm0, %v6875_v55 }
0x1b8b   : > { %14020 = vmatmul.mubr.msk.f32.vlgmr.msra.gmra.mrb[84].mxu0 %vm1729_vm0, %v14007_v48 }
0x1b8c   : > { %v14010_v54 = vpop.f32.mrb[82].mxu0  ;;  %14952 = vmatpush3.bf16.msra.mxu0 %v17209_v49 }
0x1b8d   : > { %v6885_v14 = vpop.f32.mrb[83].mxu0  ;;  %14954 = vmatprep.subr.bf16.mxu0 %v17212_v23 }
0x1b8e   : > { %14022 = vmatprep.mubr.msk.f32.mxu0 %vm1729_vm0, %v6885_v14  ;;  %v17870_v14 = vld [vmem:[%s19663_s2] ss:$0 sm:$0xff] }
0x1b8f   : > { %14023 = vmatmul.mubr.msk.f32.gmra.mrb[86].mxu0 %vm1729_vm0, %v14010_v54 }
0x1b90   : > { %14956 = vmatpush3.bf16.msra.mxu0 %v17212_v23 }
0x1b91   : > { %14958 = vmatprep.subr.bf16.mxu0 %v17219_v25 }
0x1b94   : > { %14960 = vmatpush3.bf16.msra.mxu0 %v17219_v25 }
0x1b95   : > { %14962 = vmatprep.subr.bf16.mxu0 %v17225_v24 }
0x1b98   : > { %14964 = vmatpush3.bf16.msra.mxu0 %v17225_v24 }
0x1b99   : > { %14982 = vmatprep.subr.bf16.mxu0 %v17314_v62 }
0x1c5e   : > { %v14021_v29 = vpop.f32.mrb[84].mxu0 }
0x1c5f   : > { %v6978_v34 = vadd.f32 %v17741_v27, %v14021_v29  ;;  %v6972_v49 = vpop.f32.mrb[85].mxu0 }
0x1c60   : > { %v6973_v17 = vadd.f32 %v17741_v27, %v6972_v49 }
0x1c61   : > { %v6992_v19 = vmax.f32 %v6978_v34, 0.0 }
0x1c62   : > { %v6991_v50 = vmax.f32 %v6973_v17, 0.0  ;;  %v14024_v42 = vpop.f32.mrb[86].mxu0 }
0x1c63   : > { %v6988_v23 = vadd.f32 %v17741_v27, %v14024_v42  ;;  %v6982_v45 = vpop.f32.mrb[87].mxu0 }
0x1c64   : > { %v14941_v60 = vpack.c.bf16 %v6992_v19, %v6991_v50  ;;  %v6983_v25 = vadd.f32 %v17741_v27, %v6982_v45 }
0x1c65   : > { %v6994_v20 = vmax.f32 %v6988_v23, 0.0 }
0x1c66   : > { %v6993_v48 = vmax.f32 %v6983_v25, 0.0  ;;  %14942 = vmatprep.subr.bf16.mxu1 %v14941_v60 }
0x1c67   : > { %14944 = vmatpush3.bf16.msra.mxu1 %v14941_v60 }
0x1c68   : > { %v14945_v24 = vpack.c.bf16 %v6994_v20, %v6993_v48 }
0x1c6a   : > { %14946 = vmatprep.subr.bf16.mxu1 %v14945_v24 }
0x1c6b   : > { %14948 = vmatpush3.bf16.msra.mxu1 %v14945_v24 }
0x1c6c   : > { %14966 = vmatprep.subr.bf16.mxu1 %v17314_v62 }
0x1c6e   : > { %14034 = vmatmul.mubr.msk.f32.vlgmr.msra.gmra.mrb[80].mxu1 %vm1729_vm0, %v17748_v10  ;;  %v17858_v10 = vld [vmem:[%s19694_s18] sm:$0xff]  ;;  %s12357_s18 = sld [smem:[#allocation2 + $0x100]] }
0x1c6f   : > { %14968 = vmatpush3.bf16.msra.mxu1 %v17314_v62  ;;  %14036 = vmatprep.mubr.msk.f32.mxu1 %vm1729_vm0, %v17751_v8 }
0x1c70   : > { %14970 = vmatprep.subr.bf16.mxu1 %v17324_v40 }
0x1c72   : > { %14037 = vmatmul.mubr.msk.f32.gmra.mrb[82].mxu1 %vm1729_vm0, %v17758_v59 }
0x1c73   : > { %14972 = vmatpush3.bf16.msra.mxu1 %v17324_v40  ;;  %14069 = vmatprep.mubr.msk.f32.mxu1 %vm1729_vm0, %v17790_v32 }
0x1c74   : > { %14974 = vmatprep.subr.bf16.mxu1 %v17314_v62 }
0x1c76   : > { %14070 = vmatmul.mubr.msk.f32.vlgmr.msra.gmra.mrb[84].mxu1 %vm1729_vm0, %v17788_v2 }
0x1c77   : > { %14072 = vmatprep.mubr.msk.f32.mxu1 %vm1729_vm0, %v17796_v39  ;;  %14976 = vmatpush3.bf16.msra.mxu1 %v17314_v62 }
0x1c78   : > { %14978 = vmatprep.subr.bf16.mxu1 %v17324_v40 }
0x1c7a   : > { %14073 = vmatmul.mubr.msk.f32.gmra.mrb[86].mxu1 %vm1729_vm0, %v17794_v41 }
0x1c7b   : > { %14980 = vmatpush3.bf16.msra.mxu1 %v17324_v40  ;;  %14083 = vmatprep.mubr.msk.f32.mxu1 %vm1729_vm0, %v17776_v12 }
0x1c7e   : > { %14084 = vmatmul.mubr.msk.f32.vlgmr.msra.gmra.mrb[88].mxu1 %vm1729_vm0, %v17773_v56 }
0x1c7f   : > { %14086 = vmatprep.mubr.msk.f32.mxu1 %vm1729_vm0, %v17784_v46 }
0x1c82   : > { %14087 = vmatmul.mubr.msk.f32.gmra.mrb[90].mxu1 %vm1729_vm0, %v17781_v51 }
0x1c83   : > { %14111 = vmatprep.mubr.msk.f32.mxu1 %vm1729_vm0, %v17858_v10 }
0x1d41   : > { %v14035_v27 = vpop.f32.mrb[80].mxu1 }
0x1d42   : > { %v7061_v8 = vpop.f32.mrb[81].mxu1 }
0x1d43   : > { %14055 = vmatprep.mubr.msk.f32.mxu0 %vm3582_vm3, %v7061_v8 }
0x1d44   : > { %14056 = vmatmul.mubr.msk.f32.vlgmr.msra.gmra.mrb[88].mxu0 %vm3582_vm3, %v14035_v27 }
0x1d45   : > { %v14038_v59 = vpop.f32.mrb[82].mxu1  ;;  %14984 = vmatpush3.bf16.msra.mxu0 %v17314_v62 }
0x1d46   : > { %v7071_v55 = vpop.f32.mrb[83].mxu1  ;;  %14986 = vmatprep.subr.bf16.mxu0 %v17324_v40 }
0x1d47   : > { %14058 = vmatprep.mubr.msk.f32.mxu0 %vm3582_vm3, %v7071_v55 }
0x1d48   : > { %14059 = vmatmul.mubr.msk.f32.gmra.mrb[90].mxu0 %vm3582_vm3, %v14038_v59 }
0x1d49   : > { %v14071_v54 = vpop.f32.mrb[84].mxu1  ;;  %14988 = vmatpush3.bf16.msra.mxu0 %v17324_v40 }
0x1d4a   : > { %v7285_v29 = vadd.f32 %v17870_v14, %v14071_v54  ;;  %v7279_v34 = vpop.f32.mrb[85].mxu1  ;;  %v8107_v54 = vpop.xlane.xlu1 %8106 }
0x1d4b   : > { %v7280_v49 = vadd.f32 %v17870_v14, %v7279_v34 }
0x1d4c   : > { %v7299_v17 = vadd.f32 %v7285_v29, %v17391_v38 }
0x1d4d   : > { %v7298_v62 = vadd.f32 %v7280_v49, %v17396_v58  ;;  %v14074_v19 = vpop.f32.mrb[86].mxu1 }
0x1d4e   : > { %v12305_v50 = vmul.f32 -1.442695, %v7299_v17  ;;  %v7295_v42 = vadd.f32 %v17870_v14, %v14074_v19  ;;  %v7289_v23 = vpop.f32.mrb[87].mxu1 }
0x1d4f   : > { %v12304_v45 = vmul.f32 -1.442695, %v7298_v62  ;;  %v7290_v60 = vadd.f32 %v17870_v14, %v7289_v23  ;;  %v8117_v23 = vsub.f32 %v17433_v52, %v8107_v54  ;;  %v8232_v54 = vstv %s12357_s18  ;;  %s12390_s18 = sld [smem:[#allocation2 + $0x1]] }
0x1d50   : > { %15657 = vpow2.f32 %v12305_v50  ;;  %v7301_v40 = vadd.f32 %v7295_v42, %v17402_v47  ;;  %v8113_v50 = vpop.xlane.xlu1 %8112 }
0x1d51   : > { %15659 = vpow2.f32 %v12304_v45  ;;  %v7300_v25 = vadd.f32 %v7290_v60, %v17406_v4  ;;  %v17880_v20 = vpop.f32.mrb[88].mxu1  ;;  %v8119_v45 = vsub.f32 %v17449_v44, %v8113_v50 }
0x1d52   : > { %v12307_v48 = vmul.f32 -1.442695, %v7301_v40  ;;  %v17882_v24 = vpop.f32.mrb[89].mxu1  ;;  %v8121_v40 = vmul.f32 1.442695, %v8117_v23  ;;  %v7659_v23 = vadd.f32 %v17663_v22, %v17423_v3 }
0x1d53   : > { %v12306_v27 = vmul.f32 -1.442695, %v7300_v25 }
0x1d54   : > { %15661 = vpow2.f32 %v12307_v48  ;;  %v8173_v60 = vpop.xlane.xlu1 %8172  ;;  %v8125_v48 = vmul.f32 1.442695, %v8119_v45 }
0x1d55   : > { %15663 = vpow2.f32 %v12306_v27  ;;  %v17884_v8 = vpop.f32.mrb[90].mxu1 }
0x1d56   : > { %v17886_v59 = vpop.f32.mrb[91].mxu1 }
0x1d5a   : > { %v15658_v55 = vpop.eup %15657 }
0x1d5b   : > { %v15660_v29 = vpop.eup %15659  ;;  %v7315_v34 = vadd.f32 1.0, %v15658_v55 }
0x1d5c   : > { %v7314_v49 = vadd.f32 1.0, %v15660_v29  ;;  %v8183_v29 = vsub.f32 %v17673_v57, %v8173_v60  ;;  %v7658_v57 = vadd.f32 %v17665_v16, %v17425_v33 }
0x1d5d   : > { %15665 = vrcp.f32 %v7315_v34 }
0x1d5e   : > { %v15662_v17 = vpop.eup %15661  ;;  %15667 = vrcp.f32 %v7314_v49  ;;  %v8179_v49 = vpop.xlane.xlu1 %8178  ;;  %v8187_v60 = vmul.f32 1.442695, %v8183_v29 }
0x1d5f   : > { %v15664_v62 = vpop.eup %15663  ;;  %v7317_v19 = vadd.f32 1.0, %v15662_v17 }
0x1d60   : > { %v7316_v42 = vadd.f32 1.0, %v15664_v62 }
0x1d61   : > { %15669 = vrcp.f32 %v7317_v19 }
0x1d62   : > { %15671 = vrcp.f32 %v7316_v42 }
0x1d63   : > { %15673 = vpow2.f32 %v8121_v40 }
0x1d64   : > { %15675 = vpow2.f32 %v8125_v48 }
0x1d65   : > { %15677 = vpow2.f32 %v8187_v60 }
0x1d67   : > { %v15666_v25 = vpop.eup %15665 }
0x1d68   : > { %v15668_v27 = vpop.eup %15667  ;;  %v7331_v55 = vsub.f32 1.0, %v15666_v25  ;;  %v7327_v17 = vmul.f32 %v15666_v25, %v17139_v9 }
0x1d69   : > { %v7330_v34 = vsub.f32 1.0, %v15668_v27  ;;  %v7326_v44 = vmul.f32 %v15668_v27, %v17137_v63 }
0x1d6a   : > { %v7335_v62 = vmul.f32 %v17788_v2, %v7331_v55  ;;  %v8185_v2 = vsub.f32 %v17689_v26, %v8179_v49 }
0x1d6b   : > { %v15670_v52 = vpop.eup %15669  ;;  %v7334_v19 = vmul.f32 %v17790_v32, %v7330_v34 }
0x1d6c   : > { %v15672_v50 = vpop.eup %15671  ;;  %v17895_v42 = vadd.f32 %v7335_v62, %v7327_v17  ;;  %v7333_v45 = vsub.f32 1.0, %v15670_v52  ;;  %v7329_v27 = vmul.f32 %v15670_v52, %v17153_v15  ;;  %v7661_v52 = vadd.f32 %v17679_v1, %v17439_v30 }
0x1d6d   : > { %v17902_v40 = vadd.f32 %v7334_v19, %v7326_v44  ;;  %v7332_v25 = vsub.f32 1.0, %v15672_v50  ;;  %v7328_v26 = vmul.f32 %v15672_v50, %v17151_v0 }
0x1d6e   : > { %19696 = vst [vmem:[#allocation93_spill] sm:$0xff] %v17895_v42  ;;  %v17905_v48 = vmul.f32 %v8232_v54, %v17895_v42  ;;  %v17908_v32 = vadd.f32 %v7659_v23, %v17895_v42  ;;  %v7337_v55 = vmul.f32 %v17794_v41, %v7333_v45  ;;  %v8191_v23 = vmul.f32 1.442695, %v8185_v2 }
0x1d6f   : > { %19697 = vst [vmem:[#allocation94_spill] sm:$0xff] %v17902_v40  ;;  %v17913_v34 = vmul.f32 %v8232_v54, %v17902_v40  ;;  %v17916_v29 = vadd.f32 %v7658_v57, %v17902_v40  ;;  %v7336_v49 = vmul.f32 %v17796_v39, %v7332_v25  ;;  %v7660_v39 = vadd.f32 %v17683_v53, %v17443_v37 }
0x1d70   : > { %19698 = vst [vmem:[#allocation95_spill] sm:$0xff] %v17908_v32  ;;  %v8240_v17 = vsel %vm1729_vm0, %v17905_v48, -inf  ;;  %v17922_v62 = vadd.f32 %v7337_v55, %v7329_v27  ;;  %v17946_v27 = vpop.eup %15673  ;;  %15679 = vpow2.f32 %v8191_v23 }
0x1d71   : > { %8241 = vmax.xlane.f32.xlu0 %v8240_v17  ;;  %v8237_v41 = vsel %vm1729_vm0, %v17913_v34, -inf  ;;  %v14989_v44 = vpack.c.bf16 %v17908_v32, %v17916_v29  ;;  %v17930_v19 = vadd.f32 %v7336_v49, %v7328_v26  ;;  %v17950_v26 = vpop.eup %15675  ;;  %v8129_v2 = vsel %vm1729_vm0, %v17946_v27, 0.0  ;;  %v7625_v49 = vld [vmem:[%s19695_s1 + $0x8] sm:$0xff]  ;;  %v7626_v17 = vld [vmem:[%s19695_s1 + $0x10] sm:$0xff] }
0x1d72   : > { %19699 = vst [vmem:[#allocation96_spill] sm:$0xff] %v17922_v62  ;;  %8238 = vmax.xlane.f32.xlu1 %v8237_v41  ;;  %v17935_v50 = vmul.f32 %v8232_v54, %v17922_v62  ;;  %v17938_v57 = vadd.f32 %v7661_v52, %v17922_v62  ;;  %v8135_v52 = vsel %vm1729_vm0, %v17950_v26, 0.0  ;;  %v7627_v41 = vld [vmem:[%s19695_s1 + $0x18] sm:$0xff] }
0x1d73   : > { %19700 = vst [vmem:[#allocation97_spill] sm:$0xff] %v17930_v19  ;;  %14990 = vmatprep.subr.bf16.mxu1 %v14989_v44  ;;  %v17941_v45 = vmul.f32 %v8232_v54, %v17930_v19  ;;  %v17944_v25 = vadd.f32 %v7660_v39, %v17930_v19  ;;  %v7628_v39 = vld [vmem:[%s19695_s1 + $0x20] sm:$0xff] }
0x1d74   : > { %19701 = vst [vmem:[#allocation98_spill] sm:$0xff] %v17938_v57  ;;  %14992 = vmatpush3.bf16.msra.mxu1 %v14989_v44  ;;  %v8246_v55 = vsel %vm1729_vm0, %v17935_v50, -inf  ;;  %v17965_v44 = vpop.eup %15677 }
0x1d75   : > { %19702 = vst [vmem:[#allocation99_spill] sm:$0xff] %v17944_v25  ;;  %8247 = vmax.xlane.f32.xlu0 %v8246_v55  ;;  %v8243_v60 = vsel %vm1729_vm0, %v17941_v45, -inf  ;;  %v14993_v54 = vpack.c.bf16 %v17938_v57, %v17944_v25  ;;  %v8195_v23 = vsel %vm1729_vm0, %v17965_v44, 0.0  ;;  %v7629_v55 = vld [vmem:[%s19695_s1 + $0x28] sm:$0xff] }
0x1d76   : > { %8244 = vmax.xlane.f32.xlu1 %v8243_v60 }
0x1d77   : > { %14994 = vmatprep.subr.bf16.mxu1 %v14993_v54 }
0x1d78   : > { %14996 = vmatpush3.bf16.msra.mxu1 %v14993_v54  ;;  %v7630_v54 = vld [vmem:[%s19695_s1 + $0x30] sm:$0xff] }
0x1d79   : > { %8130 = vadd.xlane.f32.xlu0 %v8129_v2 }
0x1d7a   : > { %v17973_v60 = vpop.eup %15679 }
0x1d7b   : > { %14112 = vmatmul.mubr.msk.f32.vlgmr.msra.gmra.mrb[92].mxu1 %vm1729_vm0, %v7625_v49  ;;  %v8201_v2 = vsel %vm1729_vm0, %v17973_v60, 0.0  ;;  %v7631_v49 = vld [vmem:[%s19695_s1 + $0x38] sm:$0xff] }
0x1d7c   : > { %14114 = vmatprep.mubr.msk.f32.mxu1 %vm1729_vm0, %v7626_v17  ;;  %v7632_v17 = vld [vmem:[%s19695_s1 + $0x40] sm:$0xff] }
0x1d7d   : > { %8136 = vadd.xlane.f32.xlu0 %v8135_v52  ;;  %v7633_v52 = vld [vmem:[%s19695_s1 + $0x48] sm:$0xff] }
0x1d7f   : > { %14115 = vmatmul.mubr.msk.f32.gmra.mrb[94].mxu1 %vm1729_vm0, %v7627_v41  ;;  %v7634_v41 = vld [vmem:[%s19695_s1 + $0x50] sm:$0xff] }
0x1d80   : > { %14117 = vmatprep.mubr.msk.f32.mxu1 %vm1729_vm0, %v7628_v39  ;;  %v7635_v39 = vld [vmem:[%s19695_s1 + $0x58] sm:$0xff] }
0x1d81   : > { %8196 = vadd.xlane.f32.xlu0 %v8195_v23  ;;  %v7636_v23 = vld [vmem:[%s19695_s1 + $0x60] sm:$0xff] }
0x1d83   : > { %14118 = vmatmul.mubr.msk.f32.gmra.mrb[96].mxu1 %vm1729_vm0, %v7629_v55  ;;  %v7637_v55 = vld [vmem:[%s19695_s1 + $0x68] sm:$0xff] }
0x1d84   : > { %14120 = vmatprep.mubr.msk.f32.mxu1 %vm1729_vm0, %v7630_v54  ;;  %v7638_v54 = vld [vmem:[%s19695_s1 + $0x70] sm:$0xff] }
0x1d85   : > { %8202 = vadd.xlane.f32.xlu0 %v8201_v2  ;;  %v7639_v2 = vld [vmem:[%s19695_s1 + $0x78] sm:$0xff] }
0x1d87   : > { %14121 = vmatmul.mubr.msk.f32.gmra.mrb[98].mxu1 %vm1729_vm0, %v7631_v49  ;;  %v7640_v49 = vld [vmem:[%s19695_s1 + $0x80] sm:$0xff] }
0x1d88   : > { %14123 = vmatprep.mubr.msk.f32.mxu1 %vm1729_vm0, %v7632_v17  ;;  %v7641_v17 = vld [vmem:[%s19695_s1 + $0x88] sm:$0xff] }
0x1d8b   : > { %14124 = vmatmul.mubr.msk.f32.gmra.mrb[100].mxu1 %vm1729_vm0, %v7633_v52  ;;  %v7642_v52 = vld [vmem:[%s19695_s1 + $0x90] sm:$0xff] }
0x1d8c   : > { %14126 = vmatprep.mubr.msk.f32.mxu1 %vm1729_vm0, %v7634_v41  ;;  %v7643_v41 = vld [vmem:[%s19695_s1 + $0x98] sm:$0xff] }
0x1d8f   : > { %14127 = vmatmul.mubr.msk.f32.gmra.mrb[102].mxu1 %vm1729_vm0, %v7635_v39  ;;  %v7644_v39 = vld [vmem:[%s19695_s1 + $0xa0] sm:$0xff] }
0x1d90   : > { %14129 = vmatprep.mubr.msk.f32.mxu1 %vm1729_vm0, %v7636_v23  ;;  %v7645_v23 = vld [vmem:[%s19695_s1 + $0xa8] sm:$0xff] }
0x1d93   : > { %14130 = vmatmul.mubr.msk.f32.gmra.mrb[104].mxu1 %vm1729_vm0, %v7637_v55  ;;  %v7646_v55 = vld [vmem:[%s19695_s1 + $0xb0] sm:$0xff] }
0x1d94   : > { %14132 = vmatprep.mubr.msk.f32.mxu1 %vm1729_vm0, %v7638_v54  ;;  %v7647_v54 = vld [vmem:[%s19695_s1 + $0xb8] sm:$0xff] }
0x1d97   : > { %14133 = vmatmul.mubr.msk.f32.gmra.mrb[106].mxu1 %vm1729_vm0, %v7639_v2  ;;  %v7648_v2 = vld [vmem:[%s19695_s1 + $0xc0] sm:$0xff] }
0x1d98   : > { %14135 = vmatprep.mubr.msk.f32.mxu1 %vm1729_vm0, %v7640_v49  ;;  %v7649_v49 = vld [vmem:[%s19695_s1 + $0xc8] sm:$0xff] }
0x1d9b   : > { %14136 = vmatmul.mubr.msk.f32.gmra.mrb[108].mxu1 %vm1729_vm0, %v7641_v17  ;;  %v7650_v17 = vld [vmem:[%s19695_s1 + $0xd0] sm:$0xff] }
0x1d9c   : > { %14138 = vmatprep.mubr.msk.f32.mxu1 %vm1729_vm0, %v7642_v52  ;;  %v7651_v52 = vld [vmem:[%s19695_s1 + $0xd8] sm:$0xff] }
0x1d9f   : > { %14139 = vmatmul.mubr.msk.f32.gmra.mrb[110].mxu1 %vm1729_vm0, %v7643_v41  ;;  %v7652_v41 = vld [vmem:[%s19695_s1 + $0xe0] sm:$0xff] }
0x1da0   : > { %14141 = vmatprep.mubr.msk.f32.mxu1 %vm1729_vm0, %v7644_v39  ;;  %v7653_v39 = vld [vmem:[%s19695_s1 + $0xe8] sm:$0xff] }
0x1da3   : > { %14142 = vmatmul.mubr.msk.f32.gmra.mrb[112].mxu1 %vm1729_vm0, %v7645_v23  ;;  %v7654_v23 = vld [vmem:[%s19695_s1 + $0xf0] sm:$0xff] }
0x1da4   : > { %14144 = vmatprep.mubr.msk.f32.mxu1 %vm1729_vm0, %v7646_v55  ;;  %v7655_v55 = vld [vmem:[%s19695_s1 + $0xf8] sm:$0xff] }
0x1da7   : > { %14145 = vmatmul.mubr.msk.f32.gmra.mrb[114].mxu1 %vm1729_vm0, %v7647_v54  ;;  %v4939_v54 = vadd.f32 %v17870_v14, %v17413_v13 }
0x1da8   : > { %14147 = vmatprep.mubr.msk.f32.mxu1 %vm1729_vm0, %v7648_v2  ;;  %v4949_v2 = vadd.f32 %v17870_v14, %v17417_v43  ;;  %v7421_v43 = vadd.f32 %v17870_v14, %v17882_v24 }
0x1dab   : > { %14148 = vmatmul.mubr.msk.f32.gmra.mrb[116].mxu1 %vm1729_vm0, %v7649_v49  ;;  %v4957_v49 = vadd.f32 %v4939_v54, %v17396_v58 }
0x1dac   : > { %14150 = vmatprep.mubr.msk.f32.mxu1 %vm1729_vm0, %v7650_v17  ;;  %v4959_v17 = vadd.f32 %v4949_v2, %v17406_v4  ;;  %v7439_v2 = vadd.f32 %v7421_v43, %v17396_v58 }
0x1daf   : > { %14151 = vmatmul.mubr.msk.f32.gmra.mrb[118].mxu1 %vm1729_vm0, %v7651_v52  ;;  %v6180_v52 = vadd.f32 %v17870_v14, %v17653_v6  ;;  %v7431_v6 = vadd.f32 %v17870_v14, %v17886_v59 }
0x1db0   : > { %14153 = vmatprep.mubr.msk.f32.mxu1 %vm1729_vm0, %v7652_v41  ;;  %v12168_v41 = vmul.f32 -1.442695, %v4957_v49 }
0x1db2   : > { %15681 = vpow2.f32 %v12168_v41 }
0x1db3   : > { %14154 = vmatmul.mubr.msk.f32.gmra.mrb[120].mxu1 %vm1729_vm0, %v7653_v39  ;;  %v12170_v39 = vmul.f32 -1.442695, %v4959_v17 }
0x1db4   : > { %14156 = vmatprep.mubr.msk.f32.mxu1 %vm1729_vm0, %v7654_v23  ;;  %v6198_v23 = vadd.f32 %v6180_v52, %v17396_v58  ;;  %v12312_v52 = vmul.f32 -1.442695, %v7439_v2 }
0x1db5   : > { %15683 = vpow2.f32 %v12170_v39 }
0x1db6   : > { %v12240_v13 = vmul.f32 -1.442695, %v6198_v23 }
0x1db7   : > { %14157 = vmatmul.mubr.msk.f32.gmra.mrb[122].mxu1 %vm1729_vm0, %v7655_v55  ;;  %v6190_v55 = vadd.f32 %v17870_v14, %v17657_v28  ;;  %v7441_v28 = vadd.f32 %v7431_v6, %v17406_v4 }
0x1db8   : > { %15685 = vpow2.f32 %v12240_v13 }
0x1db9   : > { %v6200_v62 = vadd.f32 %v6190_v55, %v17406_v4  ;;  %v12314_v23 = vmul.f32 -1.442695, %v7441_v28 }
0x1dbb   : > { %v12242_v54 = vmul.f32 -1.442695, %v6200_v62 }
0x1dbc   : > { %v15682_v49 = vpop.eup %15681 }
0x1dbd   : > { %15687 = vpow2.f32 %v12242_v54  ;;  %v4973_v41 = vadd.f32 1.0, %v15682_v49 }
0x1dbe   : > { %15689 = vpow2.f32 %v12312_v52 }
0x1dbf   : > { %v15684_v17 = vpop.eup %15683  ;;  %15691 = vrcp.f32 %v4973_v41 }
0x1dc0   : > { %v4975_v39 = vadd.f32 1.0, %v15684_v17 }
0x1dc2   : > { %v15686_v55 = vpop.eup %15685  ;;  %15693 = vrcp.f32 %v4975_v39 }
0x1dc3   : > { %v6214_v24 = vadd.f32 1.0, %v15686_v55  ;;  %15695 = vpow2.f32 %v12314_v23 }
0x1dc5   : > { %15697 = vrcp.f32 %v6214_v24 }
0x1dc7   : > { %v15688_v62 = vpop.eup %15687 }
0x1dc8   : > { %v6216_v59 = vadd.f32 1.0, %v15688_v62  ;;  %v15690_v54 = vpop.eup %15689 }
0x1dc9   : > { %v15692_v42 = vpop.eup %15691  ;;  %v7455_v17 = vadd.f32 1.0, %v15690_v54  ;;  %v18059_v54 = vstv %s12390_s18  ;;  %s12392_s18 = sld [smem:[#allocation2 + $0x101]] }
0x1dca   : > { %v4989_v41 = vsub.f32 1.0, %v15692_v42  ;;  %v4985_v24 = vmul.f32 %v15692_v42, %v17137_v63 }
0x1dcc   : > { %v15694_v49 = vpop.eup %15693  ;;  %v4993_v55 = vmul.f32 %v4989_v41, %v17266_v21 }
0x1dcd   : > { %v15696_v28 = vpop.eup %15695  ;;  %v4987_v21 = vmul.f32 %v15694_v49, %v17151_v0 }
0x1dce   : > { %v7457_v39 = vadd.f32 1.0, %v15696_v28 }
0x1dcf   : > { %v15698_v23 = vpop.eup %15697 }
0x1dd0   : > { %v6230_v62 = vsub.f32 1.0, %v15698_v23 }
0x1dff   : > { %v8239_v13 = vpop.xlane.xlu1 %8238 }
0x1e00   : > { %v8249_v43 = vsub.f32 %v17913_v34, %v8239_v13  ;;  %v4991_v34 = vsub.f32 1.0, %v15694_v49 }
0x1e02   : > { %v8253_v19 = vmul.f32 1.442695, %v8249_v43  ;;  %v18057_v43 = vadd.f32 %v4993_v55, %v4985_v24 }
0x1e03   : > { %v8245_v2 = vpop.xlane.xlu1 %8244 }
0x1e04   : > { %15699 = vpow2.f32 %v8253_v19  ;;  %v8251_v6 = vsub.f32 %v17941_v45, %v8245_v2  ;;  %v4995_v45 = vmul.f32 %v4991_v34, %v17274_v36  ;;  %19704 = vst [vmem:[#allocation100_spill] sm:$0xff] %v18057_v43  ;;  %v18063_v2 = vld [vmem:[%s19703_s3] sm:$0x77]  ;;  %v6234_v36 = vmul.f32 %v6230_v62, %v17530_v7 }
0x1e05   : > { %15701 = vrcp.f32 %v6216_v59  ;;  %v18078_v28 = vmul.f32 %v18059_v54, %v18057_v43 }
0x1e06   : > { %v8257_v52 = vmul.f32 1.442695, %v8251_v6  ;;  %v18067_v6 = vadd.f32 %v4995_v45, %v4987_v21  ;;  %v18090_v45 = vstv %s12391_s4  ;;  %s12425_s4 = sld [smem:[#allocation2 + $0x2]] }
0x1e07   : > { %v8636_v24 = vsel %vm1729_vm0, %v18078_v28, -inf }
0x1e08   : > { %15703 = vpow2.f32 %v8257_v52  ;;  %19706 = vst [vmem:[#allocation102_spill] sm:$0xff] %v18067_v6  ;;  %v18084_v7 = vmul.f32 %v18059_v54, %v18067_v6 }
0x1e09   : > { %15705 = vrcp.f32 %v7455_v17  ;;  %v18072_v17 = vcombine.high %v18063_v2, %v18063_v2 }
0x1e0a   : > { %15707 = vrcp.f32 %v7457_v39  ;;  %v6226_v39 = vmul.f32 %v15698_v23, %v17137_v63  ;;  %v8642_v43 = vsel %vm1729_vm0, %v18084_v7, -inf }
0x1e0b   : > { %19707 = vst [vmem:[#allocation103_spill] sm:$0xff] %v18072_v17  ;;  %8618 = vmatprep.mubr.f32.mxu1 %v18072_v17 }
0x1e0c   : > { %v18086_v34 = vadd.f32 %v6234_v36, %v6226_v39 }
0x1e0e   : > { %v18052_v19 = vpop.eup %15699  ;;  %19708 = vst [vmem:[#allocation104_spill] sm:$0xff] %v18086_v34  ;;  %v18100_v40 = vmul.f32 %v18090_v45, %v18086_v34 }
0x1e0f   : > { %v8261_v13 = vsel %vm1729_vm0, %v18052_v19, 0.0  ;;  %v15702_v59 = vpop.eup %15701 }
0x1e10   : > { %8262 = vadd.xlane.f32.xlu0 %v8261_v13  ;;  %v6232_v49 = vsub.f32 1.0, %v15702_v59  ;;  %v6228_v36 = vmul.f32 %v15702_v59, %v17151_v0 }
0x1e12   : > { %v18065_v42 = vpop.eup %15703  ;;  %v6236_v62 = vmul.f32 %v6232_v49, %v17538_v18 }
0x1e13   : > { %19705 = vst [vmem:[#allocation101_spill] sm:$0xff] %v18065_v42  ;;  %v8267_v52 = vsel %vm1729_vm0, %v18065_v42, 0.0  ;;  %v15706_v41 = vpop.eup %15705 }
0x1e14   : > { %8268 = vadd.xlane.f32.xlu0 %v8267_v52  ;;  %v7471_v13 = vsub.f32 1.0, %v15706_v41  ;;  %v15708_v21 = vpop.eup %15707  ;;  %v18102_v1 = vadd.f32 %v6236_v62, %v6228_v36 }
0x1e16   : > { %19709 = vst [vmem:[#allocation105_spill] sm:$0xff] %v18102_v1  ;;  %v18112_v62 = vmul.f32 %v18090_v45, %v18102_v1 }
0x1e17   : > { %v14057_v55 = vpop.f32.mrb[88].mxu0 }
0x1e18   : > { %v7164_v23 = vadd.f32 %v17770_v31, %v14057_v55  ;;  %v7158_v52 = vpop.f32.mrb[89].mxu0  ;;  %8637 = vmax.xlane.f32.xlu0 %v8636_v24  ;;  %v7475_v55 = vmul.f32 %v7471_v13, %v17776_v12  ;;  %v7473_v24 = vsub.f32 1.0, %v15708_v21 }
0x1e19   : > { %v7159_v6 = vadd.f32 %v17770_v31, %v7158_v52 }
0x1e1a   : > { %v12297_v39 = vmul.f32 -1.442695, %v7164_v23  ;;  %v7467_v23 = vmul.f32 %v15706_v41, %v17137_v63  ;;  %v7477_v13 = vmul.f32 %v7473_v24, %v17784_v46 }
0x1e1b   : > { %v12296_v18 = vmul.f32 -1.442695, %v7159_v6  ;;  %v14060_v49 = vpop.f32.mrb[90].mxu0  ;;  %v8702_v6 = vsel %vm1729_vm0, %v18100_v40, -inf }
0x1e1c   : > { %15709 = vpow2.f32 %v12297_v39  ;;  %v7174_v52 = vadd.f32 %v17770_v31, %v14060_v49  ;;  %v7168_v53 = vpop.f32.mrb[91].mxu0  ;;  %8643 = vmax.xlane.f32.xlu0 %v8642_v43  ;;  %v18114_v12 = vadd.f32 %v7475_v55, %v7467_v23  ;;  %v18117_v43 = vstv %s12392_s18  ;;  %s12426_s18 = sld [smem:[#allocation2 + $0x82]] }
0x1e1d   : > { %15711 = vpow2.f32 %v12296_v18  ;;  %v7169_v59 = vadd.f32 %v17770_v31, %v7168_v53  ;;  %v7469_v53 = vmul.f32 %v15708_v21, %v17151_v0  ;;  %v8708_v31 = vsel %vm1729_vm0, %v18112_v62, -inf }
0x1e1e   : > { %v12299_v22 = vmul.f32 -1.442695, %v7174_v52  ;;  %19710 = vst [vmem:[#allocation106_spill] sm:$0xff] %v18114_v12  ;;  %v18124_v41 = vmul.f32 %v18117_v43, %v18114_v12 }
0x1e1f   : > { %v12298_v34 = vmul.f32 -1.442695, %v7169_v59  ;;  %v18126_v36 = vadd.f32 %v7477_v13, %v7469_v53 }
0x1e20   : > { %15713 = vpow2.f32 %v12299_v22  ;;  %8703 = vmax.xlane.f32.xlu0 %v8702_v6  ;;  %v8768_v22 = vsel %vm1729_vm0, %v18124_v41, -inf }
0x1e21   : > { %15715 = vpow2.f32 %v12298_v34  ;;  %19711 = vst [vmem:[#allocation107_spill] sm:$0xff] %v18126_v36  ;;  %v18132_v34 = vmul.f32 %v18117_v43, %v18126_v36 }
0x1e23   : > { %v8774_v52 = vsel %vm1729_vm0, %v18132_v34, -inf }
0x1e24   : > { %8709 = vmax.xlane.f32.xlu0 %v8708_v31 }
0x1e26   : > { %v15710_v39 = vpop.eup %15709 }
0x1e27   : > { %v15712_v18 = vpop.eup %15711  ;;  %v7190_v46 = vadd.f32 1.0, %v15710_v39 }
0x1e28   : > { %v7189_v21 = vadd.f32 1.0, %v15712_v18  ;;  %8769 = vmax.xlane.f32.xlu0 %v8768_v22 }
0x1e2a   : > { %v15714_v49 = vpop.eup %15713  ;;  %15717 = vrcp.f32 %v7189_v21 }
0x1e2b   : > { %v15716_v55 = vpop.eup %15715  ;;  %15719 = vrcp.f32 %v7190_v46  ;;  %v7192_v24 = vadd.f32 1.0, %v15714_v49 }
0x1e2c   : > { %v7191_v59 = vadd.f32 1.0, %v15716_v55  ;;  %8775 = vmax.xlane.f32.xlu0 %v8774_v52 }
0x1e2e   : > { %15721 = vrcp.f32 %v7191_v59 }
0x1e2f   : > { %15723 = vrcp.f32 %v7192_v24 }
0x1e34   : > { %v18136_v23 = vpop.eup %15717 }
0x1e35   : > { %19712 = vst [vmem:[#allocation108_spill] sm:$0xff] %v18136_v23  ;;  %v18138_v6 = vpop.eup %15719  ;;  %14097 = vmatprep.mubr.msk.f32.mxu0 %vm1729_vm0, %v18136_v23 }
0x1e36   : > { %19713 = vst [vmem:[#allocation109_spill] sm:$0xff] %v18138_v6  ;;  %14098 = vmatmul.mubr.msk.f32.vlgmr.msra.gmra.mrb[92].mxu0 %vm1729_vm0, %v18138_v6 }
0x1e38   : > { %v18144_v13 = vpop.eup %15721 }
0x1e39   : > { %v18146_v53 = vpop.eup %15723  ;;  %14100 = vmatprep.mubr.msk.f32.mxu0 %vm1729_vm0, %v18144_v13 }
0x1e3a   : > { %19714 = vst [vmem:[#allocation110_spill] sm:$0xff] %v18146_v53  ;;  %14101 = vmatmul.mubr.msk.f32.gmra.mrb[94].mxu0 %vm1729_vm0, %v18146_v53 }
0x1e3b   : > { %8086 = vmatprep.mubr.f32.mxu0 %v18072_v17 }
0x1e4e   : > { %v14113_v31 = vpop.f32.mrb[92].mxu1 }
0x1e4f   : > { %v7988_v39 = vmax.f32 %v14113_v31, 0.0  ;;  %v7828_v18 = vpop.f32.mrb[93].mxu1 }
0x1e50   : > { %v7987_v46 = vmax.f32 %v7828_v18, 0.0 }
0x1e52   : > { %v14999_v22 = vpack.c.bf16 %v7988_v39, %v7987_v46  ;;  %v14116_v21 = vpop.f32.mrb[94].mxu1 }
0x1e53   : > { %v7990_v49 = vmax.f32 %v14116_v21, 0.0  ;;  %v7838_v55 = vpop.f32.mrb[95].mxu1 }
0x1e54   : > { %v7989_v24 = vmax.f32 %v7838_v55, 0.0 }
0x1e56   : > { %v15003_v52 = vpack.c.bf16 %v7990_v49, %v7989_v24  ;;  %v14119_v59 = vpop.f32.mrb[96].mxu1 }
0x1e57   : > { %v7992_v36 = vmax.f32 %v14119_v59, 0.0  ;;  %v7848_v12 = vpop.f32.mrb[97].mxu1 }
0x1e58   : > { %v7991_v1 = vmax.f32 %v7848_v12, 0.0 }
0x1e5a   : > { %v15007_v6 = vpack.c.bf16 %v7992_v36, %v7991_v1  ;;  %v14122_v23 = vpop.f32.mrb[98].mxu1 }
0x1e5b   : > { %v7994_v16 = vmax.f32 %v14122_v23, 0.0  ;;  %v7858_v53 = vpop.f32.mrb[99].mxu1 }
0x1e5c   : > { %v7993_v42 = vmax.f32 %v7858_v53, 0.0 }
0x1e5e   : > { %v15011_v17 = vpack.c.bf16 %v7994_v16, %v7993_v42  ;;  %v14125_v30 = vpop.f32.mrb[100].mxu1 }
0x1e5f   : > { %v7996_v31 = vmax.f32 %v14125_v30, 0.0  ;;  %v7868_v37 = vpop.f32.mrb[101].mxu1 }
0x1e60   : > { %v7995_v18 = vmax.f32 %v7868_v37, 0.0 }
0x1e62   : > { %v15015_v39 = vpack.c.bf16 %v7996_v31, %v7995_v18  ;;  %v14128_v46 = vpop.f32.mrb[102].mxu1 }
0x1e63   : > { %v7998_v21 = vmax.f32 %v14128_v46, 0.0  ;;  %v7878_v3 = vpop.f32.mrb[103].mxu1 }
0x1e64   : > { %v7997_v55 = vmax.f32 %v7878_v3, 0.0 }
0x1e66   : > { %v15019_v49 = vpack.c.bf16 %v7998_v21, %v7997_v55  ;;  %v14131_v24 = vpop.f32.mrb[104].mxu1 }
0x1e67   : > { %v8000_v59 = vmax.f32 %v14131_v24, 0.0  ;;  %v7888_v33 = vpop.f32.mrb[105].mxu1 }
0x1e68   : > { %v7999_v12 = vmax.f32 %v7888_v33, 0.0 }
0x1e6a   : > { %v15023_v1 = vpack.c.bf16 %v8000_v59, %v7999_v12  ;;  %v14134_v36 = vpop.f32.mrb[106].mxu1 }
0x1e6b   : > { %v8002_v23 = vmax.f32 %v14134_v36, 0.0  ;;  %v7898_v57 = vpop.f32.mrb[107].mxu1 }
0x1e6c   : > { %v8001_v53 = vmax.f32 %v7898_v57, 0.0 }
0x1e6e   : > { %v15027_v16 = vpack.c.bf16 %v8002_v23, %v8001_v53  ;;  %v14137_v42 = vpop.f32.mrb[108].mxu1 }
0x1e6f   : > { %v8004_v30 = vmax.f32 %v14137_v42, 0.0  ;;  %v7908_v25 = vpop.f32.mrb[109].mxu1 }
0x1e70   : > { %v8003_v37 = vmax.f32 %v7908_v25, 0.0 }
0x1e72   : > { %v14997_v31 = vpack.c.bf16 %v8004_v30, %v8003_v37  ;;  %v14140_v18 = vpop.f32.mrb[110].mxu1 }
0x1e73   : > { %v8006_v46 = vmax.f32 %v14140_v18, 0.0  ;;  %v7918_v32 = vpop.f32.mrb[111].mxu1 }
0x1e74   : > { %v8005_v3 = vmax.f32 %v7918_v32, 0.0  ;;  %14998 = vmatprep.subr.bf16.mxu0 %v14997_v31 }
0x1e75   : > { %15000 = vmatpush3.bf16.msra.mxu0 %v14999_v22 }
0x1e76   : > { %v15001_v21 = vpack.c.bf16 %v8006_v46, %v8005_v3  ;;  %v14143_v55 = vpop.f32.mrb[112].mxu1 }
0x1e77   : > { %v8008_v33 = vmax.f32 %v14143_v55, 0.0  ;;  %v7928_v24 = vpop.f32.mrb[113].mxu1 }
0x1e78   : > { %v8007_v59 = vmax.f32 %v7928_v24, 0.0  ;;  %15002 = vmatprep.subr.bf16.mxu0 %v15001_v21 }
0x1e79   : > { %15004 = vmatpush3.bf16.msra.mxu0 %v15003_v52 }
0x1e7a   : > { %v15005_v57 = vpack.c.bf16 %v8008_v33, %v8007_v59  ;;  %v14146_v12 = vpop.f32.mrb[114].mxu1 }
0x1e7b   : > { %v8010_v36 = vmax.f32 %v14146_v12, 0.0  ;;  %v7938_v23 = vpop.f32.mrb[115].mxu1 }
0x1e7c   : > { %v8009_v53 = vmax.f32 %v7938_v23, 0.0  ;;  %15006 = vmatprep.subr.bf16.mxu0 %v15005_v57 }
0x1e7d   : > { %15008 = vmatpush3.bf16.msra.mxu0 %v15007_v6 }
0x1e7e   : > { %v15009_v25 = vpack.c.bf16 %v8010_v36, %v8009_v53  ;;  %v14149_v42 = vpop.f32.mrb[116].mxu1 }
0x1e7f   : > { %v8012_v30 = vmax.f32 %v14149_v42, 0.0  ;;  %v7948_v32 = vpop.f32.mrb[117].mxu1 }
0x1e80   : > { %v8011_v37 = vmax.f32 %v7948_v32, 0.0  ;;  %15010 = vmatprep.subr.bf16.mxu0 %v15009_v25  ;;  %v8110_v25 = vpop.xlane.xlu0 %8109 }
0x1e81   : > { %15012 = vmatpush3.bf16.msra.mxu0 %v15011_v17 }
0x1e82   : > { %v15013_v22 = vpack.c.bf16 %v8012_v30, %v8011_v37  ;;  %v14152_v31 = vpop.f32.mrb[118].mxu1 }
0x1e83   : > { %v8014_v18 = vmax.f32 %v14152_v31, 0.0  ;;  %v7958_v46 = vpop.f32.mrb[119].mxu1  ;;  %v6185_v31 = vadd.f32 %v17870_v14, %v17651_v35 }
0x1e84   : > { %v8013_v3 = vmax.f32 %v7958_v46, 0.0  ;;  %15014 = vmatprep.subr.bf16.mxu0 %v15013_v22  ;;  %v8116_v42 = vpop.xlane.xlu0 %8115 }
0x1e85   : > { %15016 = vmatpush3.bf16.msra.mxu0 %v15015_v39 }
0x1e86   : > { %v15017_v52 = vpack.c.bf16 %v8014_v18, %v8013_v3  ;;  %v14155_v21 = vpop.f32.mrb[120].mxu1  ;;  %v6199_v3 = vadd.f32 %v6185_v31, %v17391_v38 }
0x1e87   : > { %v8016_v55 = vmax.f32 %v14155_v21, 0.0  ;;  %v7968_v33 = vpop.f32.mrb[121].mxu1  ;;  %v19719_v21 = vld [vmem:[#allocation65_spill] sm:$0xff] }
0x1e88   : > { %v8015_v24 = vmax.f32 %v7968_v33, 0.0  ;;  %15018 = vmatprep.subr.bf16.mxu0 %v15017_v52  ;;  %v8176_v30 = vpop.xlane.xlu0 %8175  ;;  %v19718_v52 = vld [vmem:[#allocation79_spill] sm:$0xff] }
0x1e89   : > { %15020 = vmatpush3.bf16.msra.mxu0 %v15019_v49 }
0x1e8a   : > { %v15021_v6 = vpack.c.bf16 %v8016_v55, %v8015_v24  ;;  %v14158_v59 = vpop.f32.mrb[122].mxu1  ;;  %v8118_v55 = vsub.f32 %v19719_v21, %v8110_v25  ;;  %v7436_v25 = vadd.f32 %v17870_v14, %v17884_v8 }
0x1e8b   : > { %v8018_v57 = vmax.f32 %v14158_v59, 0.0  ;;  %v7978_v12 = vpop.f32.mrb[123].mxu1  ;;  %v19720_v59 = vld [vmem:[#allocation68_spill] sm:$0xff] }
0x1e8c   : > { %v8017_v36 = vmax.f32 %v7978_v12, 0.0  ;;  %15022 = vmatprep.subr.bf16.mxu0 %v15021_v6  ;;  %v7426_v6 = vadd.f32 %v17870_v14, %v17880_v20  ;;  %v8123_v35 = vmul.f32 1.442695, %v8118_v55 }
0x1e8d   : > { %15024 = vmatpush3.bf16.msra.mxu0 %v15023_v1  ;;  %v4944_v1 = vadd.f32 %v17870_v14, %v17411_v11  ;;  %v6195_v11 = vadd.f32 %v17870_v14, %v19718_v52 }
0x1e8e   : > { %v15025_v17 = vpack.c.bf16 %v8018_v57, %v8017_v36  ;;  %v8120_v57 = vsub.f32 %v19720_v59, %v8116_v42  ;;  %v7442_v42 = vadd.f32 %v7436_v25, %v17402_v47 }
0x1e8f   : > { %v6201_v24 = vadd.f32 %v6195_v11, %v17402_v47 }
0x1e90   : > { %15026 = vmatprep.subr.bf16.mxu0 %v15025_v17  ;;  %v7440_v17 = vadd.f32 %v7426_v6, %v17391_v38  ;;  %v12315_v55 = vmul.f32 -1.442695, %v7442_v42 }
0x1e91   : > { %15028 = vmatpush3.bf16.msra.mxu0 %v15027_v16  ;;  %v8182_v16 = vpop.xlane.xlu0 %8181  ;;  %v12243_v12 = vmul.f32 -1.442695, %v6201_v24 }
0x1e92   : > { %v12313_v31 = vmul.f32 -1.442695, %v7440_v17 }
0x1e94   : > { %8087 = vmatmul.mubr.f32.vlgmr.msra.gmra.mrb[96].mxu0 %v18063_v2  ;;  %v4958_v2 = vadd.f32 %v4944_v1, %v17391_v38 }
0x1e95   : > { %14167 = vmatprep.mubr.msk.f32.mxu0 %vm1729_vm0, %v17858_v10  ;;  %v4954_v10 = vadd.f32 %v17870_v14, %v17415_v5  ;;  %v8242_v32 = vpop.xlane.xlu0 %8241  ;;  %v12241_v5 = vmul.f32 -1.442695, %v6199_v3  ;;  %v19722_v3 = vld [vmem:[#allocation85_spill] sm:$0xff] }
0x1e96   : > { %v12169_v37 = vmul.f32 -1.442695, %v4958_v2  ;;  %v8127_v2 = vmul.f32 1.442695, %v8120_v57  ;;  %v8186_v52 = vsub.f32 %v19722_v3, %v8182_v16  ;;  %v8250_v6 = vsub.f32 %v17905_v48, %v8242_v32 }
0x1e97   : > { %v4960_v22 = vadd.f32 %v4954_v10, %v17402_v47  ;;  %v19721_v10 = vld [vmem:[#allocation82_spill] sm:$0xff] }
0x1e98   : > { %15725 = vpow2.f32 %v12169_v37  ;;  %v8184_v37 = vsub.f32 %v19721_v10, %v8176_v30  ;;  %v8193_v24 = vmul.f32 1.442695, %v8186_v52 }
0x1e99   : > { %v8248_v18 = vpop.xlane.xlu0 %8247  ;;  %v12171_v46 = vmul.f32 -1.442695, %v4960_v22 }
0x1e9a   : > { %v8252_v17 = vsub.f32 %v17935_v50, %v8248_v18 }
0x1e9b   : > { %15727 = vpow2.f32 %v12171_v46  ;;  %v8189_v46 = vmul.f32 1.442695, %v8184_v37 }
0x1e9c   : > { %15729 = vpow2.f32 %v12241_v5  ;;  %v8259_v37 = vmul.f32 1.442695, %v8252_v17 }
0x1e9d   : > { %v18176_v33 = vpop.xlane.xlu0 %8130  ;;  %15731 = vpow2.f32 %v8123_v35 }
0x1e9e   : > { %15733 = vpow2.f32 %v12243_v12 }
0x1e9f   : > { %15735 = vpow2.f32 %v8127_v2 }
0x1ea1   : > { %v18185_v1 = vpop.xlane.xlu0 %8136 }
0x1ea2   : > { %v15726_v36 = vpop.eup %15725 }
0x1ea3   : > { %v4974_v22 = vadd.f32 1.0, %v15726_v36  ;;  %v8255_v36 = vmul.f32 1.442695, %v8250_v6  ;;  %v19724_v6 = vld [vmem:[#allocation74_spill] sm:$0xff] }
0x1ea5   : > { %v15728_v20 = vpop.eup %15727  ;;  %v18190_v11 = vpop.xlane.xlu0 %8196  ;;  %15737 = vrcp.f32 %v4974_v22 }
0x1ea6   : > { %v4976_v14 = vadd.f32 1.0, %v15728_v20  ;;  %15739 = vpow2.f32 %v12313_v31  ;;  %v15730_v5 = vpop.eup %15729 }
0x1ea7   : > { %15741 = vpow2.f32 %v8189_v46  ;;  %v18194_v59 = vpop.eup %15731  ;;  %v6215_v16 = vadd.f32 1.0, %v15730_v5 }
0x1ea8   : > { %15743 = vrcp.f32 %v4976_v14  ;;  %v15734_v12 = vpop.eup %15733  ;;  %v8132_v25 = vsel %vm1729_vm0, %v18194_v59, 0.0 }
0x1ea9   : > { %15745 = vpow2.f32 %v12315_v55  ;;  %v18196_v57 = vpop.xlane.xlu0 %8202  ;;  %v18201_v2 = vpop.eup %15735  ;;  %v6217_v48 = vadd.f32 1.0, %v15734_v12 }
0x1eaa   : > { %15747 = vpow2.f32 %v8193_v24  ;;  %v8138_v20 = vsel %vm1729_vm0, %v18201_v2, 0.0  ;;  %v18217_v24 = vld [vmem:[%s19663_s2] ss:$0 sm:$0xff]  ;;  %s19746_s2 = sld [smem:[#allocation36_spill]] }
0x1eab   : > { %15749 = vrcp.f32 %v6215_v16 }
0x1eac   : > { %15751 = vpow2.f32 %v8255_v36 }
0x1ead   : > { %v18203_v32 = vpop.xlane.xlu0 %8262  ;;  %15753 = vrcp.f32 %v6217_v48 }
0x1eae   : > { %15755 = vpow2.f32 %v8259_v37 }
0x1eaf   : > { %v15738_v10 = vpop.eup %15737 }
0x1eb0   : > { %v15740_v22 = vpop.eup %15739  ;;  %v4990_v42 = vsub.f32 1.0, %v15738_v10  ;;  %v4986_v36 = vmul.f32 %v15738_v10, %v17139_v9 }
0x1eb1   : > { %v18207_v31 = vpop.eup %15741  ;;  %v7456_v18 = vadd.f32 1.0, %v15740_v22  ;;  %v18209_v3 = vpop.xlane.xlu0 %8268  ;;  %v19727_v22 = vld [vmem:[#allocation62_spill] sm:$0xff] }
0x1eb2   : > { %v15744_v50 = vpop.eup %15743  ;;  %v8198_v52 = vsel %vm1729_vm0, %v18207_v31, 0.0 }
0x1eb3   : > { %v15746_v46 = vpop.eup %15745  ;;  %15757 = vrcp.f32 %v7456_v18  ;;  %v4988_v10 = vmul.f32 %v15744_v50, %v17153_v15 }
0x1eb4   : > { %v7458_v14 = vadd.f32 1.0, %v15746_v46 }
0x1eb5   : > { %v8638_v17 = vpop.xlane.xlu0 %8637 }
0x1eb6   : > { %15759 = vrcp.f32 %v7458_v14 }
0x1f09   : > { %v18156_v39 = vpop.f32.mrb[92].mxu0 }
0x1f0a   : > { %19715 = vst [vmem:[#allocation111_spill] sm:$0xff] %v18156_v39  ;;  %v18158_v23 = vpop.f32.mrb[93].mxu0 }
0x1f0b   : > { %19716 = vst [vmem:[#allocation112_spill] sm:$0xff] %v18158_v23 }
0x1f0d   : > { %v18160_v49 = vpop.f32.mrb[94].mxu0 }
0x1f0e   : > { %19717 = vst [vmem:[#allocation113_spill] sm:$0xff] %v18160_v49  ;;  %v18162_v53 = vpop.f32.mrb[95].mxu0 }
0x1f67   : > { %v13062_v21 = vpop.f32.mrb[96].mxu0 }
0x1f68   : > { %v13063_v8 = vpop.f32.mrb[97].mxu0 }
0x1f69   : > { %v13064_v30 = vadd.f32 %v13063_v8, %v13062_v21  ;;  %v18213_v21 = vpop.eup %15747  ;;  %v19723_v8 = vld [vmem:[#allocation61_spill] sm:$0xff] }
0x1f6a   : > { %v4994_v55 = vmul.f32 %v4990_v42, %v19723_v8  ;;  %v15750_v5 = vpop.eup %15749  ;;  %v8204_v16 = vsel %vm1729_vm0, %v18213_v21, 0.0 }
0x1f6b   : > { %v8093_v35 = vsel %vm8092_vm4, %v13064_v30, 0.0  ;;  %v4992_v30 = vsub.f32 1.0, %v15744_v50  ;;  %v18223_v12 = vpop.eup %15751 }
0x1f6c   : > { %8094 = vadd.xlane.f32.xlu1 %v8093_v35  ;;  %v5080_v35 = vadd.f32 %v18217_v24, %v19724_v6  ;;  %v18228_v37 = vadd.f32 %v4994_v55, %v4986_v36  ;;  %v15754_v18 = vpop.eup %15753  ;;  %v8264_v46 = vsel %vm1729_vm0, %v18223_v12, 0.0  ;;  %v19729_v36 = vld [vmem:[#allocation77_spill] sm:$0xff] }
0x1f6d   : > { %v18234_v8 = vpop.eup %15755 }
0x1f6e   : > { %19726 = vst [vmem:[#allocation79_spill] sm:$0xff] %v18228_v37  ;;  %v5098_v42 = vadd.f32 %v5080_v35, %v17396_v58  ;;  %v18240_v14 = vmul.f32 %v18059_v54, %v18228_v37  ;;  %v8270_v35 = vsel %vm1729_vm0, %v18234_v8, 0.0  ;;  %v15758_v49 = vpop.eup %15757 }
0x1f6f   : > { %v7472_v37 = vsub.f32 1.0, %v15758_v49  ;;  %v15760_v23 = vpop.eup %15759 }
0x1f70   : > { %8133 = vadd.xlane.f32.xlu1 %v8132_v25  ;;  %v19725_v25 = vld [vmem:[#allocation76_spill] sm:$0xff] }
0x1f71   : > { %v5090_v48 = vadd.f32 %v18217_v24, %v19725_v25 }
0x1f73   : > { %v5100_v6 = vadd.f32 %v5090_v48, %v17406_v4  ;;  %v6227_v48 = vmul.f32 %v15750_v5, %v17139_v9 }
0x1f74   : > { %8139 = vadd.xlane.f32.xlu1 %v8138_v20  ;;  %v4996_v20 = vmul.f32 %v4992_v30, %v19727_v22  ;;  %v12176_v30 = vmul.f32 -1.442695, %v5098_v42  ;;  %v6233_v22 = vsub.f32 1.0, %v15754_v18 }
0x1f75   : > { %v12178_v39 = vmul.f32 -1.442695, %v5100_v6 }
0x1f76   : > { %v18242_v55 = vadd.f32 %v4996_v20, %v4988_v10  ;;  %v8639_v20 = vsel %vm1729_vm0, %v18240_v14, -inf  ;;  %15761 = vpow2.f32 %v12176_v30 }
0x1f77   : > { %15763 = vpow2.f32 %v12178_v39 }
0x1f78   : > { %8199 = vadd.xlane.f32.xlu1 %v8198_v52  ;;  %v6231_v52 = vsub.f32 1.0, %v15750_v5  ;;  %19728 = vst [vmem:[#allocation65_spill] sm:$0xff] %v18242_v55  ;;  %v18254_v42 = vmul.f32 %v18059_v54, %v18242_v55  ;;  %v6331_v5 = vadd.f32 %v18217_v24, %v17738_v61  ;;  %v8648_v54 = vsub.f32 %v18078_v28, %v8638_v17 }
0x1f79   : > { %v7468_v28 = vmul.f32 %v15758_v49, %v17139_v9 }
0x1f7a   : > { %v6235_v25 = vmul.f32 %v6231_v52, %v19729_v36  ;;  %v19732_v52 = vld [vmem:[#allocation78_spill] sm:$0xff]  ;;  %v8645_v30 = vsel %vm1729_vm0, %v18254_v42, -inf  ;;  %v8652_v17 = vmul.f32 1.442695, %v8648_v54 }
0x1f7b   : > { %v6237_v36 = vmul.f32 %v6233_v22, %v19732_v52 }
0x1f7c   : > { %8205 = vadd.xlane.f32.xlu1 %v8204_v16  ;;  %v8644_v16 = vpop.xlane.xlu0 %8643  ;;  %v18256_v10 = vadd.f32 %v6235_v25, %v6227_v48  ;;  %v7474_v48 = vsub.f32 1.0, %v15760_v23 }
0x1f7d   : > { %v8650_v52 = vsub.f32 %v18084_v7, %v8644_v16  ;;  %v7572_v7 = vadd.f32 %v18217_v24, %v18162_v53  ;;  %v7470_v16 = vmul.f32 %v15760_v23, %v17153_v15 }
0x1f7e   : > { %19731 = vst [vmem:[#allocation68_spill] sm:$0xff] %v18256_v10  ;;  %v18268_v25 = vmul.f32 %v18090_v45, %v18256_v10 }
0x1f7f   : > { %v8656_v54 = vmul.f32 1.442695, %v8650_v52  ;;  %v7582_v23 = vadd.f32 %v7572_v7, %v17406_v4 }
0x1f80   : > { %8265 = vadd.xlane.f32.xlu1 %v8264_v46  ;;  %v19730_v46 = vld [vmem:[#allocation75_spill] sm:$0xff]  ;;  %v8704_v6 = vpop.xlane.xlu0 %8703 }
0x1f81   : > { %v5095_v50 = vadd.f32 %v18217_v24, %v19730_v46 }
0x1f83   : > { %v5101_v46 = vadd.f32 %v5095_v50, %v17402_v47  ;;  %v7476_v50 = vmul.f32 %v7472_v37, %v17773_v56 }
0x1f84   : > { %8271 = vadd.xlane.f32.xlu1 %v8270_v35  ;;  %v6229_v35 = vmul.f32 %v15754_v18, %v17153_v15  ;;  %v19734_v18 = vld [vmem:[#allocation92_spill] sm:$0xff]  ;;  %v8710_v55 = vpop.xlane.xlu0 %8709 }
0x1f85   : > { %v12179_v61 = vmul.f32 -1.442695, %v5101_v46  ;;  %v6336_v39 = vadd.f32 %v18217_v24, %v19734_v18  ;;  %v18284_v37 = vadd.f32 %v7476_v50, %v7468_v28  ;;  %v7478_v46 = vmul.f32 %v7474_v48, %v17781_v51 }
0x1f86   : > { %v18270_v22 = vadd.f32 %v6237_v36, %v6229_v35  ;;  %v8705_v36 = vsel %vm1729_vm0, %v18268_v25, -inf  ;;  %v15762_v35 = vpop.eup %15761 }
0x1f87   : > { %19735 = vst [vmem:[#allocation85_spill] sm:$0xff] %v18284_v37  ;;  %15765 = vpow2.f32 %v12179_v61  ;;  %v6342_v49 = vadd.f32 %v6336_v39, %v17402_v47  ;;  %v18296_v51 = vmul.f32 %v18117_v43, %v18284_v37  ;;  %v18298_v50 = vadd.f32 %v7478_v46, %v7470_v16  ;;  %v15764_v48 = vpop.eup %15763 }
0x1f88   : > { %8640 = vmax.xlane.f32.xlu1 %v8639_v20  ;;  %19733 = vst [vmem:[#allocation82_spill] sm:$0xff] %v18270_v22  ;;  %v6341_v20 = vadd.f32 %v6331_v5, %v17406_v4  ;;  %v18282_v56 = vmul.f32 %v18090_v45, %v18270_v22  ;;  %15767 = vpow2.f32 %v8652_v17  ;;  %v8714_v45 = vsub.f32 %v18100_v40, %v8704_v6 }
0x1f89   : > { %19736 = vst [vmem:[#allocation61_spill] sm:$0xff] %v18298_v50  ;;  %v5114_v61 = vadd.f32 1.0, %v15762_v35  ;;  %v12251_v53 = vmul.f32 -1.442695, %v6342_v49  ;;  %v8716_v40 = vsub.f32 %v18112_v62, %v8710_v55  ;;  %v8771_v6 = vsel %vm1729_vm0, %v18296_v51, -inf }
0x1f8a   : > { %v12250_v5 = vmul.f32 -1.442695, %v6341_v20  ;;  %v8770_v20 = vpop.xlane.xlu0 %8769  ;;  %v8718_v18 = vmul.f32 1.442695, %v8714_v45  ;;  %v18306_v39 = vmul.f32 %v18117_v43, %v18298_v50  ;;  %v5116_v28 = vadd.f32 1.0, %v15764_v48 }
0x1f8b   : > { %v12322_v17 = vmul.f32 -1.442695, %v7582_v23  ;;  %v8780_v4 = vsub.f32 %v18124_v41, %v8770_v20 }
0x1f8c   : > { %8646 = vmax.xlane.f32.xlu1 %v8645_v30  ;;  %v8711_v30 = vsel %vm1729_vm0, %v18282_v56, -inf  ;;  %15769 = vpow2.f32 %v12250_v5  ;;  %v8777_v62 = vsel %vm1729_vm0, %v18306_v39, -inf }
0x1f8d   : > { %15771 = vpow2.f32 %v8656_v54  ;;  %v8784_v35 = vmul.f32 1.442695, %v8780_v4 }
0x1f8e   : > { %15773 = vrcp.f32 %v5114_v61  ;;  %v8776_v46 = vpop.xlane.xlu0 %8775 }
0x1f8f   : > { %15775 = vpow2.f32 %v12251_v53  ;;  %v8782_v49 = vsub.f32 %v18132_v34, %v8776_v46 }
0x1f90   : > { %8706 = vmax.xlane.f32.xlu1 %v8705_v36  ;;  %15777 = vpow2.f32 %v8718_v18  ;;  %v8722_v36 = vmul.f32 1.442695, %v8716_v40 }
0x1f91   : > { %v15766_v52 = vpop.eup %15765  ;;  %15779 = vrcp.f32 %v5116_v28  ;;  %v8788_v45 = vmul.f32 1.442695, %v8782_v49 }
0x1f92   : > { %v18311_v55 = vpop.eup %15767  ;;  %v5117_v43 = vadd.f32 1.0, %v15766_v52  ;;  %15781 = vpow2.f32 %v12322_v17  ;;  %v19737_v52 = vld [vmem:[#allocation69_spill] sm:$0xff] }
0x1f93   : > { %15783 = vpow2.f32 %v8722_v36  ;;  %v8660_v7 = vsel %vm1729_vm0, %v18311_v55, 0.0 }
0x1f94   : > { %8712 = vmax.xlane.f32.xlu1 %v8711_v30  ;;  %15785 = vrcp.f32 %v5117_v43 }
0x1f95   : > { %15787 = vpow2.f32 %v8784_v35 }
0x1f96   : > { %v15770_v5 = vpop.eup %15769 }
0x1f97   : > { %v18316_v16 = vpop.eup %15771  ;;  %v6357_v41 = vadd.f32 1.0, %v15770_v5 }
0x1f98   : > { %8772 = vmax.xlane.f32.xlu1 %v8771_v6  ;;  %v15774_v54 = vpop.eup %15773  ;;  %v8666_v48 = vsel %vm1729_vm0, %v18316_v16, 0.0 }
0x1f99   : > { %v15776_v30 = vpop.eup %15775  ;;  %15789 = vrcp.f32 %v6357_v41  ;;  %v5130_v18 = vsub.f32 1.0, %v15774_v54 }
0x1f9a   : > { %v18320_v61 = vpop.eup %15777  ;;  %v6358_v53 = vadd.f32 1.0, %v15776_v30  ;;  %15791 = vpow2.f32 %v8788_v45  ;;  %v18339_v30 = vstv %s12425_s4  ;;  %s12427_s4 = sld [smem:[#allocation2 + $0x102]] }
0x1f9b   : > { %v15780_v34 = vpop.eup %15779  ;;  %v8726_v23 = vsel %vm1729_vm0, %v18320_v61, 0.0  ;;  %v5134_v36 = vmul.f32 %v19737_v52, %v5130_v18 }
0x1f9c   : > { %8778 = vmax.xlane.f32.xlu1 %v8777_v62  ;;  %v15782_v20 = vpop.eup %15781  ;;  %15793 = vrcp.f32 %v6358_v53  ;;  %v5132_v4 = vsub.f32 1.0, %v15780_v34  ;;  %v5126_v62 = vmul.f32 %v15774_v54, %v17137_v63  ;;  %v19740_v53 = vld [vmem:[#allocation72_spill] sm:$0xff] }
0x1f9d   : > { %v18324_v40 = vpop.eup %15783  ;;  %v7598_v6 = vadd.f32 1.0, %v15782_v20 }
0x1f9e   : > { %v15786_v28 = vpop.eup %15785  ;;  %v8732_v17 = vsel %vm1729_vm0, %v18324_v40, 0.0  ;;  %v18334_v49 = vadd.f32 %v5134_v36, %v5126_v62  ;;  %v19743_v62 = vld [vmem:[#allocation88_spill] sm:$0xff] }
0x1f9f   : > { %v18329_v46 = vpop.eup %15787  ;;  %15795 = vrcp.f32 %v7598_v6  ;;  %v5133_v43 = vsub.f32 1.0, %v15786_v28  ;;  %v5129_v52 = vmul.f32 %v15786_v28, %v17153_v15 }
0x1fa0   : > { %8661 = vadd.xlane.f32.xlu1 %v8660_v7  ;;  %v8792_v35 = vsel %vm1729_vm0, %v18329_v46, 0.0  ;;  %19738 = vst [vmem:[#allocation74_spill] sm:$0xff] %v18334_v49  ;;  %v19739_v7 = vld [vmem:[#allocation71_spill] sm:$0xff] }
0x1fa1   : > { %v5136_v41 = vmul.f32 %v19739_v7, %v5132_v4  ;;  %v5137_v20 = vmul.f32 %v19740_v53, %v5133_v43 }
0x1fa3   : > { %v15790_v5 = vpop.eup %15789  ;;  %v18352_v36 = vadd.f32 %v5137_v20, %v5129_v52  ;;  %v19745_v20 = vld [vmem:[#allocation89_spill] sm:$0xff] }
0x1fa4   : > { %8667 = vadd.xlane.f32.xlu1 %v8666_v48  ;;  %v18337_v45 = vpop.eup %15791  ;;  %v5128_v48 = vmul.f32 %v15780_v34, %v17151_v0  ;;  %v6373_v6 = vsub.f32 1.0, %v15790_v5 }
0x1fa5   : > { %v8798_v54 = vsel %vm1729_vm0, %v18337_v45, 0.0  ;;  %19742 = vst [vmem:[#allocation62_spill] sm:$0xff] %v18352_v36  ;;  %v18364_v28 = vmul.f32 %v18339_v30, %v18352_v36 }
0x1fa6   : > { %v18349_v18 = vadd.f32 %v5136_v41, %v5128_v48  ;;  %v6377_v43 = vmul.f32 %v19743_v62, %v6373_v6  ;;  %v6369_v41 = vmul.f32 %v15790_v5, %v17151_v0  ;;  %v18372_v62 = vstv %s12426_s18 }
0x1fa7   : > { %v9176_v5 = vsel %vm1729_vm0, %v18364_v28, -inf }
0x1fa8   : > { %8727 = vadd.xlane.f32.xlu1 %v8726_v23  ;;  %v18347_v23 = vmul.f32 %v18339_v30, %v18334_v49  ;;  %19741 = vst [vmem:[#allocation76_spill] sm:$0xff] %v18349_v18  ;;  %v18358_v4 = vmul.f32 %v18339_v30, %v18349_v18  ;;  %v18368_v53 = vadd.f32 %v6377_v43, %v6369_v41 }
0x1faa   : > { %v9167_v34 = vsel %vm1729_vm0, %v18347_v23, -inf  ;;  %v9173_v48 = vsel %vm1729_vm0, %v18358_v4, -inf  ;;  %19744 = vst [vmem:[#allocation77_spill] sm:$0xff] %v18368_v53 }
0x1fac   : > { %8733 = vadd.xlane.f32.xlu1 %v8732_v17  ;;  %v15794_v17 = vpop.eup %15793 }
0x1fad   : > { %v15796_v7 = vpop.eup %15795  ;;  %v6370_v6 = vmul.f32 %v15794_v17, %v17153_v15 }
0x1fae   : > { %v7614_v52 = vsub.f32 1.0, %v15796_v7 }
0x1fb0   : > { %8793 = vadd.xlane.f32.xlu1 %v8792_v35  ;;  %v6374_v35 = vsub.f32 1.0, %v15794_v17  ;;  %v7618_v43 = vmul.f32 %v18144_v13, %v7614_v52 }
0x1fb4   : > { %8799 = vadd.xlane.f32.xlu1 %v8798_v54  ;;  %v6378_v54 = vmul.f32 %v19745_v20, %v6374_v35  ;;  %v7610_v35 = vmul.f32 %v15796_v7, %v17151_v0  ;;  %v18392_v20 = vstv %s12427_s4  ;;  %v18403_v7 = vld [vmem:[%s19746_s2] sm:$0x7] }
0x1fb6   : > { %v18380_v36 = vadd.f32 %v6378_v54, %v6370_v6 }
0x1fb8   : > { %9168 = vmax.xlane.f32.xlu1 %v9167_v34  ;;  %v18378_v34 = vmul.f32 %v18372_v62, %v18368_v53  ;;  %19747 = vst [vmem:[#allocation75_spill] sm:$0xff] %v18380_v36  ;;  %v18388_v41 = vmul.f32 %v18372_v62, %v18380_v36 }
0x1fba   : > { %v9239_v17 = vsel %vm1729_vm0, %v18378_v34, -inf  ;;  %v9242_v54 = vsel %vm1729_vm0, %v18388_v41, -inf }
0x1fbc   : > { %9174 = vmax.xlane.f32.xlu1 %v9173_v48  ;;  %v18390_v48 = vadd.f32 %v7618_v43, %v7610_v35 }
0x1fbe   : > { %19748 = vst [vmem:[#allocation78_spill] sm:$0xff] %v18390_v48  ;;  %v18398_v13 = vmul.f32 %v18392_v20, %v18390_v48 }
0x1fc0   : > { %9177 = vmax.xlane.f32.xlu1 %v9176_v5  ;;  %v9305_v0 = vsel %vm1729_vm0, %v18398_v13, -inf }
0x1fc4   : > { %9240 = vmax.xlane.f32.xlu1 %v9239_v17 }
0x1fc8   : > { %9243 = vmax.xlane.f32.xlu1 %v9242_v54 }
0x1fcc   : > { %9306 = vmax.xlane.f32.xlu1 %v9305_v0 }
0x1ff9   : > { %v8095_v52 = vpop.xlane.xlu1 %8094 }
0x1ffa   : > { %v8096_v6 = vadd.f32 %v8095_v52, %v18403_v7 }
0x1ffc   : > { %15797 = vtanh.f32 %v8096_v6 }
0x1ffd   : > { %v8134_v48 = vpop.xlane.xlu1 %8133  ;;  %15799 = vrcp.f32 %v18176_v33 }
0x1ffe   : > { %15801 = vrcp.f32 %v18185_v1 }
0x1fff   : > { %15803 = vrcp.f32 %v18190_v11 }
0x2000   : > { %15805 = vrcp.f32 %v18196_v57 }
0x2001   : > { %v8140_v36 = vpop.xlane.xlu1 %8139  ;;  %15807 = vrcp.f32 %v8134_v48 }
0x2002   : > { %15809 = vrcp.f32 %v8140_v36 }
0x2003   : > { %15811 = vrcp.f32 %v18203_v32 }
0x2005   : > { %v8200_v54 = vpop.xlane.xlu1 %8199 }
0x2006   : > { %v15798_v5 = vpop.eup %15797  ;;  %15813 = vrcp.f32 %v8200_v54 }
0x2007   : > { %v8098_v43 = vmax.f32 %v15798_v5, 0.0  ;;  %v15800_v6 = vpop.eup %15799 }
0x2008   : > { %v15802_v5 = vpop.eup %15801  ;;  %v8145_v36 = vmul.f32 %v15800_v6, %v17946_v27 }
0x2009   : > { %15301 = vpush %v8098_v43  ;;  %v8215_v35 = vrot.slane %v8098_v43, 1  ;;  %v8281_v17 = vrot.slane %v8098_v43, 2  ;;  %v8206_v53 = vpop.xlane.xlu1 %8205  ;;  %v15804_v33 = vpop.eup %15803 }
0x200a   : > { %15815 = vrcp.f32 %v8206_v53  ;;  %v15806_v1 = vpop.eup %15805  ;;  %v8147_v53 = vmul.f32 %v15802_v5, %v17950_v26  ;;  %v8211_v54 = vmul.f32 %v15804_v33, %v17965_v44  ;;  %v19749_v44 = vld [vmem:[#allocation95_spill] sm:$0xff] }
0x200b   : > { %15303 = vpush %v8215_v35  ;;  %15817 = vrcp.f32 %v18209_v3  ;;  %v15808_v43 = vpop.eup %15807 }
0x200c   : > { %15305 = vpush %v8281_v17  ;;  %v15810_v11 = vpop.eup %15809  ;;  %v8146_v32 = vmul.f32 %v15808_v43, %v18194_v59  ;;  %v19751_v43 = vld [vmem:[#allocation98_spill] sm:$0xff] }
0x200d   : > { %v8266_v0 = vpop.xlane.xlu1 %8265  ;;  %v15812_v35 = vpop.eup %15811  ;;  %v8148_v48 = vmul.f32 %v15810_v11, %v18201_v2 }
0x200e   : > { %15819 = vrcp.f32 %v8266_v0  ;;  %v8213_v0 = vmul.f32 %v15806_v1, %v17973_v60  ;;  %v8277_v2 = vmul.f32 %v15812_v35, %v18052_v19  ;;  %v19750_v60 = vld [vmem:[#allocation99_spill] sm:$0xff]  ;;  %v19755_v35 = vld [vmem:[#allocation66_spill] sm:$0xff] }
0x2010   : > { %v15814_v57 = vpop.eup %15813 }
0x2011   : > { %v8272_v52 = vpop.xlane.xlu1 %8271  ;;  %v8212_v27 = vmul.f32 %v15814_v57, %v18207_v31  ;;  %v19752_v31 = vld [vmem:[#allocation64_spill] sm:$0xff] }
0x2012   : > { %15821 = vrcp.f32 %v8272_v52 }
0x2014   : > { %v15816_v17 = vpop.eup %15815 }
0x2015   : > { %v15818_v52 = vpop.eup %15817  ;;  %v8214_v59 = vmul.f32 %v15816_v17, %v18213_v21  ;;  %v19753_v21 = vld [vmem:[#allocation63_spill] sm:$0xff] }
0x2018   : > { %v15820_v22 = vpop.eup %15819 }
0x201c   : > { %v15822_v6 = vpop.eup %15821 }
0x203a   : > { %s15302_s18 = spop %15301 }
0x203b   : > { %v8151_v3 = vstv %s15302_s18 }
0x203c   : > { %v8153_v18 = vmul.f32 %v8151_v3, %v8145_v36  ;;  %v8154_v49 = vmul.f32 %v8151_v3, %v8146_v32  ;;  %v8155_v50 = vmul.f32 %v8151_v3, %v8147_v53  ;;  %v8156_v37 = vmul.f32 %v8151_v3, %v8148_v48  ;;  %s15304_s4 = spop %15303  ;;  %v19754_v3 = vld [vmem:[#allocation67_spill] sm:$0xff] }
0x203d   : > { %v8217_v26 = vstv %s15304_s4  ;;  %s15306_s18 = spop %15305 }
0x203e   : > { %v8157_v5 = vadd.f32 %v8153_v18, %v17916_v29  ;;  %v8158_v33 = vadd.f32 %v8154_v49, %v19749_v44  ;;  %v8159_v1 = vadd.f32 %v8155_v50, %v19750_v60  ;;  %v8160_v11 = vadd.f32 %v8156_v37, %v19751_v43  ;;  %v19756_v49 = vld [vmem:[#allocation101_spill] sm:$0xff] }
0x203f   : > { %v8219_v36 = vmul.f32 %v8217_v26, %v8211_v54  ;;  %v8220_v32 = vmul.f32 %v8217_v26, %v8212_v27  ;;  %v8221_v53 = vmul.f32 %v8217_v26, %v8213_v0  ;;  %v8222_v48 = vmul.f32 %v8217_v26, %v8214_v59 }
0x2040   : > { %v8161_v57 = vadd.f32 %v8157_v5, %v19752_v31  ;;  %v8162_v17 = vadd.f32 %v8158_v33, %v19753_v21  ;;  %v8163_v19 = vadd.f32 %v8159_v1, %v19754_v3  ;;  %v8164_v10 = vadd.f32 %v8160_v11, %v19755_v35  ;;  %v19757_v33 = vld [vmem:[#allocation81_spill] sm:$0xff]  ;;  %v19758_v1 = vld [vmem:[#allocation80_spill] sm:$0xff] }
0x2041   : > { %v8278_v29 = vmul.f32 %v15820_v22, %v18223_v12  ;;  %v8279_v18 = vmul.f32 %v15818_v52, %v19756_v49  ;;  %v8280_v50 = vmul.f32 %v15822_v6, %v18234_v8  ;;  %v8283_v37 = vstv %s15306_s18  ;;  %v19759_v11 = vld [vmem:[#allocation84_spill] sm:$0xff]  ;;  %v19760_v12 = vld [vmem:[#allocation83_spill] sm:$0xff]  ;;  %v18458_v49 = vld [vmem:[%s19695_s1 + $0x10] sm:$0xff] }
0x2042   : > { %v8223_v44 = vadd.f32 %v8219_v36, %v8161_v57  ;;  %v8224_v54 = vadd.f32 %v8220_v32, %v8162_v17  ;;  %v8225_v27 = vadd.f32 %v8221_v53, %v8163_v19  ;;  %v8226_v0 = vadd.f32 %v8222_v48, %v8164_v10  ;;  %v19761_v10 = vld [vmem:[#allocation94_spill] sm:$0xff]  ;;  %v19762_v32 = vld [vmem:[#allocation93_spill] sm:$0xff]  ;;  %v19764_v17 = vld [vmem:[#allocation96_spill] sm:$0xff] }
0x2043   : > { %v8285_v59 = vmul.f32 %v8283_v37, %v8277_v2  ;;  %v8286_v26 = vmul.f32 %v8283_v37, %v8278_v29  ;;  %v8287_v5 = vmul.f32 %v8283_v37, %v8279_v18  ;;  %v8288_v60 = vmul.f32 %v8283_v37, %v8280_v50  ;;  %v19763_v48 = vld [vmem:[#allocation97_spill] sm:$0xff]  ;;  %v18463_v18 = vld [vmem:[%s19695_s1 + $0x18] sm:$0xff]  ;;  %v18468_v50 = vld [vmem:[%s19695_s1 + $0x20] sm:$0xff] }
0x2044   : > { %v8227_v43 = vadd.f32 %v8223_v44, %v19757_v33  ;;  %v8228_v31 = vadd.f32 %v8224_v54, %v19758_v1  ;;  %v8229_v21 = vadd.f32 %v8225_v27, %v19759_v11  ;;  %v8230_v22 = vadd.f32 %v8226_v0, %v19760_v12  ;;  %v18453_v29 = vld [vmem:[%s19695_s1 + $0x8] sm:$0xff]  ;;  %v18478_v44 = vld [vmem:[%s19695_s1 + $0x30] sm:$0xff]  ;;  %v18483_v54 = vld [vmem:[%s19695_s1 + $0x38] sm:$0xff] }
0x2045   : > { %v18473_v37 = vld [vmem:[%s19695_s1 + $0x28] sm:$0xff]  ;;  %19766 = vst [vmem:[#allocation69_spill] sm:$0xff] %v18478_v44  ;;  %19767 = vst [vmem:[#allocation71_spill] sm:$0xff] %v18483_v54  ;;  %v18488_v27 = vld [vmem:[%s19695_s1 + $0x40] sm:$0xff] }
0x2046   : > { %v8289_v52 = vadd.f32 %v8285_v59, %v8227_v43  ;;  %v8290_v8 = vadd.f32 %v8286_v26, %v8228_v31  ;;  %v8291_v6 = vadd.f32 %v8287_v5, %v8229_v21  ;;  %v8292_v36 = vadd.f32 %v8288_v60, %v8230_v22  ;;  %19765 = vst [vmem:[#allocation92_spill] sm:$0xff] %v18473_v37  ;;  %v18493_v0 = vld [vmem:[%s19695_s1 + $0x48] sm:$0xff]  ;;  %v18498_v59 = vld [vmem:[%s19695_s1 + $0x50] sm:$0xff]  ;;  %v18503_v26 = vld [vmem:[%s19695_s1 + $0x58] sm:$0xff] }
0x2047   : > { %19768 = vst [vmem:[#allocation72_spill] sm:$0xff] %v18488_v27  ;;  %19769 = vst [vmem:[#allocation88_spill] sm:$0xff] %v18493_v0  ;;  %v18508_v5 = vld [vmem:[%s19695_s1 + $0x60] sm:$0xff]  ;;  %v18513_v60 = vld [vmem:[%s19695_s1 + $0x68] sm:$0xff] }
0x2048   : > { %v18437_v2 = vadd.f32 %v8289_v52, %v19761_v10  ;;  %v18440_v53 = vadd.f32 %v8290_v8, %v19762_v32  ;;  %v18443_v57 = vadd.f32 %v8291_v6, %v19763_v48  ;;  %v18446_v3 = vadd.f32 %v8292_v36, %v19764_v17  ;;  %19770 = vst [vmem:[#allocation89_spill] sm:$0xff] %v18498_v59  ;;  %v18518_v33 = vld [vmem:[%s19695_s1 + $0x70] sm:$0xff]  ;;  %v18523_v43 = vld [vmem:[%s19695_s1 + $0x78] sm:$0xff]  ;;  %v18528_v1 = vld [vmem:[%s19695_s1 + $0x80] sm:$0xff] }
0x2049   : > { %19771 = vst [vmem:[#allocation95_spill] sm:$0xff] %v18503_v26  ;;  %19772 = vst [vmem:[#allocation99_spill] sm:$0xff] %v18508_v5  ;;  %v18533_v31 = vld [vmem:[%s19695_s1 + $0x88] sm:$0xff]  ;;  %v18538_v11 = vld [vmem:[%s19695_s1 + $0x90] sm:$0xff] }
0x204a   : > { %v15029_v19 = vpack.c.bf16 %v18440_v53, %v18437_v2  ;;  %v15033_v35 = vpack.c.bf16 %v18446_v3, %v18443_v57  ;;  %19773 = vst [vmem:[#allocation98_spill] sm:$0xff] %v18513_v60  ;;  %19774 = vst [vmem:[#allocation64_spill] sm:$0xff] %v18518_v33  ;;  %v18543_v21 = vld [vmem:[%s19695_s1 + $0x98] sm:$0xff]  ;;  %v18548_v12 = vld [vmem:[%s19695_s1 + $0xa0] sm:$0xff] }
0x204b   : > { %19775 = vst [vmem:[#allocation63_spill] sm:$0xff] %v18523_v43  ;;  %19776 = vst [vmem:[#allocation67_spill] sm:$0xff] %v18528_v1  ;;  %v18553_v22 = vld [vmem:[%s19695_s1 + $0xa8] sm:$0xff]  ;;  %v18558_v52 = vld [vmem:[%s19695_s1 + $0xb0] sm:$0xff] }
0x204c   : > { %15030 = vmatprep.subr.bf16.mxu0 %v15029_v19  ;;  %19777 = vst [vmem:[#allocation66_spill] sm:$0xff] %v18533_v31  ;;  %19778 = vst [vmem:[#allocation101_spill] sm:$0xff] %v18538_v11  ;;  %v18563_v8 = vld [vmem:[%s19695_s1 + $0xb8] sm:$0xff]  ;;  %v18568_v6 = vld [vmem:[%s19695_s1 + $0xc0] sm:$0xff] }
0x204d   : > { %15032 = vmatpush3.bf16.msra.mxu0 %v15029_v19  ;;  %19779 = vst [vmem:[#allocation81_spill] sm:$0xff] %v18543_v21  ;;  %19780 = vst [vmem:[#allocation80_spill] sm:$0xff] %v18548_v12  ;;  %v18573_v36 = vld [vmem:[%s19695_s1 + $0xc8] sm:$0xff]  ;;  %v18578_v10 = vld [vmem:[%s19695_s1 + $0xd0] sm:$0xff] }
0x204e   : > { %15034 = vmatprep.subr.bf16.mxu0 %v15033_v35  ;;  %19781 = vst [vmem:[#allocation84_spill] sm:$0xff] %v18553_v22  ;;  %19782 = vst [vmem:[#allocation83_spill] sm:$0xff] %v18558_v52  ;;  %v18583_v32 = vld [vmem:[%s19695_s1 + $0xd8] sm:$0xff]  ;;  %v18588_v48 = vld [vmem:[%s19695_s1 + $0xe0] sm:$0xff] }
0x204f   : > { %19783 = vst [vmem:[#allocation94_spill] sm:$0xff] %v18563_v8  ;;  %19784 = vst [vmem:[#allocation93_spill] sm:$0xff] %v18568_v6  ;;  %v18593_v17 = vld [vmem:[%s19695_s1 + $0xe8] sm:$0xff]  ;;  %v18598_v19 = vld [vmem:[%s19695_s1 + $0xf0] sm:$0xff] }
0x2050   : > { %19785 = vst [vmem:[#allocation97_spill] sm:$0xff] %v18573_v36  ;;  %19786 = vst [vmem:[#allocation96_spill] sm:$0xff] %v18578_v10 }
0x2051   : > { %15036 = vmatpush3.bf16.msra.mxu0 %v15033_v35  ;;  %19787 = vst [vmem:[#allocation114_spill] sm:$0xff] %v18583_v32  ;;  %19788 = vst [vmem:[#allocation115_spill] sm:$0xff] %v18588_v48  ;;  %v18603_v35 = vld [vmem:[%s19695_s1 + $0xf8] sm:$0xff] }
0x2052   : > { %19789 = vst [vmem:[#allocation116_spill] sm:$0xff] %v18593_v17  ;;  %19790 = vst [vmem:[#allocation117_spill] sm:$0xff] %v18598_v19 }
0x2053   : > { %19791 = vst [vmem:[#allocation118_spill] sm:$0xff] %v18603_v35 }
0x2054   : > { %14168 = vmatmul.mubr.msk.f32.vlgmr.msra.gmra.mrb[98].mxu0 %vm1729_vm0, %v18453_v29 }
0x2055   : > { %14170 = vmatprep.mubr.msk.f32.mxu0 %vm1729_vm0, %v18458_v49 }
0x2058   : > { %14171 = vmatmul.mubr.msk.f32.gmra.mrb[100].mxu0 %vm1729_vm0, %v18463_v18 }
0x2059   : > { %14173 = vmatprep.mubr.msk.f32.mxu0 %vm1729_vm0, %v18468_v50 }
0x205c   : > { %14174 = vmatmul.mubr.msk.f32.gmra.mrb[102].mxu0 %vm1729_vm0, %v18473_v37 }
0x205d   : > { %14176 = vmatprep.mubr.msk.f32.mxu0 %vm1729_vm0, %v18478_v44 }
0x2060   : > { %14177 = vmatmul.mubr.msk.f32.gmra.mrb[104].mxu0 %vm1729_vm0, %v18483_v54 }
0x2061   : > { %14179 = vmatprep.mubr.msk.f32.mxu0 %vm1729_vm0, %v18488_v27 }
0x2064   : > { %14180 = vmatmul.mubr.msk.f32.gmra.mrb[106].mxu0 %vm1729_vm0, %v18493_v0 }
0x2065   : > { %14182 = vmatprep.mubr.msk.f32.mxu0 %vm1729_vm0, %v18498_v59 }
0x2068   : > { %14183 = vmatmul.mubr.msk.f32.gmra.mrb[108].mxu0 %vm1729_vm0, %v18503_v26 }
0x2069   : > { %14185 = vmatprep.mubr.msk.f32.mxu0 %vm1729_vm0, %v18508_v5 }
0x206c   : > { %14186 = vmatmul.mubr.msk.f32.gmra.mrb[110].mxu0 %vm1729_vm0, %v18513_v60 }
0x206d   : > { %14188 = vmatprep.mubr.msk.f32.mxu0 %vm1729_vm0, %v18518_v33 }
0x2070   : > { %14189 = vmatmul.mubr.msk.f32.gmra.mrb[112].mxu0 %vm1729_vm0, %v18523_v43 }
0x2071   : > { %14191 = vmatprep.mubr.msk.f32.mxu0 %vm1729_vm0, %v18528_v1 }
0x2074   : > { %14192 = vmatmul.mubr.msk.f32.gmra.mrb[114].mxu0 %vm1729_vm0, %v18533_v31 }
0x2075   : > { %14194 = vmatprep.mubr.msk.f32.mxu0 %vm1729_vm0, %v18538_v11 }
0x2078   : > { %14195 = vmatmul.mubr.msk.f32.gmra.mrb[116].mxu0 %vm1729_vm0, %v18543_v21 }
0x2079   : > { %14197 = vmatprep.mubr.msk.f32.mxu0 %vm1729_vm0, %v18548_v12 }
0x207c   : > { %14198 = vmatmul.mubr.msk.f32.gmra.mrb[118].mxu0 %vm1729_vm0, %v18553_v22 }
0x207d   : > { %14200 = vmatprep.mubr.msk.f32.mxu0 %vm1729_vm0, %v18558_v52 }
0x2080   : > { %14201 = vmatmul.mubr.msk.f32.gmra.mrb[120].mxu0 %vm1729_vm0, %v18563_v8 }
0x2081   : > { %14203 = vmatprep.mubr.msk.f32.mxu0 %vm1729_vm0, %v18568_v6 }
0x2084   : > { %14204 = vmatmul.mubr.msk.f32.gmra.mrb[122].mxu0 %vm1729_vm0, %v18573_v36 }
0x2085   : > { %14206 = vmatprep.mubr.msk.f32.mxu0 %vm1729_vm0, %v18578_v10 }
0x2088   : > { %14207 = vmatmul.mubr.msk.f32.gmra.mrb[124].mxu0 %vm1729_vm0, %v18583_v32  ;;  %v19792_v32 = vld [vmem:[#allocation103_spill] sm:$0xff] }
0x2089   : > { %14209 = vmatprep.mubr.msk.f32.mxu0 %vm1729_vm0, %v18588_v48 }
0x208c   : > { %14210 = vmatmul.mubr.msk.f32.gmra.mrb[126].mxu0 %vm1729_vm0, %v18593_v17 }
0x208d   : > { %14212 = vmatprep.mubr.msk.f32.mxu0 %vm1729_vm0, %v18598_v19 }
0x2090   : > { %14213 = vmatmul.mubr.msk.f32.gmra.mrb[128].mxu0 %vm1729_vm0, %v18603_v35 }
0x2091   : > { %9149 = vmatprep.mubr.f32.mxu0 %v19792_v32 }
0x2127   : > { %v14169_v10 = vpop.f32.mrb[98].mxu0 }
0x2128   : > { %v8523_v36 = vmax.f32 %v14169_v10, 0.0  ;;  %v8363_v48 = vpop.f32.mrb[99].mxu0 }
0x2129   : > { %v8522_v6 = vmax.f32 %v8363_v48, 0.0 }
0x212b   : > { %v15039_v8 = vpack.c.bf16 %v8523_v36, %v8522_v6  ;;  %v14172_v52 = vpop.f32.mrb[100].mxu0 }
0x212c   : > { %v8525_v22 = vmax.f32 %v14172_v52, 0.0  ;;  %v8373_v17 = vpop.f32.mrb[101].mxu0 }
0x212d   : > { %v8524_v12 = vmax.f32 %v8373_v17, 0.0 }
0x212f   : > { %v15043_v21 = vpack.c.bf16 %v8525_v22, %v8524_v12  ;;  %v14175_v11 = vpop.f32.mrb[102].mxu0 }
0x2130   : > { %v8527_v31 = vmax.f32 %v14175_v11, 0.0  ;;  %v8383_v19 = vpop.f32.mrb[103].mxu0 }
0x2131   : > { %v8526_v1 = vmax.f32 %v8383_v19, 0.0 }
0x2133   : > { %v15047_v43 = vpack.c.bf16 %v8527_v31, %v8526_v1  ;;  %v14178_v33 = vpop.f32.mrb[104].mxu0 }
0x2134   : > { %v8529_v60 = vmax.f32 %v14178_v33, 0.0  ;;  %v8393_v35 = vpop.f32.mrb[105].mxu0 }
0x2135   : > { %v8528_v5 = vmax.f32 %v8393_v35, 0.0 }
0x2137   : > { %v15051_v32 = vpack.c.bf16 %v8529_v60, %v8528_v5  ;;  %v14181_v26 = vpop.f32.mrb[106].mxu0 }
0x2138   : > { %v8531_v10 = vmax.f32 %v14181_v26, 0.0  ;;  %v8403_v59 = vpop.f32.mrb[107].mxu0 }
0x2139   : > { %v8530_v48 = vmax.f32 %v8403_v59, 0.0 }
0x213b   : > { %v15055_v6 = vpack.c.bf16 %v8531_v10, %v8530_v48  ;;  %v14184_v36 = vpop.f32.mrb[108].mxu0 }
0x213c   : > { %v8533_v52 = vmax.f32 %v14184_v36, 0.0  ;;  %v8413_v0 = vpop.f32.mrb[109].mxu0 }
0x213d   : > { %v8532_v17 = vmax.f32 %v8413_v0, 0.0 }
0x213f   : > { %v15059_v12 = vpack.c.bf16 %v8533_v52, %v8532_v17  ;;  %v14187_v22 = vpop.f32.mrb[110].mxu0 }
0x2140   : > { %v8535_v11 = vmax.f32 %v14187_v22, 0.0  ;;  %v8423_v27 = vpop.f32.mrb[111].mxu0 }
0x2141   : > { %v8534_v19 = vmax.f32 %v8423_v27, 0.0 }
0x2143   : > { %v15063_v1 = vpack.c.bf16 %v8535_v11, %v8534_v19  ;;  %v14190_v31 = vpop.f32.mrb[112].mxu0 }
0x2144   : > { %v8537_v33 = vmax.f32 %v14190_v31, 0.0  ;;  %v8433_v54 = vpop.f32.mrb[113].mxu0 }
0x2145   : > { %v8536_v35 = vmax.f32 %v8433_v54, 0.0 }
0x2147   : > { %v15067_v5 = vpack.c.bf16 %v8537_v33, %v8536_v35  ;;  %v14193_v60 = vpop.f32.mrb[114].mxu0 }
0x2148   : > { %v8539_v26 = vmax.f32 %v14193_v60, 0.0  ;;  %v8443_v44 = vpop.f32.mrb[115].mxu0 }
0x2149   : > { %v8538_v59 = vmax.f32 %v8443_v44, 0.0 }
0x214b   : > { %v15037_v10 = vpack.c.bf16 %v8539_v26, %v8538_v59  ;;  %v14196_v48 = vpop.f32.mrb[116].mxu0 }
0x214c   : > { %v8541_v36 = vmax.f32 %v14196_v48, 0.0  ;;  %v8453_v37 = vpop.f32.mrb[117].mxu0 }
0x214d   : > { %v8540_v0 = vmax.f32 %v8453_v37, 0.0  ;;  %15038 = vmatprep.subr.bf16.mxu1 %v15037_v10 }
0x214e   : > { %15040 = vmatpush3.bf16.msra.mxu1 %v15039_v8 }
0x214f   : > { %v15041_v52 = vpack.c.bf16 %v8541_v36, %v8540_v0  ;;  %v14199_v17 = vpop.f32.mrb[118].mxu0 }
0x2150   : > { %v8543_v27 = vmax.f32 %v14199_v17, 0.0  ;;  %v8463_v22 = vpop.f32.mrb[119].mxu0 }
0x2151   : > { %v8542_v11 = vmax.f32 %v8463_v22, 0.0  ;;  %15042 = vmatprep.subr.bf16.mxu1 %v15041_v52 }
0x2152   : > { %15044 = vmatpush3.bf16.msra.mxu1 %v15043_v21 }
0x2153   : > { %v15045_v54 = vpack.c.bf16 %v8543_v27, %v8542_v11  ;;  %v14202_v19 = vpop.f32.mrb[120].mxu0 }
0x2154   : > { %v8545_v31 = vmax.f32 %v14202_v19, 0.0  ;;  %v8473_v33 = vpop.f32.mrb[121].mxu0 }
0x2155   : > { %v8544_v35 = vmax.f32 %v8473_v33, 0.0  ;;  %15046 = vmatprep.subr.bf16.mxu1 %v15045_v54  ;;  %v16103_v33 = vld [vmem:[%s19695_s1] sm:$0xff] }
0x2156   : > { %15048 = vmatpush3.bf16.msra.mxu1 %v15047_v43 }
0x2157   : > { %v15049_v44 = vpack.c.bf16 %v8545_v31, %v8544_v35  ;;  %v14205_v60 = vpop.f32.mrb[122].mxu0  ;;  %v8641_v35 = vpop.xlane.xlu1 %8640 }
0x2158   : > { %v8547_v26 = vmax.f32 %v14205_v60, 0.0  ;;  %v8483_v37 = vpop.f32.mrb[123].mxu0 }
0x2159   : > { %v8546_v59 = vmax.f32 %v8483_v37, 0.0  ;;  %15050 = vmatprep.subr.bf16.mxu1 %v15049_v44 }
0x215a   : > { %15052 = vmatpush3.bf16.msra.mxu1 %v15051_v32 }
0x215b   : > { %v15053_v8 = vpack.c.bf16 %v8547_v26, %v8546_v59  ;;  %v14208_v10 = vpop.f32.mrb[124].mxu0  ;;  %v8647_v44 = vpop.xlane.xlu1 %8646  ;;  %v19793_v26 = vld [vmem:[#allocation73_spill] sm:$0xff] }
0x215c   : > { %v8549_v48 = vmax.f32 %v14208_v10, 0.0  ;;  %v8493_v36 = vpop.f32.mrb[125].mxu0  ;;  %v5085_v37 = vadd.f32 %v18217_v24, %v19793_v26  ;;  %v8651_v26 = vsub.f32 %v18254_v42, %v8647_v44 }
0x215d   : > { %v8548_v0 = vmax.f32 %v8493_v36, 0.0  ;;  %15054 = vmatprep.subr.bf16.mxu1 %v15053_v8  ;;  %v19794_v8 = vld [vmem:[#allocation91_spill] sm:$0xff] }
0x215e   : > { %15056 = vmatpush3.bf16.msra.mxu1 %v15055_v6  ;;  %v18609_v6 = vld [vmem:[%s19703_s3] sm:$0x77]  ;;  %s19863_s3 = smov 104  }
0x215f   : > { %v15057_v21 = vpack.c.bf16 %v8549_v48, %v8548_v0  ;;  %v14211_v52 = vpop.f32.mrb[126].mxu0  ;;  %v19795_v0 = vld [vmem:[#allocation90_spill] sm:$0xff] }
0x2160   : > { %v8551_v17 = vmax.f32 %v14211_v52, 0.0  ;;  %v8503_v27 = vpop.f32.mrb[127].mxu0 }
0x2161   : > { %v8550_v43 = vmax.f32 %v8503_v27, 0.0  ;;  %15058 = vmatprep.subr.bf16.mxu1 %v15057_v21  ;;  %v6326_v21 = vadd.f32 %v18217_v24, %v19795_v0  ;;  %v19796_v27 = vld [vmem:[#allocation112_spill] sm:$0xff] }
0x2162   : > { %15060 = vmatpush3.bf16.msra.mxu1 %v15059_v12  ;;  %v8707_v12 = vpop.xlane.xlu1 %8706 }
0x2163   : > { %v15061_v22 = vpack.c.bf16 %v8551_v17, %v8550_v43  ;;  %v14214_v11 = vpop.f32.mrb[128].mxu0  ;;  %v6340_v17 = vadd.f32 %v6326_v21, %v17391_v38  ;;  %v7562_v43 = vadd.f32 %v18217_v24, %v19796_v27 }
0x2164   : > { %v8553_v54 = vmax.f32 %v14214_v11, 0.0  ;;  %v8513_v32 = vpop.f32.mrb[129].mxu0  ;;  %v8649_v11 = vsub.f32 %v18240_v14, %v8641_v35  ;;  %v8658_v35 = vmul.f32 1.442695, %v8651_v26 }
0x2165   : > { %v8552_v19 = vmax.f32 %v8513_v32, 0.0  ;;  %15062 = vmatprep.subr.bf16.mxu1 %v15061_v22  ;;  %v7580_v32 = vadd.f32 %v7562_v43, %v17396_v58 }
0x2166   : > { %15064 = vmatpush3.bf16.msra.mxu1 %v15063_v1  ;;  %v8713_v60 = vpop.xlane.xlu1 %8712  ;;  %v5099_v1 = vadd.f32 %v5085_v37, %v17391_v38 }
0x2167   : > { %v15065_v31 = vpack.c.bf16 %v8553_v54, %v8552_v19  ;;  %v12249_v54 = vmul.f32 -1.442695, %v6340_v17  ;;  %v19797_v19 = vld [vmem:[#allocation111_spill] sm:$0xff]  ;;  %v8717_v17 = vsub.f32 %v18282_v56, %v8713_v60 }
0x2168   : > { %v12177_v10 = vmul.f32 -1.442695, %v5099_v1  ;;  %v12320_v1 = vmul.f32 -1.442695, %v7580_v32 }
0x2169   : > { %15066 = vmatprep.subr.bf16.mxu1 %v15065_v31  ;;  %v7567_v31 = vadd.f32 %v18217_v24, %v19797_v19 }
0x216a   : > { %15068 = vmatpush3.bf16.msra.mxu1 %v15067_v5  ;;  %v8773_v59 = vpop.xlane.xlu1 %8772  ;;  %v6321_v5 = vadd.f32 %v18217_v24, %v19794_v8  ;;  %15823 = vpow2.f32 %v12177_v10  ;;  %v19798_v10 = vld [vmem:[#allocation113_spill] sm:$0xff] }
0x216b   : > { %v7577_v14 = vadd.f32 %v18217_v24, %v19798_v10 }
0x216c   : > { %v6339_v48 = vadd.f32 %v6321_v5, %v17396_v58  ;;  %v7581_v5 = vadd.f32 %v7567_v31, %v17391_v38  ;;  %v8715_v58 = vsub.f32 %v18268_v25, %v8707_v12  ;;  %v8724_v12 = vmul.f32 1.442695, %v8717_v17 }
0x216d   : > { %8619 = vmatmul.mubr.f32.vlgmr.msra.gmra.mrb[124].mxu1 %v18609_v6  ;;  %v7583_v42 = vadd.f32 %v7577_v14, %v17402_v47 }
0x216e   : > { %14223 = vmatprep.mubr.msk.f32.mxu1 %vm1729_vm0, %v16103_v33  ;;  %v8779_v36 = vpop.xlane.xlu1 %8778  ;;  %v12248_v52 = vmul.f32 -1.442695, %v6339_v48  ;;  %v8654_v33 = vmul.f32 1.442695, %v8649_v11  ;;  %v12321_v21 = vmul.f32 -1.442695, %v7581_v5 }
0x216f   : > { %v12323_v43 = vmul.f32 -1.442695, %v7583_v42 }
0x2170   : > { %15825 = vpow2.f32 %v12248_v52  ;;  %v8720_v52 = vmul.f32 1.442695, %v8715_v58 }
0x2171   : > { %15827 = vpow2.f32 %v12249_v54  ;;  %v8781_v54 = vsub.f32 %v18296_v51, %v8773_v59 }
0x2172   : > { %v18625_v22 = vpop.xlane.xlu1 %8661  ;;  %15829 = vpow2.f32 %v8654_v33  ;;  %v8783_v33 = vsub.f32 %v18306_v39, %v8779_v36 }
0x2173   : > { %15831 = vpow2.f32 %v12320_v1  ;;  %v8786_v31 = vmul.f32 1.442695, %v8781_v54 }
0x2174   : > { %v15824_v8 = vpop.eup %15823  ;;  %15833 = vpow2.f32 %v8658_v35  ;;  %v8790_v5 = vmul.f32 1.442695, %v8783_v33 }
0x2175   : > { %v5115_v48 = vadd.f32 1.0, %v15824_v8 }
0x2176   : > { %v18632_v37 = vpop.xlane.xlu1 %8667 }
0x2177   : > { %15835 = vrcp.f32 %v5115_v48 }
0x2178   : > { %15837 = vpow2.f32 %v12321_v21 }
0x2179   : > { %15839 = vpow2.f32 %v8720_v52 }
0x217a   : > { %v15826_v0 = vpop.eup %15825  ;;  %v18639_v44 = vpop.xlane.xlu1 %8727 }
0x217b   : > { %v6355_v27 = vadd.f32 1.0, %v15826_v0  ;;  %v15828_v25 = vpop.eup %15827 }
0x217c   : > { %v18646_v19 = vpop.eup %15829  ;;  %v6356_v56 = vadd.f32 1.0, %v15828_v25 }
0x217d   : > { %15841 = vrcp.f32 %v6355_v27  ;;  %v15832_v60 = vpop.eup %15831  ;;  %v8663_v26 = vsel %vm1729_vm0, %v18646_v19, 0.0  ;;  %v19799_v27 = vld [vmem:[#allocation70_spill] sm:$0xff] }
0x217e   : > { %v18643_v32 = vpop.xlane.xlu1 %8733  ;;  %15843 = vpow2.f32 %v12323_v43  ;;  %v18651_v1 = vpop.eup %15833  ;;  %v7596_v51 = vadd.f32 1.0, %v15832_v60 }
0x217f   : > { %15845 = vpow2.f32 %v8724_v12  ;;  %v8669_v14 = vsel %vm1729_vm0, %v18651_v1, 0.0 }
0x2180   : > { %15847 = vrcp.f32 %v6356_v56 }
0x2181   : > { %v15836_v8 = vpop.eup %15835  ;;  %15849 = vpow2.f32 %v8786_v31  ;;  %v19800_v31 = vld [vmem:[#allocation86_spill] sm:$0xff] }
0x2182   : > { %v18653_v59 = vpop.xlane.xlu1 %8793  ;;  %v15838_v10 = vpop.eup %15837  ;;  %15851 = vrcp.f32 %v7596_v51  ;;  %v5131_v21 = vsub.f32 1.0, %v15836_v8  ;;  %v5127_v12 = vmul.f32 %v15836_v8, %v17139_v9 }
0x2183   : > { %v18657_v35 = vpop.eup %15839  ;;  %v7597_v36 = vadd.f32 1.0, %v15838_v10  ;;  %15853 = vpow2.f32 %v8790_v5  ;;  %v19801_v5 = vld [vmem:[#allocation87_spill] sm:$0xff] }
0x2184   : > { %v8729_v0 = vsel %vm1729_vm0, %v18657_v35, 0.0 }
0x2185   : > { %15855 = vrcp.f32 %v7597_v36 }
0x2186   : > { %v18659_v48 = vpop.xlane.xlu1 %8799 }
0x2187   : > { %v15842_v39 = vpop.eup %15841 }
0x2188   : > { %v15844_v58 = vpop.eup %15843  ;;  %v6371_v43 = vsub.f32 1.0, %v15842_v39  ;;  %v6367_v51 = vmul.f32 %v15842_v39, %v17137_v63 }
0x2189   : > { %v18663_v42 = vpop.eup %15845  ;;  %v7599_v52 = vadd.f32 1.0, %v15844_v58 }
0x218a   : > { %v15848_v17 = vpop.eup %15847  ;;  %v9169_v25 = vpop.xlane.xlu1 %9168  ;;  %v6375_v33 = vmul.f32 %v19800_v31, %v6371_v43 }
0x218b   : > { %15857 = vrcp.f32 %v7599_v52  ;;  %v6372_v54 = vsub.f32 1.0, %v15848_v17  ;;  %v6368_v52 = vmul.f32 %v15848_v17, %v17139_v9  ;;  %v9179_v31 = vsub.f32 %v18347_v23, %v9169_v25 }
0x218c   : > { %v18686_v58 = vadd.f32 %v6375_v33, %v6367_v51 }
0x218d   : > { %v6376_v10 = vmul.f32 %v19801_v5, %v6372_v54  ;;  %v19803_v5 = vld [vmem:[#allocation109_spill] sm:$0xff] }
0x2240   : > { %v13133_v38 = vpop.f32.mrb[124].mxu1 }
0x2241   : > { %v13134_v24 = vpop.f32.mrb[125].mxu1 }
0x2242   : > { %v13135_v11 = vadd.f32 %v13134_v24, %v13133_v38  ;;  %v8735_v38 = vsel %vm1729_vm0, %v18663_v42, 0.0  ;;  %v5135_v24 = vmul.f32 %v19799_v27, %v5131_v21  ;;  %v18695_v27 = vmul.f32 %v18372_v62, %v18686_v58 }
0x2244   : > { %v8624_v47 = vsel %vm8092_vm4, %v13135_v11, 0.0  ;;  %v18668_v11 = vpop.eup %15849  ;;  %v18673_v60 = vadd.f32 %v5135_v24, %v5127_v12  ;;  %v19802_v24 = vld [vmem:[#allocation108_spill] sm:$0xff]  ;;  %v9233_v33 = vsel %vm1729_vm0, %v18695_v27, -inf }
0x2245   : > { %8625 = vadd.xlane.f32.xlu0 %v8624_v47  ;;  %v15852_v47 = vpop.eup %15851  ;;  %v8795_v56 = vsel %vm1729_vm0, %v18668_v11, 0.0 }
0x2246   : > { %v18684_v36 = vmul.f32 %v18339_v30, %v18673_v60 }
0x2248   : > { %v9170_v39 = vsel %vm1729_vm0, %v18684_v36, -inf }
0x2249   : > { %8664 = vadd.xlane.f32.xlu0 %v8663_v26  ;;  %v18676_v26 = vpop.eup %15853 }
0x224a   : > { %v8801_v8 = vsel %vm1729_vm0, %v18676_v26, 0.0  ;;  %v15856_v21 = vpop.eup %15855 }
0x224b   : > { %v7613_v30 = vsub.f32 1.0, %v15856_v21  ;;  %v15858_v12 = vpop.eup %15857 }
0x224d   : > { %8670 = vadd.xlane.f32.xlu0 %v8669_v14  ;;  %v9175_v14 = vpop.xlane.xlu1 %9174 }
0x2251   : > { %8730 = vadd.xlane.f32.xlu0 %v8729_v0  ;;  %v7612_v0 = vsub.f32 1.0, %v15852_v47  ;;  %v9178_v54 = vpop.xlane.xlu1 %9177 }
0x2253   : > { %v7616_v43 = vmul.f32 %v19802_v24, %v7612_v0  ;;  %v7609_v0 = vmul.f32 %v15856_v21, %v17139_v9  ;;  %v9182_v21 = vsub.f32 %v18364_v28, %v9178_v54 }
0x2255   : > { %8736 = vadd.xlane.f32.xlu0 %v8735_v38  ;;  %v18689_v38 = vadd.f32 %v6376_v10, %v6368_v52  ;;  %v7617_v10 = vmul.f32 %v19803_v5, %v7613_v30  ;;  %v9183_v52 = vmul.f32 1.442695, %v9179_v31  ;;  %v9189_v31 = vmul.f32 1.442695, %v9182_v21 }
0x2257   : > { %v18702_v17 = vmul.f32 %v18372_v62, %v18689_v38  ;;  %v18717_v25 = vadd.f32 %v7617_v10, %v7609_v0  ;;  %15859 = vpow2.f32 %v9183_v52 }
0x2259   : > { %8796 = vadd.xlane.f32.xlu0 %v8795_v56  ;;  %v7608_v56 = vmul.f32 %v15852_v47, %v17137_v63  ;;  %v9181_v63 = vsub.f32 %v18358_v4, %v9175_v14  ;;  %v9241_v47 = vpop.xlane.xlu1 %9240  ;;  %v9236_v23 = vsel %vm1729_vm0, %v18702_v17, -inf  ;;  %v18726_v14 = vmul.f32 %v18392_v20, %v18717_v25 }
0x225b   : > { %v18706_v51 = vadd.f32 %v7616_v43, %v7608_v56  ;;  %v7611_v43 = vmul.f32 %v15858_v12, %v17153_v15  ;;  %v9187_v9 = vmul.f32 1.442695, %v9181_v63  ;;  %v9302_v15 = vsel %vm1729_vm0, %v18726_v14, -inf }
0x225d   : > { %8802 = vadd.xlane.f32.xlu0 %v8801_v8  ;;  %v7615_v8 = vsub.f32 1.0, %v15858_v12  ;;  %v18715_v62 = vmul.f32 %v18392_v20, %v18706_v51  ;;  %v9244_v56 = vpop.xlane.xlu1 %9243  ;;  %15861 = vpow2.f32 %v9187_v9 }
0x225e   : > { %15863 = vpow2.f32 %v9189_v31  ;;  %v9248_v54 = vsub.f32 %v18388_v41, %v9244_v56 }
0x225f   : > { %v9299_v4 = vsel %vm1729_vm0, %v18715_v62, -inf }
0x2261   : > { %9171 = vmax.xlane.f32.xlu0 %v9170_v39  ;;  %v19804_v39 = vld [vmem:[#allocation110_spill] sm:$0xff]  ;;  %v9307_v5 = vpop.xlane.xlu1 %9306 }
0x2262   : > { %v7619_v24 = vmul.f32 %v19804_v39, %v7615_v8  ;;  %v18740_v8 = vpop.eup %15859  ;;  %v9313_v0 = vsub.f32 %v18398_v13, %v9307_v5 }
0x2264   : > { %v18728_v30 = vadd.f32 %v7619_v24, %v7611_v43  ;;  %v9319_v63 = vmul.f32 1.442695, %v9313_v0 }
0x2265   : > { %9234 = vmax.xlane.f32.xlu0 %v9233_v33  ;;  %v9247_v33 = vsub.f32 %v18378_v34, %v9241_v47  ;;  %v9255_v34 = vmul.f32 1.442695, %v9248_v54 }
0x2266   : > { %v18735_v28 = vmul.f32 %v18392_v20, %v18728_v30  ;;  %v9191_v20 = vsel %vm1729_vm0, %v18740_v8, 0.0 }
0x2267   : > { %v9253_v12 = vmul.f32 1.442695, %v9247_v33  ;;  %v18745_v52 = vpop.eup %15861 }
0x2268   : > { %v9308_v10 = vsel %vm1729_vm0, %v18735_v28, -inf  ;;  %v9197_v41 = vsel %vm1729_vm0, %v18745_v52, 0.0  ;;  %v18749_v47 = vpop.eup %15863 }
0x2269   : > { %9237 = vmax.xlane.f32.xlu0 %v9236_v23  ;;  %15865 = vpow2.f32 %v9253_v12  ;;  %v9200_v23 = vsel %vm1729_vm0, %v18749_v47, 0.0 }
0x226a   : > { %15867 = vpow2.f32 %v9255_v34 }
0x226b   : > { %15869 = vpow2.f32 %v9319_v63 }
0x226d   : > { %9300 = vmax.xlane.f32.xlu0 %v9299_v4 }
0x2271   : > { %9303 = vmax.xlane.f32.xlu0 %v9302_v15 }
0x2273   : > { %v18753_v39 = vpop.eup %15865 }
0x2274   : > { %v9263_v13 = vsel %vm1729_vm0, %v18753_v39, 0.0  ;;  %v18757_v24 = vpop.eup %15867 }
0x2275   : > { %9309 = vmax.xlane.f32.xlu0 %v9308_v10  ;;  %v9266_v43 = vsel %vm1729_vm0, %v18757_v24, 0.0  ;;  %v18761_v9 = vpop.eup %15869 }
0x2276   : > { %v9329_v21 = vsel %vm1729_vm0, %v18761_v9, 0.0 }
0x2279   : > { %9192 = vadd.xlane.f32.xlu0 %v9191_v20 }
0x227d   : > { %9198 = vadd.xlane.f32.xlu0 %v9197_v41 }
0x2281   : > { %9201 = vadd.xlane.f32.xlu0 %v9200_v23 }
0x2285   : > { %9264 = vadd.xlane.f32.xlu0 %v9263_v13 }
0x2289   : > { %9267 = vadd.xlane.f32.xlu0 %v9266_v43 }
0x228d   : > { %9330 = vadd.xlane.f32.xlu0 %v9329_v21 }
0x22d2   : > { %v8626_v4 = vpop.xlane.xlu0 %8625 }
0x22d3   : > { %v8627_v56 = vadd.f32 %v8626_v4, %v18403_v7 }
0x22d5   : > { %15871 = vtanh.f32 %v8627_v56 }
0x22d6   : > { %v8665_v54 = vpop.xlane.xlu0 %8664  ;;  %15873 = vrcp.f32 %v18625_v22 }
0x22d7   : > { %15875 = vrcp.f32 %v18632_v37 }
0x22d8   : > { %15877 = vrcp.f32 %v18639_v44 }
0x22d9   : > { %15879 = vrcp.f32 %v18643_v32 }
0x22da   : > { %v8671_v5 = vpop.xlane.xlu0 %8670  ;;  %15881 = vrcp.f32 %v8665_v54 }
0x22db   : > { %15883 = vrcp.f32 %v8671_v5 }
0x22dc   : > { %15885 = vrcp.f32 %v18653_v59 }
0x22de   : > { %v8731_v10 = vpop.xlane.xlu0 %8730 }
0x22df   : > { %v15872_v31 = vpop.eup %15871  ;;  %15887 = vrcp.f32 %v8731_v10 }
0x22e0   : > { %v8629_v33 = vmax.f32 %v15872_v31, 0.0  ;;  %v15874_v20 = vpop.eup %15873 }
0x22e1   : > { %v15876_v63 = vpop.eup %15875  ;;  %v8676_v43 = vmul.f32 %v15874_v20, %v18311_v55 }
0x22e2   : > { %15307 = vpush %v8629_v33  ;;  %v8746_v15 = vrot.slane %v8629_v33, 1  ;;  %v8812_v12 = vrot.slane %v8629_v33, 2  ;;  %v8737_v34 = vpop.xlane.xlu0 %8736  ;;  %v15878_v22 = vpop.eup %15877  ;;  %v8678_v21 = vmul.f32 %v15876_v63, %v18316_v16 }
0x22e3   : > { %15889 = vrcp.f32 %v8737_v34  ;;  %v15880_v37 = vpop.eup %15879  ;;  %v8742_v56 = vmul.f32 %v15878_v22, %v18320_v61 }
0x22e4   : > { %15309 = vpush %v8746_v15  ;;  %15891 = vrcp.f32 %v18659_v48  ;;  %v15882_v41 = vpop.eup %15881  ;;  %v8744_v31 = vmul.f32 %v15880_v37, %v18324_v40 }
0x22e5   : > { %15311 = vpush %v8812_v12  ;;  %v15884_v44 = vpop.eup %15883  ;;  %v8677_v59 = vmul.f32 %v15882_v41, %v18646_v19 }
0x22e6   : > { %v8797_v7 = vpop.xlane.xlu0 %8796  ;;  %v15886_v23 = vpop.eup %15885  ;;  %v8679_v4 = vmul.f32 %v15884_v44, %v18651_v1 }
0x22e7   : > { %15893 = vrcp.f32 %v8797_v7  ;;  %v8808_v1 = vmul.f32 %v15886_v23, %v18329_v46  ;;  %v19808_v23 = vld [vmem:[#allocation65_spill] sm:$0xff] }
0x22e9   : > { %v15888_v32 = vpop.eup %15887 }
0x22ea   : > { %v8803_v0 = vpop.xlane.xlu0 %8802  ;;  %v8743_v55 = vmul.f32 %v15888_v32, %v18657_v35  ;;  %v19805_v35 = vld [vmem:[#allocation100_spill] sm:$0xff]  ;;  %v19807_v32 = vld [vmem:[#allocation102_spill] sm:$0xff] }
0x22eb   : > { %15895 = vrcp.f32 %v8803_v0 }
0x22ed   : > { %v15890_v13 = vpop.eup %15889 }
0x22ee   : > { %v15892_v33 = vpop.eup %15891  ;;  %v8745_v19 = vmul.f32 %v15890_v13, %v18663_v42  ;;  %v19806_v42 = vld [vmem:[#allocation79_spill] sm:$0xff] }
0x22f1   : > { %v15894_v10 = vpop.eup %15893 }
0x22f5   : > { %v15896_v34 = vpop.eup %15895 }
0x2313   : > { %s15308_s4 = spop %15307 }
0x2314   : > { %v8682_v48 = vstv %s15308_s4 }
0x2315   : > { %v8684_v15 = vmul.f32 %v8682_v48, %v8676_v43  ;;  %v8685_v12 = vmul.f32 %v8682_v48, %v8677_v59  ;;  %v8686_v54 = vmul.f32 %v8682_v48, %v8678_v21  ;;  %v8687_v5 = vmul.f32 %v8682_v48, %v8679_v4  ;;  %s15310_s18 = spop %15309 }
0x2316   : > { %v8748_v16 = vstv %s15310_s18  ;;  %s15312_s4 = spop %15311  ;;  %s19827_s18 = sld [smem:[#allocation16_spill]] }
0x2317   : > { %v8688_v7 = vadd.f32 %v8684_v15, %v18437_v2  ;;  %v8689_v61 = vadd.f32 %v8685_v12, %v18440_v53  ;;  %v8690_v40 = vadd.f32 %v8686_v54, %v18443_v57  ;;  %v8691_v0 = vadd.f32 %v8687_v5, %v18446_v3  ;;  %v19809_v12 = vld [vmem:[#allocation104_spill] sm:$0xff] }
0x2318   : > { %v8750_v20 = vmul.f32 %v8748_v16, %v8742_v56  ;;  %v8751_v63 = vmul.f32 %v8748_v16, %v8743_v55  ;;  %v8752_v22 = vmul.f32 %v8748_v16, %v8744_v31  ;;  %v8753_v37 = vmul.f32 %v8748_v16, %v8745_v19  ;;  %v19810_v5 = vld [vmem:[#allocation68_spill] sm:$0xff]  ;;  %v19811_v19 = vld [vmem:[#allocation105_spill] sm:$0xff] }
0x2319   : > { %v8692_v41 = vadd.f32 %v8688_v7, %v19805_v35  ;;  %v8693_v44 = vadd.f32 %v8689_v61, %v19806_v42  ;;  %v8694_v46 = vadd.f32 %v8690_v40, %v19807_v32  ;;  %v8695_v13 = vadd.f32 %v8691_v0, %v19808_v23  ;;  %v19813_v7 = vld [vmem:[#allocation106_spill] sm:$0xff]  ;;  %v19814_v40 = vld [vmem:[#allocation85_spill] sm:$0xff]  ;;  %v19815_v0 = vld [vmem:[#allocation107_spill] sm:$0xff] }
0x231a   : > { %v8809_v2 = vmul.f32 %v15894_v10, %v18668_v11  ;;  %v8810_v53 = vmul.f32 %v15892_v33, %v18337_v45  ;;  %v8811_v57 = vmul.f32 %v15896_v34, %v18676_v26  ;;  %v8814_v3 = vstv %s15312_s4  ;;  %v19812_v11 = vld [vmem:[#allocation82_spill] sm:$0xff]  ;;  %v19818_v42 = vld [vmem:[#allocation69_spill] sm:$0xff]  ;;  %v19820_v32 = vld [vmem:[#allocation72_spill] sm:$0xff] }
0x231b   : > { %v8754_v43 = vadd.f32 %v8750_v20, %v8692_v41  ;;  %v8755_v59 = vadd.f32 %v8751_v63, %v8693_v44  ;;  %v8756_v21 = vadd.f32 %v8752_v22, %v8694_v46  ;;  %v8757_v4 = vadd.f32 %v8753_v37, %v8695_v13  ;;  %v19816_v63 = vld [vmem:[#allocation61_spill] sm:$0xff]  ;;  %v19817_v41 = vld [vmem:[#allocation92_spill] sm:$0xff]  ;;  %v19819_v44 = vld [vmem:[#allocation71_spill] sm:$0xff] }
0x231c   : > { %v8816_v48 = vmul.f32 %v8814_v3, %v8808_v1  ;;  %v8817_v56 = vmul.f32 %v8814_v3, %v8809_v2  ;;  %v8818_v31 = vmul.f32 %v8814_v3, %v8810_v53  ;;  %v8819_v15 = vmul.f32 %v8814_v3, %v8811_v57  ;;  %v19825_v46 = vld [vmem:[#allocation98_spill] sm:$0xff]  ;;  %v19826_v23 = vld [vmem:[#allocation64_spill] sm:$0xff]  ;;  %s19828_s4 = smov %s19827_s18  ;;  %v19829_v13 = vld [vmem:[#allocation63_spill] sm:$0xff] }
0x231d   : > { %v8758_v54 = vadd.f32 %v8754_v43, %v19809_v12  ;;  %v8759_v55 = vadd.f32 %v8755_v59, %v19810_v5  ;;  %v8760_v16 = vadd.f32 %v8756_v21, %v19811_v19  ;;  %v8761_v10 = vadd.f32 %v8757_v4, %v19812_v11  ;;  %v19830_v2 = vld [vmem:[#allocation67_spill] sm:$0xff]  ;;  %v19831_v53 = vld [vmem:[#allocation66_spill] sm:$0xff]  ;;  %v19832_v57 = vld [vmem:[#allocation101_spill] sm:$0xff] }
0x231e   : > { %v19833_v3 = vld [vmem:[#allocation81_spill] sm:$0xff]  ;;  %v19834_v43 = vld [vmem:[#allocation80_spill] sm:$0xff]  ;;  %v19836_v21 = vld [vmem:[#allocation83_spill] sm:$0xff] }
0x231f   : > { %v8820_v45 = vadd.f32 %v8816_v48, %v8758_v54  ;;  %v8821_v33 = vadd.f32 %v8817_v56, %v8759_v55  ;;  %v8822_v26 = vadd.f32 %v8818_v31, %v8760_v16  ;;  %v8823_v34 = vadd.f32 %v8819_v15, %v8761_v10  ;;  %v19835_v59 = vld [vmem:[#allocation84_spill] sm:$0xff]  ;;  %v19837_v4 = vld [vmem:[#allocation94_spill] sm:$0xff]  ;;  %v19838_v48 = vld [vmem:[#allocation93_spill] sm:$0xff] }
0x2320   : > { %v19839_v56 = vld [vmem:[#allocation97_spill] sm:$0xff]  ;;  %v19840_v31 = vld [vmem:[#allocation96_spill] sm:$0xff]  ;;  %v19841_v15 = vld [vmem:[#allocation114_spill] sm:$0xff] }
0x2321   : > { %v18797_v61 = vadd.f32 %v8820_v45, %v19813_v7  ;;  %v18800_v1 = vadd.f32 %v8821_v33, %v19814_v40  ;;  %v18803_v20 = vadd.f32 %v8822_v26, %v19815_v0  ;;  %v18806_v22 = vadd.f32 %v8823_v34, %v19816_v63  ;;  %v19842_v12 = vld [vmem:[#allocation115_spill] sm:$0xff]  ;;  %v19843_v5 = vld [vmem:[#allocation116_spill] sm:$0xff]  ;;  %v19844_v55 = vld [vmem:[#allocation117_spill] sm:$0xff] }
0x2322   : > { %v9629_v54 = vld [vmem:[%s19827_s18] sm:$0xff]  ;;  %v19845_v11 = vld [vmem:[#allocation118_spill] sm:$0xff] }
0x2323   : > { %v15069_v37 = vpack.c.bf16 %v18800_v1, %v18797_v61  ;;  %v15073_v35 = vpack.c.bf16 %v18806_v22, %v18803_v20  ;;  %v18874_v19 = vld [vmem:[%s16776_s11] sm:$0xff] }
0x2324   : > { %v18877_v16 = vadd.f32 %v18874_v19, %v9629_v54 }
0x2325   : > { %15070 = vmatprep.subr.bf16.mxu1 %v15069_v37 }
0x2326   : > { %15072 = vmatpush3.bf16.msra.mxu1 %v15069_v37 }
0x2327   : > { %15074 = vmatprep.subr.bf16.mxu1 %v15073_v35 }
0x232a   : > { %15076 = vmatpush3.bf16.msra.mxu1 %v15073_v35 }
0x232d   : > { %14224 = vmatmul.mubr.msk.f32.vlgmr.msra.gmra.mrb[126].mxu1 %vm1729_vm0, %v18453_v29  ;;  %v19821_v29 = vld [vmem:[#allocation88_spill] sm:$0xff] }
0x232e   : > { %14226 = vmatprep.mubr.msk.f32.mxu1 %vm1729_vm0, %v18458_v49  ;;  %v19822_v49 = vld [vmem:[#allocation89_spill] sm:$0xff] }
0x2331   : > { %14227 = vmatmul.mubr.msk.f32.gmra.mrb[128].mxu1 %vm1729_vm0, %v18463_v18  ;;  %v19823_v18 = vld [vmem:[#allocation95_spill] sm:$0xff] }
0x2332   : > { %14229 = vmatprep.mubr.msk.f32.mxu1 %vm1729_vm0, %v18468_v50  ;;  %v19824_v50 = vld [vmem:[#allocation99_spill] sm:$0xff] }
0x2335   : > { %14230 = vmatmul.mubr.msk.f32.gmra.mrb[130].mxu1 %vm1729_vm0, %v19817_v41 }
0x2336   : > { %14232 = vmatprep.mubr.msk.f32.mxu1 %vm1729_vm0, %v19818_v42 }
0x2339   : > { %14233 = vmatmul.mubr.msk.f32.gmra.mrb[132].mxu1 %vm1729_vm0, %v19819_v44 }
0x233a   : > { %14235 = vmatprep.mubr.msk.f32.mxu1 %vm1729_vm0, %v19820_v32 }
0x233d   : > { %14236 = vmatmul.mubr.msk.f32.gmra.mrb[134].mxu1 %vm1729_vm0, %v19821_v29 }
0x233e   : > { %14238 = vmatprep.mubr.msk.f32.mxu1 %vm1729_vm0, %v19822_v49 }
0x2341   : > { %14239 = vmatmul.mubr.msk.f32.gmra.mrb[136].mxu1 %vm1729_vm0, %v19823_v18 }
0x2342   : > { %14241 = vmatprep.mubr.msk.f32.mxu1 %vm1729_vm0, %v19824_v50 }
0x2345   : > { %14242 = vmatmul.mubr.msk.f32.gmra.mrb[138].mxu1 %vm1729_vm0, %v19825_v46 }
0x2346   : > { %14244 = vmatprep.mubr.msk.f32.mxu1 %vm1729_vm0, %v19826_v23 }
0x2349   : > { %14245 = vmatmul.mubr.msk.f32.gmra.mrb[140].mxu1 %vm1729_vm0, %v19829_v13 }
0x234a   : > { %14247 = vmatprep.mubr.msk.f32.mxu1 %vm1729_vm0, %v19830_v2 }
0x234d   : > { %14248 = vmatmul.mubr.msk.f32.gmra.mrb[142].mxu1 %vm1729_vm0, %v19831_v53 }
0x234e   : > { %14250 = vmatprep.mubr.msk.f32.mxu1 %vm1729_vm0, %v19832_v57 }
0x2351   : > { %14251 = vmatmul.mubr.msk.f32.gmra.mrb[144].mxu1 %vm1729_vm0, %v19833_v3 }
0x2352   : > { %14253 = vmatprep.mubr.msk.f32.mxu1 %vm1729_vm0, %v19834_v43 }
0x2355   : > { %14254 = vmatmul.mubr.msk.f32.gmra.mrb[146].mxu1 %vm1729_vm0, %v19835_v59 }
0x2356   : > { %14256 = vmatprep.mubr.msk.f32.mxu1 %vm1729_vm0, %v19836_v21 }
0x2359   : > { %14257 = vmatmul.mubr.msk.f32.gmra.mrb[148].mxu1 %vm1729_vm0, %v19837_v4 }
0x235a   : > { %14259 = vmatprep.mubr.msk.f32.mxu1 %vm1729_vm0, %v19838_v48 }
0x235d   : > { %14260 = vmatmul.mubr.msk.f32.gmra.mrb[150].mxu1 %vm1729_vm0, %v19839_v56 }
0x235e   : > { %14262 = vmatprep.mubr.msk.f32.mxu1 %vm1729_vm0, %v19840_v31 }
0x2361   : > { %14263 = vmatmul.mubr.msk.f32.gmra.mrb[152].mxu1 %vm1729_vm0, %v19841_v15 }
0x2362   : > { %14265 = vmatprep.mubr.msk.f32.mxu1 %vm1729_vm0, %v19842_v12 }
0x2365   : > { %14266 = vmatmul.mubr.msk.f32.gmra.mrb[154].mxu1 %vm1729_vm0, %v19843_v5 }
0x2366   : > { %14268 = vmatprep.mubr.msk.f32.mxu1 %vm1729_vm0, %v19844_v55 }
0x2369   : > { %14269 = vmatmul.mubr.msk.f32.gmra.mrb[156].mxu1 %vm1729_vm0, %v19845_v11 }
0x236a   : > { %14321 = vmatprep.mubr.msk.f32.mxu1 %vm1729_vm0, %v18877_v16 }
0x2400   : > { %v14225_v10 = vpop.f32.mrb[126].mxu1 }
0x2401   : > { %v9054_v45 = vmax.f32 %v14225_v10, 0.0  ;;  %v8894_v33 = vpop.f32.mrb[127].mxu1 }
0x2402   : > { %v9053_v26 = vmax.f32 %v8894_v33, 0.0 }
0x2404   : > { %v15079_v34 = vpack.c.bf16 %v9054_v45, %v9053_v26  ;;  %v14228_v7 = vpop.f32.mrb[128].mxu1 }
0x2405   : > { %v9056_v40 = vmax.f32 %v14228_v7, 0.0  ;;  %v8904_v0 = vpop.f32.mrb[129].mxu1 }
0x2406   : > { %v9055_v63 = vmax.f32 %v8904_v0, 0.0 }
0x2408   : > { %v15083_v37 = vpack.c.bf16 %v9056_v40, %v9055_v63  ;;  %v14231_v35 = vpop.f32.mrb[130].mxu1 }
0x2409   : > { %v9058_v41 = vmax.f32 %v14231_v35, 0.0  ;;  %v8914_v42 = vpop.f32.mrb[131].mxu1 }
0x240a   : > { %v9057_v44 = vmax.f32 %v8914_v42, 0.0 }
0x240c   : > { %v15087_v32 = vpack.c.bf16 %v9058_v41, %v9057_v44  ;;  %v14234_v29 = vpop.f32.mrb[132].mxu1 }
0x240d   : > { %v9060_v49 = vmax.f32 %v14234_v29, 0.0  ;;  %v8924_v18 = vpop.f32.mrb[133].mxu1 }
0x240e   : > { %v9059_v50 = vmax.f32 %v8924_v18, 0.0 }
0x2410   : > { %v15091_v46 = vpack.c.bf16 %v9060_v49, %v9059_v50  ;;  %v14237_v23 = vpop.f32.mrb[134].mxu1 }
0x2411   : > { %v9062_v13 = vmax.f32 %v14237_v23, 0.0  ;;  %v8934_v2 = vpop.f32.mrb[135].mxu1 }
0x2412   : > { %v9061_v53 = vmax.f32 %v8934_v2, 0.0 }
0x2414   : > { %v15095_v57 = vpack.c.bf16 %v9062_v13, %v9061_v53  ;;  %v14240_v3 = vpop.f32.mrb[136].mxu1 }
0x2415   : > { %v9064_v43 = vmax.f32 %v14240_v3, 0.0  ;;  %v8944_v59 = vpop.f32.mrb[137].mxu1 }
0x2416   : > { %v9063_v21 = vmax.f32 %v8944_v59, 0.0 }
0x2418   : > { %v15099_v4 = vpack.c.bf16 %v9064_v43, %v9063_v21  ;;  %v14243_v48 = vpop.f32.mrb[138].mxu1 }
0x2419   : > { %v9066_v56 = vmax.f32 %v14243_v48, 0.0  ;;  %v8954_v31 = vpop.f32.mrb[139].mxu1 }
0x241a   : > { %v9065_v15 = vmax.f32 %v8954_v31, 0.0 }
0x241c   : > { %v15103_v12 = vpack.c.bf16 %v9066_v56, %v9065_v15  ;;  %v14246_v54 = vpop.f32.mrb[140].mxu1 }
0x241d   : > { %v9068_v5 = vmax.f32 %v14246_v54, 0.0  ;;  %v8964_v55 = vpop.f32.mrb[141].mxu1 }
0x241e   : > { %v9067_v11 = vmax.f32 %v8964_v55, 0.0 }
0x2420   : > { %v15107_v10 = vpack.c.bf16 %v9068_v5, %v9067_v11  ;;  %v14249_v45 = vpop.f32.mrb[142].mxu1 }
0x2421   : > { %v9070_v33 = vmax.f32 %v14249_v45, 0.0  ;;  %v8974_v26 = vpop.f32.mrb[143].mxu1 }
0x2422   : > { %v9069_v7 = vmax.f32 %v8974_v26, 0.0 }
0x2424   : > { %v15077_v40 = vpack.c.bf16 %v9070_v33, %v9069_v7  ;;  %v14252_v0 = vpop.f32.mrb[144].mxu1 }
0x2425   : > { %v9072_v63 = vmax.f32 %v14252_v0, 0.0  ;;  %v8984_v35 = vpop.f32.mrb[145].mxu1 }
0x2426   : > { %v9071_v41 = vmax.f32 %v8984_v35, 0.0  ;;  %15078 = vmatprep.subr.bf16.mxu0 %v15077_v40 }
0x2427   : > { %15080 = vmatpush3.bf16.msra.mxu0 %v15079_v34 }
0x2428   : > { %v15081_v42 = vpack.c.bf16 %v9072_v63, %v9071_v41  ;;  %v14255_v44 = vpop.f32.mrb[146].mxu1 }
0x2429   : > { %v9074_v29 = vmax.f32 %v14255_v44, 0.0  ;;  %v8994_v49 = vpop.f32.mrb[147].mxu1 }
0x242a   : > { %v9073_v18 = vmax.f32 %v8994_v49, 0.0  ;;  %15082 = vmatprep.subr.bf16.mxu0 %v15081_v42 }
0x242b   : > { %15084 = vmatpush3.bf16.msra.mxu0 %v15083_v37 }
0x242c   : > { %v15085_v50 = vpack.c.bf16 %v9074_v29, %v9073_v18  ;;  %v14258_v23 = vpop.f32.mrb[148].mxu1 }
0x242d   : > { %v9076_v13 = vmax.f32 %v14258_v23, 0.0  ;;  %v9004_v2 = vpop.f32.mrb[149].mxu1 }
0x242e   : > { %v9075_v53 = vmax.f32 %v9004_v2, 0.0  ;;  %15086 = vmatprep.subr.bf16.mxu0 %v15085_v50 }
0x242f   : > { %15088 = vmatpush3.bf16.msra.mxu0 %v15087_v32 }
0x2430   : > { %v15089_v3 = vpack.c.bf16 %v9076_v13, %v9075_v53  ;;  %v14261_v43 = vpop.f32.mrb[150].mxu1 }
0x2431   : > { %v9078_v59 = vmax.f32 %v14261_v43, 0.0  ;;  %v9014_v21 = vpop.f32.mrb[151].mxu1 }
0x2432   : > { %v9077_v48 = vmax.f32 %v9014_v21, 0.0  ;;  %15090 = vmatprep.subr.bf16.mxu0 %v15089_v3 }
0x2433   : > { %15092 = vmatpush3.bf16.msra.mxu0 %v15091_v46 }
0x2434   : > { %v15093_v34 = vpack.c.bf16 %v9078_v59, %v9077_v48  ;;  %v14264_v56 = vpop.f32.mrb[152].mxu1 }
0x2435   : > { %v9080_v31 = vmax.f32 %v14264_v56, 0.0  ;;  %v9024_v15 = vpop.f32.mrb[153].mxu1 }
0x2436   : > { %v9079_v54 = vmax.f32 %v9024_v15, 0.0  ;;  %15094 = vmatprep.subr.bf16.mxu0 %v15093_v34 }
0x2437   : > { %15096 = vmatpush3.bf16.msra.mxu0 %v15095_v57  ;;  %v9172_v57 = vpop.xlane.xlu0 %9171 }
0x2438   : > { %v15097_v37 = vpack.c.bf16 %v9080_v31, %v9079_v54  ;;  %v14267_v5 = vpop.f32.mrb[154].mxu1  ;;  %v9180_v35 = vsub.f32 %v18684_v36, %v9172_v57 }
0x2439   : > { %v9082_v55 = vmax.f32 %v14267_v5, 0.0  ;;  %v9034_v11 = vpop.f32.mrb[155].mxu1 }
0x243a   : > { %v9081_v45 = vmax.f32 %v9034_v11, 0.0  ;;  %15098 = vmatprep.subr.bf16.mxu0 %v15097_v37  ;;  %v9185_v41 = vmul.f32 1.442695, %v9180_v35  ;;  %v16105_v37 = vld [vmem:[%s19746_s2] sm:$0x7] }
0x243b   : > { %15100 = vmatpush3.bf16.msra.mxu0 %v15099_v4  ;;  %v9235_v0 = vpop.xlane.xlu0 %9234 }
0x243c   : > { %v15101_v32 = vpack.c.bf16 %v9082_v55, %v9081_v45  ;;  %v14270_v33 = vpop.f32.mrb[156].mxu1  ;;  %v9245_v4 = vsub.f32 %v18695_v27, %v9235_v0  ;;  %15897 = vpow2.f32 %v9185_v41 }
0x243d   : > { %v9084_v26 = vmax.f32 %v14270_v33, 0.0  ;;  %v9044_v7 = vpop.f32.mrb[157].mxu1 }
0x243e   : > { %v9083_v40 = vmax.f32 %v9044_v7, 0.0  ;;  %15102 = vmatprep.subr.bf16.mxu0 %v15101_v32  ;;  %v9249_v44 = vmul.f32 1.442695, %v9245_v4 }
0x243f   : > { %15104 = vmatpush3.bf16.msra.mxu0 %v15103_v12  ;;  %v9238_v63 = vpop.xlane.xlu0 %9237 }
0x2440   : > { %v15105_v46 = vpack.c.bf16 %v9084_v26, %v9083_v40  ;;  %v9246_v29 = vsub.f32 %v18702_v17, %v9238_v63  ;;  %15899 = vpow2.f32 %v9249_v44 }
0x2442   : > { %15106 = vmatprep.subr.bf16.mxu0 %v15105_v46  ;;  %v9251_v12 = vmul.f32 1.442695, %v9246_v29 }
0x2443   : > { %15108 = vmatpush3.bf16.msra.mxu0 %v15107_v10  ;;  %v9301_v42 = vpop.xlane.xlu0 %9300 }
0x2444   : > { %v9311_v10 = vsub.f32 %v18715_v62, %v9301_v42  ;;  %15901 = vpow2.f32 %v9251_v12 }
0x2446   : > { %9150 = vmatmul.mubr.f32.vlgmr.msra.gmra.mrb[130].mxu0 %v18609_v6  ;;  %v9315_v23 = vmul.f32 1.442695, %v9311_v10  ;;  %v18890_v2 = vpop.eup %15897 }
0x2447   : > { %v9304_v49 = vpop.xlane.xlu0 %9303  ;;  %v9194_v62 = vsel %vm1729_vm0, %v18890_v2, 0.0 }
0x2448   : > { %v9312_v36 = vsub.f32 %v18726_v14, %v9304_v49  ;;  %15903 = vpow2.f32 %v9315_v23 }
0x244a   : > { %v9317_v17 = vmul.f32 1.442695, %v9312_v36  ;;  %v18895_v3 = vpop.eup %15899 }
0x244b   : > { %v9310_v13 = vpop.xlane.xlu0 %9309  ;;  %v9257_v14 = vsel %vm1729_vm0, %v18895_v3, 0.0 }
0x244c   : > { %v9314_v53 = vsub.f32 %v18735_v28, %v9310_v13  ;;  %15905 = vpow2.f32 %v9317_v17 }
0x244e   : > { %v9321_v43 = vmul.f32 1.442695, %v9314_v53  ;;  %v18899_v59 = vpop.eup %15901 }
0x244f   : > { %v9260_v21 = vsel %vm1729_vm0, %v18899_v59, 0.0  ;;  %v9193_v33 = vpop.xlane.xlu0 %9192 }
0x2450   : > { %15907 = vpow2.f32 %v9321_v43 }
0x2452   : > { %v18903_v28 = vpop.eup %15903 }
0x2453   : > { %v9323_v48 = vsel %vm1729_vm0, %v18903_v28, 0.0  ;;  %v9199_v26 = vpop.xlane.xlu0 %9198 }
0x2456   : > { %v18907_v34 = vpop.eup %15905 }
0x2457   : > { %v9326_v56 = vsel %vm1729_vm0, %v18907_v34, 0.0  ;;  %v9202_v40 = vpop.xlane.xlu0 %9201 }
0x245a   : > { %v18911_v31 = vpop.eup %15907 }
0x245b   : > { %v9332_v15 = vsel %vm1729_vm0, %v18911_v31, 0.0  ;;  %v9265_v57 = vpop.xlane.xlu0 %9264 }
0x245f   : > { %v9268_v63 = vpop.xlane.xlu0 %9267 }
0x2463   : > { %v9331_v41 = vpop.xlane.xlu0 %9330 }
0x2519   : > { %v13204_v18 = vpop.f32.mrb[130].mxu0 }
0x251a   : > { %v13205_v6 = vpop.f32.mrb[131].mxu0 }
0x251b   : > { %v13206_v50 = vadd.f32 %v13205_v6, %v13204_v18 }
0x251d   : > { %v9155_v27 = vsel %vm8092_vm4, %v13206_v50, 0.0 }
0x251e   : > { %9156 = vadd.xlane.f32.xlu1 %v9155_v27 }
0x2522   : > { %9195 = vadd.xlane.f32.xlu1 %v9194_v62 }
0x2526   : > { %9258 = vadd.xlane.f32.xlu1 %v9257_v14 }
0x252a   : > { %9261 = vadd.xlane.f32.xlu1 %v9260_v21 }
0x252e   : > { %9324 = vadd.xlane.f32.xlu1 %v9323_v48 }
0x2532   : > { %9327 = vadd.xlane.f32.xlu1 %v9326_v56 }
0x2536   : > { %9333 = vadd.xlane.f32.xlu1 %v9332_v15 }
0x25ab   : > { %v9157_v54 = vpop.xlane.xlu1 %9156 }
0x25ac   : > { %v9158_v5 = vadd.f32 %v16105_v37, %v9157_v54 }
0x25ae   : > { %15909 = vtanh.f32 %v9158_v5 }
0x25af   : > { %v9196_v7 = vpop.xlane.xlu1 %9195  ;;  %15911 = vrcp.f32 %v9193_v33 }
0x25b0   : > { %15913 = vrcp.f32 %v9199_v26 }
0x25b1   : > { %15915 = vrcp.f32 %v9202_v40  ;;  %v19848_v40 = vld [vmem:[#allocation62_spill] sm:$0xff] }
0x25b2   : > { %15917 = vrcp.f32 %v9265_v57 }
0x25b3   : > { %v9259_v46 = vpop.xlane.xlu1 %9258  ;;  %15919 = vrcp.f32 %v9268_v63 }
0x25b4   : > { %15921 = vrcp.f32 %v9196_v7  ;;  %v19847_v7 = vld [vmem:[#allocation76_spill] sm:$0xff] }
0x25b5   : > { %15923 = vrcp.f32 %v9331_v41 }
0x25b6   : > { %15925 = vrcp.f32 %v9259_v46 }
0x25b7   : > { %v9262_v0 = vpop.xlane.xlu1 %9261 }
0x25b8   : > { %v15910_v55 = vpop.eup %15909  ;;  %15927 = vrcp.f32 %v9262_v0 }
0x25b9   : > { %v9160_v11 = vmax.f32 %v15910_v55, 0.0  ;;  %v15912_v44 = vpop.eup %15911 }
0x25ba   : > { %v15914_v29 = vpop.eup %15913  ;;  %v9207_v36 = vmul.f32 %v15912_v44, %v18740_v8 }
0x25bb   : > { %15313 = vpush %v9160_v11  ;;  %v9277_v45 = vrot.slane %v9160_v11, 1  ;;  %v9343_v32 = vrot.slane %v9160_v11, 2  ;;  %v9325_v35 = vpop.xlane.xlu1 %9324  ;;  %v15916_v49 = vpop.eup %15915  ;;  %v9209_v27 = vmul.f32 %v15914_v29, %v18745_v52 }
0x25bc   : > { %15929 = vrcp.f32 %v9325_v35  ;;  %v15918_v12 = vpop.eup %15917  ;;  %v9210_v17 = vmul.f32 %v15916_v49, %v18749_v47  ;;  %v19849_v49 = vld [vmem:[#allocation77_spill] sm:$0xff] }
0x25bd   : > { %15315 = vpush %v9277_v45  ;;  %v15920_v10 = vpop.eup %15919  ;;  %v9275_v62 = vmul.f32 %v15918_v12, %v18753_v39 }
0x25be   : > { %15317 = vpush %v9343_v32  ;;  %v15922_v18 = vpop.eup %15921  ;;  %v9276_v43 = vmul.f32 %v15920_v10, %v18757_v24 }
0x25bf   : > { %v9328_v4 = vpop.xlane.xlu1 %9327  ;;  %v15924_v6 = vpop.eup %15923  ;;  %v9208_v13 = vmul.f32 %v15922_v18, %v18890_v2 }
0x25c0   : > { %15931 = vrcp.f32 %v9328_v4  ;;  %v15926_v50 = vpop.eup %15925  ;;  %v9341_v47 = vmul.f32 %v15924_v6, %v18761_v9 }
0x25c1   : > { %v9273_v8 = vmul.f32 %v15926_v50, %v18895_v3  ;;  %v19846_v3 = vld [vmem:[#allocation74_spill] sm:$0xff] }
0x25c2   : > { %v15928_v23 = vpop.eup %15927 }
0x25c3   : > { %v9334_v42 = vpop.xlane.xlu1 %9333  ;;  %v9274_v2 = vmul.f32 %v15928_v23, %v18899_v59 }
0x25c4   : > { %15933 = vrcp.f32 %v9334_v42 }
0x25c6   : > { %v15930_v14 = vpop.eup %15929 }
0x25ca   : > { %v15932_v54 = vpop.eup %15931 }
0x25ce   : > { %v15934_v37 = vpop.eup %15933 }
0x25ec   : > { %s15314_s18 = spop %15313 }
0x25ed   : > { %v9213_v53 = vstv %s15314_s18 }
0x25ee   : > { %v9215_v21 = vmul.f32 %v9213_v53, %v9207_v36  ;;  %v9216_v48 = vmul.f32 %v9213_v53, %v9208_v13  ;;  %v9217_v56 = vmul.f32 %v9213_v53, %v9209_v27  ;;  %v9218_v15 = vmul.f32 %v9213_v53, %v9210_v17  ;;  %s15316_s1 = spop %15315  ;;  %v19851_v36 = vld [vmem:[#allocation78_spill] sm:$0xff] }
0x25ef   : > { %v9279_v52 = vstv %s15316_s1  ;;  %s15318_s18 = spop %15317  ;;  %s19852_s1 = sld [smem:[#allocation37_spill]] }
0x25f0   : > { %v9219_v5 = vadd.f32 %v9215_v21, %v18797_v61  ;;  %v9220_v39 = vadd.f32 %v9216_v48, %v18800_v1  ;;  %v9221_v24 = vadd.f32 %v9217_v56, %v18803_v20  ;;  %v9222_v55 = vadd.f32 %v9218_v15, %v18806_v22 }
0x25f1   : > { %v9281_v11 = vmul.f32 %v9279_v52, %v9273_v8  ;;  %v9282_v45 = vmul.f32 %v9279_v52, %v9274_v2  ;;  %v9283_v32 = vmul.f32 %v9279_v52, %v9275_v62  ;;  %v9284_v33 = vmul.f32 %v9279_v52, %v9276_v43 }
0x25f2   : > { %v9223_v26 = vadd.f32 %v9219_v5, %v19846_v3  ;;  %v9224_v59 = vadd.f32 %v9220_v39, %v18673_v60  ;;  %v9225_v9 = vadd.f32 %v9221_v24, %v19847_v7  ;;  %v9226_v46 = vadd.f32 %v9222_v55, %v19848_v40 }
0x25f3   : > { %v9339_v61 = vmul.f32 %v15930_v14, %v18903_v28  ;;  %v9340_v1 = vmul.f32 %v15932_v54, %v18907_v34  ;;  %v9342_v20 = vmul.f32 %v15934_v37, %v18911_v31  ;;  %v9345_v22 = vstv %s15318_s18  ;;  %v19850_v28 = vld [vmem:[#allocation75_spill] sm:$0xff]  ;;  %s19853_s18 = sld [smem:[#allocation38_spill]] }
0x25f4   : > { %v9285_v57 = vadd.f32 %v9281_v11, %v9223_v26  ;;  %v9286_v0 = vadd.f32 %v9282_v45, %v9224_v59  ;;  %v9287_v63 = vadd.f32 %v9283_v32, %v9225_v9  ;;  %v9288_v35 = vadd.f32 %v9284_v33, %v9226_v46 }
0x25f5   : > { %v9347_v41 = vmul.f32 %v9345_v22, %v9339_v61  ;;  %v9348_v4 = vmul.f32 %v9345_v22, %v9340_v1  ;;  %v9349_v42 = vmul.f32 %v9345_v22, %v9341_v47  ;;  %v9350_v44 = vmul.f32 %v9345_v22, %v9342_v20 }
0x25f6   : > { %v9289_v60 = vadd.f32 %v9285_v57, %v18686_v58  ;;  %v9290_v29 = vadd.f32 %v9286_v0, %v18689_v38  ;;  %v9291_v12 = vadd.f32 %v9287_v63, %v19849_v49  ;;  %v9292_v10 = vadd.f32 %v9288_v35, %v19850_v28 }
0x25f8   : > { %v9351_v34 = vadd.f32 %v9347_v41, %v9289_v60  ;;  %v9352_v18 = vadd.f32 %v9348_v4, %v9290_v29  ;;  %v9353_v31 = vadd.f32 %v9349_v42, %v9291_v12  ;;  %v9354_v6 = vadd.f32 %v9350_v44, %v9292_v10 }
0x25fa   : > { %v9355_v50 = vadd.f32 %v9351_v34, %v18706_v51  ;;  %v9356_v23 = vadd.f32 %v9352_v18, %v18717_v25  ;;  %v9357_v13 = vadd.f32 %v9353_v31, %v19851_v36  ;;  %v9358_v27 = vadd.f32 %v9354_v6, %v18728_v30  ;;  %v18953_v34 = vld [vmem:[%s19852_s1] ss:$0 sm:$0xff]  ;;  %s19854_s1 = sld [smem:[#allocation39_spill]] }
0x25fb   : > { %v18956_v6 = vld [vmem:[%s19853_s18] ss:$0 sm:$0xff]  ;;  %s19855_s18 = sld [smem:[#allocation41_spill]] }
0x25fc   : > { %v12428_v17 = vmul.f32 -1.442695, %v9355_v50  ;;  %v12429_v58 = vmul.f32 -1.442695, %v9356_v23  ;;  %v12430_v53 = vmul.f32 -1.442695, %v9357_v13 }
0x25fd   : > { %v12431_v38 = vmul.f32 -1.442695, %v9358_v27 }
0x25fe   : > { %15935 = vpow2.f32 %v12428_v17 }
0x25ff   : > { %15937 = vpow2.f32 %v12429_v58 }
0x2600   : > { %15939 = vpow2.f32 %v12430_v53 }
0x2601   : > { %15941 = vpow2.f32 %v12431_v38  ;;  %s19856_s2 = smov %s19855_s18 }
0x2608   : > { %v15936_v62 = vpop.eup %15935 }
0x2609   : > { %v15938_v43 = vpop.eup %15937  ;;  %v9371_v14 = vadd.f32 1.0, %v15936_v62 }
0x260a   : > { %v15940_v21 = vpop.eup %15939  ;;  %v9372_v48 = vadd.f32 1.0, %v15938_v43 }
0x260b   : > { %v15942_v51 = vpop.eup %15941  ;;  %v9373_v56 = vadd.f32 1.0, %v15940_v21  ;;  %15943 = vrcp.f32 %v9371_v14 }
0x260c   : > { %v9374_v25 = vadd.f32 1.0, %v15942_v51  ;;  %15945 = vrcp.f32 %v9372_v48 }
0x260d   : > { %15947 = vrcp.f32 %v9373_v56 }
0x260e   : > { %15949 = vrcp.f32 %v9374_v25 }
0x2615   : > { %v15944_v30 = vpop.eup %15943 }
0x2616   : > { %v15946_v15 = vpop.eup %15945  ;;  %v9385_v54 = vsel %vm1729_vm0, %v15944_v30, 0.0 }
0x2617   : > { %v15948_v8 = vpop.eup %15947  ;;  %9386 = vadd.xlane.f32.xlu0 %v9385_v54  ;;  %v9388_v2 = vsel %vm1729_vm0, %v15946_v15, 0.0 }
0x2618   : > { %v15950_v52 = vpop.eup %15949  ;;  %9389 = vadd.xlane.f32.xlu1 %v9388_v2  ;;  %v9391_v47 = vsel %vm1729_vm0, %v15948_v8, 0.0 }
0x2619   : > { %v9394_v37 = vsel %vm1729_vm0, %v15950_v52, 0.0 }
0x261b   : > { %9392 = vadd.xlane.f32.xlu0 %v9391_v47 }
0x261c   : > { %9395 = vadd.xlane.f32.xlu1 %v9394_v37 }
0x26a4   : > { %v9387_v5 = vpop.xlane.xlu0 %9386 }
0x26a5   : > { %v9397_v39 = vmul.f32 0.03125, %v9387_v5  ;;  %v9390_v24 = vpop.xlane.xlu1 %9389 }
0x26a6   : > { %v9398_v55 = vmul.f32 0.03125, %v9390_v24 }
0x26a7   : > { %v9401_v11 = vsub.f32 %v15944_v30, %v9397_v39 }
0x26a8   : > { %v9402_v45 = vsub.f32 %v15946_v15, %v9398_v55  ;;  %v9393_v32 = vpop.xlane.xlu0 %9392 }
0x26a9   : > { %v9399_v33 = vmul.f32 0.03125, %v9393_v32  ;;  %v9396_v3 = vpop.xlane.xlu1 %9395  ;;  %v9405_v26 = vmul.f32 %v9401_v11, %v9401_v11 }
0x26aa   : > { %v9400_v59 = vmul.f32 0.03125, %v9396_v3  ;;  %v9406_v7 = vmul.f32 %v9402_v45, %v9402_v45 }
0x26ab   : > { %v9403_v9 = vsub.f32 %v15948_v8, %v9399_v33  ;;  %v9409_v40 = vsel %vm1729_vm0, %v9405_v26, 0.0 }
0x26ac   : > { %v9404_v46 = vsub.f32 %v15950_v52, %v9400_v59  ;;  %9410 = vadd.xlane.f32.xlu0 %v9409_v40  ;;  %v9412_v61 = vsel %vm1729_vm0, %v9406_v7, 0.0  ;;  %v9522_v40 = vld [vmem:[%s19854_s1 + $0x8] sm:$0xff] }
0x26ad   : > { %9413 = vadd.xlane.f32.xlu1 %v9412_v61  ;;  %v9407_v1 = vmul.f32 %v9403_v9, %v9403_v9  ;;  %v9523_v61 = vld [vmem:[%s19854_s1 + $0x10] sm:$0xff] }
0x26ae   : > { %v9408_v20 = vmul.f32 %v9404_v46, %v9404_v46 }
0x26af   : > { %v9415_v22 = vsel %vm1729_vm0, %v9407_v1, 0.0  ;;  %v9524_v1 = vld [vmem:[%s19854_s1 + $0x18] sm:$0xff] }
0x26b0   : > { %9416 = vadd.xlane.f32.xlu0 %v9415_v22  ;;  %v9418_v57 = vsel %vm1729_vm0, %v9408_v20, 0.0  ;;  %v15113_v20 = vpack.c.bf16 %v9524_v1, %v9523_v61  ;;  %v9641_v22 = vld [vmem:[%s19855_s18] sm:$0xff]  ;;  %s19857_s18 = sld [smem:[#allocation43_spill]] }
0x26b1   : > { %9419 = vadd.xlane.f32.xlu1 %v9418_v57  ;;  %v9642_v57 = vld [vmem:[%s19856_s2 + $0x8] sm:$0xff] }
0x2739   : > { %v9411_v0 = vpop.xlane.xlu0 %9410 }
0x273a   : > { %v9421_v63 = vmul.f32 0.03125, %v9411_v0  ;;  %v9414_v35 = vpop.xlane.xlu1 %9413  ;;  %v15117_v0 = vpack.c.bf16 %v9642_v57, %v9641_v22 }
0x273b   : > { %v9422_v41 = vmul.f32 0.03125, %v9414_v35 }
0x273c   : > { %v9425_v4 = vadd.f32 1e-05, %v9421_v63 }
0x273d   : > { %v9426_v42 = vadd.f32 1e-05, %v9422_v41  ;;  %v9417_v44 = vpop.xlane.xlu0 %9416 }
0x273e   : > { %15951 = vrsqrt.f32 %v9425_v4  ;;  %v9423_v60 = vmul.f32 0.03125, %v9417_v44  ;;  %v9420_v29 = vpop.xlane.xlu1 %9419 }
0x273f   : > { %15953 = vrsqrt.f32 %v9426_v42  ;;  %v9424_v49 = vmul.f32 0.03125, %v9420_v29 }
0x2740   : > { %v9427_v12 = vadd.f32 1e-05, %v9423_v60 }
0x2741   : > { %v9428_v28 = vadd.f32 1e-05, %v9424_v49 }
0x2742   : > { %15955 = vrsqrt.f32 %v9427_v12 }
0x2743   : > { %15957 = vrsqrt.f32 %v9428_v28 }
0x2748   : > { %v15952_v10 = vpop.eup %15951 }
0x2749   : > { %v15954_v18 = vpop.eup %15953  ;;  %v9433_v31 = vmul.f32 %v15952_v10, %v9401_v11 }
0x274a   : > { %v9434_v50 = vmul.f32 %v15954_v18, %v9402_v45 }
0x274b   : > { %v9443_v23 = vmul.f32 %v18953_v34, %v9433_v31 }
0x274c   : > { %v15956_v36 = vpop.eup %15955  ;;  %v9444_v13 = vmul.f32 %v18953_v34, %v9434_v50 }
0x274d   : > { %v15958_v27 = vpop.eup %15957  ;;  %v9453_v17 = vadd.f32 %v18956_v6, %v9443_v23  ;;  %v9435_v58 = vmul.f32 %v15956_v36, %v9403_v9  ;;  %v9521_v9 = vld [vmem:[%s19854_s1] sm:$0xff]  ;;  %s19858_s1 = smov %s19857_s18 }
0x274e   : > { %v9454_v53 = vadd.f32 %v18956_v6, %v9444_v13  ;;  %v9436_v38 = vmul.f32 %v15958_v27, %v9404_v46  ;;  %v15109_v46 = vpack.c.bf16 %v9522_v40, %v9521_v9 }
0x274f   : > { %v9457_v62 = vsel %vm1729_vm0, %v9453_v17, 0.0  ;;  %v9445_v43 = vmul.f32 %v18953_v34, %v9435_v58 }
0x2750   : > { %9458 = vadd.xlane.f32.xlu0 %v9457_v62  ;;  %v9460_v14 = vsel %vm1729_vm0, %v9454_v53, 0.0  ;;  %v9446_v21 = vmul.f32 %v18953_v34, %v9436_v38  ;;  %15110 = vmatprep.subr.bf16.mxu0 %v15109_v46  ;;  %v9643_v38 = vld [vmem:[%s19856_s2 + $0x10] sm:$0xff]  ;;  %v9644_v62 = vld [vmem:[%s19856_s2 + $0x18] sm:$0xff]  ;;  %s19859_s2 = sld [smem:[#allocation42_spill]] }
0x2751   : > { %9461 = vadd.xlane.f32.xlu1 %v9460_v14  ;;  %v9455_v48 = vadd.f32 %v18956_v6, %v9445_v43  ;;  %15112 = vmatpush3.bf16.msra.mxu0 %v15109_v46 }
0x2752   : > { %v9456_v51 = vadd.f32 %v18956_v6, %v9446_v21  ;;  %15114 = vmatprep.subr.bf16.mxu0 %v15113_v20 }
0x2753   : > { %v9463_v56 = vsel %vm1729_vm0, %v9455_v48, 0.0 }
0x2754   : > { %9464 = vadd.xlane.f32.xlu0 %v9463_v56  ;;  %v9466_v25 = vsel %vm1729_vm0, %v9456_v51, 0.0 }
0x2755   : > { %9467 = vadd.xlane.f32.xlu1 %v9466_v25  ;;  %15116 = vmatpush3.bf16.msra.mxu0 %v15113_v20 }
0x2756   : > { %15118 = vmatprep.subr.bf16.mxu0 %v15117_v0  ;;  %v12439_v9 = vld [vmem:[%s19859_s2] ss:$0 sm:$0xff]  ;;  %s19862_s2 = smov 112  }
0x27dd   : > { %v9459_v30 = vpop.xlane.xlu0 %9458 }
0x27de   : > { %v9469_v15 = vmul.f32 0.03125, %v9459_v30  ;;  %v9462_v54 = vpop.xlane.xlu1 %9461  ;;  %v15121_v30 = vpack.c.bf16 %v9644_v62, %v9643_v38 }
0x27df   : > { %v9470_v8 = vmul.f32 0.03125, %v9462_v54 }
0x27e0   : > { %v9473_v2 = vsub.f32 %v9453_v17, %v9469_v15 }
0x27e1   : > { %v9474_v52 = vsub.f32 %v9454_v53, %v9470_v8  ;;  %v9465_v47 = vpop.xlane.xlu0 %9464  ;;  %v9630_v8 = vld [vmem:[%s19828_s4 + $0x8] sm:$0xff] }
0x27e2   : > { %v9471_v37 = vmul.f32 0.03125, %v9465_v47  ;;  %v9468_v5 = vpop.xlane.xlu1 %9467  ;;  %v9477_v39 = vmul.f32 %v9473_v2, %v9473_v2  ;;  %v16108_v47 = vld [vmem:[%s16776_s11 + $0x18] sm:$0xff] }
0x27e3   : > { %v9472_v24 = vmul.f32 0.03125, %v9468_v5  ;;  %v9478_v55 = vmul.f32 %v9474_v52, %v9474_v52 }
0x27e4   : > { %v9475_v11 = vsub.f32 %v9455_v48, %v9471_v37  ;;  %v9481_v45 = vsel %vm1729_vm0, %v9477_v39, 0.0 }
0x27e5   : > { %v9476_v32 = vsub.f32 %v9456_v51, %v9472_v24  ;;  %9482 = vadd.xlane.f32.xlu0 %v9481_v45  ;;  %v9484_v33 = vsel %vm1729_vm0, %v9478_v55, 0.0  ;;  %v16106_v51 = vld [vmem:[%s16776_s11 + $0x8] sm:$0xff]  ;;  %v9905_v24 = vld [vmem:[%s19857_s18] sm:$0xff]  ;;  %s19860_s18 = smov 120  }
0x27e6   : > { %9485 = vadd.xlane.f32.xlu1 %v9484_v33  ;;  %v9479_v3 = vmul.f32 %v9475_v11, %v9475_v11  ;;  %v18999_v37 = vadd.f32 %v16106_v51, %v9630_v8  ;;  %v9906_v55 = vld [vmem:[%s19858_s1 + $0x8] sm:$0xff] }
0x27e7   : > { %v9480_v26 = vmul.f32 %v9476_v32, %v9476_v32  ;;  %v15137_v45 = vpack.c.bf16 %v9906_v55, %v9905_v24 }
0x27e8   : > { %v9487_v59 = vsel %vm1729_vm0, %v9479_v3, 0.0 }
0x27e9   : > { %9488 = vadd.xlane.f32.xlu0 %v9487_v59  ;;  %v9490_v7 = vsel %vm1729_vm0, %v9480_v26, 0.0  ;;  %15138 = vmatprep.subr.bf16.mxu1 %v15137_v45 }
0x27ea   : > { %9491 = vadd.xlane.f32.xlu1 %v9490_v7  ;;  %15140 = vmatpush3.bf16.msra.mxu1 %v15137_v45 }
0x2872   : > { %v9483_v63 = vpop.xlane.xlu0 %9482 }
0x2873   : > { %v9493_v35 = vmul.f32 0.03125, %v9483_v63  ;;  %v9486_v41 = vpop.xlane.xlu1 %9485 }
0x2874   : > { %v9494_v4 = vmul.f32 0.03125, %v9486_v41 }
0x2875   : > { %v9497_v42 = vadd.f32 1e-05, %v9493_v35 }
0x2876   : > { %v9498_v44 = vadd.f32 1e-05, %v9494_v4  ;;  %v9489_v60 = vpop.xlane.xlu0 %9488 }
0x2877   : > { %15959 = vrsqrt.f32 %v9497_v42  ;;  %v9495_v29 = vmul.f32 0.03125, %v9489_v60  ;;  %v9492_v49 = vpop.xlane.xlu1 %9491 }
0x2878   : > { %15961 = vrsqrt.f32 %v9498_v44  ;;  %v9496_v12 = vmul.f32 0.03125, %v9492_v49 }
0x2879   : > { %v9499_v28 = vadd.f32 1e-05, %v9495_v29 }
0x287a   : > { %v9500_v10 = vadd.f32 1e-05, %v9496_v12 }
0x287b   : > { %15963 = vrsqrt.f32 %v9499_v28 }
0x287c   : > { %15965 = vrsqrt.f32 %v9500_v10 }
0x2881   : > { %v15960_v18 = vpop.eup %15959 }
0x2882   : > { %v15962_v31 = vpop.eup %15961  ;;  %v9505_v50 = vmul.f32 %v15960_v18, %v9473_v2  ;;  %v16107_v2 = vld [vmem:[%s16776_s11 + $0x10] sm:$0xff] }
0x2883   : > { %v9506_v23 = vmul.f32 %v15962_v31, %v9474_v52  ;;  %v9631_v52 = vld [vmem:[%s19828_s4 + $0x10] sm:$0xff] }
0x2884   : > { %v9509_v36 = vmul.f32 %v18953_v34, %v9505_v50  ;;  %v19002_v5 = vadd.f32 %v16107_v2, %v9631_v52 }
0x2885   : > { %v15964_v13 = vpop.eup %15963  ;;  %v9510_v27 = vmul.f32 %v18953_v34, %v9506_v23 }
0x2886   : > { %v15966_v17 = vpop.eup %15965  ;;  %v9507_v58 = vmul.f32 %v15964_v13, %v9475_v11  ;;  %v9513_v53 = vadd.f32 %v18956_v6, %v9509_v36  ;;  %v9907_v11 = vld [vmem:[%s19858_s1 + $0x10] sm:$0xff] }
0x2887   : > { %v9508_v43 = vmul.f32 %v15966_v17, %v9476_v32  ;;  %v9514_v14 = vadd.f32 %v18956_v6, %v9510_v27  ;;  %v9908_v32 = vld [vmem:[%s19858_s1 + $0x18] sm:$0xff] }
0x2888   : > { %v9517_v21 = vadd.f32 %v18874_v19, %v9513_v53  ;;  %v9511_v48 = vmul.f32 %v18953_v34, %v9507_v58  ;;  %v15141_v33 = vpack.c.bf16 %v9908_v32, %v9907_v11 }
0x2889   : > { %v9518_v56 = vadd.f32 %v16106_v51, %v9514_v14  ;;  %v9512_v25 = vmul.f32 %v18953_v34, %v9508_v43 }
0x288a   : > { %14279 = vmatprep.mubr.msk.f32.mxu0 %vm1729_vm0, %v9517_v21  ;;  %v9515_v15 = vadd.f32 %v18956_v6, %v9511_v48  ;;  %15142 = vmatprep.subr.bf16.mxu1 %v15141_v33 }
0x288b   : > { %14280 = vmatmul.mubr.msk.f32.vlgmr.msra.gmra.mrb[132].mxu0 %vm1729_vm0, %v9518_v56  ;;  %v9516_v54 = vadd.f32 %v18956_v6, %v9512_v25  ;;  %v9632_v6 = vld [vmem:[%s19828_s4 + $0x18] sm:$0xff]  ;;  %15144 = vmatpush3.bf16.msra.mxu1 %v15141_v33 }
0x288c   : > { %15120 = vmatpush3.bf16.msra.mxu0 %v15117_v0  ;;  %v9519_v19 = vadd.f32 %v16107_v2, %v9515_v15  ;;  %v19007_v39 = vadd.f32 %v16108_v47, %v9632_v6  ;;  %v12470_v15 = vld [vmem:[%s19858_s1 + $0x20] sm:$0xff] }
0x288d   : > { %v9520_v34 = vadd.f32 %v16108_v47, %v9516_v54  ;;  %15122 = vmatprep.subr.bf16.mxu0 %v15121_v30  ;;  %v12471_v54 = vld [vmem:[%s19858_s1 + $0x28] sm:$0xff] }
0x288e   : > { %14282 = vmatprep.mubr.msk.f32.mxu0 %vm1729_vm0, %v9519_v19  ;;  %14322 = vmatmul.mubr.msk.f32.vlgmr.msra.gmra.mrb[158].mxu1 %vm1729_vm0, %v18999_v37  ;;  %v19097_v8 = vpack.c.bf16 %v12471_v54, %v12470_v15  ;;  %v12472_v54 = vld [vmem:[%s19858_s1 + $0x30] sm:$0xff] }
0x288f   : > { %14283 = vmatmul.mubr.msk.f32.gmra.mrb[134].mxu0 %vm1729_vm0, %v9520_v34  ;;  %14324 = vmatprep.mubr.msk.f32.mxu1 %vm1729_vm0, %v19002_v5 }
0x2890   : > { %15124 = vmatpush3.bf16.msra.mxu0 %v15121_v30  ;;  %14293 = vmatprep.mubr.msk.f32.mxu0 %vm1729_vm0, %v18877_v16 }
0x2892   : > { %14325 = vmatmul.mubr.msk.f32.gmra.mrb[160].mxu1 %vm1729_vm0, %v19007_v39 }
0x2893   : > { %14294 = vmatmul.mubr.msk.f32.vlgmr.msra.gmra.mrb[136].mxu0 %vm1729_vm0, %v18999_v37 }
0x2894   : > { %14296 = vmatprep.mubr.msk.f32.mxu0 %vm1729_vm0, %v19002_v5 }
0x2897   : > { %14297 = vmatmul.mubr.msk.f32.gmra.mrb[138].mxu0 %vm1729_vm0, %v19007_v39 }
0x295e   : > { %v19025_v3 = vpop.f32.mrb[132].mxu0 }
0x295f   : > { %v19027_v26 = vpop.f32.mrb[133].mxu0 }
0x2961   : > { %v14323_v53 = vpop.f32.mrb[158].mxu1 }
0x2962   : > { %v19029_v59 = vpop.f32.mrb[134].mxu0  ;;  %v9982_v43 = vpop.f32.mrb[159].mxu1 }
0x2963   : > { %v19031_v7 = vpop.f32.mrb[135].mxu0 }
0x2965   : > { %v14326_v21 = vpop.f32.mrb[160].mxu1 }
0x2966   : > { %v14295_v40 = vpop.f32.mrb[136].mxu0  ;;  %v9992_v51 = vpop.f32.mrb[161].mxu1 }
0x2967   : > { %v9736_v46 = vadd.f32 %v14295_v40, %v12439_v9  ;;  %v9730_v61 = vpop.f32.mrb[137].mxu0 }
0x2968   : > { %v9731_v1 = vadd.f32 %v12439_v9, %v9730_v61 }
0x2969   : > { %10104 = vrot.lane.b32.xlu1 %v9736_v46, %s19860_s18 }
0x296a   : > { %10102 = vrot.lane.b32.xlu0 %v9731_v1, %s19860_s18  ;;  %v15125_v20 = vpack.c.bf16 %v9736_v46, %v9731_v1  ;;  %v14298_v22 = vpop.f32.mrb[138].mxu0  ;;  %14307 = vmatprep.mubr.msk.f32.mxu0 %vm1936_vm1, %v9731_v1 }
0x296b   : > { %v9746_v57 = vadd.f32 %v14298_v22, %v12439_v9  ;;  %v9740_v0 = vpop.f32.mrb[139].mxu0 }
0x296c   : > { %15127 = vmatprep.subr.msk.bf16.mxu0 %vm16835_vm2, %v15125_v20  ;;  %v9741_v35 = vadd.f32 %v12439_v9, %v9740_v0 }
0x296d   : > { %15130 = vmatpush3.bf16.xpose.msk.msra.mxu0 %vm16835_vm2, %v15125_v20 }
0x296e   : > { %10106 = vrot.lane.b32.xlu1 %v9741_v35, %s19860_s18  ;;  %10108 = vrot.lane.b32.xlu0 %v9746_v57, %s19860_s18  ;;  %v15131_v41 = vpack.c.bf16 %v9746_v57, %v9741_v35  ;;  %s19865_s18 = sld [smem:[#allocation17_spill]] }
0x2970   : > { %15133 = vmatprep.subr.msk.bf16.mxu0 %vm16835_vm2, %v15131_v41 }
0x2972   : > { %10453 = vrot.lane.b32.xlu1 %v9731_v1, %s19862_s2  ;;  %10455 = vrot.lane.b32.xlu0 %v9736_v46, %s19862_s2 }
0x2974   : > { %v19101_v2 = vld [vmem:[%s19865_s18 + $0x8] sm:$0xff] }
0x2975   : > { %15136 = vmatpush3.bf16.xpose.msk.msra.mxu0 %vm16835_vm2, %v15131_v41 }
0x2976   : > { %10457 = vrot.lane.b32.xlu1 %v9741_v35, %s19862_s2  ;;  %10459 = vrot.lane.b32.xlu0 %v9746_v57, %s19862_s2  ;;  %s19866_s2 = smov %s19865_s18  ;;  %s19867_s18 = sld [smem:[#allocation45_spill]] }
0x2977   : > { %v19104_v47 = vld [vmem:[%s19866_s2] sm:$0xff]  ;;  %v19109_v11 = vld [vmem:[%s19866_s2 + $0x18] sm:$0xff]  ;;  %v19113_v9 = vld [vmem:[%s19866_s2 + $0x10] sm:$0xff]  ;;  %s19870_s2 = sld [smem:[#allocation50_spill]] }
0x297a   : > { %10804 = vrot.lane.b32.xlu1 %v9731_v1, %s19863_s3  ;;  %10806 = vrot.lane.b32.xlu0 %v9736_v46, %s19863_s3 }
0x297c   : > { %14308 = vmatmul.mubr.msk.f32.vlgmr.msra.gmra.mrb[140].mxu0 %vm1936_vm1, %v9736_v46 }
0x297d   : > { %14310 = vmatprep.mubr.msk.f32.mxu0 %vm1936_vm1, %v9741_v35 }
0x297e   : > { %10808 = vrot.lane.b32.xlu1 %v9741_v35, %s19863_s3  ;;  %10810 = vrot.lane.b32.xlu0 %v9746_v57, %s19863_s3  ;;  %s19864_s3 = sld [smem:[#allocation44_spill]] }
0x2980   : > { %14311 = vmatmul.mubr.msk.f32.gmra.mrb[142].mxu0 %vm1936_vm1, %v9746_v57 }
0x2984   : > { %v12453_v38 = vld [vmem:[%s19864_s3] ss:$0 sm:$0xff] }
0x2985   : > { %v9988_v62 = vadd.f32 %v14323_v53, %v12453_v38  ;;  %v9983_v14 = vadd.f32 %v12453_v38, %v9982_v43  ;;  %v9998_v48 = vadd.f32 %v14326_v21, %v12453_v38  ;;  %v9993_v25 = vadd.f32 %v12453_v38, %v9992_v51 }
0x2987   : > { %v15145_v56 = vpack.c.bf16 %v9988_v62, %v9983_v14  ;;  %v15149_v30 = vpack.c.bf16 %v9998_v48, %v9993_v25 }
0x2989   : > { %15146 = vmatprep.subr.bf16.mxu0 %v15145_v56 }
0x298a   : > { %15148 = vmatpush3.bf16.msra.mxu0 %v15145_v56 }
0x298b   : > { %15150 = vmatprep.subr.bf16.mxu0 %v15149_v30 }
0x298e   : > { %15152 = vmatpush3.bf16.msra.mxu0 %v15149_v30 }
0x298f   : > { %15166 = vmatprep.subr.bf16.mxu0 %v19097_v8 }
0x29db   : > { %v10105_v4 = vpop.permute.xlu1 %10104 }
0x29dc   : > { %v10103_v42 = vpop.permute.xlu0 %10102 }
0x29dd   : > { %v15153_v44 = vpack.c.bf16 %v10105_v4, %v10103_v42  ;;  %14349 = vmatprep.mubr.msk.f32.mxu1 %vm1936_vm1, %v10103_v42 }
0x29df   : > { %15155 = vmatprep.subr.msk.bf16.mxu1 %vm16835_vm2, %v15153_v44 }
0x29e0   : > { %15158 = vmatpush3.bf16.xpose.msk.msra.mxu1 %vm16835_vm2, %v15153_v44  ;;  %v10107_v60 = vpop.permute.xlu1 %10106  ;;  %v10109_v29 = vpop.permute.xlu0 %10108 }
0x29e1   : > { %v15159_v49 = vpack.c.bf16 %v10109_v29, %v10107_v60 }
0x29e3   : > { %15161 = vmatprep.subr.msk.bf16.mxu1 %vm16835_vm2, %v15159_v49 }
0x29e4   : > { %v10454_v12 = vpop.permute.xlu1 %10453  ;;  %v10456_v28 = vpop.permute.xlu0 %10455 }
0x29e5   : > { %v15181_v10 = vpack.c.bf16 %v10456_v28, %v10454_v12 }
0x29e8   : > { %15164 = vmatpush3.bf16.xpose.msk.msra.mxu1 %vm16835_vm2, %v15159_v49  ;;  %v10458_v18 = vpop.permute.xlu1 %10457  ;;  %v10460_v31 = vpop.permute.xlu0 %10459 }
0x29e9   : > { %15183 = vmatprep.subr.msk.bf16.mxu1 %vm16835_vm2, %v15181_v10  ;;  %v15187_v50 = vpack.c.bf16 %v10460_v31, %v10458_v18 }
0x29ec   : > { %v10805_v23 = vpop.permute.xlu1 %10804  ;;  %v10807_v36 = vpop.permute.xlu0 %10806 }
0x29ed   : > { %v15209_v13 = vpack.c.bf16 %v10807_v36, %v10805_v23 }
0x29ef   : > { %14350 = vmatmul.mubr.msk.f32.vlgmr.msra.gmra.mrb[162].mxu1 %vm1936_vm1, %v10105_v4 }
0x29f0   : > { %15186 = vmatpush3.bf16.xpose.msk.msra.mxu1 %vm16835_vm2, %v15181_v10  ;;  %14352 = vmatprep.mubr.msk.f32.mxu1 %vm1936_vm1, %v10107_v60  ;;  %v10809_v27 = vpop.permute.xlu1 %10808  ;;  %v10811_v17 = vpop.permute.xlu0 %10810 }
0x29f1   : > { %15189 = vmatprep.subr.msk.bf16.mxu1 %vm16835_vm2, %v15187_v50  ;;  %v15215_v58 = vpack.c.bf16 %v10811_v17, %v10809_v27 }
0x29f3   : > { %14353 = vmatmul.mubr.msk.f32.gmra.mrb[164].mxu1 %vm1936_vm1, %v10109_v29 }
0x29f4   : > { %14391 = vmatprep.mubr.msk.f32.mxu1 %vm1936_vm1, %v10454_v12 }
0x29f8   : > { %15192 = vmatpush3.bf16.xpose.msk.msra.mxu1 %vm16835_vm2, %v15187_v50 }
0x29f9   : > { %15211 = vmatprep.subr.msk.bf16.mxu1 %vm16835_vm2, %v15209_v13 }
0x29ff   : > { %14392 = vmatmul.mubr.msk.f32.vlgmr.msra.gmra.mrb[166].mxu1 %vm1936_vm1, %v10456_v28 }
0x2a00   : > { %15214 = vmatpush3.bf16.xpose.msk.msra.mxu1 %vm16835_vm2, %v15209_v13  ;;  %14394 = vmatprep.mubr.msk.f32.mxu1 %vm1936_vm1, %v10458_v18 }
0x2a01   : > { %15217 = vmatprep.subr.msk.bf16.mxu1 %vm16835_vm2, %v15215_v58 }
0x2a03   : > { %14395 = vmatmul.mubr.msk.f32.gmra.mrb[168].mxu1 %vm1936_vm1, %v10460_v31 }
0x2a04   : > { %14433 = vmatprep.mubr.msk.f32.mxu1 %vm1936_vm1, %v10805_v23 }
0x2a08   : > { %15220 = vmatpush3.bf16.xpose.msk.msra.mxu1 %vm16835_vm2, %v15215_v58 }
0x2a0f   : > { %14434 = vmatmul.mubr.msk.f32.vlgmr.msra.gmra.mrb[170].mxu1 %vm1936_vm1, %v10807_v36 }
0x2a10   : > { %14436 = vmatprep.mubr.msk.f32.mxu1 %vm1936_vm1, %v10809_v27 }
0x2a13   : > { %14437 = vmatmul.mubr.msk.f32.gmra.mrb[172].mxu1 %vm1936_vm1, %v10811_v17 }
0x2a4f   : > { %v14309_v19 = vpop.f32.mrb[140].mxu0 }
0x2a50   : > { %v9855_v52 = vmul.f32 0.17677669, %v14309_v19  ;;  %v9835_v34 = vpop.f32.mrb[141].mxu0  ;;  %v12473_v19 = vld [vmem:[%s19858_s1 + $0x38] sm:$0xff] }
0x2a51   : > { %v9854_v6 = vmul.f32 0.17677669, %v9835_v34 }
0x2a52   : > { %v9859_v24 = vadd.f32 %v9855_v52, %v19101_v2 }
0x2a53   : > { %v9858_v55 = vadd.f32 %v9854_v6, %v19104_v47  ;;  %v14312_v45 = vpop.f32.mrb[142].mxu0 }
0x2a54   : > { %v9863_v32 = vsel %vm1729_vm0, %v9859_v24, -inf  ;;  %v9857_v33 = vmul.f32 0.17677669, %v14312_v45  ;;  %v9845_v40 = vpop.f32.mrb[143].mxu0  ;;  %v15169_v45 = vpack.c.bf16 %v12473_v19, %v12472_v54 }
0x2a55   : > { %v9862_v46 = vsel %vm1729_vm0, %v9858_v55, -inf  ;;  %v9856_v61 = vmul.f32 0.17677669, %v9845_v40 }
0x2a56   : > { %v9866_v1 = vmax.f32 %v9862_v46, %v9863_v32  ;;  %v9861_v20 = vadd.f32 %v9857_v33, %v19109_v11 }
0x2a57   : > { %v9860_v22 = vadd.f32 %v9856_v61, %v19113_v9 }
0x2a58   : > { %v9865_v57 = vsel %vm1729_vm0, %v9861_v20, -inf }
0x2a59   : > { %v9864_v0 = vsel %vm1729_vm0, %v9860_v22, -inf }
0x2a5a   : > { %v9867_v63 = vmax.f32 %v9864_v0, %v9865_v57 }
0x2a5c   : > { %v9868_v35 = vmax.f32 %v9866_v1, %v9867_v63 }
0x2a5e   : > { %v9869_v41 = vrot.slane %v9868_v35, 4 }
0x2a60   : > { %v9870_v4 = vmax.f32 %v9868_v35, %v9869_v41 }
0x2a62   : > { %v9871_v42 = vrot.slane %v9870_v4, 2 }
0x2a64   : > { %v9872_v44 = vmax.f32 %v9870_v4, %v9871_v42 }
0x2a66   : > { %v9873_v60 = vrot.slane %v9872_v44, 1 }
0x2a68   : > { %v9874_v29 = vmax.f32 %v9872_v44, %v9873_v60 }
0x2a6a   : > { %v9875_v49 = vsub.f32 %v9858_v55, %v9874_v29  ;;  %v9876_v12 = vsub.f32 %v9859_v24, %v9874_v29  ;;  %v9877_v28 = vsub.f32 %v9860_v22, %v9874_v29  ;;  %v9878_v10 = vsub.f32 %v9861_v20, %v9874_v29 }
0x2a6c   : > { %v9879_v18 = vmul.f32 1.442695, %v9875_v49  ;;  %v9881_v31 = vmul.f32 1.442695, %v9876_v12  ;;  %v9883_v50 = vmul.f32 1.442695, %v9877_v28 }
0x2a6d   : > { %v9885_v23 = vmul.f32 1.442695, %v9878_v10 }
0x2a6e   : > { %15967 = vpow2.f32 %v9879_v18 }
0x2a6f   : > { %15969 = vpow2.f32 %v9881_v31 }
0x2a70   : > { %15971 = vpow2.f32 %v9883_v50 }
0x2a71   : > { %15973 = vpow2.f32 %v9885_v23 }
0x2a78   : > { %v15968_v36 = vpop.eup %15967 }
0x2a79   : > { %v15970_v13 = vpop.eup %15969  ;;  %v9887_v27 = vsel %vm1729_vm0, %v15968_v36, 0.0 }
0x2a7a   : > { %v15972_v17 = vpop.eup %15971  ;;  %v9888_v58 = vsel %vm1729_vm0, %v15970_v13, 0.0 }
0x2a7b   : > { %v15974_v53 = vpop.eup %15973  ;;  %v9889_v38 = vadd.f32 %v9888_v58, %v9887_v27  ;;  %v9890_v62 = vsel %vm1729_vm0, %v15972_v17, 0.0 }
0x2a7c   : > { %v9892_v14 = vsel %vm1729_vm0, %v15974_v53, 0.0 }
0x2a7d   : > { %v9891_v43 = vadd.f32 %v9890_v62, %v9889_v38 }
0x2a7f   : > { %v9893_v21 = vadd.f32 %v9892_v14, %v9891_v43 }
0x2a81   : > { %v9894_v48 = vrot.slane %v9893_v21, 4 }
0x2a83   : > { %v9895_v51 = vadd.f32 %v9894_v48, %v9893_v21 }
0x2a85   : > { %v9896_v56 = vrot.slane %v9895_v51, 2 }
0x2a87   : > { %v9897_v25 = vadd.f32 %v9896_v56, %v9895_v51 }
0x2a89   : > { %v9898_v30 = vrot.slane %v9897_v25, 1 }
0x2a8b   : > { %v9899_v15 = vadd.f32 %v9898_v30, %v9897_v25 }
0x2a8d   : > { %15975 = vrcp.f32 %v9899_v15 }
0x2a97   : > { %v15976_v52 = vpop.eup %15975 }
0x2a98   : > { %v9901_v34 = vmul.f32 %v15976_v52, %v15968_v36  ;;  %v9902_v6 = vmul.f32 %v15976_v52, %v15970_v13  ;;  %v9903_v24 = vmul.f32 %v15976_v52, %v15972_v17  ;;  %v9904_v55 = vmul.f32 %v15976_v52, %v15974_v53 }
0x2a9a   : > { %14335 = vmatprep.mubr.msk.f32.mxu0 %vm1729_vm0, %v9901_v34 }
0x2a9b   : > { %14336 = vmatmul.mubr.msk.f32.vlgmr.msra.gmra.mrb[144].mxu0 %vm1729_vm0, %v9902_v6 }
0x2a9c   : > { %14338 = vmatprep.mubr.msk.f32.mxu0 %vm1729_vm0, %v9903_v24  ;;  %15168 = vmatpush3.bf16.msra.mxu0 %v19097_v8 }
0x2a9d   : > { %15170 = vmatprep.subr.bf16.mxu0 %v15169_v45 }
0x2a9f   : > { %14339 = vmatmul.mubr.msk.f32.gmra.mrb[146].mxu0 %vm1729_vm0, %v9904_v55 }
0x2aa0   : > { %15172 = vmatpush3.bf16.msra.mxu0 %v15169_v45  ;;  %14363 = vmatprep.mubr.msk.f32.mxu0 %vm1729_vm0, %v18877_v16 }
0x2aa3   : > { %14364 = vmatmul.mubr.msk.f32.vlgmr.msra.gmra.mrb[148].mxu0 %vm1729_vm0, %v18999_v37 }
0x2aa4   : > { %14366 = vmatprep.mubr.msk.f32.mxu0 %vm1729_vm0, %v19002_v5 }
0x2aa7   : > { %14367 = vmatmul.mubr.msk.f32.gmra.mrb[150].mxu0 %vm1729_vm0, %v19007_v39 }
0x2ac2   : > { %v14351_v32 = vpop.f32.mrb[162].mxu1 }
0x2ac3   : > { %v10204_v33 = vmul.f32 0.17677669, %v14351_v32  ;;  %v10184_v40 = vpop.f32.mrb[163].mxu1 }
0x2ac4   : > { %v10203_v8 = vmul.f32 0.17677669, %v10184_v40 }
0x2ac5   : > { %v10208_v46 = vadd.f32 %v10204_v33, %v19101_v2 }
0x2ac6   : > { %v10207_v61 = vadd.f32 %v10203_v8, %v19104_v47  ;;  %v14354_v1 = vpop.f32.mrb[164].mxu1 }
0x2ac7   : > { %v10212_v20 = vsel %vm1729_vm0, %v10208_v46, -inf  ;;  %v10206_v22 = vmul.f32 0.17677669, %v14354_v1  ;;  %v10194_v57 = vpop.f32.mrb[165].mxu1 }
0x2ac8   : > { %v10211_v0 = vsel %vm1729_vm0, %v10207_v61, -inf  ;;  %v10205_v63 = vmul.f32 0.17677669, %v10194_v57 }
0x2ac9   : > { %v10215_v35 = vmax.f32 %v10211_v0, %v10212_v20  ;;  %v10210_v41 = vadd.f32 %v10206_v22, %v19109_v11 }
0x2aca   : > { %v10209_v4 = vadd.f32 %v10205_v63, %v19113_v9 }
0x2acb   : > { %v10214_v42 = vsel %vm1729_vm0, %v10210_v41, -inf }
0x2acc   : > { %v10213_v44 = vsel %vm1729_vm0, %v10209_v4, -inf }
0x2acd   : > { %v10216_v60 = vmax.f32 %v10213_v44, %v10214_v42 }
0x2acf   : > { %v10217_v29 = vmax.f32 %v10215_v35, %v10216_v60 }
0x2ad1   : > { %v10218_v49 = vrot.slane %v10217_v29, 4 }
0x2ad2   : > { %v14393_v12 = vpop.f32.mrb[166].mxu1 }
0x2ad3   : > { %v10219_v28 = vmax.f32 %v10217_v29, %v10218_v49  ;;  %v10555_v10 = vmul.f32 0.17677669, %v14393_v12  ;;  %v10535_v18 = vpop.f32.mrb[167].mxu1 }
0x2ad4   : > { %v10554_v31 = vmul.f32 0.17677669, %v10535_v18 }
0x2ad5   : > { %v10220_v50 = vrot.slane %v10219_v28, 2  ;;  %v19148_v23 = vadd.f32 %v10555_v10, %v19101_v2 }
0x2ad6   : > { %v19151_v36 = vadd.f32 %v10554_v31, %v19104_v47  ;;  %v14396_v13 = vpop.f32.mrb[168].mxu1 }
0x2ad7   : > { %v10221_v27 = vmax.f32 %v10219_v28, %v10220_v50  ;;  %v10563_v17 = vsel %vm1729_vm0, %v19148_v23, -inf  ;;  %v10557_v58 = vmul.f32 0.17677669, %v14396_v13  ;;  %v10545_v53 = vpop.f32.mrb[169].mxu1 }
0x2ad8   : > { %v10562_v38 = vsel %vm1729_vm0, %v19151_v36, -inf  ;;  %v10556_v62 = vmul.f32 0.17677669, %v10545_v53 }
0x2ad9   : > { %v10222_v43 = vrot.slane %v10221_v27, 1  ;;  %v10566_v14 = vmax.f32 %v10562_v38, %v10563_v17  ;;  %v10561_v21 = vadd.f32 %v10557_v58, %v19109_v11 }
0x2ada   : > { %v10560_v48 = vadd.f32 %v10556_v62, %v19113_v9 }
0x2adb   : > { %v10223_v51 = vmax.f32 %v10221_v27, %v10222_v43  ;;  %v10565_v56 = vsel %vm1729_vm0, %v10561_v21, -inf }
0x2adc   : > { %v10564_v25 = vsel %vm1729_vm0, %v10560_v48, -inf }
0x2add   : > { %v10224_v30 = vsub.f32 %v10207_v61, %v10223_v51  ;;  %v10225_v15 = vsub.f32 %v10208_v46, %v10223_v51  ;;  %v10226_v54 = vsub.f32 %v10209_v4, %v10223_v51  ;;  %v10227_v19 = vsub.f32 %v10210_v41, %v10223_v51 }
0x2ade   : > { %v10567_v52 = vmax.f32 %v10564_v25, %v10565_v56 }
0x2adf   : > { %v10228_v34 = vmul.f32 1.442695, %v10224_v30  ;;  %v10230_v6 = vmul.f32 1.442695, %v10225_v15  ;;  %v10232_v24 = vmul.f32 1.442695, %v10226_v54 }
0x2ae0   : > { %v10234_v55 = vmul.f32 1.442695, %v10227_v19  ;;  %v10568_v45 = vmax.f32 %v10566_v14, %v10567_v52 }
0x2ae1   : > { %15977 = vpow2.f32 %v10228_v34 }
0x2ae2   : > { %15979 = vpow2.f32 %v10230_v6  ;;  %v10569_v32 = vrot.slane %v10568_v45, 4  ;;  %v14435_v33 = vpop.f32.mrb[170].mxu1 }
0x2ae3   : > { %15981 = vpow2.f32 %v10232_v24  ;;  %v10906_v40 = vmul.f32 0.17677669, %v14435_v33  ;;  %v10886_v8 = vpop.f32.mrb[171].mxu1 }
0x2ae4   : > { %15983 = vpow2.f32 %v10234_v55  ;;  %v10570_v1 = vmax.f32 %v10568_v45, %v10569_v32  ;;  %v10905_v20 = vmul.f32 0.17677669, %v10886_v8 }
0x2ae5   : > { %v19162_v46 = vadd.f32 %v10906_v40, %v19101_v2 }
0x2ae6   : > { %v10571_v61 = vrot.slane %v10570_v1, 2  ;;  %v19165_v22 = vadd.f32 %v10905_v20, %v19104_v47  ;;  %v14438_v57 = vpop.f32.mrb[172].mxu1 }
0x2ae7   : > { %v10914_v0 = vsel %vm1729_vm0, %v19162_v46, -inf  ;;  %v10908_v63 = vmul.f32 0.17677669, %v14438_v57  ;;  %v10896_v35 = vpop.f32.mrb[173].mxu1 }
0x2ae8   : > { %v10572_v41 = vmax.f32 %v10570_v1, %v10571_v61  ;;  %v10913_v4 = vsel %vm1729_vm0, %v19165_v22, -inf  ;;  %v10907_v42 = vmul.f32 0.17677669, %v10896_v35 }
0x2ae9   : > { %v10917_v44 = vmax.f32 %v10913_v4, %v10914_v0  ;;  %v10912_v60 = vadd.f32 %v10908_v63, %v19109_v11 }
0x2aea   : > { %v10573_v2 = vrot.slane %v10572_v41, 1  ;;  %v10911_v29 = vadd.f32 %v10907_v42, %v19113_v9 }
0x2aeb   : > { %v19173_v49 = vpop.eup %15977  ;;  %v10916_v47 = vsel %vm1729_vm0, %v10912_v60, -inf }
0x2aec   : > { %v19176_v12 = vpop.eup %15979  ;;  %v10236_v28 = vsel %vm1729_vm0, %v19173_v49, 0.0  ;;  %v10574_v10 = vmax.f32 %v10572_v41, %v10573_v2  ;;  %v10915_v18 = vsel %vm1729_vm0, %v10911_v29, -inf }
0x2aed   : > { %v19181_v31 = vpop.eup %15981  ;;  %v10237_v11 = vsel %vm1729_vm0, %v19176_v12, 0.0  ;;  %v10918_v50 = vmax.f32 %v10915_v18, %v10916_v47 }
0x2aee   : > { %v19185_v13 = vpop.eup %15983  ;;  %v10238_v9 = vadd.f32 %v10237_v11, %v10236_v28  ;;  %v10575_v27 = vsub.f32 %v19151_v36, %v10574_v10  ;;  %v10576_v17 = vsub.f32 %v19148_v23, %v10574_v10  ;;  %v10239_v58 = vsel %vm1729_vm0, %v19181_v31, 0.0 }
0x2aef   : > { %v10577_v53 = vsub.f32 %v10560_v48, %v10574_v10  ;;  %v10578_v38 = vsub.f32 %v10561_v21, %v10574_v10  ;;  %v10919_v62 = vmax.f32 %v10917_v44, %v10918_v50  ;;  %v10241_v56 = vsel %vm1729_vm0, %v19185_v13, 0.0 }
0x2af0   : > { %v10240_v43 = vadd.f32 %v10239_v58, %v10238_v9  ;;  %v10579_v14 = vmul.f32 1.442695, %v10575_v27  ;;  %v10581_v51 = vmul.f32 1.442695, %v10576_v17 }
0x2af1   : > { %v10583_v25 = vmul.f32 1.442695, %v10577_v53  ;;  %v10585_v30 = vmul.f32 1.442695, %v10578_v38  ;;  %v10920_v15 = vrot.slane %v10919_v62, 4 }
0x2af2   : > { %v10242_v54 = vadd.f32 %v10241_v56, %v10240_v43  ;;  %15985 = vpow2.f32 %v10579_v14 }
0x2af3   : > { %15987 = vpow2.f32 %v10581_v51  ;;  %v10921_v36 = vmax.f32 %v10919_v62, %v10920_v15 }
0x2af4   : > { %v10243_v23 = vrot.slane %v10242_v54, 4  ;;  %15989 = vpow2.f32 %v10583_v25 }
0x2af5   : > { %15991 = vpow2.f32 %v10585_v30  ;;  %v10922_v19 = vrot.slane %v10921_v36, 2 }
0x2af6   : > { %v10244_v48 = vadd.f32 %v10243_v23, %v10242_v54 }
0x2af7   : > { %v10923_v21 = vmax.f32 %v10921_v36, %v10922_v19 }
0x2af8   : > { %v10245_v52 = vrot.slane %v10244_v48, 2 }
0x2af9   : > { %v10924_v34 = vrot.slane %v10923_v21, 1 }
0x2afa   : > { %v10246_v6 = vadd.f32 %v10245_v52, %v10244_v48 }
0x2afb   : > { %v10925_v24 = vmax.f32 %v10923_v21, %v10924_v34 }
0x2afc   : > { %v15986_v55 = vpop.eup %15985  ;;  %v10247_v45 = vrot.slane %v10246_v6, 1 }
0x2afd   : > { %v15988_v32 = vpop.eup %15987  ;;  %v10587_v33 = vsel %vm1729_vm0, %v15986_v55, 0.0  ;;  %v10926_v40 = vsub.f32 %v19165_v22, %v10925_v24  ;;  %v10927_v8 = vsub.f32 %v19162_v46, %v10925_v24  ;;  %v10928_v1 = vsub.f32 %v10911_v29, %v10925_v24 }
0x2afe   : > { %v15990_v20 = vpop.eup %15989  ;;  %v10248_v61 = vadd.f32 %v10247_v45, %v10246_v6  ;;  %v10588_v57 = vsel %vm1729_vm0, %v15988_v32, 0.0  ;;  %v10929_v0 = vsub.f32 %v10912_v60, %v10925_v24 }
0x2aff   : > { %v15992_v63 = vpop.eup %15991  ;;  %v10589_v35 = vadd.f32 %v10588_v57, %v10587_v33  ;;  %v10930_v41 = vmul.f32 1.442695, %v10926_v40  ;;  %v10932_v4 = vmul.f32 1.442695, %v10927_v8  ;;  %v10590_v42 = vsel %vm1729_vm0, %v15990_v20, 0.0 }
0x2b00   : > { %15993 = vrcp.f32 %v10248_v61  ;;  %v10934_v44 = vmul.f32 1.442695, %v10928_v1  ;;  %v10936_v2 = vmul.f32 1.442695, %v10929_v0  ;;  %v10592_v22 = vsel %vm1729_vm0, %v15992_v63, 0.0 }
0x2b01   : > { %v10591_v47 = vadd.f32 %v10590_v42, %v10589_v35  ;;  %15995 = vpow2.f32 %v10930_v41  ;;  %v12492_v35 = vld [vmem:[%s19858_s1 + $0x40] sm:$0xff]  ;;  %v12493_v41 = vld [vmem:[%s19858_s1 + $0x48] sm:$0xff] }
0x2b02   : > { %15997 = vpow2.f32 %v10932_v4 }
0x2b03   : > { %v10593_v46 = vadd.f32 %v10592_v22, %v10591_v47  ;;  %15999 = vpow2.f32 %v10934_v44  ;;  %v15193_v44 = vpack.c.bf16 %v12493_v41, %v12492_v35  ;;  %v12495_v47 = vld [vmem:[%s19858_s1 + $0x58] sm:$0xff] }
0x2b04   : > { %16001 = vpow2.f32 %v10936_v2  ;;  %v12494_v2 = vld [vmem:[%s19858_s1 + $0x50] sm:$0xff] }
0x2b05   : > { %v10594_v29 = vrot.slane %v10593_v46, 4  ;;  %v15197_v22 = vpack.c.bf16 %v12495_v47, %v12494_v2 }
0x2b07   : > { %v10595_v28 = vadd.f32 %v10594_v29, %v10593_v46  ;;  %v12497_v46 = vld [vmem:[%s19864_s3 + $0x2] ss:$0 sm:$0xff] }
0x2b09   : > { %v10596_v60 = vrot.slane %v10595_v28, 2 }
0x2b0a   : > { %v15994_v10 = vpop.eup %15993 }
0x2b0b   : > { %v15996_v18 = vpop.eup %15995  ;;  %v10597_v11 = vadd.f32 %v10596_v60, %v10595_v28  ;;  %v10250_v50 = vmul.f32 %v15994_v10, %v19173_v49  ;;  %v10251_v9 = vmul.f32 %v15994_v10, %v19176_v12  ;;  %v10252_v27 = vmul.f32 %v15994_v10, %v19181_v31 }
0x2b0c   : > { %v15998_v17 = vpop.eup %15997  ;;  %v10938_v58 = vsel %vm1729_vm0, %v15996_v18, 0.0  ;;  %v10253_v53 = vmul.f32 %v15994_v10, %v19185_v13 }
0x2b0d   : > { %v16000_v38 = vpop.eup %15999  ;;  %v10598_v62 = vrot.slane %v10597_v11, 1  ;;  %v10939_v43 = vsel %vm1729_vm0, %v15998_v17, 0.0  ;;  %14377 = vmatprep.mubr.msk.f32.mxu0 %vm1729_vm0, %v10250_v50 }
0x2b0e   : > { %v16002_v14 = vpop.eup %16001  ;;  %v10940_v51 = vadd.f32 %v10939_v43, %v10938_v58  ;;  %v10941_v49 = vsel %vm1729_vm0, %v16000_v38, 0.0  ;;  %v12517_v43 = vld [vmem:[%s19858_s1 + $0x78] sm:$0xff] }
0x2b0f   : > { %v10599_v56 = vadd.f32 %v10598_v62, %v10597_v11  ;;  %v10943_v12 = vsel %vm1729_vm0, %v16002_v14, 0.0  ;;  %v12516_v62 = vld [vmem:[%s19858_s1 + $0x70] sm:$0xff] }
0x2b10   : > { %v10942_v25 = vadd.f32 %v10941_v49, %v10940_v51  ;;  %v12519_v51 = vld [vmem:[%s19864_s3 + $0x3] ss:$0 sm:$0xff] }
0x2b11   : > { %16003 = vrcp.f32 %v10599_v56 }
0x2b12   : > { %v10944_v31 = vadd.f32 %v10943_v12, %v10942_v25 }
0x2b14   : > { %v10945_v30 = vrot.slane %v10944_v31, 4 }
0x2b16   : > { %v10946_v15 = vadd.f32 %v10945_v30, %v10944_v31 }
0x2b18   : > { %v10947_v13 = vrot.slane %v10946_v15, 2 }
0x2b1a   : > { %v10948_v54 = vadd.f32 %v10947_v13, %v10946_v15 }
0x2b1b   : > { %v16004_v36 = vpop.eup %16003 }
0x2b1c   : > { %v10949_v23 = vrot.slane %v10948_v54, 1  ;;  %v10601_v19 = vmul.f32 %v16004_v36, %v15986_v55  ;;  %v19208_v48 = vmul.f32 %v16004_v36, %v15988_v32  ;;  %v19210_v21 = vmul.f32 %v16004_v36, %v15990_v20  ;;  %v12475_v55 = vld [vmem:[%s19864_s3 + $0x1] ss:$0 sm:$0xff]  ;;  %s19873_s3 = sld [smem:[#allocation49_spill]] }
0x2b1d   : > { %v19212_v52 = vmul.f32 %v16004_v36, %v15992_v63 }
0x2b1e   : > { %v10950_v34 = vadd.f32 %v10949_v23, %v10948_v54  ;;  %v12444_v23 = vld [vmem:[%s19867_s18] ss:$0 sm:$0xff]  ;;  %s19868_s18 = sld [smem:[#allocation48_spill]] }
0x2b20   : > { %16005 = vrcp.f32 %v10950_v34 }
0x2b2a   : > { %v16006_v6 = vpop.eup %16005 }
0x2b2b   : > { %v19214_v24 = vmul.f32 %v16006_v6, %v15996_v18  ;;  %v19216_v45 = vmul.f32 %v16006_v6, %v15998_v17  ;;  %v19218_v33 = vmul.f32 %v16006_v6, %v16000_v38  ;;  %v19220_v40 = vmul.f32 %v16006_v6, %v16002_v14  ;;  %v12515_v17 = vld [vmem:[%s19858_s1 + $0x68] sm:$0xff] }
0x2b2c   : > { %v15225_v14 = vpack.c.bf16 %v12517_v43, %v12516_v62  ;;  %v11345_v43 = vld [vmem:[%s19870_s2] sm:$0xff] }
0x2b76   : > { %v14365_v32 = vpop.f32.mrb[148].mxu0 }
0x2b77   : > { %v10339_v8 = vadd.f32 %v14365_v32, %v12475_v55  ;;  %v10333_v1 = vpop.f32.mrb[149].mxu0 }
0x2b78   : > { %v10334_v20 = vadd.f32 %v12475_v55, %v10333_v1 }
0x2b7a   : > { %v15173_v61 = vpack.c.bf16 %v10339_v8, %v10334_v20  ;;  %v14368_v57 = vpop.f32.mrb[150].mxu0 }
0x2b7b   : > { %v10349_v0 = vadd.f32 %v14368_v57, %v12475_v55  ;;  %v10343_v63 = vpop.f32.mrb[151].mxu0 }
0x2b7c   : > { %v10344_v4 = vadd.f32 %v12475_v55, %v10343_v63  ;;  %15174 = vmatprep.subr.bf16.mxu0 %v15173_v61 }
0x2b7d   : > { %15176 = vmatpush3.bf16.msra.mxu0 %v15173_v61 }
0x2b7e   : > { %v15177_v42 = vpack.c.bf16 %v10349_v0, %v10344_v4 }
0x2b80   : > { %15178 = vmatprep.subr.bf16.mxu0 %v15177_v42 }
0x2b81   : > { %15180 = vmatpush3.bf16.msra.mxu0 %v15177_v42 }
0x2b82   : > { %15194 = vmatprep.subr.bf16.mxu0 %v15193_v44 }
0x2b84   : > { %14378 = vmatmul.mubr.msk.f32.vlgmr.msra.gmra.mrb[144].mxu0 %vm1729_vm0, %v10251_v9 }
0x2b85   : > { %14380 = vmatprep.mubr.msk.f32.mxu0 %vm1729_vm0, %v10252_v27  ;;  %15196 = vmatpush3.bf16.msra.mxu0 %v15193_v44  ;;  %v12514_v27 = vld [vmem:[%s19858_s1 + $0x60] sm:$0xff]  ;;  %s19869_s1 = smov %s19868_s18 }
0x2b86   : > { %15198 = vmatprep.subr.bf16.mxu0 %v15197_v22  ;;  %v15221_v38 = vpack.c.bf16 %v12515_v17, %v12514_v27  ;;  %v11233_v27 = vld [vmem:[%s19868_s18] sm:$0xff]  ;;  %v11234_v17 = vld [vmem:[%s19869_s1 + $0x8] sm:$0xff]  ;;  %s19871_s18 = sld [smem:[#allocation46_spill]] }
0x2b88   : > { %14381 = vmatmul.mubr.msk.f32.gmra.mrb[146].mxu0 %vm1729_vm0, %v10253_v53 }
0x2b89   : > { %15200 = vmatpush3.bf16.msra.mxu0 %v15197_v22  ;;  %14405 = vmatprep.mubr.msk.f32.mxu0 %vm1729_vm0, %v18877_v16 }
0x2b8c   : > { %14406 = vmatmul.mubr.msk.f32.vlgmr.msra.gmra.mrb[152].mxu0 %vm1729_vm0, %v18999_v37 }
0x2b8d   : > { %14408 = vmatprep.mubr.msk.f32.mxu0 %vm1729_vm0, %v19002_v5 }
0x2b90   : > { %14409 = vmatmul.mubr.msk.f32.gmra.mrb[154].mxu0 %vm1729_vm0, %v19007_v39 }
0x2b91   : > { %14419 = vmatprep.mubr.msk.f32.mxu0 %vm1729_vm0, %v10601_v19 }
0x2c5f   : > { %v14407_v29 = vpop.f32.mrb[152].mxu0 }
0x2c60   : > { %v10690_v28 = vadd.f32 %v14407_v29, %v12497_v46  ;;  %v10684_v60 = vpop.f32.mrb[153].mxu0 }
0x2c61   : > { %v10685_v10 = vadd.f32 %v12497_v46, %v10684_v60 }
0x2c63   : > { %v15201_v18 = vpack.c.bf16 %v10690_v28, %v10685_v10  ;;  %v14410_v11 = vpop.f32.mrb[154].mxu0 }
0x2c64   : > { %v10700_v50 = vadd.f32 %v14410_v11, %v12497_v46  ;;  %v10694_v9 = vpop.f32.mrb[155].mxu0 }
0x2c65   : > { %v10695_v58 = vadd.f32 %v12497_v46, %v10694_v9  ;;  %15202 = vmatprep.subr.bf16.mxu0 %v15201_v18 }
0x2c66   : > { %15204 = vmatpush3.bf16.msra.mxu0 %v15201_v18 }
0x2c67   : > { %v15205_v53 = vpack.c.bf16 %v10700_v50, %v10695_v58  ;;  %v11235_v58 = vld [vmem:[%s19869_s1 + $0x10] sm:$0xff] }
0x2c69   : > { %15206 = vmatprep.subr.bf16.mxu0 %v15205_v53 }
0x2c6a   : > { %15208 = vmatpush3.bf16.msra.mxu0 %v15205_v53  ;;  %v15237_v53 = vpack.c.bf16 %v11234_v17, %v11233_v27 }
0x2c6b   : > { %15222 = vmatprep.subr.bf16.mxu0 %v15221_v38 }
0x2c6c   : > { %15238 = vmatprep.subr.bf16.mxu1 %v15237_v53 }
0x2c6d   : > { %14420 = vmatmul.mubr.msk.f32.vlgmr.msra.gmra.mrb[144].mxu0 %vm1729_vm0, %v19208_v48  ;;  %15240 = vmatpush3.bf16.msra.mxu1 %v15237_v53 }
0x2c6e   : > { %14422 = vmatprep.mubr.msk.f32.mxu0 %vm1729_vm0, %v19210_v21  ;;  %15224 = vmatpush3.bf16.msra.mxu0 %v15221_v38  ;;  %v11236_v38 = vld [vmem:[%s19869_s1 + $0x18] sm:$0xff]  ;;  %s19872_s1 = sld [smem:[#allocation47_spill]] }
0x2c6f   : > { %15226 = vmatprep.subr.bf16.mxu0 %v15225_v14  ;;  %v15241_v62 = vpack.c.bf16 %v11236_v38, %v11235_v58 }
0x2c71   : > { %14423 = vmatmul.mubr.msk.f32.gmra.mrb[146].mxu0 %vm1729_vm0, %v19212_v52  ;;  %15242 = vmatprep.subr.bf16.mxu1 %v15241_v62 }
0x2c72   : > { %15228 = vmatpush3.bf16.msra.mxu0 %v15225_v14  ;;  %14447 = vmatprep.mubr.msk.f32.mxu0 %vm1729_vm0, %v18877_v16  ;;  %v11346_v14 = vld [vmem:[%s19870_s2 + $0x8] sm:$0xff] }
0x2c73   : > { %15244 = vmatpush3.bf16.msra.mxu1 %v15241_v62 }
0x2c75   : > { %14448 = vmatmul.mubr.msk.f32.vlgmr.msra.gmra.mrb[156].mxu0 %vm1729_vm0, %v18999_v37 }
0x2c76   : > { %14450 = vmatprep.mubr.msk.f32.mxu0 %vm1729_vm0, %v19002_v5 }
0x2c79   : > { %14451 = vmatmul.mubr.msk.f32.gmra.mrb[158].mxu0 %vm1729_vm0, %v19007_v39 }
0x2c7a   : > { %14461 = vmatprep.mubr.msk.f32.mxu0 %vm1729_vm0, %v19214_v24 }
0x2d48   : > { %v14449_v56 = vpop.f32.mrb[156].mxu0 }
0x2d49   : > { %v11041_v49 = vadd.f32 %v14449_v56, %v12519_v51  ;;  %v11035_v25 = vpop.f32.mrb[157].mxu0  ;;  %v15245_v56 = vpack.c.bf16 %v11346_v14, %v11345_v43 }
0x2d4a   : > { %v11036_v12 = vadd.f32 %v12519_v51, %v11035_v25 }
0x2d4c   : > { %v15229_v31 = vpack.c.bf16 %v11041_v49, %v11036_v12  ;;  %v14452_v30 = vpop.f32.mrb[158].mxu0  ;;  %v11348_v49 = vld [vmem:[%s19870_s2 + $0x18] sm:$0xff]  ;;  %v11349_v12 = vld [vmem:[%s19870_s2 + $0x20] sm:$0xff] }
0x2d4d   : > { %v11051_v15 = vadd.f32 %v14452_v30, %v12519_v51  ;;  %v11045_v13 = vpop.f32.mrb[159].mxu0 }
0x2d4e   : > { %v11046_v54 = vadd.f32 %v12519_v51, %v11045_v13  ;;  %15230 = vmatprep.subr.bf16.mxu0 %v15229_v31  ;;  %v11347_v51 = vld [vmem:[%s19870_s2 + $0x10] sm:$0xff] }
0x2d4f   : > { %15232 = vmatpush3.bf16.msra.mxu0 %v15229_v31  ;;  %v15249_v25 = vpack.c.bf16 %v11348_v49, %v11347_v51  ;;  %v11350_v31 = vld [vmem:[%s19870_s2 + $0x28] sm:$0xff] }
0x2d50   : > { %v15233_v36 = vpack.c.bf16 %v11051_v15, %v11046_v54  ;;  %v15253_v30 = vpack.c.bf16 %v11350_v31, %v11349_v12 }
0x2d52   : > { %15234 = vmatprep.subr.bf16.mxu0 %v15233_v36 }
0x2d53   : > { %15236 = vmatpush3.bf16.msra.mxu0 %v15233_v36 }
0x2d54   : > { %15246 = vmatprep.subr.bf16.mxu0 %v15245_v56 }
0x2d56   : > { %14462 = vmatmul.mubr.msk.f32.vlgmr.msra.gmra.mrb[144].mxu0 %vm1729_vm0, %v19216_v45 }
0x2d57   : > { %14464 = vmatprep.mubr.msk.f32.mxu0 %vm1729_vm0, %v19218_v33  ;;  %15248 = vmatpush3.bf16.msra.mxu0 %v15245_v56 }
0x2d58   : > { %15250 = vmatprep.subr.bf16.mxu0 %v15249_v25 }
0x2d5a   : > { %14465 = vmatmul.mubr.msk.f32.gmra.mrb[146].mxu0 %vm1729_vm0, %v19220_v40 }
0x2d5b   : > { %15252 = vmatpush3.bf16.msra.mxu0 %v15249_v25 }
0x2d5c   : > { %15254 = vmatprep.subr.bf16.mxu0 %v15253_v30 }
0x2d5f   : > { %15256 = vmatpush3.bf16.msra.mxu0 %v15253_v30 }
0x2e29   : > { %v14463_v19 = vpop.f32.mrb[144].mxu0 }
0x2e2a   : > { %v15273_v48 = vadd.f32 %v14463_v19, %v12444_v23  ;;  %v11132_v21 = vpop.f32.mrb[145].mxu0 }
0x2e2b   : > { %v15274_v52 = vadd.f32 %v12444_v23, %v11132_v21 }
0x2e2c   : > { %v11156_v34 = vadd.f32 %v15273_v48, %v18999_v37 }
0x2e2d   : > { %v11155_v6 = vadd.f32 %v15274_v52, %v18877_v16  ;;  %v14466_v24 = vpop.f32.mrb[146].mxu0 }
0x2e2e   : > { %v15275_v55 = vadd.f32 %v14466_v24, %v12444_v23  ;;  %v11142_v32 = vpop.f32.mrb[147].mxu0  ;;  %v11164_v45 = vsel %vm1729_vm0, %v11156_v34, 0.0 }
0x2e2f   : > { %v15276_v8 = vadd.f32 %v12444_v23, %v11142_v32  ;;  %11165 = vadd.xlane.f32.xlu0 %v11164_v45  ;;  %v11161_v33 = vsel %vm1729_vm0, %v11155_v6, 0.0  ;;  %v12528_v32 = vld [vmem:[%s19871_s18] ss:$0 sm:$0xff]  ;;  %s19876_s18 = sld [smem:[#allocation53_spill]] }
0x2e30   : > { %v11158_v40 = vadd.f32 %v15275_v55, %v19007_v39  ;;  %11162 = vadd.xlane.f32.xlu1 %v11161_v33 }
0x2e31   : > { %v11157_v1 = vadd.f32 %v15276_v8, %v19002_v5 }
0x2e32   : > { %v11170_v20 = vsel %vm1729_vm0, %v11158_v40, 0.0 }
0x2e33   : > { %v11167_v61 = vsel %vm1729_vm0, %v11157_v1, 0.0 }
0x2e34   : > { %11171 = vadd.xlane.f32.xlu1 %v11170_v20  ;;  %11168 = vadd.xlane.f32.xlu0 %v11167_v61 }
0x2ebc   : > { %v11166_v57 = vpop.xlane.xlu0 %11165 }
0x2ebd   : > { %v11174_v0 = vmul.f32 0.03125, %v11166_v57  ;;  %v11163_v63 = vpop.xlane.xlu1 %11162 }
0x2ebe   : > { %v11173_v35 = vmul.f32 0.03125, %v11163_v63 }
0x2ebf   : > { %v19276_v41 = vsub.f32 %v11156_v34, %v11174_v0 }
0x2ec0   : > { %v19278_v4 = vsub.f32 %v11155_v6, %v11173_v35 }
0x2ec1   : > { %v11172_v42 = vpop.xlane.xlu1 %11171  ;;  %v11169_v44 = vpop.xlane.xlu0 %11168  ;;  %v11182_v2 = vmul.f32 %v19276_v41, %v19276_v41 }
0x2ec2   : > { %v11176_v47 = vmul.f32 0.03125, %v11172_v42  ;;  %v11175_v22 = vmul.f32 0.03125, %v11169_v44  ;;  %v11181_v46 = vmul.f32 %v19278_v4, %v19278_v4 }
0x2ec3   : > { %v11188_v29 = vsel %vm1729_vm0, %v11182_v2, 0.0 }
0x2ec4   : > { %v19285_v28 = vsub.f32 %v11158_v40, %v11176_v47  ;;  %v19287_v60 = vsub.f32 %v11157_v1, %v11175_v22  ;;  %11189 = vadd.xlane.f32.xlu1 %v11188_v29  ;;  %v11185_v10 = vsel %vm1729_vm0, %v11181_v46, 0.0  ;;  %v12529_v40 = vld [vmem:[%s19872_s1] ss:$0 sm:$0xff]  ;;  %v11351_v47 = vld [vmem:[%s19870_s2 + $0x30] sm:$0xff]  ;;  %v11352_v22 = vld [vmem:[%s19870_s2 + $0x38] sm:$0xff]  ;;  %s19874_s1 = sld [smem:[#allocation51_spill]] }
0x2ec5   : > { %11186 = vadd.xlane.f32.xlu0 %v11185_v10  ;;  %v15257_v46 = vpack.c.bf16 %v11352_v22, %v11351_v47  ;;  %v12530_v29 = vld [vmem:[%s19873_s3] ss:$0 sm:$0xff]  ;;  %s19875_s3 = sld [smem:[#allocation52_spill]] }
0x2ec6   : > { %v11184_v18 = vmul.f32 %v19285_v28, %v19285_v28  ;;  %v11183_v11 = vmul.f32 %v19287_v60, %v19287_v60 }
0x2ec7   : > { %15258 = vmatprep.subr.bf16.mxu0 %v15257_v46 }
0x2ec8   : > { %v11194_v50 = vsel %vm1729_vm0, %v11184_v18, 0.0  ;;  %v11191_v9 = vsel %vm1729_vm0, %v11183_v11, 0.0  ;;  %15260 = vmatpush3.bf16.msra.mxu0 %v15257_v46 }
0x2ec9   : > { %11195 = vadd.xlane.f32.xlu1 %v11194_v50  ;;  %11192 = vadd.xlane.f32.xlu0 %v11191_v9 }
0x2eca   : > { %v12535_v62 = vld [vmem:[%s19874_s1] ss:$0 sm:$0xff]  ;;  %s19576_s1 = sand.u32 1, %s16278_s16  }
0x2f51   : > { %v11190_v15 = vpop.xlane.xlu1 %11189 }
0x2f52   : > { %v11198_v13 = vmul.f32 0.03125, %v11190_v15  ;;  %v11187_v54 = vpop.xlane.xlu0 %11186 }
0x2f53   : > { %v11197_v36 = vmul.f32 0.03125, %v11187_v54 }
0x2f54   : > { %v11202_v23 = vadd.f32 1e-05, %v11198_v13 }
0x2f55   : > { %v11201_v19 = vadd.f32 1e-05, %v11197_v36 }
0x2f56   : > { %16007 = vrsqrt.f32 %v11202_v23  ;;  %v11196_v48 = vpop.xlane.xlu1 %11195  ;;  %v11193_v21 = vpop.xlane.xlu0 %11192 }
0x2f57   : > { %16009 = vrsqrt.f32 %v11201_v19  ;;  %v11200_v52 = vmul.f32 0.03125, %v11196_v48  ;;  %v11199_v34 = vmul.f32 0.03125, %v11193_v21 }
0x2f59   : > { %v11204_v6 = vadd.f32 1e-05, %v11200_v52  ;;  %v11203_v24 = vadd.f32 1e-05, %v11199_v34 }
0x2f5b   : > { %16011 = vrsqrt.f32 %v11204_v6 }
0x2f5c   : > { %16013 = vrsqrt.f32 %v11203_v24 }
0x2f60   : > { %v16008_v55 = vpop.eup %16007 }
0x2f61   : > { %v16010_v45 = vpop.eup %16009  ;;  %v11210_v8 = vmul.f32 %v16008_v55, %v19276_v41 }
0x2f62   : > { %v11209_v33 = vmul.f32 %v16010_v45, %v19278_v4 }
0x2f63   : > { %v11220_v1 = vmul.f32 %v12528_v32, %v11210_v8 }
0x2f64   : > { %v11219_v20 = vmul.f32 %v12528_v32, %v11209_v33 }
0x2f65   : > { %v16012_v61 = vpop.eup %16011  ;;  %v19313_v35 = vadd.f32 %v12529_v40, %v11220_v1 }
0x2f66   : > { %v16014_v57 = vpop.eup %16013  ;;  %v19310_v0 = vadd.f32 %v12529_v40, %v11219_v20  ;;  %v11212_v63 = vmul.f32 %v16012_v61, %v19285_v28 }
0x2f67   : > { %v11211_v42 = vmul.f32 %v16014_v57, %v19287_v60 }
0x2f68   : > { %14475 = vmatprep.mubr.msk.f32.mxu1 %vm1729_vm0, %v19310_v0  ;;  %v11222_v41 = vmul.f32 %v12528_v32, %v11212_v63 }
0x2f69   : > { %14476 = vmatmul.mubr.msk.f32.vlgmr.msra.gmra.mrb[174].mxu1 %vm1729_vm0, %v19313_v35  ;;  %v11221_v4 = vmul.f32 %v12528_v32, %v11211_v42 }
0x2f6a   : > { %v19320_v44 = vadd.f32 %v12529_v40, %v11222_v41 }
0x2f6b   : > { %v19322_v2 = vadd.f32 %v12529_v40, %v11221_v4 }
0x2f6d   : > { %14478 = vmatprep.mubr.msk.f32.mxu1 %vm1729_vm0, %v19322_v2 }
0x2f6e   : > { %14479 = vmatmul.mubr.msk.f32.gmra.mrb[176].mxu1 %vm1729_vm0, %v19320_v44 }
0x303c   : > { %v14477_v28 = vpop.f32.mrb[174].mxu1 }
0x303d   : > { %v11328_v60 = vadd.f32 %v14477_v28, %v12530_v29  ;;  %v11322_v10 = vpop.f32.mrb[175].mxu1 }
0x303e   : > { %v11323_v18 = vadd.f32 %v12530_v29, %v11322_v10 }
0x303f   : > { %v11342_v50 = vmax.f32 %v11328_v60, 0.0 }
0x3040   : > { %v11341_v11 = vmax.f32 %v11323_v18, 0.0 }
0x3041   : > { %v14480_v9 = vpop.f32.mrb[176].mxu1 }
0x3042   : > { %v11338_v27 = vadd.f32 %v14480_v9, %v12530_v29  ;;  %v11332_v17 = vpop.f32.mrb[177].mxu1  ;;  %14497 = vmatprep.mubr.msk.f32.mxu0 %vm3582_vm3, %v11341_v11 }
0x3043   : > { %v11333_v58 = vadd.f32 %v12530_v29, %v11332_v17  ;;  %14498 = vmatmul.mubr.msk.f32.vlgmr.msra.gmra.mrb[160].mxu0 %vm3582_vm3, %v11342_v50 }
0x3044   : > { %v11344_v38 = vmax.f32 %v11338_v27, 0.0 }
0x3045   : > { %v11343_v53 = vmax.f32 %v11333_v58, 0.0 }
0x3047   : > { %14500 = vmatprep.mubr.msk.f32.mxu0 %vm3582_vm3, %v11343_v53  ;;  %v12540_v53 = vld [vmem:[%s19875_s3] ss:$0 sm:$0xff]  ;;  %s12002_s3 = sshll.u32 %s19576_s1, 5 }
0x3048   : > { %14501 = vmatmul.mubr.msk.f32.gmra.mrb[162].mxu0 %vm3582_vm3, %v11344_v38 }
0x3116   : > { %v14499_v43 = vpop.f32.mrb[160].mxu0 }
0x3117   : > { %v11444_v14 = vadd.f32 %v14499_v43, %v12535_v62  ;;  %v11438_v51 = vpop.f32.mrb[161].mxu0 }
0x3118   : > { %v11439_v56 = vadd.f32 %v12535_v62, %v11438_v51 }
0x3119   : > { %v11458_v49 = vadd.f32 %v11444_v14, %v19313_v35  ;;  %v12541_v14 = vld [vmem:[%s19876_s18] ss:$0 sm:$0xff]  ;;  %s1677_s18 = scalar_lea.vmem [#allocation10], %s12002_s3 }
0x311a   : > { %v11457_v25 = vadd.f32 %v11439_v56, %v19310_v0  ;;  %s11807_s2 = sshll.u32 %s1677_s18, 4  ;;  %s19400_s2 = int_to_ptr.vmem [resolvable:$true] %s11807_s2 }
0x311b   : > { %v14502_v12 = vpop.f32.mrb[162].mxu0  ;;  %v11466_v31 = vsel %vm1729_vm0, %v11458_v49, 0.0  ;;  %s16212_s4 = scalar_lea.vmem %s19400_s2, 512 }
0x311c   : > { %v11454_v30 = vadd.f32 %v14502_v12, %v12535_v62  ;;  %v11448_v15 = vpop.f32.mrb[163].mxu0  ;;  %11467 = vadd.xlane.f32.xlu1 %v11466_v31  ;;  %v11463_v13 = vsel %vm1729_vm0, %v11457_v25, 0.0  ;;  %p16213_p1 = scmp.ne.s32.totalorder %s19400_s2, %s16212_s4 }
0x311d   : > { %v11449_v54 = vadd.f32 %v12535_v62, %v11448_v15  ;;  %11464 = vadd.xlane.f32.xlu0 %v11463_v13 }
0x311e   : > { %v11460_v36 = vadd.f32 %v11454_v30, %v19320_v44  ;;  %p16214_p3 = pnand %p16213_p1, %p19879_p2 }
0x311f   : > { %v11459_v23 = vadd.f32 %v11449_v54, %v19322_v2 }
0x3120   : > { %v11472_v19 = vsel %vm1729_vm0, %v11460_v36, 0.0  ;;  %p16215_p4 = pneg %p16214_p3 }
0x3121   : > { %11473 = vadd.xlane.f32.xlu1 %v11472_v19  ;;  %v11469_v48 = vsel %vm1729_vm0, %v11459_v23, 0.0 }
0x3122   : > { %11470 = vadd.xlane.f32.xlu0 %v11469_v48 }
0x31a9   : > { %v11468_v21 = vpop.xlane.xlu1 %11467 }
0x31aa   : > { %v11476_v52 = vmul.f32 0.03125, %v11468_v21  ;;  %v11465_v34 = vpop.xlane.xlu0 %11464 }
0x31ab   : > { %v11475_v6 = vmul.f32 0.03125, %v11465_v34 }
0x31ac   : > { %v11480_v24 = vsub.f32 %v11458_v49, %v11476_v52  ;;  %v16109_v52 = vld [vmem:[%s16776_s11 + $0x8] sm:$0xff] }
0x31ad   : > { %v11479_v55 = vsub.f32 %v11457_v25, %v11475_v6 }
0x31ae   : > { %v11474_v32 = vpop.xlane.xlu1 %11473  ;;  %v11484_v45 = vmul.f32 %v11480_v24, %v11480_v24 }
0x31af   : > { %v11478_v8 = vmul.f32 0.03125, %v11474_v32  ;;  %v11471_v33 = vpop.xlane.xlu0 %11470  ;;  %v11483_v40 = vmul.f32 %v11479_v55, %v11479_v55 }
0x31b0   : > { %v11477_v1 = vmul.f32 0.03125, %v11471_v33  ;;  %v11490_v20 = vsel %vm1729_vm0, %v11484_v45, 0.0 }
0x31b1   : > { %v11482_v61 = vsub.f32 %v11460_v36, %v11478_v8  ;;  %11491 = vadd.xlane.f32.xlu1 %v11490_v20  ;;  %v11487_v57 = vsel %vm1729_vm0, %v11483_v40, 0.0  ;;  %v16111_v8 = vld [vmem:[%s16776_s11 + $0x18] sm:$0xff]  ;;  %v16112_v40 = vld [vmem:[%s16776_s11 + $0x10] sm:$0xff] }
0x31b2   : > { %v11481_v63 = vsub.f32 %v11459_v23, %v11477_v1  ;;  %11488 = vadd.xlane.f32.xlu0 %v11487_v57 }
0x31b3   : > { %v11486_v42 = vmul.f32 %v11482_v61, %v11482_v61 }
0x31b4   : > { %v11485_v41 = vmul.f32 %v11481_v63, %v11481_v63 }
0x31b5   : > { %v11496_v4 = vsel %vm1729_vm0, %v11486_v42, 0.0 }
0x31b6   : > { %11497 = vadd.xlane.f32.xlu1 %v11496_v4  ;;  %v11493_v47 = vsel %vm1729_vm0, %v11485_v41, 0.0 }
0x31b7   : > { %11494 = vadd.xlane.f32.xlu0 %v11493_v47 }
0x323e   : > { %v11492_v22 = vpop.xlane.xlu1 %11491 }
0x323f   : > { %v11500_v46 = vmul.f32 0.03125, %v11492_v22  ;;  %v11489_v29 = vpop.xlane.xlu0 %11488 }
0x3240   : > { %v11499_v28 = vmul.f32 0.03125, %v11489_v29 }
0x3241   : > { %v11504_v60 = vadd.f32 1e-05, %v11500_v46 }
0x3242   : > { %v11503_v10 = vadd.f32 1e-05, %v11499_v28 }
0x3243   : > { %16015 = vrsqrt.f32 %v11504_v60  ;;  %v11498_v18 = vpop.xlane.xlu1 %11497 }
0x3244   : > { %16017 = vrsqrt.f32 %v11503_v10  ;;  %v11502_v11 = vmul.f32 0.03125, %v11498_v18  ;;  %v11495_v50 = vpop.xlane.xlu0 %11494 }
0x3245   : > { %v11501_v9 = vmul.f32 0.03125, %v11495_v50 }
0x3246   : > { %v11506_v27 = vadd.f32 1e-05, %v11502_v11 }
0x3247   : > { %v11505_v17 = vadd.f32 1e-05, %v11501_v9 }
0x3248   : > { %16019 = vrsqrt.f32 %v11506_v27  ;;  %v11621_v27 = vld [vmem:[%s16620_s20] sm:$0xff] }
0x3249   : > { %16021 = vrsqrt.f32 %v11505_v17  ;;  %v11622_v17 = vld [vmem:[%s16620_s20 + $0x8] sm:$0xff] }
0x324d   : > { %v16016_v58 = vpop.eup %16015 }
0x324e   : > { %v16018_v38 = vpop.eup %16017  ;;  %v11512_v62 = vmul.f32 %v16016_v58, %v11480_v24  ;;  %v16110_v24 = vld [vmem:[%s16776_s11] sm:$0xff]  ;;  %v11623_v58 = vld [vmem:[%s16620_s20 + $0x10] sm:$0xff]  ;;  %s19877_s11 = sld [smem:[#allocation40_spill]] }
0x324f   : > { %v11511_v43 = vmul.f32 %v16018_v38, %v11479_v55  ;;  %v11624_v38 = vld [vmem:[%s16620_s20 + $0x18] sm:$0xff] }
0x3250   : > { %v11522_v51 = vmul.f32 %v12540_v53, %v11512_v62  ;;  %v15265_v62 = vpack.c.bf16 %v11624_v38, %v11623_v58 }
0x3251   : > { %v11521_v56 = vmul.f32 %v12540_v53, %v11511_v43 }
0x3252   : > { %v16020_v49 = vpop.eup %16019  ;;  %v11532_v25 = vadd.f32 %v12541_v14, %v11522_v51 }
0x3253   : > { %v16022_v12 = vpop.eup %16021  ;;  %v11514_v31 = vmul.f32 %v16020_v49, %v11482_v61  ;;  %v11531_v30 = vadd.f32 %v12541_v14, %v11521_v56 }
0x3254   : > { %v11513_v15 = vmul.f32 %v16022_v12, %v11481_v63  ;;  %v11536_v13 = vadd.f32 %v11532_v25, %v18999_v37 }
0x3255   : > { %v11535_v54 = vadd.f32 %v11531_v30, %v18877_v16  ;;  %v11524_v36 = vmul.f32 %v12540_v53, %v11514_v31 }
0x3256   : > { %v11540_v23 = vadd.f32 %v11536_v13, %v19313_v35  ;;  %v11523_v19 = vmul.f32 %v12540_v53, %v11513_v15  ;;  %v15261_v53 = vpack.c.bf16 %v11622_v17, %v11621_v27 }
0x3257   : > { %v11539_v48 = vadd.f32 %v11535_v54, %v19310_v0  ;;  %v11534_v21 = vadd.f32 %v12541_v14, %v11524_v36 }
0x3258   : > { %v11544_v34 = vadd.f32 %v16109_v52, %v11540_v23  ;;  %v11533_v6 = vadd.f32 %v12541_v14, %v11523_v19  ;;  %15262 = vmatprep.subr.bf16.mxu1 %v15261_v53  ;;  %v12542_v23 = vld [vmem:[#allocation6] ss:$0 sm:$0xff]  ;;  %v12543_v52 = vld [vmem:[#allocation7] ss:$0 sm:$0xff] }
0x3259   : > { %v11543_v55 = vadd.f32 %v16110_v24, %v11539_v48  ;;  %v11538_v32 = vadd.f32 %v11534_v21, %v19007_v39  ;;  %15264 = vmatpush3.bf16.msra.mxu1 %v15261_v53 }
0x325a   : > { %v11552_v37 = vsel %vm1729_vm0, %v11544_v34, 0.0  ;;  %v11537_v16 = vadd.f32 %v11533_v6, %v19002_v5  ;;  %15266 = vmatprep.subr.bf16.mxu1 %v15265_v62 }
0x325b   : > { %11553 = vadd.xlane.f32.xlu1 %v11552_v37  ;;  %v11549_v35 = vsel %vm1729_vm0, %v11543_v55, 0.0  ;;  %v11542_v45 = vadd.f32 %v11538_v32, %v19320_v44 }
0x325c   : > { %11550 = vadd.xlane.f32.xlu0 %v11549_v35  ;;  %v11541_v0 = vadd.f32 %v11537_v16, %v19322_v2 }
0x325d   : > { %v11546_v33 = vadd.f32 %v16111_v8, %v11542_v45  ;;  %15268 = vmatpush3.bf16.msra.mxu1 %v15265_v62 }
0x325e   : > { %v11545_v1 = vadd.f32 %v16112_v40, %v11541_v0  ;;  %v12434_v40 = vld [vmem:[%s19877_s11] ss:$0 sm:$0xff]  ;;  %s12565_s11 = sshll.u32 %s16653_s0, 9  ;;  %s19878_s0 = sand.u32 1, %s16278_s16  }
0x325f   : > { %v11558_v20 = vsel %vm1729_vm0, %v11546_v33, 0.0  ;;  %s19398_s1 = scalar_lea.hbm %s16630_s6, %s12565_s11  ;;  %s19406_s3 = scalar_lea.sflag [#allocation4], %s19878_s0 }
0x3260   : > { %11559 = vadd.xlane.f32.xlu1 %v11558_v20  ;;  %v11555_v39 = vsel %vm1729_vm0, %v11545_v1, 0.0  ;;  %v9611_v20 = vadd.f32 %v12434_v40, %v19027_v26  ;;  %s16349_s11 = smov [#allocation10]  }
0x3261   : > { %11556 = vadd.xlane.f32.xlu0 %v11555_v39  ;;  %s16216_s5 = sshll.u32 %s16349_s11, 4  ;;  %s16217_s5 = int_to_ptr.vmem [resolvable:$false] %s16216_s5 }
0x3262   : > { %s16218_s8 = scalar_lea.vmem %s16217_s5, 1024  ;;  %p16219_p7 = scmp.lt.s32.totalorder %s19400_s2, %s16217_s5 }
0x3263   : > { %p16220_p6 = scmp.lt.s32.totalorder %s16218_s8, %s16212_s4 }
0x3265   : > { %p16221_p5 = por %p16220_p6, %p16219_p7 }
0x3267   : > { %p16222_p9 = pnand %p16221_p5, %p16215_p4 }
0x32e8   : > { %v11554_v61 = vpop.xlane.xlu1 %11553 }
0x32e9   : > { %v11562_v5 = vmul.f32 0.03125, %v11554_v61  ;;  %v11551_v57 = vpop.xlane.xlu0 %11550  ;;  %v19382_v61 = vadd.f32 %v19029_v59, %v12434_v40 }
0x32ea   : > { %v11561_v63 = vmul.f32 0.03125, %v11551_v57  ;;  %v19385_v57 = vadd.f32 %v12434_v40, %v19031_v7 }
0x32eb   : > { %v11566_v42 = vsub.f32 %v11544_v34, %v11562_v5  ;;  %v12549_v5 = vmul.f32 -1.442695, %v9611_v20 }
0x32ec   : > { %v11565_v41 = vsub.f32 %v11543_v55, %v11561_v63  ;;  %v12544_v63 = vld [vmem:[#allocation9] ss:$0 sm:$0xff] }
0x32ed   : > { %v11560_v44 = vpop.xlane.xlu1 %11559  ;;  %v11570_v4 = vmul.f32 %v11566_v42, %v11566_v42 }
0x32ee   : > { %v11564_v47 = vmul.f32 0.03125, %v11560_v44  ;;  %v11557_v2 = vpop.xlane.xlu0 %11556  ;;  %v11569_v22 = vmul.f32 %v11565_v41, %v11565_v41 }
0x32ef   : > { %v11563_v46 = vmul.f32 0.03125, %v11557_v2  ;;  %v11576_v29 = vsel %vm1729_vm0, %v11570_v4, 0.0 }
0x32f0   : > { %v11568_v28 = vsub.f32 %v11546_v33, %v11564_v47  ;;  %11577 = vadd.xlane.f32.xlu1 %v11576_v29  ;;  %v11573_v60 = vsel %vm1729_vm0, %v11569_v22, 0.0 }
0x32f1   : > { %v11567_v10 = vsub.f32 %v11545_v1, %v11563_v46  ;;  %11574 = vadd.xlane.f32.xlu0 %v11573_v60  ;;  %v9616_v1 = vadd.f32 %v19025_v3, %v12434_v40 }
0x32f2   : > { %v11572_v18 = vmul.f32 %v11568_v28, %v11568_v28 }
0x32f3   : > { %v11571_v11 = vmul.f32 %v11567_v10, %v11567_v10  ;;  %v12550_v39 = vmul.f32 -1.442695, %v9616_v1 }
0x32f4   : > { %v11582_v50 = vsel %vm1729_vm0, %v11572_v18, 0.0 }
0x32f5   : > { %11583 = vadd.xlane.f32.xlu1 %v11582_v50  ;;  %v11579_v9 = vsel %vm1729_vm0, %v11571_v11, 0.0 }
0x32f6   : > { %11580 = vadd.xlane.f32.xlu0 %v11579_v9 }
0x337d   : > { %v11578_v43 = vpop.xlane.xlu1 %11577 }
0x337e   : > { %v11586_v14 = vmul.f32 0.03125, %v11578_v43  ;;  %v11575_v51 = vpop.xlane.xlu0 %11574 }
0x337f   : > { %v11585_v56 = vmul.f32 0.03125, %v11575_v51 }
0x3380   : > { %v11590_v49 = vadd.f32 1e-05, %v11586_v14 }
0x3381   : > { %v11589_v25 = vadd.f32 1e-05, %v11585_v56 }
0x3382   : > { %16023 = vrsqrt.f32 %v11590_v49  ;;  %v11584_v12 = vpop.xlane.xlu1 %11583 }
0x3383   : > { %16025 = vrsqrt.f32 %v11589_v25  ;;  %v11588_v31 = vmul.f32 0.03125, %v11584_v12  ;;  %v11581_v30 = vpop.xlane.xlu0 %11580 }
0x3384   : > { %v11587_v15 = vmul.f32 0.03125, %v11581_v30 }
0x3385   : > { %v11592_v13 = vadd.f32 1e-05, %v11588_v31 }
0x3386   : > { %v11591_v54 = vadd.f32 1e-05, %v11587_v15 }
0x3387   : > { %16027 = vrsqrt.f32 %v11592_v13 }
0x3388   : > { %16029 = vrsqrt.f32 %v11591_v54 }
0x3389   : > { %16031 = vpow2.f32 %v12550_v39 }
0x338a   : > { %16033 = vpow2.f32 %v12549_v5 }
0x338c   : > { %v16024_v36 = vpop.eup %16023 }
0x338d   : > { %v16026_v19 = vpop.eup %16025  ;;  %v11598_v48 = vmul.f32 %v16024_v36, %v11566_v42  ;;  %v12552_v42 = vmul.f32 -1.442695, %v19382_v61 }
0x338e   : > { %v11597_v21 = vmul.f32 %v16026_v19, %v11565_v41  ;;  %v12551_v41 = vmul.f32 -1.442695, %v19385_v57 }
0x338f   : > { %v11608_v34 = vmul.f32 %v12542_v23, %v11598_v48  ;;  %16035 = vpow2.f32 %v12552_v42 }
0x3390   : > { %v11607_v6 = vmul.f32 %v12542_v23, %v11597_v21  ;;  %16037 = vpow2.f32 %v12551_v41 }
0x3391   : > { %v16028_v24 = vpop.eup %16027  ;;  %v11618_v16 = vadd.f32 %v12543_v52, %v11608_v34 }
0x3392   : > { %v16030_v55 = vpop.eup %16029  ;;  %v11617_v32 = vadd.f32 %v12543_v52, %v11607_v6  ;;  %v11600_v37 = vmul.f32 %v16028_v24, %v11568_v28 }
0x3393   : > { %v11599_v35 = vmul.f32 %v16030_v55, %v11567_v10  ;;  %v16032_v28 = vpop.eup %16031 }
0x3394   : > { %14511 = vmatprep.mubr.msk.f32.mxu1 %vm1729_vm0, %v11617_v32  ;;  %v11610_v45 = vmul.f32 %v12542_v23, %v11600_v37  ;;  %v16034_v10 = vpop.eup %16033  ;;  %v11742_v18 = vadd.f32 1.0, %v16032_v28 }
0x3395   : > { %14512 = vmatmul.mubr.msk.f32.vlgmr.msra.gmra.mrb[178].mxu1 %vm1729_vm0, %v11618_v16  ;;  %v11609_v0 = vmul.f32 %v12542_v23, %v11599_v35  ;;  %v11741_v50 = vadd.f32 1.0, %v16034_v10 }
0x3396   : > { %v11620_v33 = vadd.f32 %v12543_v52, %v11610_v45 }
0x3397   : > { %v11619_v8 = vadd.f32 %v12543_v52, %v11609_v0 }
0x3399   : > { %14514 = vmatprep.mubr.msk.f32.mxu1 %vm1729_vm0, %v11619_v8  ;;  %v16036_v11 = vpop.eup %16035 }
0x339a   : > { %14515 = vmatmul.mubr.msk.f32.gmra.mrb[180].mxu1 %vm1729_vm0, %v11620_v33  ;;  %v16038_v9 = vpop.eup %16037  ;;  %v11744_v53 = vadd.f32 1.0, %v16036_v11 }
0x339b   : > { %v11743_v62 = vadd.f32 1.0, %v16038_v9 }
0x3468   : > { %v14513_v44 = vpop.f32.mrb[178].mxu1 }
0x3469   : > { %v11716_v4 = vadd.f32 %v14513_v44, %v12544_v63  ;;  %v11710_v3 = vpop.f32.mrb[179].mxu1 }
0x346a   : > { %v11711_v47 = vadd.f32 %v12544_v63, %v11710_v3 }
0x346b   : > { %v12554_v26 = vmul.f32 -1.442695, %v11716_v4 }
0x346c   : > { %v12553_v59 = vmul.f32 -1.442695, %v11711_v47 }
0x346d   : > { %16039 = vpow2.f32 %v12554_v26  ;;  %v14516_v2 = vpop.f32.mrb[180].mxu1 }
0x346e   : > { %16041 = vpow2.f32 %v12553_v59  ;;  %v11726_v7 = vadd.f32 %v14516_v2, %v12544_v63  ;;  %v11720_v22 = vpop.f32.mrb[181].mxu1 }
0x346f   : > { %v11721_v46 = vadd.f32 %v12544_v63, %v11720_v22 }
0x3470   : > { %v12556_v29 = vmul.f32 -1.442695, %v11726_v7 }
0x3471   : > { %v12555_v60 = vmul.f32 -1.442695, %v11721_v46 }
0x3472   : > { %16043 = vpow2.f32 %v12556_v29 }
0x3473   : > { %16045 = vpow2.f32 %v12555_v60 }
0x3474   : > { %16047 = vrcp.f32 %v11742_v18 }
0x3475   : > { %16049 = vrcp.f32 %v11741_v50 }
0x3477   : > { %v16040_v27 = vpop.eup %16039 }
0x3478   : > { %v16042_v17 = vpop.eup %16041  ;;  %v11770_v58 = vadd.f32 1.0, %v16040_v27 }
0x3479   : > { %v11769_v38 = vadd.f32 1.0, %v16042_v17 }
0x347a   : > { %16051 = vrcp.f32 %v11770_v58 }
0x347b   : > { %16053 = vrcp.f32 %v11769_v38 }
0x347c   : > { %v16044_v43 = vpop.eup %16043  ;;  %16055 = vrcp.f32 %v11744_v53 }
0x347d   : > { %v16046_v14 = vpop.eup %16045  ;;  %v11772_v51 = vadd.f32 1.0, %v16044_v43  ;;  %16057 = vrcp.f32 %v11743_v62 }
0x347e   : > { %v11771_v56 = vadd.f32 1.0, %v16046_v14  ;;  %v16048_v49 = vpop.eup %16047 }
0x347f   : > { %16059 = vrcp.f32 %v11772_v51  ;;  %v16050_v25 = vpop.eup %16049  ;;  %v11754_v30 = vmul.f32 %v16048_v49, %v9616_v1 }
0x3480   : > { %16061 = vrcp.f32 %v11771_v56  ;;  %v11753_v13 = vmul.f32 %v16050_v25, %v9611_v20 }
0x3484   : > { %v16052_v12 = vpop.eup %16051 }
0x3485   : > { %v16054_v31 = vpop.eup %16053  ;;  %v11782_v15 = vmul.f32 %v16052_v12, %v11716_v4 }
0x3486   : > { %v11781_v54 = vmul.f32 %v16054_v31, %v11711_v47  ;;  %v16056_v36 = vpop.eup %16055 }
0x3487   : > { %v11786_v23 = vadd.f32 %v11782_v15, %v11754_v30  ;;  %v16058_v19 = vpop.eup %16057  ;;  %v11756_v34 = vmul.f32 %v16056_v36, %v19382_v61 }
0x3488   : > { %v11785_v48 = vadd.f32 %v11781_v54, %v11753_v13  ;;  %v11755_v24 = vmul.f32 %v16058_v19, %v19385_v57 }
0x3489   : > { %v16060_v21 = vpop.eup %16059  ;;  %11790 = vst.msk [vmem:[%s1677_s18 + $0x8] sm:$0xff] %vm1729_vm0, %v11786_v23 }
0x348a   : > { %v16062_v52 = vpop.eup %16061  ;;  %11789 = vst.msk [vmem:[%s1677_s18] sm:$0xff] %vm1729_vm0, %v11785_v48  ;;  %v11784_v6 = vmul.f32 %v16060_v21, %v11726_v7 }
0x348b   : > { %v11783_v55 = vmul.f32 %v16062_v52, %v11721_v46 }
0x348c   : > { %v11788_v32 = vadd.f32 %v11784_v6, %v11756_v34 }
0x348d   : > { %v11787_v37 = vadd.f32 %v11783_v55, %v11755_v24 }
0x348e   : > { %11792 = vst.msk [vmem:[%s1677_s18 + $0x18] sm:$0xff] %vm1729_vm0, %v11788_v32 }
0x348f   : > { %11791 = vst.msk [vmem:[%s1677_s18 + $0x10] sm:$0xff] %vm1729_vm0, %v11787_v37 }
0x3490   : > { %16225 = shalt.err (!%p16222_p9)
}
0x3491   : > { %s16226_s18 = scalar_lea.hbm %s19398_s1, 512  ;;  %s16230_s0 = scalar_lea.hbm %s16630_s6, 1024 }
0x3492   : > { %p16227_p10 = scmp.ne.s32.totalorder %s19398_s1, %s16226_s18  ;;  %p16231_p11 = scmp.lt.u32.totalorder %s19398_s1, %s16630_s6 }
0x3493   : > { %p16232_p12 = scmp.lt.u32.totalorder %s16230_s0, %s16226_s18  ;;  %p16234_p1 = scmp.lt.u32.totalorder %s16226_s18, %s19398_s1 }
0x3494   : > { %p16228_p0 = pnand %p16227_p10, %p19879_p2 }
0x3495   : > { %p16233_p13 = por %p16232_p12, %p16231_p11 }
0x3496   : > { %p16229_p8 = pneg %p16228_p0 }
0x3497   : > { %p16235_p3 = por %p16234_p1, %p16233_p13 }
0x3499   : > { %p16236_p4 = pnand %p16235_p3, %p16229_p8 }
0x349b   : > { %16239 = shalt.err (!%p16236_p4)
}
0x349c   : > { %s16350_s8 = smov 128   ;;  %s16351_s5 = smov 8  }
0x349d   : > { %15335 = dma.vmem_to_hbm [thread:$0]  (%p19879_p2), %s19400_s2, 512, %s19398_s1, %s19406_s3, %s16350_s8, %s16350_s8, %s16351_s5  }
0x349e PF: > { %s19880_s4 = sld [smem:[#allocation59_spill]]  ;;  %p15362_p7 = scmp.ge.s32.totalorder %s16286_s22, 2 }
0x349f   : > { %s11822_s11 = sand.u32 1, %s16274_s15  }
0x34a0   : > { %s11823_s18 = scalar_lea.sflag [#allocation4], %s11822_s11 }
0x34a4   : > { %p19881_p6 = scmp.ne.s32.totalorder %s19880_s4, 0 }
0x34a6   : > { %p15351_p5 = pnand %p15362_p7, %p19881_p6 }
0x34a8   : > { %16269 = dma.done.wait (!%p15351_p5), %s11823_s18, 512  }
0x34a9   : > { %16271 = vsyncadd (!%p15351_p5), %s11823_s18, 4294966784  ;;  %s19882_s22 = sld [smem:[#allocation57_spill]]  ;;  %s19883_s0 = sld [smem:[#allocation56_spill]] }
0x34aa   : > { %s19884_s18 = sld [smem:[#allocation58_spill]]  ;;  %s19885_s15 = smov %s16278_s16 }
0x34af   : > { %p122_p9 = scmp.ge.s32.totalorder %s19882_s22, 4   ;;  %s19886_s16 = smov %s19883_s0 }
0x34b1   :  { %124 = sbr.rel (!%p122_p9) target bundleno = 107 (0x6b), region = 362 }
0x34b8   :  { %11828 = vsyncpa [#allocation3], 1 }
0x34b9   :  { %11830 = vsyncpa [#allocation3 + $0x1], 1 }
0x34ba   :  { %11831 = vsyncpa [#allocation8], 1 }
0x34bb   :  { %11832 = vsyncpa [#allocation4], 1 }
0x34bc   :  { %11834 = vsyncpa [#allocation4 + $0x1], 1 }
0x34bd   :  { %11835 = vsyncpa [#allocation5], 1 }
0x34be   :  { %11837 = vsyncpa [#allocation5 + $0x1], 1 }

</bundles_post_ra>
